<compile_context>
chip_gen: v5e
topology: v5e:2x2
jax: 0.10.0
libtpu: 0.0.40
codegen_flags: <defaults>
</compile_context>

<pallas_src>
import jax
import jax.numpy as jnp
from jax.experimental import pallas as pl
from jax.experimental.pallas import tpu as pltpu

# Model dims (MNIST): 1x28x28 input -> 784 -> 256 -> 128 -> 10
IN_DIM = 28 * 28          # 784
IN_PAD = 896              # 7 * 128: lane-multiple K (zero-padded)
H1 = 256
FEAT = 128
NUM_CLASSES = 10
OUT_PAD = 128             # lane-dense output block; real logits are [:, :10]
TB = 512                  # batch tile: multiple of 256 (MXU rows), amortizes grid overhead
COMPUTE_DTYPE = jnp.bfloat16


def _mnist_classifier_kernel(x_ref, w1_ref, b1_ref, w2_ref, b2_ref,
                             w3_ref, b3_ref, out_ref):
    # encoder layer 1: Linear(784 (padded 896), 256) + ReLU  (bf16 MXU, f32 accumulate)
    h1 = jnp.dot(x_ref[...], w1_ref[...], preferred_element_type=jnp.float32)
    h1 = jnp.maximum(h1 + b1_ref[...], 0.0)
    # encoder layer 2: Linear(256, 128) + ReLU
    h2 = jnp.dot(h1.astype(w2_ref.dtype), w2_ref[...],
                 preferred_element_type=jnp.float32)
    h2 = jnp.maximum(h2 + b2_ref[...], 0.0)
    # classifier: Linear(128, 10 -> padded 128): lane-dense unmasked store
    logits = jnp.dot(h2.astype(w3_ref.dtype), w3_ref[...],
                     preferred_element_type=jnp.float32)
    out_ref[...] = logits + b3_ref[...]


def mnist_classifier_forward(x_nchw, params):
    """x_nchw: (B, 1, 28, 28) float32  ->  logits (B, 10) float32."""
    B = x_nchw.shape[0]
    w1, b1, w2, b2, w3, b3 = params

    # glue: flatten NCHW, pad K 784->896 (zero cols), pad batch to multiple of TB
    x = x_nchw.reshape(B, -1).astype(jnp.float32)
    x = jnp.pad(x, ((0, 0), (0, IN_PAD - IN_DIM)))
    b_pad = pl.cdiv(B, TB) * TB
    x = jnp.pad(x, ((0, b_pad - B), (0, 0))).astype(COMPUTE_DTYPE)

    # weights: zero-pad K rows of w1, zero-pad w3/b3 to 128 output lanes; bf16 for MXU
    w1p = jnp.pad(w1, ((0, IN_PAD - IN_DIM), (0, 0))).astype(COMPUTE_DTYPE)
    w2p = w2.astype(COMPUTE_DTYPE)
    w3p = jnp.pad(w3, ((0, 0), (0, OUT_PAD - NUM_CLASSES))).astype(COMPUTE_DTYPE)
    b1p = b1.astype(jnp.float32)
    b2p = b2.astype(jnp.float32)
    b3p = jnp.pad(b3, ((0, 0), (0, OUT_PAD - NUM_CLASSES))).astype(jnp.float32)

    # weights/biases: constant index_map -> fetched once, VMEM-resident across the grid
    resident = lambda shape: pl.BlockSpec(shape, lambda i: (0, 0))

    out = pl.pallas_call(
        _mnist_classifier_kernel,
        out_shape=jax.ShapeDtypeStruct((b_pad, OUT_PAD), jnp.float32),
        grid=(b_pad // TB,),
        in_specs=[
            pl.BlockSpec((TB, IN_PAD), lambda i: (i, 0)),      # activations: tiled on batch
            resident((IN_PAD, H1)), resident((1, H1)),
            resident((H1, FEAT)), resident((1, FEAT)),
            resident((FEAT, OUT_PAD)), resident((1, OUT_PAD)),
        ],
        out_specs=pl.BlockSpec((TB, OUT_PAD), lambda i: (i, 0)),
        compiler_params=pltpu.CompilerParams(
            dimension_semantics=("parallel",),                 # v7x: shard batch over 2 TCs
        ),
    )(x, w1p, b1p, w2p, b2p, w3p, b3p)

    return out[:B, :NUM_CLASSES]


def init_params(key):
    """Deterministic PyTorch-style (uniform +/- 1/sqrt(fan_in)) init."""
    def linear(key, fan_in, fan_out):
        kw, kb = jax.random.split(key)
        bound = 1.0 / jnp.sqrt(float(fan_in))
        w = jax.random.uniform(kw, (fan_in, fan_out), jnp.float32, -bound, bound)
        b = jax.random.uniform(kb, (1, fan_out), jnp.float32, -bound, bound)
        return w, b

    k1, k2, k3 = jax.random.split(key, 3)
    w1, b1 = linear(k1, IN_DIM, H1)
    w2, b2 = linear(k2, H1, FEAT)
    w3, b3 = linear(k3, FEAT, NUM_CLASSES)
    return (w1, b1, w2, b2, w3, b3)


if __name__ == "__main__":
    key = jax.random.PRNGKey(0)
    k_params, k_x = jax.random.split(key)

    params = init_params(k_params)
    B = 8
    x = jax.random.normal(k_x, (B, 1, 28, 28), jnp.float32)   # NCHW like PyTorch

    logits = mnist_classifier_forward(x, params)
    jax.block_until_ready(logits)

    # sanity: plain-JAX reference with the same bf16 matmul inputs / f32 accumulation
    xf = x.reshape(B, -1)
    w1, b1, w2, b2, w3, b3 = params
    cd = COMPUTE_DTYPE
    ref = jnp.maximum(jnp.dot(xf.astype(cd), w1.astype(cd),
                              preferred_element_type=jnp.float32) + b1, 0.0)
    ref = jnp.maximum(jnp.dot(ref.astype(cd), w2.astype(cd),
                              preferred_element_type=jnp.float32) + b2, 0.0)
    ref = jnp.dot(ref.astype(cd), w3.astype(cd),
                  preferred_element_type=jnp.float32) + b3

    assert logits.shape == (B, NUM_CLASSES)
    assert jnp.allclose(logits, ref, atol=2e-2, rtol=2e-2)

    print("KERNEL_OK")
</pallas_src>

<mosaic_0001>
module attributes {stable_mosaic.version = 11 : i64} {
  func.func @_mnist_classifier_kernel(%arg0: i32, %arg1: memref<512x896xbf16, #tpu.memory_space<vmem>>, %arg2: memref<896x256xbf16, #tpu.memory_space<vmem>>, %arg3: memref<1x256xf32, #tpu.memory_space<vmem>>, %arg4: memref<256x128xbf16, #tpu.memory_space<vmem>>, %arg5: memref<1x128xf32, #tpu.memory_space<vmem>>, %arg6: memref<128x128xbf16, #tpu.memory_space<vmem>>, %arg7: memref<1x128xf32, #tpu.memory_space<vmem>>, %arg8: memref<512x128xf32, #tpu.memory_space<vmem>>) attributes {dimension_semantics = [#tpu.dimension_semantics<parallel>], iteration_bounds = array<i64: 1>, scalar_prefetch = 0 : i64, scratch_operands = 0 : i64, tpu.core_type = #tpu.core_type<tc>, window_params = [{transform_indices = @transform_0, window_bounds = array<i64: 512, 896>}, {pipeline_mode = #tpu.pipeline_mode<synchronous>, transform_indices = @transform_1, window_bounds = array<i64: 896, 256>}, {pipeline_mode = #tpu.pipeline_mode<synchronous>, transform_indices = @transform_2, window_bounds = array<i64: 1, 256>}, {pipeline_mode = #tpu.pipeline_mode<synchronous>, transform_indices = @transform_3, window_bounds = array<i64: 256, 128>}, {pipeline_mode = #tpu.pipeline_mode<synchronous>, transform_indices = @transform_4, window_bounds = array<i64: 1, 128>}, {pipeline_mode = #tpu.pipeline_mode<synchronous>, transform_indices = @transform_5, window_bounds = array<i64: 128, 128>}, {pipeline_mode = #tpu.pipeline_mode<synchronous>, transform_indices = @transform_6, window_bounds = array<i64: 1, 128>}, {transform_indices = @transform_7, window_bounds = array<i64: 512, 128>}]} {
    %c0 = arith.constant 0 : index
    %c0_0 = arith.constant 0 : index
    %0 = vector.load %arg1[%c0, %c0_0] : memref<512x896xbf16, #tpu.memory_space<vmem>>, vector<512x896xbf16>
    %c0_1 = arith.constant 0 : index
    %c0_2 = arith.constant 0 : index
    %1 = vector.load %arg2[%c0_1, %c0_2] : memref<896x256xbf16, #tpu.memory_space<vmem>>, vector<896x256xbf16>
    %cst = arith.constant dense<0.000000e+00> : vector<512x256xf32>
    %2 = tpu.matmul %0, %1, %cst {dimension_numbers = #tpu.dot_dimension_numbers<[1], [0], [0], [1], [0, 0, 1, 1], [], []>} : vector<512x896xbf16>, vector<896x256xbf16>, vector<512x256xf32> -> vector<512x256xf32>
    %c0_3 = arith.constant 0 : index
    %c0_4 = arith.constant 0 : index
    %3 = vector.load %arg3[%c0_3, %c0_4] : memref<1x256xf32, #tpu.memory_space<vmem>>, vector<1x256xf32>
    %4 = vector.broadcast %3 : vector<1x256xf32> to vector<512x256xf32>
    %5 = arith.addf %2, %4 : vector<512x256xf32>
    %cst_5 = arith.constant 0.000000e+00 : f32
    %6 = vector.broadcast %cst_5 : f32 to vector<512x256xf32>
    %7 = arith.maximumf %5, %6 : vector<512x256xf32>
    %8 = arith.truncf %7 : vector<512x256xf32> to vector<512x256xbf16>
    %c0_6 = arith.constant 0 : index
    %c0_7 = arith.constant 0 : index
    %9 = vector.load %arg4[%c0_6, %c0_7] : memref<256x128xbf16, #tpu.memory_space<vmem>>, vector<256x128xbf16>
    %cst_8 = arith.constant dense<0.000000e+00> : vector<512x128xf32>
    %10 = tpu.matmul %8, %9, %cst_8 {dimension_numbers = #tpu.dot_dimension_numbers<[1], [0], [0], [1], [0, 0, 1, 1], [], []>} : vector<512x256xbf16>, vector<256x128xbf16>, vector<512x128xf32> -> vector<512x128xf32>
    %c0_9 = arith.constant 0 : index
    %c0_10 = arith.constant 0 : index
    %11 = vector.load %arg5[%c0_9, %c0_10] : memref<1x128xf32, #tpu.memory_space<vmem>>, vector<1x128xf32>
    %12 = vector.broadcast %11 : vector<1x128xf32> to vector<512x128xf32>
    %13 = arith.addf %10, %12 : vector<512x128xf32>
    %cst_11 = arith.constant 0.000000e+00 : f32
    %14 = vector.broadcast %cst_11 : f32 to vector<512x128xf32>
    %15 = arith.maximumf %13, %14 : vector<512x128xf32>
    %16 = arith.truncf %15 : vector<512x128xf32> to vector<512x128xbf16>
    %c0_12 = arith.constant 0 : index
    %c0_13 = arith.constant 0 : index
    %17 = vector.load %arg6[%c0_12, %c0_13] : memref<128x128xbf16, #tpu.memory_space<vmem>>, vector<128x128xbf16>
    %cst_14 = arith.constant dense<0.000000e+00> : vector<512x128xf32>
    %18 = tpu.matmul %16, %17, %cst_14 {dimension_numbers = #tpu.dot_dimension_numbers<[1], [0], [0], [1], [0, 0, 1, 1], [], []>} : vector<512x128xbf16>, vector<128x128xbf16>, vector<512x128xf32> -> vector<512x128xf32>
    %c0_15 = arith.constant 0 : index
    %c0_16 = arith.constant 0 : index
    %19 = vector.load %arg7[%c0_15, %c0_16] : memref<1x128xf32, #tpu.memory_space<vmem>>, vector<1x128xf32>
    %20 = vector.broadcast %19 : vector<1x128xf32> to vector<512x128xf32>
    %21 = arith.addf %18, %20 : vector<512x128xf32>
    %c0_17 = arith.constant 0 : index
    %c0_18 = arith.constant 0 : index
    %22 = vector.load %arg8[%c0_17, %c0_18] : memref<512x128xf32, #tpu.memory_space<vmem>>, vector<512x128xf32>
    tpu.vector_store %arg8[%c0_17, %c0_18], %21 {strides = array<i32>} : memref<512x128xf32, #tpu.memory_space<vmem>>, vector<512x128xf32>,
    return
  }
  func.func @transform_0(%arg0: i32) -> (i32, i32) {
    %c0_i32 = arith.constant 0 : i32
    %c0_i32_0 = arith.constant 0 : i32
    return %arg0, %c0_i32 : i32, i32
  }
  func.func @transform_1(%arg0: i32) -> (i32, i32) {
    %c0_i32 = arith.constant 0 : i32
    %c0_i32_0 = arith.constant 0 : i32
    %c0_i32_1 = arith.constant 0 : i32
    return %c0_i32, %c0_i32_0 : i32, i32
  }
  func.func @transform_2(%arg0: i32) -> (i32, i32) {
    %c0_i32 = arith.constant 0 : i32
    %c0_i32_0 = arith.constant 0 : i32
    %c0_i32_1 = arith.constant 0 : i32
    return %c0_i32, %c0_i32_0 : i32, i32
  }
  func.func @transform_3(%arg0: i32) -> (i32, i32) {
    %c0_i32 = arith.constant 0 : i32
    %c0_i32_0 = arith.constant 0 : i32
    %c0_i32_1 = arith.constant 0 : i32
    return %c0_i32, %c0_i32_0 : i32, i32
  }
  func.func @transform_4(%arg0: i32) -> (i32, i32) {
    %c0_i32 = arith.constant 0 : i32
    %c0_i32_0 = arith.constant 0 : i32
    %c0_i32_1 = arith.constant 0 : i32
    return %c0_i32, %c0_i32_0 : i32, i32
  }
  func.func @transform_5(%arg0: i32) -> (i32, i32) {
    %c0_i32 = arith.constant 0 : i32
    %c0_i32_0 = arith.constant 0 : i32
    %c0_i32_1 = arith.constant 0 : i32
    return %c0_i32, %c0_i32_0 : i32, i32
  }
  func.func @transform_6(%arg0: i32) -> (i32, i32) {
    %c0_i32 = arith.constant 0 : i32
    %c0_i32_0 = arith.constant 0 : i32
    %c0_i32_1 = arith.constant 0 : i32
    return %c0_i32, %c0_i32_0 : i32, i32
  }
  func.func @transform_7(%arg0: i32) -> (i32, i32) {
    %c0_i32 = arith.constant 0 : i32
    %c0_i32_0 = arith.constant 0 : i32
    return %arg0, %c0_i32 : i32, i32
  }
}

</mosaic_0001>

<bundles_post_ra>
// kernel: tpu_custom_call.1
= control target key start
LH: loop header
LB: loop body
LE: loop exit
PB: predicated region body
PF: predicated region fallthrough
CT: control target
= control target key end

     0   :  { %12 = vsyncpa [#allocation3], 0  ;;  %s9957_s0 = inlined_call_operand.hbm [shape: bf16[512,896], index: 0, kind: input, shape index: {}]   ;;  %s9958_s1 = inlined_call_operand.hbm [shape: bf16[896,256], index: 1, kind: input, shape index: {}]   ;;  %s9959_s2 = inlined_call_operand.hbm [shape: f32[1,256], index: 2, kind: input, shape index: {}]   ;;  %s9960_s3 = inlined_call_operand.hbm [shape: bf16[256,128], index: 3, kind: input, shape index: {}]   ;;  %s9961_s4 = inlined_call_operand.vmem [shape: f32[1,128], index: 4, kind: input, shape index: {}]   ;;  %s9962_s5 = inlined_call_operand.hbm [shape: bf16[128,128], index: 5, kind: input, shape index: {}]   ;;  %s9963_s6 = inlined_call_operand.vmem [shape: f32[1,128], index: 6, kind: input, shape index: {}]   ;;  %s9964_s7 = inlined_call_operand.hbm [shape: f32[512,128], index: 7, kind: output, shape index: {}]  }
   0x1   :  { %13 = vsyncpa [#allocation6], 0 }
   0x2   :  { %14 = vsyncpa [#allocation9], 0  ;;  %s33_s26 = sshll.u32 %s9958_s1, 4  ;;  %s34_s26 = int_to_ptr.hbm [resolvable:$true] %s33_s26 }
   0x3   :  { %15 = vsyncpa [#allocation4], 0  ;;  %s7628_s27 = smov [#allocation5]   ;;  %s57_s8 = sshll.u32 %s9960_s3, 4  ;;  %s58_s8 = int_to_ptr.hbm [resolvable:$true] %s57_s8 }
   0x4   :  { %s35_s28 = sshll.u32 %s7628_s27, 4  ;;  %s7629_s9 = smov 128   ;;  %s36_s28 = int_to_ptr.vmem [resolvable:$true] %s35_s28 }
   0x5   :  { %s7630_s10 = smov 8   ;;  %s7631_s11 = smov [#allocation8]  }
   0x6   :  { %41 = dma.hbm_to_vmem [thread:$0]  %s34_s26, 14336, %s36_s28, [#allocation6], %s7629_s9, %s7629_s9, %s7630_s10  }
   0x7   :  { %s59_s12 = sshll.u32 %s7631_s11, 4  ;;  %s7632_s1 = smov 64   ;;  %s60_s12 = int_to_ptr.vmem [resolvable:$true] %s59_s12 }
   0x8   :  { %s7633_s13 = smov 4   ;;  %s20_s16 = sshll.u32 %s9957_s0, 4  ;;  %s21_s16 = int_to_ptr.hbm [resolvable:$true] %s20_s16 }
   0x9   :  { %65 = dma.hbm_to_vmem [thread:$0]  %s58_s8, 2048, %s60_s12, [#allocation9], %s7632_s1, %s7632_s1, %s7633_s13  }
   0xa   :  { %s7634_s17 = smov [#allocation2]   ;;  %s47_s20 = sshll.u32 %s9959_s2, 4  ;;  %s48_s20 = int_to_ptr.hbm [resolvable:$true] %s47_s20 }
   0xb   :  { %s22_s3 = sshll.u32 %s7634_s17, 4  ;;  %s7635_s21 = smov 448   ;;  %s23_s3 = int_to_ptr.vmem [resolvable:$true] %s22_s3 }
   0xc   :  { %s7636_s22 = smov 28   ;;  %s7637_s23 = smov [#allocation7]  }
   0xd   :  { %28 = dma.hbm_to_vmem [thread:$0]  %s21_s16, 28672, %s23_s3, [#allocation3], %s7635_s21, %s7635_s21, %s7636_s22  }
   0xe   :  { %s49_s24 = sshll.u32 %s7637_s23, 4  ;;  %s72_s27 = sshll.u32 %s9962_s5, 4  ;;  %s50_s24 = int_to_ptr.vmem [resolvable:$true] %s49_s24  ;;  %s73_s27 = int_to_ptr.hbm [resolvable:$true] %s72_s27 }
   0xf   :  { %52 = dma.hbm_to_vmem [thread:$0]  %s48_s20, 32, %s50_s24, [#allocation6]  }
  0x10   :  { %s7638_s0 = smov [#allocation10]  }
  0x11   :  { %s74_s28 = sshll.u32 %s7638_s0, 4  ;;  %s75_s28 = int_to_ptr.vmem [resolvable:$true] %s74_s28 }
  0x12   :  { %80 = dma.hbm_to_vmem [thread:$0]  %s73_s27, 1024, %s75_s28, [#allocation9], %s7632_s1, %s7632_s1, %s7633_s13  }
  0x13   :  { %7620 = dma.done.wait [#allocation3], 28672  }
  0x14   :  { %7621 = vsyncadd [#allocation3], 4294938624 }
  0x15   :  { %7622 = dma.done.wait [#allocation6], 14368  }
  0x16   :  { %7623 = vsyncadd [#allocation6], 4294952928 }
  0x17   :  { %7624 = dma.done.wait [#allocation9], 3072  }
  0x18   :  { %7625 = vsyncadd [#allocation9], 4294964224  ;;  %v6589_v0 = vld [vmem:[#allocation5 + $0x70] sm:$0xf]  ;;  %v7314_v1 = vld [vmem:[#allocation5 + $0x74] sm:$0xf0] }
  0x19   :  { %v6581_v2 = vld [vmem:[#allocation5 + $0x60] sm:$0xf]  ;;  %v6590_v3 = vor.u32 %v7314_v1, %v6589_v0  ;;  %v7312_v4 = vld [vmem:[#allocation5 + $0x64] sm:$0xf0]  ;;  %v6573_v6 = vld [vmem:[#allocation5 + $0x50] sm:$0xf] }
  0x1a   :  { %v6582_v5 = vor.u32 %v7312_v4, %v6581_v2  ;;  %v7310_v7 = vld [vmem:[#allocation5 + $0x54] sm:$0xf0]  ;;  %v6565_v9 = vld [vmem:[#allocation5 + $0x40] sm:$0xf]  ;;  %v7308_v10 = vld [vmem:[#allocation5 + $0x44] sm:$0xf0] }
  0x1b   :  { %7435 = vmatpush.bf16.msra.mxu1 %v6590_v3  ;;  %7436 = vmatpush.bf16.msra.mxu2 %v6590_v3  ;;  %v6574_v8 = vor.u32 %v7310_v7, %v6573_v6  ;;  %v6566_v11 = vor.u32 %v7308_v10, %v6565_v9  ;;  %v6557_v12 = vld [vmem:[#allocation5 + $0x30] sm:$0xf]  ;;  %v7306_v13 = vld [vmem:[#allocation5 + $0x34] sm:$0xf0]  ;;  %v6549_v15 = vld [vmem:[#allocation5 + $0x20] sm:$0xf] }
  0x1c   :  { %7437 = vmatpush.bf16.msra.mxu3 %v6590_v3  ;;  %2189 = vmatpush.bf16.msra.mxu0 %v6590_v3  ;;  %v6558_v14 = vor.u32 %v7306_v13, %v6557_v12  ;;  %v7304_v16 = vld [vmem:[#allocation5 + $0x24] sm:$0xf0]  ;;  %v6541_v18 = vld [vmem:[#allocation5 + $0x10] sm:$0xf]  ;;  %v7302_v19 = vld [vmem:[#allocation5 + $0x14] sm:$0xf0] }
  0x1d   :  { %v6550_v17 = vor.u32 %v7304_v16, %v6549_v15  ;;  %v6542_v20 = vor.u32 %v7302_v19, %v6541_v18  ;;  %v6533_v21 = vld [vmem:[#allocation5] sm:$0xf]  ;;  %v7300_v22 = vld [vmem:[#allocation5 + $0x4] sm:$0xf0]  ;;  %v6653_v23 = vld [vmem:[#allocation5 + $0xf0] sm:$0xf] }
  0x1e   :  { %v7330_v24 = vld [vmem:[#allocation5 + $0xf4] sm:$0xf0]  ;;  %v5861_v25 = vld [vmem:[#allocation2 + $0x1c0] sm:$0xf]  ;;  %v6534_v26 = vor.u32 %v7300_v22, %v6533_v21  ;;  %v7134_v27 = vld [vmem:[#allocation2 + $0x1d8] sm:$0xf0] }
  0x1f   :  { %7438 = vmatpush.bf16.msra.mxu1 %v6582_v5  ;;  %7439 = vmatpush.bf16.msra.mxu2 %v6582_v5  ;;  %v6085_v28 = vld [vmem:[#allocation2 + $0x380] sm:$0xf]  ;;  %v7190_v29 = vld [vmem:[#allocation2 + $0x398] sm:$0xf0]  ;;  %v6654_v30 = vor.u32 %v7330_v24, %v6653_v23  ;;  %v7328_v36 = vld [vmem:[#allocation5 + $0xe4] sm:$0xf0]  ;;  %v7698_v37 = vor.u32 %v7134_v27, %v5861_v25 }
  0x20   :  { %7440 = vmatpush.bf16.msra.mxu3 %v6582_v5  ;;  %2190 = vmatpush.bf16.msra.mxu0 %v6582_v5  ;;  %v6309_v31 = vld [vmem:[#allocation2 + $0x540] sm:$0xf]  ;;  %v7246_v32 = vld [vmem:[#allocation2 + $0x558] sm:$0xf0]  ;;  %v7700_v38 = vor.u32 %v7190_v29, %v6085_v28  ;;  %v6637_v42 = vld [vmem:[#allocation5 + $0xd0] sm:$0xf] }
  0x21   :  { %v5637_v33 = vld [vmem:[#allocation2] sm:$0xf]  ;;  %v7078_v34 = vld [vmem:[#allocation2 + $0x18] sm:$0xf0]  ;;  %10170 = vst [vmem:[#allocation16_spill] sm:$0xff] %v7698_v37  ;;  %v7702_v39 = vor.u32 %v7246_v32, %v6309_v31  ;;  %s5620_s15 = sshll.u32 %s9964_s7, 4  ;;  %s5621_s15 = int_to_ptr.hbm [resolvable:$true] %s5620_s15 }
  0x22   :  { %v6645_v35 = vld [vmem:[#allocation5 + $0xe0] sm:$0xf]  ;;  %10171 = vst [vmem:[#allocation17_spill] sm:$0xff] %v7700_v38  ;;  %v7704_v40 = vor.u32 %v7078_v34, %v5637_v33  ;;  %v7326_v43 = vld [vmem:[#allocation5 + $0xd4] sm:$0xf0] }
  0x23   :  { %7441 = vmatpush.bf16.msra.mxu1 %v6574_v8  ;;  %7442 = vmatpush.bf16.msra.mxu2 %v6574_v8  ;;  %10172 = vst [vmem:[#allocation18_spill] sm:$0xff] %v7702_v39  ;;  %v6646_v41 = vor.u32 %v7328_v36, %v6645_v35  ;;  %v6638_v44 = vor.u32 %v7326_v43, %v6637_v42  ;;  %v5889_v45 = vld [vmem:[#allocation2 + $0x1f8] sm:$0xf]  ;;  %v7141_v46 = vld [vmem:[#allocation2 + $0x210] sm:$0xf0] }
  0x24   :  { %7443 = vmatpush.bf16.msra.mxu3 %v6574_v8  ;;  %2191 = vmatpush.bf16.msra.mxu0 %v6574_v8  ;;  %10173 = vst [vmem:[#allocation19_spill] sm:$0xff] %v7704_v40  ;;  %v6113_v47 = vld [vmem:[#allocation2 + $0x3b8] sm:$0xf]  ;;  %v7197_v48 = vld [vmem:[#allocation2 + $0x3d0] sm:$0xf0]  ;;  %v7710_v53 = vor.u32 %v7141_v46, %v5889_v45 }
  0x25   :  { %v6337_v49 = vld [vmem:[#allocation2 + $0x578] sm:$0xf]  ;;  %v7253_v50 = vld [vmem:[#allocation2 + $0x590] sm:$0xf0]  ;;  %v7712_v54 = vor.u32 %v7197_v48, %v6113_v47  ;;  %v6629_v57 = vld [vmem:[#allocation5 + $0xc0] sm:$0xf] }
  0x26   :  { %v5665_v51 = vld [vmem:[#allocation2 + $0x38] sm:$0xf]  ;;  %v7085_v52 = vld [vmem:[#allocation2 + $0x50] sm:$0xf0]  ;;  %10174 = vst [vmem:[#allocation20_spill] sm:$0xff] %v7710_v53  ;;  %v7714_v55 = vor.u32 %v7253_v50, %v6337_v49 }
  0x27   :  { %7444 = vmatpush.bf16.msra.mxu1 %v6566_v11  ;;  %7445 = vmatpush.bf16.msra.mxu2 %v6566_v11  ;;  %10175 = vst [vmem:[#allocation21_spill] sm:$0xff] %v7712_v54  ;;  %v7716_v56 = vor.u32 %v7085_v52, %v5665_v51  ;;  %v7324_v58 = vld [vmem:[#allocation5 + $0xc4] sm:$0xf0]  ;;  %v5917_v60 = vld [vmem:[#allocation2 + $0x230] sm:$0xf] }
  0x28   :  { %7446 = vmatpush.bf16.msra.mxu3 %v6566_v11  ;;  %2192 = vmatpush.bf16.msra.mxu0 %v6566_v11  ;;  %10176 = vst [vmem:[#allocation22_spill] sm:$0xff] %v7714_v55  ;;  %v6630_v59 = vor.u32 %v7324_v58, %v6629_v57  ;;  %v7148_v61 = vld [vmem:[#allocation2 + $0x248] sm:$0xf0]  ;;  %v6141_v62 = vld [vmem:[#allocation2 + $0x3f0] sm:$0xf] }
  0x29   :  { %10177 = vst [vmem:[#allocation23_spill] sm:$0xff] %v7716_v56  ;;  %v7204_v63 = vld [vmem:[#allocation2 + $0x408] sm:$0xf0]  ;;  %v6365_v0 = vld [vmem:[#allocation2 + $0x5b0] sm:$0xf]  ;;  %v7722_v4 = vor.u32 %v7148_v61, %v5917_v60 }
  0x2a   :  { %v7260_v1 = vld [vmem:[#allocation2 + $0x5c8] sm:$0xf0]  ;;  %v5693_v2 = vld [vmem:[#allocation2 + $0x70] sm:$0xf]  ;;  %v7724_v5 = vor.u32 %v7204_v63, %v6141_v62  ;;  %v7322_v9 = vld [vmem:[#allocation5 + $0xb4] sm:$0xf0] }
  0x2b   :  { %7447 = vmatpush.bf16.msra.mxu1 %v6558_v14  ;;  %7448 = vmatpush.bf16.msra.mxu2 %v6558_v14  ;;  %v7092_v3 = vld [vmem:[#allocation2 + $0x88] sm:$0xf0]  ;;  %10178 = vst [vmem:[#allocation24_spill] sm:$0xff] %v7722_v4  ;;  %v7726_v6 = vor.u32 %v7260_v1, %v6365_v0  ;;  %v6621_v8 = vld [vmem:[#allocation5 + $0xb0] sm:$0xf] }
  0x2c   :  { %7449 = vmatpush.bf16.msra.mxu3 %v6558_v14  ;;  %2193 = vmatpush.bf16.msra.mxu0 %v6558_v14  ;;  %10179 = vst [vmem:[#allocation25_spill] sm:$0xff] %v7724_v5  ;;  %v7728_v7 = vor.u32 %v7092_v3, %v5693_v2  ;;  %v6622_v10 = vor.u32 %v7322_v9, %v6621_v8  ;;  %v5945_v11 = vld [vmem:[#allocation2 + $0x268] sm:$0xf]  ;;  %v7155_v12 = vld [vmem:[#allocation2 + $0x280] sm:$0xf0] }
  0x2d   :  { %10180 = vst [vmem:[#allocation26_spill] sm:$0xff] %v7726_v6  ;;  %v6169_v13 = vld [vmem:[#allocation2 + $0x428] sm:$0xf]  ;;  %v7211_v14 = vld [vmem:[#allocation2 + $0x440] sm:$0xf0]  ;;  %v7734_v19 = vor.u32 %v7155_v12, %v5945_v11 }
  0x2e   :  { %10181 = vst [vmem:[#allocation27_spill] sm:$0xff] %v7728_v7  ;;  %v6393_v15 = vld [vmem:[#allocation2 + $0x5e8] sm:$0xf]  ;;  %v7267_v16 = vld [vmem:[#allocation2 + $0x600] sm:$0xf0] }
  0x2f   :  { %7450 = vmatpush.bf16.msra.mxu1 %v6550_v17  ;;  %7451 = vmatpush.bf16.msra.mxu2 %v6550_v17  ;;  %v7099_v18 = vld [vmem:[#allocation2 + $0xc0] sm:$0xf0]  ;;  %10182 = vst [vmem:[#allocation28_spill] sm:$0xff] %v7734_v19  ;;  %v7738_v21 = vor.u32 %v7267_v16, %v6393_v15  ;;  %v6613_v23 = vld [vmem:[#allocation5 + $0xa0] sm:$0xf] }
  0x30   :  { %7452 = vmatpush.bf16.msra.mxu3 %v6550_v17  ;;  %2194 = vmatpush.bf16.msra.mxu0 %v6550_v17  ;;  %v5721_v17 = vld [vmem:[#allocation2 + $0xa8] sm:$0xf]  ;;  %v7162_v27 = vld [vmem:[#allocation2 + $0x2b8] sm:$0xf0]  ;;  %v6197_v28 = vld [vmem:[#allocation2 + $0x460] sm:$0xf] }
  0x31   :  { %10184 = vst [vmem:[#allocation30_spill] sm:$0xff] %v7738_v21  ;;  %v7740_v22 = vor.u32 %v7099_v18, %v5721_v17  ;;  %v7320_v24 = vld [vmem:[#allocation5 + $0xa4] sm:$0xf0]  ;;  %v7218_v29 = vld [vmem:[#allocation2 + $0x478] sm:$0xf0] }
  0x32   :  { %v6614_v25 = vor.u32 %v7320_v24, %v6613_v23  ;;  %v7274_v31 = vld [vmem:[#allocation2 + $0x638] sm:$0xf0]  ;;  %v5749_v32 = vld [vmem:[#allocation2 + $0xe0] sm:$0xf]  ;;  %v7748_v35 = vor.u32 %v7218_v29, %v6197_v28  ;;  %v6717_v42 = vld [vmem:[#allocation5 + $0x170] sm:$0xf] }
  0x33   :  { %7453 = vmatpush.bf16.msra.mxu1 %v6542_v20  ;;  %7454 = vmatpush.bf16.msra.mxu2 %v6542_v20  ;;  %10185 = vst [vmem:[#allocation31_spill] sm:$0xff] %v7740_v22  ;;  %v7106_v33 = vld [vmem:[#allocation2 + $0xf8] sm:$0xf0]  ;;  %v7346_v43 = vld [vmem:[#allocation5 + $0x174] sm:$0xf0] }
  0x34   :  { %7455 = vmatpush.bf16.msra.mxu3 %v6542_v20  ;;  %2195 = vmatpush.bf16.msra.mxu0 %v6542_v20  ;;  %v7736_v20 = vor.u32 %v7211_v14, %v6169_v13  ;;  %10187 = vst [vmem:[#allocation33_spill] sm:$0xff] %v7748_v35  ;;  %v6605_v45 = vld [vmem:[#allocation5 + $0x90] sm:$0xf]  ;;  %v7318_v46 = vld [vmem:[#allocation5 + $0x94] sm:$0xf0] }
  0x35   :  { %v6781_v47 = vld [vmem:[#allocation5 + $0x1f0] sm:$0xf]  ;;  %v6606_v48 = vor.u32 %v7318_v46, %v6605_v45  ;;  %v7362_v49 = vld [vmem:[#allocation5 + $0x1f4] sm:$0xf0]  ;;  %v6709_v50 = vld [vmem:[#allocation5 + $0x160] sm:$0xf] }
  0x36   :  { %10183 = vst [vmem:[#allocation29_spill] sm:$0xff] %v7736_v20  ;;  %v7344_v51 = vld [vmem:[#allocation5 + $0x164] sm:$0xf0]  ;;  %v6782_v52 = vor.u32 %v7362_v49, %v6781_v47  ;;  %v6773_v58 = vld [vmem:[#allocation5 + $0x1e0] sm:$0xf] }
  0x37   :  { %7456 = vmatpush.bf16.msra.mxu1 %v6534_v26  ;;  %7457 = vmatpush.bf16.msra.mxu2 %v6534_v26  ;;  %v6710_v57 = vor.u32 %v7344_v51, %v6709_v50  ;;  %v6701_v60 = vld [vmem:[#allocation5 + $0x150] sm:$0xf]  ;;  %v7342_v61 = vld [vmem:[#allocation5 + $0x154] sm:$0xf0]  ;;  %v6693_v9 = vld [vmem:[#allocation5 + $0x140] sm:$0xf] }
  0x38   :  { %7458 = vmatpush.bf16.msra.mxu3 %v6534_v26  ;;  %2196 = vmatpush.bf16.msra.mxu0 %v6534_v26  ;;  %v5973_v26 = vld [vmem:[#allocation2 + $0x2a0] sm:$0xf]  ;;  %v6845_v63 = vld [vmem:[#allocation5 + $0x270] sm:$0xf]  ;;  %v6702_v0 = vor.u32 %v7342_v61, %v6701_v60  ;;  %v7358_v2 = vld [vmem:[#allocation5 + $0x1d4] sm:$0xf0] }
  0x39   :  { %v7746_v34 = vor.u32 %v7162_v27, %v5973_v26  ;;  %v6765_v1 = vld [vmem:[#allocation5 + $0x1d0] sm:$0xf]  ;;  %v7378_v3 = vld [vmem:[#allocation5 + $0x274] sm:$0xf0]  ;;  %v6837_v11 = vld [vmem:[#allocation5 + $0x260] sm:$0xf] }
  0x3a   :  { %2237 = vmatmul.bf16.vlgmr.msra.gmra.mxu1 %v7698_v37  ;;  %2277 = vmatmul.bf16.vlgmr.msra.gmra.mxu2 %v7700_v38  ;;  %v6846_v8 = vor.u32 %v7378_v3, %v6845_v63  ;;  %v7376_v12 = vld [vmem:[#allocation5 + $0x264] sm:$0xf0]  ;;  %v6001_v13 = vld [vmem:[#allocation2 + $0x2d8] sm:$0xf]  ;;  %v6766_v14 = vor.u32 %v7358_v2, %v6765_v1  ;;  %v7169_v16 = vld [vmem:[#allocation2 + $0x2f0] sm:$0xf0] }
  0x3b   :  { %2358 = vmatpush.bf16.msrb.mxu1 %v6654_v30  ;;  %2317 = vmatmul.bf16.vlgmr.msra.gmra.mxu3 %v7702_v39  ;;  %v6421_v30 = vld [vmem:[#allocation2 + $0x620] sm:$0xf]  ;;  %10186 = vst [vmem:[#allocation32_spill] sm:$0xff] %v7746_v34  ;;  %v6838_v15 = vor.u32 %v7376_v12, %v6837_v11  ;;  %v6225_v17 = vld [vmem:[#allocation2 + $0x498] sm:$0xf] }
  0x3c   :  { %2197 = vmatmul.bf16.vlgmr.msra.gmra.mxu0 %v7704_v40  ;;  %v7750_v36 = vor.u32 %v7274_v31, %v6421_v30  ;;  %2696 = vmatpush.bf16.msrb.mxu3 %v6782_v52  ;;  %v7225_v18 = vld [vmem:[#allocation2 + $0x4b0] sm:$0xf0]  ;;  %v6449_v24 = vld [vmem:[#allocation2 + $0x658] sm:$0xf]  ;;  %v6757_v28 = vld [vmem:[#allocation5 + $0x1c0] sm:$0xf]  ;;  %v7758_v30 = vor.u32 %v7169_v16, %v6001_v13 }
  0x3d   :  { %2865 = vmatpush.bf16.msrb.mxu0 %v6846_v8  ;;  %v5777_v26 = vld [vmem:[#allocation2 + $0x118] sm:$0xf]  ;;  %v7113_v27 = vld [vmem:[#allocation2 + $0x130] sm:$0xf0]  ;;  %v7356_v29 = vld [vmem:[#allocation5 + $0x1c4] sm:$0xf0]  ;;  %v7760_v31 = vor.u32 %v7225_v18, %v6225_v17 }
  0x3e   :  { %10188 = vst [vmem:[#allocation34_spill] sm:$0xff] %v7750_v36  ;;  %v6597_v46 = vld [vmem:[#allocation5 + $0x80] sm:$0xf]  ;;  %v7316_v47 = vld [vmem:[#allocation5 + $0x84] sm:$0xf0] }
  0x3f   :  { %2359 = vmatpush.bf16.msrb.mxu1 %v6646_v41  ;;  %v7752_v41 = vor.u32 %v7106_v33, %v5749_v32  ;;  %10190 = vst [vmem:[#allocation36_spill] sm:$0xff] %v7758_v30  ;;  %v7764_v33 = vor.u32 %v7113_v27, %v5777_v26  ;;  %v6598_v49 = vor.u32 %v7316_v47, %v6597_v46  ;;  %v7354_v50 = vld [vmem:[#allocation5 + $0x1b4] sm:$0xf0]  ;;  %v6829_v51 = vld [vmem:[#allocation5 + $0x250] sm:$0xf] }
  0x40   :  { %10191 = vst [vmem:[#allocation37_spill] sm:$0xff] %v7760_v31  ;;  %v7374_v52 = vld [vmem:[#allocation5 + $0x254] sm:$0xf0]  ;;  %v7336_v60 = vld [vmem:[#allocation5 + $0x124] sm:$0xf0] }
  0x41   :  { %10189 = vst [vmem:[#allocation35_spill] sm:$0xff] %v7752_v41  ;;  %2866 = vmatpush.bf16.msrb.mxu0 %v6838_v15  ;;  %v6741_v61 = vld [vmem:[#allocation5 + $0x1a0] sm:$0xf]  ;;  %v7352_v63 = vld [vmem:[#allocation5 + $0x1a4] sm:$0xf0] }
  0x42   :  { %10193 = vst [vmem:[#allocation39_spill] sm:$0xff] %v7764_v33  ;;  %v7372_v1 = vld [vmem:[#allocation5 + $0x244] sm:$0xf0]  ;;  %v6669_v3 = vld [vmem:[#allocation5 + $0x110] sm:$0xf] }
  0x43   :  { %2360 = vmatpush.bf16.msrb.mxu1 %v6638_v44  ;;  %v6718_v44 = vor.u32 %v7346_v43, %v6717_v42  ;;  %v6758_v42 = vor.u32 %v7356_v29, %v6757_v28  ;;  %v6685_v43 = vld [vmem:[#allocation5 + $0x130] sm:$0xf]  ;;  %v7334_v8 = vld [vmem:[#allocation5 + $0x114] sm:$0xf0]  ;;  %v7176_v16 = vld [vmem:[#allocation2 + $0x328] sm:$0xf0] }
  0x44   :  { %v6813_v11 = vld [vmem:[#allocation5 + $0x230] sm:$0xf]  ;;  %v7370_v12 = vld [vmem:[#allocation5 + $0x234] sm:$0xf0]  ;;  %v6661_v27 = vld [vmem:[#allocation5 + $0x100] sm:$0xf] }
  0x45   :  { %2527 = vmatpush.bf16.msrb.mxu2 %v6718_v44  ;;  %v7338_v44 = vld [vmem:[#allocation5 + $0x134] sm:$0xf0]  ;;  %v6733_v13 = vld [vmem:[#allocation5 + $0x190] sm:$0xf]  ;;  %v6814_v17 = vor.u32 %v7370_v12, %v6813_v11  ;;  %v7332_v28 = vld [vmem:[#allocation5 + $0x104] sm:$0xf0] }
  0x46   :  { %v6686_v45 = vor.u32 %v7338_v44, %v6685_v43  ;;  %v6029_v15 = vld [vmem:[#allocation2 + $0x310] sm:$0xf]  ;;  %v6662_v43 = vor.u32 %v7332_v28, %v6661_v27  ;;  %v6725_v46 = vld [vmem:[#allocation5 + $0x180] sm:$0xf]  ;;  %v7348_v47 = vld [vmem:[#allocation5 + $0x184] sm:$0xf0] }
  0x47   :  { %2361 = vmatpush.bf16.msrb.mxu1 %v6630_v59  ;;  %v7360_v59 = vld [vmem:[#allocation5 + $0x1e4] sm:$0xf0]  ;;  %v6253_v18 = vld [vmem:[#allocation2 + $0x4d0] sm:$0xf]  ;;  %v7770_v44 = vor.u32 %v7176_v16, %v6029_v15  ;;  %v7295_v12 = vld [vmem:[#allocation2 + $0x6e0] sm:$0xf0] }
  0x48   :  { %v6774_v62 = vor.u32 %v7360_v59, %v6773_v58  ;;  %v6830_v58 = vor.u32 %v7374_v52, %v6829_v51  ;;  %v6677_v59 = vld [vmem:[#allocation5 + $0x120] sm:$0xf]  ;;  %v5805_v29 = vld [vmem:[#allocation2 + $0x150] sm:$0xf]  ;;  %v6726_v52 = vor.u32 %v7348_v47, %v6725_v46  ;;  %v6505_v11 = vld [vmem:[#allocation2 + $0x6c8] sm:$0xf] }
  0x49   :  { %2528 = vmatpush.bf16.msrb.mxu2 %v6710_v57  ;;  %10194 = vst [vmem:[#allocation40_spill] sm:$0xff] %v7770_v44  ;;  %v7076_v27 = vld [vmem:[#allocation2 + $0xc] sm:$0xf]  ;;  %v5647_v28 = vld [vmem:[#allocation2 + $0x24] sm:$0xf0] }
  0x4a   :  { %2242 = vmatmul.bf16.gmra.mxu1 %v7710_v53  ;;  %2282 = vmatmul.bf16.gmra.mxu2 %v7712_v54 }
  0x4b   :  { %2322 = vmatmul.bf16.gmra.mxu3 %v7714_v55  ;;  %2362 = vmatpush.bf16.msrb.mxu1 %v6622_v10  ;;  %v7340_v10 = vld [vmem:[#allocation5 + $0x144] sm:$0xf0] }
  0x4c   :  { %2202 = vmatmul.bf16.gmra.mxu0 %v7716_v56  ;;  %2697 = vmatpush.bf16.msrb.mxu3 %v6774_v62  ;;  %v6694_v23 = vor.u32 %v7340_v10, %v6693_v9  ;;  %v6678_v62 = vor.u32 %v7336_v60, %v6677_v59  ;;  %v6670_v9 = vor.u32 %v7334_v8, %v6669_v3  ;;  %v7394_v59 = vld [vmem:[#allocation5 + $0x2f4] sm:$0xf0]  ;;  %v6797_v60 = vld [vmem:[#allocation5 + $0x210] sm:$0xf]  ;;  %v6057_v3 = vld [vmem:[#allocation2 + $0x348] sm:$0xf] }
  0x4d   :  { %2529 = vmatpush.bf16.msrb.mxu2 %v6702_v0  ;;  %v6821_v0 = vld [vmem:[#allocation5 + $0x240] sm:$0xf]  ;;  %2867 = vmatpush.bf16.msrb.mxu0 %v6830_v58  ;;  %v6742_v10 = vor.u32 %v7352_v63, %v6741_v61  ;;  %v6909_v58 = vld [vmem:[#allocation5 + $0x2f0] sm:$0xf]  ;;  %v7183_v8 = vld [vmem:[#allocation2 + $0x360] sm:$0xf0] }
  0x4e   :  { %v6822_v2 = vor.u32 %v7372_v1, %v6821_v0  ;;  %v6910_v61 = vor.u32 %v7394_v59, %v6909_v58  ;;  %v6789_v0 = vld [vmem:[#allocation5 + $0x200] sm:$0xf]  ;;  %v7364_v1 = vld [vmem:[#allocation5 + $0x204] sm:$0xf0]  ;;  %v7782_v15 = vor.u32 %v7183_v8, %v6057_v3 }
  0x4f   :  { %2363 = vmatpush.bf16.msrb.mxu1 %v6614_v25  ;;  %v7281_v25 = vld [vmem:[#allocation2 + $0x670] sm:$0xf0]  ;;  %v5681_v8 = vld [vmem:[#allocation2 + $0x48] sm:$0xf] }
  0x50   :  { %2698 = vmatpush.bf16.msrb.mxu3 %v6766_v14  ;;  %v7762_v32 = vor.u32 %v7281_v25, %v6449_v24  ;;  %v7350_v14 = vld [vmem:[#allocation5 + $0x194] sm:$0xf0]  ;;  %v6477_v24 = vld [vmem:[#allocation2 + $0x690] sm:$0xf]  ;;  %v7288_v25 = vld [vmem:[#allocation2 + $0x6a8] sm:$0xf0] }
  0x51   :  { %2530 = vmatpush.bf16.msrb.mxu2 %v6694_v23  ;;  %2868 = vmatpush.bf16.msrb.mxu0 %v6822_v2  ;;  %v7232_v23 = vld [vmem:[#allocation2 + $0x4e8] sm:$0xf0]  ;;  %v6734_v26 = vor.u32 %v7350_v14, %v6733_v13  ;;  %v6790_v2 = vor.u32 %v7364_v1, %v6789_v0  ;;  %v5833_v13 = vld [vmem:[#allocation2 + $0x188] sm:$0xf]  ;;  %v7127_v14 = vld [vmem:[#allocation2 + $0x1a0] sm:$0xf0] }
  0x52   :  { %10192 = vst [vmem:[#allocation38_spill] sm:$0xff] %v7762_v32  ;;  %v7086_v0 = vld [vmem:[#allocation2 + $0x58] sm:$0xf0]  ;;  %v7083_v1 = vld [vmem:[#allocation2 + $0x44] sm:$0xf] }
  0x53   :  { %2364 = vmatpush.bf16.msrb.mxu1 %v6606_v48  ;;  %v6749_v48 = vld [vmem:[#allocation5 + $0x1b0] sm:$0xf]  ;;  %10198 = vst [vmem:[#allocation44_spill] sm:$0xff] %v7782_v15 }
  0x54   :  { %2699 = vmatpush.bf16.msrb.mxu3 %v6758_v42  ;;  %v6750_v57 = vor.u32 %v7354_v50, %v6749_v48  ;;  %v7120_v42 = vld [vmem:[#allocation2 + $0x168] sm:$0xf0]  ;;  %v6805_v48 = vld [vmem:[#allocation5 + $0x220] sm:$0xf]  ;;  %v7368_v50 = vld [vmem:[#allocation5 + $0x224] sm:$0xf0] }
  0x55   :  { %2531 = vmatpush.bf16.msrb.mxu2 %v6686_v45  ;;  %v7772_v45 = vor.u32 %v7232_v23, %v6253_v18  ;;  %2869 = vmatpush.bf16.msrb.mxu0 %v6814_v17  ;;  %v7776_v51 = vor.u32 %v7120_v42, %v5805_v29  ;;  %v7786_v17 = vor.u32 %v7295_v12, %v6505_v11  ;;  %v7075_v23 = vld [vmem:[#allocation2 + $0x4] sm:$0xf]  ;;  %v5653_v29 = vld [vmem:[#allocation2 + $0x10] sm:$0xf]  ;;  %v7080_v42 = vld [vmem:[#allocation2 + $0x28] sm:$0xf0] }
  0x56   :  { %v7788_v18 = vor.u32 %v7127_v14, %v5833_v13 }
  0x57   :  { %2365 = vmatpush.bf16.msrb.mxu1 %v6598_v49  ;;  %10195 = vst [vmem:[#allocation41_spill] sm:$0xff] %v7772_v45  ;;  %v7774_v49 = vor.u32 %v7288_v25, %v6477_v24  ;;  %v5639_v24 = vld [vmem:[#allocation2 + $0x1c] sm:$0xf0]  ;;  %v5645_v25 = vld [vmem:[#allocation2 + $0x8] sm:$0xf] }
  0x58   :  { %2700 = vmatpush.bf16.msrb.mxu3 %v6750_v57  ;;  %10197 = vst [vmem:[#allocation43_spill] sm:$0xff] %v7776_v51  ;;  %v6806_v57 = vor.u32 %v7368_v50, %v6805_v48  ;;  %v7800_v48 = vor.u32 %v7076_v27, %v5647_v28  ;;  %v7802_v50 = vor.u32 %v7080_v42, %v5653_v29  ;;  %v7089_v29 = vld [vmem:[#allocation2 + $0x74] sm:$0xf]  ;;  %v5695_v42 = vld [vmem:[#allocation2 + $0x8c] sm:$0xf0] }
  0x59   :  { %2532 = vmatpush.bf16.msrb.mxu2 %v6678_v62  ;;  %10196 = vst [vmem:[#allocation42_spill] sm:$0xff] %v7774_v49  ;;  %v7366_v62 = vld [vmem:[#allocation5 + $0x214] sm:$0xf0] }
  0x5a   :  { %2247 = vmatmul.bf16.gmra.mxu1 %v7722_v4  ;;  %2287 = vmatmul.bf16.gmra.mxu2 %v7724_v5  ;;  %v6798_v63 = vor.u32 %v7366_v62, %v6797_v60  ;;  %10200 = vst [vmem:[#allocation46_spill] sm:$0xff] %v7786_v17  ;;  %v5667_v62 = vld [vmem:[#allocation2 + $0x54] sm:$0xf0] }
  0x5b   :  { %2327 = vmatmul.bf16.gmra.mxu3 %v7726_v6  ;;  %2870 = vmatpush.bf16.msrb.mxu0 %v6806_v57  ;;  %10201 = vst [vmem:[#allocation47_spill] sm:$0xff] %v7788_v18 }
  0x5c   :  { %2207 = vmatmul.bf16.gmra.mxu0 %v7728_v7  ;;  %2701 = vmatpush.bf16.msrb.mxu3 %v6742_v10  ;;  %v7239_v10 = vld [vmem:[#allocation2 + $0x520] sm:$0xf0]  ;;  %10204 = vst [vmem:[#allocation50_spill] sm:$0xff] %v7800_v48  ;;  %v7129_v7 = vld [vmem:[#allocation2 + $0x1b0] sm:$0xf0] }
  0x5d   :  { %2533 = vmatpush.bf16.msrb.mxu2 %v6670_v9  ;;  %3034 = vmatpush.bf16.msra.mxu1 %v6910_v61  ;;  %v6281_v9 = vld [vmem:[#allocation2 + $0x508] sm:$0xf]  ;;  %10205 = vst [vmem:[#allocation51_spill] sm:$0xff] %v7802_v50  ;;  %v7082_v61 = vld [vmem:[#allocation2 + $0x3c] sm:$0xf] }
  0x5e   :  { %v7784_v16 = vor.u32 %v7239_v10, %v6281_v9  ;;  %v7087_v9 = vld [vmem:[#allocation2 + $0x60] sm:$0xf0]  ;;  %v7822_v11 = vor.u32 %v7082_v61, %v5667_v62  ;;  %v5701_v61 = vld [vmem:[#allocation2 + $0x78] sm:$0xf]  ;;  %v7093_v62 = vld [vmem:[#allocation2 + $0x90] sm:$0xf0] }
  0x5f   :  { %2871 = vmatpush.bf16.msrb.mxu0 %v6798_v63  ;;  %v5673_v63 = vld [vmem:[#allocation2 + $0x40] sm:$0xf] }
  0x60   :  { %2702 = vmatpush.bf16.msrb.mxu3 %v6734_v26  ;;  %10199 = vst [vmem:[#allocation45_spill] sm:$0xff] %v7784_v16  ;;  %v7079_v26 = vld [vmem:[#allocation2 + $0x20] sm:$0xf0]  ;;  %v7824_v12 = vor.u32 %v7086_v0, %v5673_v63  ;;  %v7090_v63 = vld [vmem:[#allocation2 + $0x7c] sm:$0xf] }
  0x61   :  { %2534 = vmatpush.bf16.msrb.mxu2 %v6662_v43  ;;  %v7794_v43 = vor.u32 %v7075_v23, %v5639_v24  ;;  %v7796_v46 = vor.u32 %v7079_v26, %v5645_v25  ;;  %10208 = vst [vmem:[#allocation54_spill] sm:$0xff] %v7822_v11  ;;  %v7830_v23 = vor.u32 %v7087_v9, %v5681_v8  ;;  %v5703_v0 = vld [vmem:[#allocation2 + $0x94] sm:$0xf0]  ;;  %v7094_v8 = vld [vmem:[#allocation2 + $0x98] sm:$0xf0] }
  0x62   :  { %10209 = vst [vmem:[#allocation55_spill] sm:$0xff] %v7824_v12 }
  0x63   :  { %2872 = vmatpush.bf16.msrb.mxu0 %v6790_v2  ;;  %10202 = vst [vmem:[#allocation48_spill] sm:$0xff] %v7794_v43  ;;  %v5675_v2 = vld [vmem:[#allocation2 + $0x5c] sm:$0xf0] }
  0x64   :  { %2703 = vmatpush.bf16.msrb.mxu3 %v6726_v52  ;;  %10203 = vst [vmem:[#allocation49_spill] sm:$0xff] %v7796_v46  ;;  %v7828_v14 = vor.u32 %v7083_v1, %v5675_v2  ;;  %v5709_v2 = vld [vmem:[#allocation2 + $0x80] sm:$0xf] }
  0x65   :  { %10211 = vst [vmem:[#allocation57_spill] sm:$0xff] %v7830_v23 }
  0x66   :  { %10210 = vst [vmem:[#allocation56_spill] sm:$0xff] %v7828_v14 }
  0x6a   :  { %2252 = vmatmul.bf16.gmra.mxu1 %v7734_v19  ;;  %2292 = vmatmul.bf16.gmra.mxu2 %v7736_v20 }
  0x6b   :  { %2332 = vmatmul.bf16.gmra.mxu3 %v7738_v21 }
  0x6c   :  { %2212 = vmatmul.bf16.gmra.mxu0 %v7740_v22 }
  0x7a   :  { %2257 = vmatmul.bf16.gmra.mxu1 %v7746_v34  ;;  %2297 = vmatmul.bf16.gmra.mxu2 %v7748_v35  ;;  %v5787_v34 = vld [vmem:[#allocation2 + $0x13c] sm:$0xf0] }
  0x7b   :  { %2337 = vmatmul.bf16.gmra.mxu3 %v7750_v36  ;;  %v5731_v36 = vld [vmem:[#allocation2 + $0xcc] sm:$0xf0] }
  0x7c   :  { %2217 = vmatmul.bf16.gmra.mxu0 %v7752_v41 }
  0x8a   :  { %2262 = vmatmul.bf16.gmra.mxu1 %v7758_v30  ;;  %2302 = vmatmul.bf16.gmra.mxu2 %v7760_v31  ;;  %v5759_v31 = vld [vmem:[#allocation2 + $0x104] sm:$0xf0]  ;;  %v7111_v30 = vld [vmem:[#allocation2 + $0x124] sm:$0xf] }
  0x8b   :  { %2342 = vmatmul.bf16.gmra.mxu3 %v7762_v32  ;;  %v7097_v32 = vld [vmem:[#allocation2 + $0xb4] sm:$0xf] }
  0x8c   :  { %2222 = vmatmul.bf16.gmra.mxu0 %v7764_v33  ;;  %v7884_v55 = vor.u32 %v7097_v32, %v5731_v36  ;;  %v7103_v32 = vld [vmem:[#allocation2 + $0xe4] sm:$0xf] }
  0x8e   :  { %10222 = vst [vmem:[#allocation68_spill] sm:$0xff] %v7884_v55 }
  0x9a   :  { %2267 = vmatmul.bf16.gmra.mxu1 %v7770_v44  ;;  %2307 = vmatmul.bf16.gmra.mxu2 %v7772_v45  ;;  %v7104_v45 = vld [vmem:[#allocation2 + $0xec] sm:$0xf] }
  0x9b   :  { %2347 = vmatmul.bf16.gmra.mxu3 %v7774_v49  ;;  %v7392_v49 = vld [vmem:[#allocation5 + $0x2e4] sm:$0xf0]  ;;  %v7912_v38 = vor.u32 %v7104_v45, %v5759_v31  ;;  %v5779_v45 = vld [vmem:[#allocation2 + $0x134] sm:$0xf0] }
  0x9c   :  { %2227 = vmatmul.bf16.gmra.mxu0 %v7776_v51 }
  0x9d   :  { %10228 = vst [vmem:[#allocation74_spill] sm:$0xff] %v7912_v38 }
  0xaa   :  { %2272 = vmatmul.bf16.gmra.mxu1 %v7782_v15  ;;  %2312 = vmatmul.bf16.gmra.mxu2 %v7784_v16 }
  0xab   :  { %2352 = vmatmul.bf16.gmra.mxu3 %v7786_v17  ;;  %v6901_v17 = vld [vmem:[#allocation5 + $0x2e0] sm:$0xf] }
  0xac   :  { %2232 = vmatmul.bf16.gmra.mxu0 %v7788_v18  ;;  %v7940_v18 = vor.u32 %v7111_v30, %v5787_v34  ;;  %v5813_v30 = vld [vmem:[#allocation2 + $0x158] sm:$0xf] }
  0xae   :  { %10234 = vst [vmem:[#allocation80_spill] sm:$0xff] %v7940_v18 }
  0xb7   :  { %v7798_v47 = vpop.f32.mrf.mxu1 }
  0xb9   :  { %v7804_v52 = vpop.f32.mrf.mxu0 }
  0xba   :  { %2366 = vmatmul.bf16.vlgmr.msrb.gmra.mxu1 %v7794_v43  ;;  %2535 = vmatmul.bf16.vlgmr.msrb.gmra.mxu2 %v7796_v46 }
  0xbb   :  { %2704 = vmatmul.bf16.vlgmr.msrb.gmra.mxu3 %v7800_v48  ;;  %v7858_v48 = vor.u32 %v7094_v8, %v5709_v2  ;;  %v5723_v2 = vld [vmem:[#allocation2 + $0xc4] sm:$0xf0]  ;;  %v5729_v8 = vld [vmem:[#allocation2 + $0xb0] sm:$0xf] }
  0xbc   :  { %2873 = vmatmul.bf16.vlgmr.msrb.gmra.mxu0 %v7802_v50  ;;  %v7856_v50 = vor.u32 %v7090_v63, %v5703_v0  ;;  %v7096_v0 = vld [vmem:[#allocation2 + $0xac] sm:$0xf] }
  0xbd   :  { %v7810_v57 = vpop.f32.mrf.mxu2  ;;  %10217 = vst [vmem:[#allocation63_spill] sm:$0xff] %v7858_v48 }
  0xbe   :  { %v7812_v58 = vpop.f32.mrf.mxu3  ;;  %10216 = vst [vmem:[#allocation62_spill] sm:$0xff] %v7856_v50 }
  0xbf   :  { %10206 = vst [vmem:[#allocation52_spill] sm:$0xff] %v7812_v58  ;;  %v7814_v59 = vpop.f32.mrf.mxu1 }
  0xc1   :  { %v7816_v60 = vpop.f32.mrf.mxu0 }
  0xc5   :  { %v7818_v3 = vpop.f32.mrf.mxu2 }
  0xc6   :  { %v7820_v10 = vpop.f32.mrf.mxu3 }
  0xc7   :  { %10207 = vst [vmem:[#allocation53_spill] sm:$0xff] %v7820_v10  ;;  %v7826_v13 = vpop.f32.mrf.mxu1 }
  0xc9   :  { %v7832_v24 = vpop.f32.mrf.mxu0 }
  0xca   :  { %2371 = vmatmul.bf16.gmra.mxu1 %v7822_v11  ;;  %2540 = vmatmul.bf16.gmra.mxu2 %v7824_v12  ;;  %v6591_v11 = vld [vmem:[#allocation5 + $0x78] sm:$0xf0] }
  0xcb   :  { %2709 = vmatmul.bf16.gmra.mxu3 %v7828_v14  ;;  %v7852_v14 = vor.u32 %v7093_v62, %v5701_v61 }
  0xcc   :  { %2878 = vmatmul.bf16.gmra.mxu0 %v7830_v23  ;;  %v7850_v23 = vor.u32 %v7089_v29, %v5695_v42  ;;  %v6902_v29 = vor.u32 %v7392_v49, %v6901_v17  ;;  %v5737_v49 = vld [vmem:[#allocation2 + $0xb8] sm:$0xf]  ;;  %v7101_v17 = vld [vmem:[#allocation2 + $0xd0] sm:$0xf0] }
  0xcd   :  { %v7838_v25 = vpop.f32.mrf.mxu2  ;;  %10215 = vst [vmem:[#allocation61_spill] sm:$0xff] %v7852_v14  ;;  %v7886_v39 = vor.u32 %v7101_v17, %v5737_v49  ;;  %v5757_v49 = vld [vmem:[#allocation2 + $0xe8] sm:$0xf]  ;;  %v7107_v17 = vld [vmem:[#allocation2 + $0x100] sm:$0xf0] }
  0xce   :  { %v7840_v26 = vpop.f32.mrf.mxu3  ;;  %10214 = vst [vmem:[#allocation60_spill] sm:$0xff] %v7850_v23  ;;  %3035 = vmatpush.bf16.msra.mxu1 %v6902_v29  ;;  %v7908_v5 = vor.u32 %v7107_v17, %v5757_v49  ;;  %v7114_v17 = vld [vmem:[#allocation2 + $0x138] sm:$0xf0] }
  0xcf   :  { %10212 = vst [vmem:[#allocation58_spill] sm:$0xff] %v7840_v26  ;;  %v7842_v27 = vpop.f32.mrf.mxu1 }
  0xd0   :  { %10223 = vst [vmem:[#allocation69_spill] sm:$0xff] %v7886_v39 }
  0xd1   :  { %v7844_v28 = vpop.f32.mrf.mxu0  ;;  %10227 = vst [vmem:[#allocation73_spill] sm:$0xff] %v7908_v5 }
  0xd5   :  { %v7846_v1 = vpop.f32.mrf.mxu2 }
  0xd6   :  { %v7848_v9 = vpop.f32.mrf.mxu3 }
  0xd7   :  { %10213 = vst [vmem:[#allocation59_spill] sm:$0xff] %v7848_v9  ;;  %v7854_v12 = vpop.f32.mrf.mxu1  ;;  %v7313_v9 = vld [vmem:[#allocation5 + $0x74] sm:$0xf] }
  0xd9   :  { %v7860_v46 = vpop.f32.mrf.mxu0 }
  0xda   :  { %2376 = vmatmul.bf16.gmra.mxu1 %v7850_v23  ;;  %2545 = vmatmul.bf16.gmra.mxu2 %v7852_v14  ;;  %v7100_v14 = vld [vmem:[#allocation2 + $0xc8] sm:$0xf0] }
  0xdb   :  { %2714 = vmatmul.bf16.gmra.mxu3 %v7856_v50  ;;  %v7878_v50 = vor.u32 %v7096_v0, %v5723_v2  ;;  %v7880_v29 = vor.u32 %v7100_v14, %v5729_v8  ;;  %v5751_v8 = vld [vmem:[#allocation2 + $0xfc] sm:$0xf0] }
  0xdc   :  { %2883 = vmatmul.bf16.gmra.mxu0 %v7858_v48 }
  0xdd   :  { %v7866_v42 = vpop.f32.mrf.mxu2  ;;  %10220 = vst [vmem:[#allocation66_spill] sm:$0xff] %v7878_v50 }
  0xde   :  { %v7868_v61 = vpop.f32.mrf.mxu3  ;;  %10221 = vst [vmem:[#allocation67_spill] sm:$0xff] %v7880_v29 }
  0xdf   :  { %10218 = vst [vmem:[#allocation64_spill] sm:$0xff] %v7868_v61  ;;  %v7870_v62 = vpop.f32.mrf.mxu1 }
  0xe1   :  { %v7872_v63 = vpop.f32.mrf.mxu0 }
  0xe5   :  { %v7874_v21 = vpop.f32.mrf.mxu2 }
  0xe6   :  { %v7876_v48 = vpop.f32.mrf.mxu3 }
  0xe7   :  { %10219 = vst [vmem:[#allocation65_spill] sm:$0xff] %v7876_v48  ;;  %v7882_v6 = vpop.f32.mrf.mxu1  ;;  %v7390_v48 = vld [vmem:[#allocation5 + $0x2d4] sm:$0xf0] }
  0xe9   :  { %v7888_v16 = vpop.f32.mrf.mxu0 }
  0xea   :  { %2381 = vmatmul.bf16.gmra.mxu1 %v7878_v50  ;;  %2550 = vmatmul.bf16.gmra.mxu2 %v7880_v29  ;;  %v5765_v29 = vld [vmem:[#allocation2 + $0xf0] sm:$0xf] }
  0xeb   :  { %2719 = vmatmul.bf16.gmra.mxu3 %v7884_v55  ;;  %v7108_v55 = vld [vmem:[#allocation2 + $0x108] sm:$0xf0] }
  0xec   :  { %2888 = vmatmul.bf16.gmra.mxu0 %v7886_v39  ;;  %v7906_v39 = vor.u32 %v7103_v32, %v5751_v8  ;;  %v7914_v15 = vor.u32 %v7108_v55, %v5765_v29  ;;  %v7110_v55 = vld [vmem:[#allocation2 + $0x11c] sm:$0xf]  ;;  %v5785_v29 = vld [vmem:[#allocation2 + $0x120] sm:$0xf] }
  0xed   :  { %v7894_v0 = vpop.f32.mrf.mxu2  ;;  %v7936_v53 = vor.u32 %v7114_v17, %v5785_v29  ;;  %v7121_v17 = vld [vmem:[#allocation2 + $0x170] sm:$0xf0] }
  0xee   :  { %v7896_v14 = vpop.f32.mrf.mxu3  ;;  %10226 = vst [vmem:[#allocation72_spill] sm:$0xff] %v7906_v39 }
  0xef   :  { %10224 = vst [vmem:[#allocation70_spill] sm:$0xff] %v7896_v14  ;;  %v7898_v2 = vpop.f32.mrf.mxu1  ;;  %v6893_v14 = vld [vmem:[#allocation5 + $0x2d0] sm:$0xf] }
  0xf0   :  { %10229 = vst [vmem:[#allocation75_spill] sm:$0xff] %v7914_v15 }
  0xf1   :  { %v7900_v36 = vpop.f32.mrf.mxu0  ;;  %10233 = vst [vmem:[#allocation79_spill] sm:$0xff] %v7936_v53 }
  0xf5   :  { %v7902_v35 = vpop.f32.mrf.mxu2 }
  0xf6   :  { %v7904_v20 = vpop.f32.mrf.mxu3 }
  0xf7   :  { %10225 = vst [vmem:[#allocation71_spill] sm:$0xff] %v7904_v20  ;;  %v7910_v54 = vpop.f32.mrf.mxu1 }
  0xf9   :  { %v7916_v44 = vpop.f32.mrf.mxu0 }
  0xfa   :  { %2386 = vmatmul.bf16.gmra.mxu1 %v7906_v39  ;;  %2555 = vmatmul.bf16.gmra.mxu2 %v7908_v5  ;;  %v5793_v5 = vld [vmem:[#allocation2 + $0x128] sm:$0xf] }
  0xfb   :  { %2724 = vmatmul.bf16.gmra.mxu3 %v7912_v38  ;;  %v7115_v38 = vld [vmem:[#allocation2 + $0x140] sm:$0xf0] }
  0xfc   :  { %2893 = vmatmul.bf16.gmra.mxu0 %v7914_v15  ;;  %v7934_v15 = vor.u32 %v7110_v55, %v5779_v45  ;;  %v7942_v51 = vor.u32 %v7115_v38, %v5793_v5  ;;  %v7117_v38 = vld [vmem:[#allocation2 + $0x154] sm:$0xf]  ;;  %v5807_v5 = vld [vmem:[#allocation2 + $0x16c] sm:$0xf0] }
  0xfd   :  { %v7922_v32 = vpop.f32.mrf.mxu2 }
  0xfe   :  { %v7924_v8 = vpop.f32.mrf.mxu3  ;;  %10232 = vst [vmem:[#allocation78_spill] sm:$0xff] %v7934_v15 }
  0xff   :  { %10230 = vst [vmem:[#allocation76_spill] sm:$0xff] %v7924_v8  ;;  %v7926_v49 = vpop.f32.mrf.mxu1  ;;  %v7964_v8 = vor.u32 %v7121_v17, %v5813_v30  ;;  %v6973_v30 = vld [vmem:[#allocation5 + $0x370] sm:$0xf]  ;;  %v7410_v17 = vld [vmem:[#allocation5 + $0x374] sm:$0xf0] }
 0x100   :  { %10235 = vst [vmem:[#allocation81_spill] sm:$0xff] %v7942_v51  ;;  %v6974_v23 = vor.u32 %v7410_v17, %v6973_v30  ;;  %v6594_v30 = vor.u32 %v7313_v9, %v6591_v11  ;;  %v7131_v11 = vld [vmem:[#allocation2 + $0x1c4] sm:$0xf]  ;;  %v5863_v9 = vld [vmem:[#allocation2 + $0x1dc] sm:$0xf0] }
 0x101   :  { %v7928_v31 = vpop.f32.mrf.mxu0  ;;  %10240 = vst [vmem:[#allocation86_spill] sm:$0xff] %v7964_v8 }
 0x102   :  { %3203 = vmatpush.bf16.msra.mxu2 %v6974_v23  ;;  %3372 = vmatpush.bf16.msra.mxu3 %v6594_v30  ;;  %v7132_v30 = vld [vmem:[#allocation2 + $0x1cc] sm:$0xf] }
 0x105   :  { %v7930_v19 = vpop.f32.mrf.mxu2 }
 0x106   :  { %v7932_v4 = vpop.f32.mrf.mxu3 }
 0x107   :  { %10231 = vst [vmem:[#allocation77_spill] sm:$0xff] %v7932_v4  ;;  %v7938_v37 = vpop.f32.mrf.mxu1  ;;  %v7118_v4 = vld [vmem:[#allocation2 + $0x15c] sm:$0xf] }
 0x109   :  { %v7944_v33 = vpop.f32.mrf.mxu0 }
 0x10a   :  { %2391 = vmatmul.bf16.gmra.mxu1 %v7934_v15  ;;  %2560 = vmatmul.bf16.gmra.mxu2 %v7936_v53  ;;  %v5815_v15 = vld [vmem:[#allocation2 + $0x174] sm:$0xf0]  ;;  %v5821_v53 = vld [vmem:[#allocation2 + $0x160] sm:$0xf] }
 0x10b   :  { %2729 = vmatmul.bf16.gmra.mxu3 %v7940_v18  ;;  %v7122_v18 = vld [vmem:[#allocation2 + $0x178] sm:$0xf0]  ;;  %v7968_v20 = vor.u32 %v7118_v4, %v5815_v15 }
 0x10c   :  { %2898 = vmatmul.bf16.gmra.mxu0 %v7942_v51  ;;  %v7962_v51 = vor.u32 %v7117_v38, %v5807_v5  ;;  %v7970_v50 = vor.u32 %v7122_v18, %v5821_v53  ;;  %v6894_v38 = vor.u32 %v7390_v48, %v6893_v14  ;;  %v7124_v18 = vld [vmem:[#allocation2 + $0x18c] sm:$0xf]  ;;  %v5843_v48 = vld [vmem:[#allocation2 + $0x1ac] sm:$0xf0] }
 0x10d   :  { %v7950_v55 = vpop.f32.mrf.mxu2  ;;  %10241 = vst [vmem:[#allocation87_spill] sm:$0xff] %v7968_v20 }
 0x10e   :  { %v7952_v45 = vpop.f32.mrf.mxu3  ;;  %10239 = vst [vmem:[#allocation85_spill] sm:$0xff] %v7962_v51  ;;  %3036 = vmatpush.bf16.msra.mxu1 %v6894_v38 }
 0x10f   :  { %10236 = vst [vmem:[#allocation82_spill] sm:$0xff] %v7952_v45  ;;  %v7954_v29 = vpop.f32.mrf.mxu1 }
 0x110   :  { %10242 = vst [vmem:[#allocation88_spill] sm:$0xff] %v7970_v50 }
 0x111   :  { %v7956_v34 = vpop.f32.mrf.mxu0 }
 0x115   :  { %v7958_v39 = vpop.f32.mrf.mxu2 }
 0x116   :  { %10237 = vst [vmem:[#allocation83_spill] sm:$0xff] %v7958_v39  ;;  %v7960_v41 = vpop.f32.mrf.mxu3 }
 0x117   :  { %10238 = vst [vmem:[#allocation84_spill] sm:$0xff] %v7960_v41  ;;  %v7966_v45 = vpop.f32.mrf.mxu1  ;;  %v7128_v41 = vld [vmem:[#allocation2 + $0x1a8] sm:$0xf0] }
 0x119   :  { %v7972_v22 = vpop.f32.mrf.mxu0 }
 0x11a   :  { %2396 = vmatmul.bf16.gmra.mxu1 %v7962_v51  ;;  %2565 = vmatmul.bf16.gmra.mxu2 %v7964_v8  ;;  %v5835_v8 = vld [vmem:[#allocation2 + $0x1a4] sm:$0xf0]  ;;  %v5841_v51 = vld [vmem:[#allocation2 + $0x190] sm:$0xf] }
 0x11b   :  { %2734 = vmatmul.bf16.gmra.mxu3 %v7968_v20  ;;  %v7125_v20 = vld [vmem:[#allocation2 + $0x194] sm:$0xf]  ;;  %v7992_v61 = vor.u32 %v7128_v41, %v5841_v51 }
 0x11c   :  { %2903 = vmatmul.bf16.gmra.mxu0 %v7970_v50  ;;  %v5849_v50 = vld [vmem:[#allocation2 + $0x198] sm:$0xf]  ;;  %v7996_v26 = vor.u32 %v7125_v20, %v5843_v48  ;;  %v471_v20 = vld [vmem:[#allocation7] sm:$0x3] }
 0x11d   :  { %v7978_v5 = vpop.f32.mrf.mxu2  ;;  %10248 = vst [vmem:[#allocation94_spill] sm:$0xff] %v7992_v61  ;;  %v7998_v17 = vor.u32 %v7129_v7, %v5849_v50  ;;  %v8014_v50 = vperm.slane %v471_v20, 0 }
 0x11e   :  { %10243 = vst [vmem:[#allocation89_spill] sm:$0xff] %v7978_v5  ;;  %v7980_v4 = vpop.f32.mrf.mxu3  ;;  %v7143_v5 = vld [vmem:[#allocation2 + $0x220] sm:$0xf0] }
 0x11f   :  { %10244 = vst [vmem:[#allocation90_spill] sm:$0xff] %v7980_v4  ;;  %v7982_v53 = vpop.f32.mrf.mxu1  ;;  %v7990_v4 = vor.u32 %v7124_v18, %v5835_v8  ;;  %v5869_v8 = vld [vmem:[#allocation2 + $0x1c8] sm:$0xf]  ;;  %v7135_v18 = vld [vmem:[#allocation2 + $0x1e0] sm:$0xf0]  ;;  %v2199_v48 = vadd.f32 %v7804_v52, %v8014_v50  ;;  %v2201_v52 = vadd.f32 %v7816_v60, %v8014_v50 }
 0x120   :  { %10249 = vst [vmem:[#allocation95_spill] sm:$0xff] %v7996_v26  ;;  %v8024_v43 = vor.u32 %v7135_v18, %v5869_v8  ;;  %v5899_v60 = vld [vmem:[#allocation2 + $0x21c] sm:$0xf0] }
 0x121   :  { %v7984_v15 = vpop.f32.mrf.mxu0  ;;  %10247 = vst [vmem:[#allocation93_spill] sm:$0xff] %v7990_v4 }
 0x122   :  { %10250 = vst [vmem:[#allocation96_spill] sm:$0xff] %v7998_v17 }
 0x123   :  { %10256 = vst [vmem:[#allocation102_spill] sm:$0xff] %v8024_v43 }
 0x125   :  { %v7986_v14 = vpop.f32.mrf.mxu2 }
 0x126   :  { %10245 = vst [vmem:[#allocation91_spill] sm:$0xff] %v7986_v14  ;;  %v7988_v38 = vpop.f32.mrf.mxu3 }
 0x127   :  { %10246 = vst [vmem:[#allocation92_spill] sm:$0xff] %v7988_v38  ;;  %v7994_v56 = vpop.f32.mrf.mxu1  ;;  %v8022_v38 = vor.u32 %v7131_v11, %v5863_v9 }
 0x129   :  { %v8000_v10 = vpop.f32.mrf.mxu0  ;;  %10255 = vst [vmem:[#allocation101_spill] sm:$0xff] %v8022_v38 }
 0x12a   :  { %2401 = vmatmul.bf16.gmra.mxu1 %v7990_v4  ;;  %2570 = vmatmul.bf16.gmra.mxu2 %v7992_v61  ;;  %v5877_v61 = vld [vmem:[#allocation2 + $0x1d0] sm:$0xf]  ;;  %v7136_v4 = vld [vmem:[#allocation2 + $0x1e8] sm:$0xf0] }
 0x12b   :  { %2739 = vmatmul.bf16.gmra.mxu3 %v7996_v26 }
 0x12c   :  { %2908 = vmatmul.bf16.gmra.mxu0 %v7998_v17  ;;  %v5871_v17 = vld [vmem:[#allocation2 + $0x1e4] sm:$0xf0] }
 0x12d   :  { %v8006_v41 = vpop.f32.mrf.mxu2  ;;  %v8026_v40 = vor.u32 %v7132_v30, %v5871_v17  ;;  %v7138_v30 = vld [vmem:[#allocation2 + $0x1fc] sm:$0xf] }
 0x12e   :  { %10251 = vst [vmem:[#allocation97_spill] sm:$0xff] %v8006_v41  ;;  %v8008_v51 = vpop.f32.mrf.mxu3  ;;  %v8028_v41 = vor.u32 %v7136_v4, %v5877_v61 }
 0x12f   :  { %10252 = vst [vmem:[#allocation98_spill] sm:$0xff] %v8008_v51  ;;  %v8010_v23 = vpop.f32.mrf.mxu1 }
 0x130   :  { %10257 = vst [vmem:[#allocation103_spill] sm:$0xff] %v8026_v40 }
 0x131   :  { %v8012_v7 = vpop.f32.mrf.mxu0  ;;  %10258 = vst [vmem:[#allocation104_spill] sm:$0xff] %v8028_v41 }
 0x135   :  { %v8018_v26 = vpop.f32.mrf.mxu2 }
 0x136   :  { %10253 = vst [vmem:[#allocation99_spill] sm:$0xff] %v8018_v26  ;;  %v8020_v51 = vpop.f32.mrf.mxu3 }
 0x137   :  { %10254 = vst [vmem:[#allocation100_spill] sm:$0xff] %v8020_v51  ;;  %v2367_v20 = vpop.f32.mrf.mxu1  ;;  %v7139_v51 = vld [vmem:[#allocation2 + $0x204] sm:$0xf] }
 0x138   :  { %v2368_v58 = vadd.f32 %v2367_v20, %v2199_v48  ;;  %v5891_v20 = vld [vmem:[#allocation2 + $0x214] sm:$0xf0] }
 0x139   :  { %v2874_v14 = vpop.f32.mrf.mxu0  ;;  %v8040_v39 = vor.u32 %v7138_v30, %v5891_v20  ;;  %v7145_v30 = vld [vmem:[#allocation2 + $0x234] sm:$0xf]  ;;  %v5919_v20 = vld [vmem:[#allocation2 + $0x24c] sm:$0xf0] }
 0x13a   :  { %2406 = vmatmul.bf16.gmra.mxu1 %v8022_v38  ;;  %2575 = vmatmul.bf16.gmra.mxu2 %v8024_v43  ;;  %v5897_v38 = vld [vmem:[#allocation2 + $0x200] sm:$0xf]  ;;  %v7142_v43 = vld [vmem:[#allocation2 + $0x218] sm:$0xf0] }
 0x13b   :  { %2744 = vmatmul.bf16.gmra.mxu3 %v8026_v40  ;;  %v2204_v40 = vadd.f32 %v7832_v24, %v8014_v50  ;;  %10260 = vst [vmem:[#allocation106_spill] sm:$0xff] %v8040_v39 }
 0x13c   :  { %2913 = vmatmul.bf16.gmra.mxu0 %v8028_v41  ;;  %v5905_v41 = vld [vmem:[#allocation2 + $0x208] sm:$0xf] }
 0x13d   :  { %v2536_v11 = vpop.f32.mrf.mxu2 }
 0x13e   :  { %v2537_v9 = vadd.f32 %v2536_v11, %v2368_v58  ;;  %v2705_v8 = vpop.f32.mrf.mxu3 }
 0x13f   :  { %v2369_v17 = vpop.f32.mrf.mxu1 }
 0x140   :  { %v2370_v18 = vadd.f32 %v2369_v17, %v2201_v52  ;;  %v2706_v48 = vadd.f32 %v2705_v8, %v2537_v9  ;;  %v8042_v52 = vor.u32 %v7142_v43, %v5897_v38  ;;  %v8044_v9 = vor.u32 %v7139_v51, %v5899_v60  ;;  %v5925_v60 = vld [vmem:[#allocation2 + $0x238] sm:$0xf] }
 0x141   :  { %v2876_v61 = vpop.f32.mrf.mxu0  ;;  %v2206_v43 = vadd.f32 %v7844_v28, %v8014_v50  ;;  %v5927_v28 = vld [vmem:[#allocation2 + $0x254] sm:$0xf0] }
 0x142   :  { %v8036_v4 = vadd.f32 %v2874_v14, %v2706_v48  ;;  %10261 = vst [vmem:[#allocation107_spill] sm:$0xff] %v8042_v52  ;;  %v8046_v48 = vor.u32 %v7143_v5, %v5905_v41 }
 0x143   :  { %10262 = vst [vmem:[#allocation108_spill] sm:$0xff] %v8044_v9 }
 0x144   :  { %10259 = vst [vmem:[#allocation105_spill] sm:$0xff] %v8036_v4 }
 0x145   :  { %v2538_v26 = vpop.f32.mrf.mxu2  ;;  %10263 = vst [vmem:[#allocation109_spill] sm:$0xff] %v8046_v48 }
 0x146   :  { %v2539_v58 = vadd.f32 %v2538_v26, %v2370_v18  ;;  %v2707_v11 = vpop.f32.mrf.mxu3 }
 0x147   :  { %v2372_v14 = vpop.f32.mrf.mxu1 }
 0x148   :  { %v2373_v8 = vadd.f32 %v2372_v14, %v2204_v40  ;;  %v2708_v17 = vadd.f32 %v2707_v11, %v2539_v58  ;;  %v7149_v58 = vld [vmem:[#allocation2 + $0x250] sm:$0xf0]  ;;  %v2209_v11 = vadd.f32 %v7860_v46, %v8014_v50  ;;  %v7146_v14 = vld [vmem:[#allocation2 + $0x23c] sm:$0xf] }
 0x149   :  { %v2879_v4 = vpop.f32.mrf.mxu0 }
 0x14a   :  { %v8048_v24 = vadd.f32 %v2876_v61, %v2708_v17  ;;  %2411 = vmatmul.bf16.gmra.mxu1 %v8040_v39  ;;  %2580 = vmatmul.bf16.gmra.mxu2 %v8042_v52  ;;  %v8060_v52 = vor.u32 %v7145_v30, %v5919_v20  ;;  %v2211_v20 = vadd.f32 %v7872_v63, %v8014_v50 }
 0x14b   :  { %2749 = vmatmul.bf16.gmra.mxu3 %v8044_v9  ;;  %v7150_v9 = vld [vmem:[#allocation2 + $0x258] sm:$0xf0]  ;;  %v2214_v63 = vadd.f32 %v7888_v16, %v8014_v50 }
 0x14c   :  { %10264 = vst [vmem:[#allocation110_spill] sm:$0xff] %v8048_v24  ;;  %2918 = vmatmul.bf16.gmra.mxu0 %v8046_v48  ;;  %v5933_v48 = vld [vmem:[#allocation2 + $0x240] sm:$0xf] }
 0x14d   :  { %v2541_v26 = vpop.f32.mrf.mxu2  ;;  %10266 = vst [vmem:[#allocation112_spill] sm:$0xff] %v8060_v52 }
 0x14e   :  { %v2542_v38 = vadd.f32 %v2541_v26, %v2373_v8  ;;  %v2710_v40 = vpop.f32.mrf.mxu3 }
 0x14f   :  { %v2374_v51 = vpop.f32.mrf.mxu1 }
 0x150   :  { %v2375_v5 = vadd.f32 %v2374_v51, %v2206_v43  ;;  %v2711_v41 = vadd.f32 %v2710_v40, %v2542_v38  ;;  %v8062_v43 = vor.u32 %v7149_v58, %v5925_v60  ;;  %v8064_v38 = vor.u32 %v7146_v14, %v5927_v28 }
 0x151   :  { %v2881_v18 = vpop.f32.mrf.mxu0 }
 0x152   :  { %v8056_v61 = vadd.f32 %v2879_v4, %v2711_v41  ;;  %10267 = vst [vmem:[#allocation113_spill] sm:$0xff] %v8062_v43  ;;  %v8066_v41 = vor.u32 %v7150_v9, %v5933_v48 }
 0x153   :  { %10268 = vst [vmem:[#allocation114_spill] sm:$0xff] %v8064_v38 }
 0x154   :  { %10265 = vst [vmem:[#allocation111_spill] sm:$0xff] %v8056_v61 }
 0x155   :  { %v2543_v17 = vpop.f32.mrf.mxu2  ;;  %10269 = vst [vmem:[#allocation115_spill] sm:$0xff] %v8066_v41 }
 0x156   :  { %v2544_v8 = vadd.f32 %v2543_v17, %v2375_v5  ;;  %v2712_v26 = vpop.f32.mrf.mxu3  ;;  %v6885_v5 = vld [vmem:[#allocation5 + $0x2c0] sm:$0xf]  ;;  %v7388_v17 = vld [vmem:[#allocation5 + $0x2c4] sm:$0xf0] }
 0x157   :  { %v2377_v4 = vpop.f32.mrf.mxu1  ;;  %v6886_v30 = vor.u32 %v7388_v17, %v6885_v5  ;;  %v5953_v5 = vld [vmem:[#allocation2 + $0x270] sm:$0xf]  ;;  %v7156_v17 = vld [vmem:[#allocation2 + $0x288] sm:$0xf0] }
 0x158   :  { %v2378_v40 = vadd.f32 %v2377_v4, %v2209_v11  ;;  %v2713_v51 = vadd.f32 %v2712_v26, %v2544_v8  ;;  %v7152_v8 = vld [vmem:[#allocation2 + $0x26c] sm:$0xf]  ;;  %v6965_v26 = vld [vmem:[#allocation5 + $0x360] sm:$0xf]  ;;  %v7408_v4 = vld [vmem:[#allocation5 + $0x364] sm:$0xf0] }
 0x159   :  { %v2884_v39 = vpop.f32.mrf.mxu0  ;;  %3037 = vmatpush.bf16.msra.mxu1 %v6886_v30  ;;  %v5955_v30 = vld [vmem:[#allocation2 + $0x28c] sm:$0xf0] }
 0x15a   :  { %v8068_v46 = vadd.f32 %v2881_v18, %v2713_v51  ;;  %2416 = vmatmul.bf16.gmra.mxu1 %v8060_v52  ;;  %2585 = vmatmul.bf16.gmra.mxu2 %v8062_v43  ;;  %v5947_v51 = vld [vmem:[#allocation2 + $0x284] sm:$0xf0]  ;;  %v7157_v43 = vld [vmem:[#allocation2 + $0x290] sm:$0xf0] }
 0x15b   :  { %2754 = vmatmul.bf16.gmra.mxu3 %v8064_v38  ;;  %v6966_v38 = vor.u32 %v7408_v4, %v6965_v26 }
 0x15c   :  { %10270 = vst [vmem:[#allocation116_spill] sm:$0xff] %v8068_v46  ;;  %2923 = vmatmul.bf16.gmra.mxu0 %v8066_v41  ;;  %v7153_v41 = vld [vmem:[#allocation2 + $0x274] sm:$0xf] }
 0x15d   :  { %v2546_v60 = vpop.f32.mrf.mxu2  ;;  %3204 = vmatpush.bf16.msra.mxu2 %v6966_v38  ;;  %v2216_v38 = vadd.f32 %v7900_v36, %v8014_v50  ;;  %v5983_v36 = vld [vmem:[#allocation2 + $0x2c4] sm:$0xf0] }
 0x15e   :  { %v2547_v9 = vadd.f32 %v2546_v60, %v2378_v40  ;;  %v2715_v48 = vpop.f32.mrf.mxu3  ;;  %v5961_v60 = vld [vmem:[#allocation2 + $0x278] sm:$0xf] }
 0x15f   :  { %v2379_v18 = vpop.f32.mrf.mxu1  ;;  %v8086_v46 = vor.u32 %v7157_v43, %v5961_v60  ;;  %v2219_v60 = vadd.f32 %v7916_v44, %v8014_v50 }
 0x160   :  { %v2380_v58 = vadd.f32 %v2379_v18, %v2211_v20  ;;  %v2716_v11 = vadd.f32 %v2715_v48, %v2547_v9  ;;  %v8082_v48 = vor.u32 %v7156_v17, %v5953_v5  ;;  %v7311_v18 = vld [vmem:[#allocation5 + $0x64] sm:$0xf] }
 0x161   :  { %v2886_v14 = vpop.f32.mrf.mxu0  ;;  %10274 = vst [vmem:[#allocation120_spill] sm:$0xff] %v8086_v46  ;;  %v7159_v17 = vld [vmem:[#allocation2 + $0x2a4] sm:$0xf] }
 0x162   :  { %v8076_v28 = vadd.f32 %v2884_v39, %v2716_v11  ;;  %v8080_v39 = vor.u32 %v7152_v8, %v5947_v51  ;;  %10272 = vst [vmem:[#allocation118_spill] sm:$0xff] %v8082_v48  ;;  %v6583_v11 = vld [vmem:[#allocation5 + $0x68] sm:$0xf0] }
 0x163   :  { %v6586_v26 = vor.u32 %v7311_v18, %v6583_v11  ;;  %v5989_v18 = vld [vmem:[#allocation2 + $0x2b0] sm:$0xf]  ;;  %v7164_v11 = vld [vmem:[#allocation2 + $0x2c8] sm:$0xf0] }
 0x164   :  { %10271 = vst [vmem:[#allocation117_spill] sm:$0xff] %v8076_v28  ;;  %v8084_v28 = vor.u32 %v7153_v41, %v5955_v30  ;;  %v5981_v30 = vld [vmem:[#allocation2 + $0x2a8] sm:$0xf] }
 0x165   :  { %v2548_v40 = vpop.f32.mrf.mxu2  ;;  %3373 = vmatpush.bf16.msra.mxu3 %v6586_v26 }
 0x166   :  { %v2549_v20 = vadd.f32 %v2548_v40, %v2380_v58  ;;  %v2717_v9 = vpop.f32.mrf.mxu3  ;;  %10273 = vst [vmem:[#allocation119_spill] sm:$0xff] %v8084_v28  ;;  %v7163_v40 = vld [vmem:[#allocation2 + $0x2c0] sm:$0xf0] }
 0x167   :  { %v2382_v52 = vpop.f32.mrf.mxu1 }
 0x168   :  { %v2383_v4 = vadd.f32 %v2382_v52, %v2214_v63  ;;  %v2718_v16 = vadd.f32 %v2717_v9, %v2549_v20  ;;  %v5975_v63 = vld [vmem:[#allocation2 + $0x2bc] sm:$0xf0]  ;;  %v7160_v20 = vld [vmem:[#allocation2 + $0x2ac] sm:$0xf] }
 0x169   :  { %v2889_v61 = vpop.f32.mrf.mxu0 }
 0x16a   :  { %v8088_v24 = vadd.f32 %v2886_v14, %v2718_v16  ;;  %2421 = vmatmul.bf16.gmra.mxu1 %v8080_v39  ;;  %2590 = vmatmul.bf16.gmra.mxu2 %v8082_v48  ;;  %v8100_v16 = vor.u32 %v7159_v17, %v5975_v63 }
 0x16b   :  { %2759 = vmatmul.bf16.gmra.mxu3 %v8084_v28 }
 0x16c   :  { %2928 = vmatmul.bf16.gmra.mxu0 %v8086_v46 }
 0x16d   :  { %v2551_v41 = vpop.f32.mrf.mxu2 }
 0x16e   :  { %v2552_v52 = vadd.f32 %v2551_v41, %v2383_v4  ;;  %v2720_v58 = vpop.f32.mrf.mxu3  ;;  %v8104_v41 = vor.u32 %v7160_v20, %v5983_v36 }
 0x16f   :  { %v2384_v43 = vpop.f32.mrf.mxu1 }
 0x170   :  { %v2385_v8 = vadd.f32 %v2384_v43, %v2216_v38  ;;  %v2721_v51 = vadd.f32 %v2720_v58, %v2552_v52  ;;  %v8102_v38 = vor.u32 %v7163_v40, %v5981_v30  ;;  %10276 = vst [vmem:[#allocation122_spill] sm:$0xff] %v8104_v41  ;;  %v8106_v43 = vor.u32 %v7164_v11, %v5989_v18  ;;  %v6003_v18 = vld [vmem:[#allocation2 + $0x2f4] sm:$0xf0]  ;;  %v6009_v11 = vld [vmem:[#allocation2 + $0x2e0] sm:$0xf] }
 0x171   :  { %v2891_v5 = vpop.f32.mrf.mxu0 }
 0x172   :  { %v8096_v14 = vadd.f32 %v2889_v61, %v2721_v51  ;;  %10275 = vst [vmem:[#allocation121_spill] sm:$0xff] %v8102_v38 }
 0x173   :  { %10277 = vst [vmem:[#allocation123_spill] sm:$0xff] %v8106_v43 }
 0x175   :  { %v2553_v9 = vpop.f32.mrf.mxu2 }
 0x176   :  { %v2554_v26 = vadd.f32 %v2553_v9, %v2385_v8  ;;  %v2722_v4 = vpop.f32.mrf.mxu3  ;;  %v2221_v8 = vadd.f32 %v7928_v31, %v8014_v50  ;;  %v7166_v9 = vld [vmem:[#allocation2 + $0x2dc] sm:$0xf]  ;;  %v6011_v31 = vld [vmem:[#allocation2 + $0x2fc] sm:$0xf0] }
 0x177   :  { %v2387_v61 = vpop.f32.mrf.mxu1 }
 0x178   :  { %v2388_v52 = vadd.f32 %v2387_v61, %v2219_v60  ;;  %v2723_v58 = vadd.f32 %v2722_v4, %v2554_v26  ;;  %v7170_v26 = vld [vmem:[#allocation2 + $0x2f8] sm:$0xf0]  ;;  %v2224_v4 = vadd.f32 %v7944_v33, %v8014_v50  ;;  %v7167_v61 = vld [vmem:[#allocation2 + $0x2e4] sm:$0xf] }
 0x179   :  { %v2894_v51 = vpop.f32.mrf.mxu0 }
 0x17a   :  { %v8108_v44 = vadd.f32 %v2891_v5, %v2723_v58  ;;  %2426 = vmatmul.bf16.gmra.mxu1 %v8100_v16  ;;  %2595 = vmatmul.bf16.gmra.mxu2 %v8102_v38  ;;  %v8120_v38 = vor.u32 %v7166_v9, %v6003_v18 }
 0x17b   :  { %2764 = vmatmul.bf16.gmra.mxu3 %v8104_v41  ;;  %v7171_v41 = vld [vmem:[#allocation2 + $0x300] sm:$0xf0] }
 0x17c   :  { %2933 = vmatmul.bf16.gmra.mxu0 %v8106_v43  ;;  %v6017_v43 = vld [vmem:[#allocation2 + $0x2e8] sm:$0xf]  ;;  %10278 = vst [vmem:[#allocation124_spill] sm:$0xff] %v8120_v38 }
 0x17d   :  { %v2556_v17 = vpop.f32.mrf.mxu2 }
 0x17e   :  { %v2557_v63 = vadd.f32 %v2556_v17, %v2388_v52  ;;  %v2725_v30 = vpop.f32.mrf.mxu3 }
 0x17f   :  { %v2389_v40 = vpop.f32.mrf.mxu1 }
 0x180   :  { %v2390_v60 = vadd.f32 %v2389_v40, %v2221_v8  ;;  %v2726_v20 = vadd.f32 %v2725_v30, %v2557_v63  ;;  %v8122_v8 = vor.u32 %v7170_v26, %v6009_v11  ;;  %v8124_v63 = vor.u32 %v7167_v61, %v6011_v31  ;;  %v7173_v61 = vld [vmem:[#allocation2 + $0x314] sm:$0xf]  ;;  %v6031_v31 = vld [vmem:[#allocation2 + $0x32c] sm:$0xf0] }
 0x181   :  { %v2896_v36 = vpop.f32.mrf.mxu0 }
 0x182   :  { %v8116_v5 = vadd.f32 %v2894_v51, %v2726_v20  ;;  %10279 = vst [vmem:[#allocation125_spill] sm:$0xff] %v8122_v8  ;;  %v8126_v20 = vor.u32 %v7171_v41, %v6017_v43 }
 0x183   :  { %10280 = vst [vmem:[#allocation126_spill] sm:$0xff] %v8124_v63 }
 0x184   :  { %10281 = vst [vmem:[#allocation127_spill] sm:$0xff] %v8126_v20 }
 0x185   :  { %v2558_v58 = vpop.f32.mrf.mxu2 }
 0x186   :  { %v2559_v52 = vadd.f32 %v2558_v58, %v2390_v60  ;;  %v2727_v17 = vpop.f32.mrf.mxu3  ;;  %v2226_v60 = vadd.f32 %v7956_v34, %v8014_v50  ;;  %v6037_v58 = vld [vmem:[#allocation2 + $0x318] sm:$0xf] }
 0x187   :  { %v2392_v51 = vpop.f32.mrf.mxu1  ;;  %v6039_v34 = vld [vmem:[#allocation2 + $0x334] sm:$0xf0] }
 0x188   :  { %v2393_v30 = vadd.f32 %v2392_v51, %v2224_v4  ;;  %v2728_v40 = vadd.f32 %v2727_v17, %v2559_v52  ;;  %v7177_v52 = vld [vmem:[#allocation2 + $0x330] sm:$0xf0]  ;;  %v2229_v17 = vadd.f32 %v7972_v22, %v8014_v50  ;;  %v7174_v51 = vld [vmem:[#allocation2 + $0x31c] sm:$0xf] }
 0x189   :  { %v2899_v46 = vpop.f32.mrf.mxu0 }
 0x18a   :  { %v8128_v33 = vadd.f32 %v2896_v36, %v2728_v40  ;;  %2431 = vmatmul.bf16.gmra.mxu1 %v8120_v38  ;;  %2600 = vmatmul.bf16.gmra.mxu2 %v8122_v8  ;;  %v8140_v8 = vor.u32 %v7173_v61, %v6031_v31  ;;  %v2231_v31 = vadd.f32 %v7984_v15, %v8014_v50 }
 0x18b   :  { %2769 = vmatmul.bf16.gmra.mxu3 %v8124_v63  ;;  %v7178_v63 = vld [vmem:[#allocation2 + $0x338] sm:$0xf0]  ;;  %v2234_v15 = vadd.f32 %v8000_v10, %v8014_v50 }
 0x18c   :  { %2938 = vmatmul.bf16.gmra.mxu0 %v8126_v20  ;;  %v6045_v20 = vld [vmem:[#allocation2 + $0x320] sm:$0xf]  ;;  %10282 = vst [vmem:[#allocation128_spill] sm:$0xff] %v8140_v8 }
 0x18d   :  { %v2561_v9 = vpop.f32.mrf.mxu2 }
 0x18e   :  { %v2562_v18 = vadd.f32 %v2561_v9, %v2393_v30  ;;  %v2730_v11 = vpop.f32.mrf.mxu3 }
 0x18f   :  { %v2394_v26 = vpop.f32.mrf.mxu1 }
 0x190   :  { %v2395_v41 = vadd.f32 %v2394_v26, %v2226_v60  ;;  %v2731_v43 = vadd.f32 %v2730_v11, %v2562_v18  ;;  %v8142_v60 = vor.u32 %v7177_v52, %v6037_v58  ;;  %v8144_v18 = vor.u32 %v7174_v51, %v6039_v34 }
 0x191   :  { %v2901_v4 = vpop.f32.mrf.mxu0 }
 0x192   :  { %v8136_v36 = vadd.f32 %v2899_v46, %v2731_v43  ;;  %10283 = vst [vmem:[#allocation129_spill] sm:$0xff] %v8142_v60  ;;  %v8146_v43 = vor.u32 %v7178_v63, %v6045_v20 }
 0x193   :  { %10284 = vst [vmem:[#allocation130_spill] sm:$0xff] %v8144_v18 }
 0x194   :  { %10285 = vst [vmem:[#allocation131_spill] sm:$0xff] %v8146_v43 }
 0x195   :  { %v2563_v40 = vpop.f32.mrf.mxu2 }
 0x196   :  { %v2564_v30 = vadd.f32 %v2563_v40, %v2395_v41  ;;  %v2732_v9 = vpop.f32.mrf.mxu3  ;;  %v6877_v41 = vld [vmem:[#allocation5 + $0x2b0] sm:$0xf]  ;;  %v7386_v40 = vld [vmem:[#allocation5 + $0x2b4] sm:$0xf0] }
 0x197   :  { %v2397_v46 = vpop.f32.mrf.mxu1  ;;  %v6878_v61 = vor.u32 %v7386_v40, %v6877_v41  ;;  %v6065_v41 = vld [vmem:[#allocation2 + $0x350] sm:$0xf]  ;;  %v7184_v40 = vld [vmem:[#allocation2 + $0x368] sm:$0xf0] }
 0x198   :  { %v2398_v11 = vadd.f32 %v2397_v46, %v2229_v17  ;;  %v2733_v26 = vadd.f32 %v2732_v9, %v2564_v30  ;;  %v7180_v30 = vld [vmem:[#allocation2 + $0x34c] sm:$0xf]  ;;  %v6957_v9 = vld [vmem:[#allocation5 + $0x350] sm:$0xf]  ;;  %v7406_v46 = vld [vmem:[#allocation5 + $0x354] sm:$0xf0] }
 0x199   :  { %v2904_v28 = vpop.f32.mrf.mxu0  ;;  %3038 = vmatpush.bf16.msra.mxu1 %v6878_v61  ;;  %v6067_v61 = vld [vmem:[#allocation2 + $0x36c] sm:$0xf0] }
 0x19a   :  { %v8148_v22 = vadd.f32 %v2901_v4, %v2733_v26  ;;  %2436 = vmatmul.bf16.gmra.mxu1 %v8140_v8  ;;  %2605 = vmatmul.bf16.gmra.mxu2 %v8142_v60  ;;  %v6059_v26 = vld [vmem:[#allocation2 + $0x364] sm:$0xf0]  ;;  %v7185_v60 = vld [vmem:[#allocation2 + $0x370] sm:$0xf0] }
 0x19b   :  { %2774 = vmatmul.bf16.gmra.mxu3 %v8144_v18  ;;  %v6958_v18 = vor.u32 %v7406_v46, %v6957_v9 }
 0x19c   :  { %10286 = vst [vmem:[#allocation132_spill] sm:$0xff] %v8148_v22  ;;  %2943 = vmatmul.bf16.gmra.mxu0 %v8146_v43  ;;  %v7181_v43 = vld [vmem:[#allocation2 + $0x354] sm:$0xf] }
 0x19d   :  { %v2566_v58 = vpop.f32.mrf.mxu2  ;;  %3205 = vmatpush.bf16.msra.mxu2 %v6958_v18  ;;  %v8164_v8 = vor.u32 %v7181_v43, %v6067_v61  ;;  %v2236_v18 = vadd.f32 %v8012_v7, %v8014_v50  ;;  %v6093_v61 = vld [vmem:[#allocation2 + $0x388] sm:$0xf]  ;;  %v7192_v7 = vld [vmem:[#allocation2 + $0x3a8] sm:$0xf0] }
 0x19e   :  { %v2567_v63 = vadd.f32 %v2566_v58, %v2398_v11  ;;  %v2735_v20 = vpop.f32.mrf.mxu3  ;;  %v6073_v58 = vld [vmem:[#allocation2 + $0x358] sm:$0xf] }
 0x19f   :  { %v2399_v4 = vpop.f32.mrf.mxu1  ;;  %10290 = vst [vmem:[#allocation136_spill] sm:$0xff] %v8164_v8 }
 0x1a0   :  { %v2400_v52 = vadd.f32 %v2399_v4, %v2231_v31  ;;  %v2736_v17 = vadd.f32 %v2735_v20, %v2567_v63  ;;  %v8162_v20 = vor.u32 %v7184_v40, %v6065_v41  ;;  %v7309_v4 = vld [vmem:[#allocation5 + $0x54] sm:$0xf]  ;;  %v7187_v40 = vld [vmem:[#allocation2 + $0x384] sm:$0xf] }
 0x1a1   :  { %v2906_v51 = vpop.f32.mrf.mxu0 }
 0x1a2   :  { %v8156_v34 = vadd.f32 %v2904_v28, %v2736_v17  ;;  %v8160_v28 = vor.u32 %v7180_v30, %v6059_v26  ;;  %10289 = vst [vmem:[#allocation135_spill] sm:$0xff] %v8162_v20  ;;  %v6575_v17 = vld [vmem:[#allocation5 + $0x58] sm:$0xf0] }
 0x1a3   :  { %v6578_v9 = vor.u32 %v7309_v4, %v6575_v17  ;;  %v6101_v4 = vld [vmem:[#allocation2 + $0x390] sm:$0xf]  ;;  %v2239_v17 = vadd.f32 %v7798_v47, %v8014_v50 }
 0x1a4   :  { %10287 = vst [vmem:[#allocation133_spill] sm:$0xff] %v8156_v34  ;;  %v8166_v34 = vor.u32 %v7185_v60, %v6073_v58  ;;  %v7188_v58 = vld [vmem:[#allocation2 + $0x38c] sm:$0xf] }
 0x1a5   :  { %v2568_v11 = vpop.f32.mrf.mxu2  ;;  %10288 = vst [vmem:[#allocation134_spill] sm:$0xff] %v8160_v28  ;;  %3374 = vmatpush.bf16.msra.mxu3 %v6578_v9 }
 0x1a6   :  { %v2569_v31 = vadd.f32 %v2568_v11, %v2400_v52  ;;  %v2737_v63 = vpop.f32.mrf.mxu3  ;;  %10291 = vst [vmem:[#allocation137_spill] sm:$0xff] %v8166_v34  ;;  %v7191_v11 = vld [vmem:[#allocation2 + $0x3a0] sm:$0xf0] }
 0x1a7   :  { %v2402_v48 = vpop.f32.mrf.mxu1 }
 0x1a8   :  { %v2403_v46 = vadd.f32 %v2402_v48, %v2234_v15  ;;  %v2738_v10 = vadd.f32 %v2737_v63, %v2569_v31  ;;  %v6087_v15 = vld [vmem:[#allocation2 + $0x39c] sm:$0xf0]  ;;  %v6095_v31 = vld [vmem:[#allocation2 + $0x3a4] sm:$0xf0] }
 0x1a9   :  { %v2909_v22 = vpop.f32.mrf.mxu0 }
 0x1aa   :  { %v8168_v38 = vadd.f32 %v2906_v51, %v2738_v10  ;;  %2441 = vmatmul.bf16.gmra.mxu1 %v8160_v28  ;;  %2610 = vmatmul.bf16.gmra.mxu2 %v8162_v20  ;;  %v8180_v10 = vor.u32 %v7187_v40, %v6087_v15 }
 0x1ab   :  { %2779 = vmatmul.bf16.gmra.mxu3 %v8164_v8 }
 0x1ac   :  { %2948 = vmatmul.bf16.gmra.mxu0 %v8166_v34  ;;  %v6655_v34 = vld [vmem:[#allocation5 + $0xf8] sm:$0xf0] }
 0x1ad   :  { %v2571_v43 = vpop.f32.mrf.mxu2 }
 0x1ae   :  { %v2572_v48 = vadd.f32 %v2571_v43, %v2403_v46  ;;  %v2740_v52 = vpop.f32.mrf.mxu3  ;;  %v8184_v43 = vor.u32 %v7188_v58, %v6095_v31  ;;  %v7194_v31 = vld [vmem:[#allocation2 + $0x3bc] sm:$0xf] }
 0x1af   :  { %v2404_v60 = vpop.f32.mrf.mxu1 }
 0x1b0   :  { %v2405_v30 = vadd.f32 %v2404_v60, %v2236_v18  ;;  %v2741_v26 = vadd.f32 %v2740_v52, %v2572_v48  ;;  %v8182_v18 = vor.u32 %v7191_v11, %v6093_v61  ;;  %10293 = vst [vmem:[#allocation139_spill] sm:$0xff] %v8184_v43  ;;  %v8186_v60 = vor.u32 %v7192_v7, %v6101_v4  ;;  %v6121_v4 = vld [vmem:[#allocation2 + $0x3c0] sm:$0xf]  ;;  %v7198_v7 = vld [vmem:[#allocation2 + $0x3d8] sm:$0xf0] }
 0x1b1   :  { %v2911_v41 = vpop.f32.mrf.mxu0 }
 0x1b2   :  { %v8176_v51 = vadd.f32 %v2909_v22, %v2741_v26  ;;  %10292 = vst [vmem:[#allocation138_spill] sm:$0xff] %v8182_v18  ;;  %v7329_v26 = vld [vmem:[#allocation5 + $0xf4] sm:$0xf] }
 0x1b3   :  { %10294 = vst [vmem:[#allocation140_spill] sm:$0xff] %v8186_v60  ;;  %v6658_v20 = vor.u32 %v7329_v26, %v6655_v34 }
 0x1b5   :  { %v2573_v63 = vpop.f32.mrf.mxu2  ;;  %3541 = vmatpush.bf16.msra.mxu0 %v6658_v20  ;;  %v6123_v20 = vld [vmem:[#allocation2 + $0x3dc] sm:$0xf0] }
 0x1b6   :  { %v2574_v9 = vadd.f32 %v2573_v63, %v2405_v30  ;;  %v2742_v46 = vpop.f32.mrf.mxu3  ;;  %v2241_v30 = vadd.f32 %v7814_v59, %v8014_v50  ;;  %v6115_v63 = vld [vmem:[#allocation2 + $0x3d4] sm:$0xf0]  ;;  %v2244_v59 = vadd.f32 %v7826_v13, %v8014_v50 }
 0x1b7   :  { %v2407_v22 = vpop.f32.mrf.mxu1  ;;  %v8200_v26 = vor.u32 %v7194_v31, %v6115_v63 }
 0x1b8   :  { %v2408_v48 = vadd.f32 %v2407_v22, %v2239_v17  ;;  %v2743_v52 = vadd.f32 %v2742_v46, %v2574_v9  ;;  %v7195_v17 = vld [vmem:[#allocation2 + $0x3c4] sm:$0xf]  ;;  %v6129_v46 = vld [vmem:[#allocation2 + $0x3c8] sm:$0xf] }
 0x1b9   :  { %v2914_v8 = vpop.f32.mrf.mxu0  ;;  %v7199_v22 = vld [vmem:[#allocation2 + $0x3e0] sm:$0xf0] }
 0x1ba   :  { %v8188_v28 = vadd.f32 %v2911_v41, %v2743_v52  ;;  %2446 = vmatmul.bf16.gmra.mxu1 %v8180_v10  ;;  %2615 = vmatmul.bf16.gmra.mxu2 %v8182_v18 }
 0x1bb   :  { %2784 = vmatmul.bf16.gmra.mxu3 %v8184_v43 }
 0x1bc   :  { %2953 = vmatmul.bf16.gmra.mxu0 %v8186_v60 }
 0x1bd   :  { %v2576_v47 = vpop.f32.mrf.mxu2 }
 0x1be   :  { %v2577_v40 = vadd.f32 %v2576_v47, %v2408_v48  ;;  %v2745_v15 = vpop.f32.mrf.mxu3  ;;  %v8202_v47 = vor.u32 %v7198_v7, %v6121_v4 }
 0x1bf   :  { %v2409_v61 = vpop.f32.mrf.mxu1 }
 0x1c0   :  { %v2410_v11 = vadd.f32 %v2409_v61, %v2241_v30  ;;  %v2746_v34 = vadd.f32 %v2745_v15, %v2577_v40  ;;  %10295 = vst [vmem:[#allocation141_spill] sm:$0xff] %v8202_v47  ;;  %v8204_v30 = vor.u32 %v7195_v17, %v6123_v20  ;;  %v8206_v61 = vor.u32 %v7199_v22, %v6129_v46  ;;  %v6143_v46 = vld [vmem:[#allocation2 + $0x40c] sm:$0xf0]  ;;  %v6149_v22 = vld [vmem:[#allocation2 + $0x3f8] sm:$0xf] }
 0x1c1   :  { %v2916_v41 = vpop.f32.mrf.mxu0 }
 0x1c2   :  { %v8196_v58 = vadd.f32 %v2914_v8, %v2746_v34  ;;  %10296 = vst [vmem:[#allocation142_spill] sm:$0xff] %v8204_v30 }
 0x1c3   :  { %10297 = vst [vmem:[#allocation143_spill] sm:$0xff] %v8206_v61 }
 0x1c5   :  { %v2578_v9 = vpop.f32.mrf.mxu2 }
 0x1c6   :  { %v2579_v48 = vadd.f32 %v2578_v9, %v2410_v11  ;;  %v2747_v52 = vpop.f32.mrf.mxu3  ;;  %v2246_v11 = vadd.f32 %v7842_v27, %v8014_v50  ;;  %v7201_v9 = vld [vmem:[#allocation2 + $0x3f4] sm:$0xf]  ;;  %v2249_v27 = vadd.f32 %v7854_v12, %v8014_v50  ;;  %v6869_v12 = vld [vmem:[#allocation5 + $0x2a0] sm:$0xf] }
 0x1c7   :  { %v2412_v8 = vpop.f32.mrf.mxu1 }
 0x1c8   :  { %v2413_v40 = vadd.f32 %v2412_v8, %v2244_v59  ;;  %v2748_v15 = vadd.f32 %v2747_v52, %v2579_v48  ;;  %v7205_v59 = vld [vmem:[#allocation2 + $0x410] sm:$0xf0]  ;;  %v7202_v48 = vld [vmem:[#allocation2 + $0x3fc] sm:$0xf]  ;;  %v6151_v52 = vld [vmem:[#allocation2 + $0x414] sm:$0xf0] }
 0x1c9   :  { %v2919_v34 = vpop.f32.mrf.mxu0 }
 0x1ca   :  { %v8208_v60 = vadd.f32 %v2916_v41, %v2748_v15  ;;  %2451 = vmatmul.bf16.gmra.mxu1 %v8200_v26  ;;  %2620 = vmatmul.bf16.gmra.mxu2 %v8202_v47  ;;  %v6157_v15 = vld [vmem:[#allocation2 + $0x400] sm:$0xf] }
 0x1cb   :  { %2789 = vmatmul.bf16.gmra.mxu3 %v8204_v30  ;;  %v8220_v30 = vor.u32 %v7201_v9, %v6143_v46 }
 0x1cc   :  { %2958 = vmatmul.bf16.gmra.mxu0 %v8206_v61  ;;  %v7206_v61 = vld [vmem:[#allocation2 + $0x418] sm:$0xf0] }
 0x1cd   :  { %v2581_v13 = vpop.f32.mrf.mxu2  ;;  %10298 = vst [vmem:[#allocation144_spill] sm:$0xff] %v8220_v30 }
 0x1ce   :  { %v2582_v31 = vadd.f32 %v2581_v13, %v2413_v40  ;;  %v2750_v63 = vpop.f32.mrf.mxu3 }
 0x1cf   :  { %v2414_v4 = vpop.f32.mrf.mxu1 }
 0x1d0   :  { %v2415_v7 = vadd.f32 %v2414_v4, %v2246_v11  ;;  %v2751_v17 = vadd.f32 %v2750_v63, %v2582_v31  ;;  %v8222_v11 = vor.u32 %v7205_v59, %v6149_v22  ;;  %v8224_v31 = vor.u32 %v7202_v48, %v6151_v52 }
 0x1d1   :  { %v2921_v20 = vpop.f32.mrf.mxu0 }
 0x1d2   :  { %v8216_v41 = vadd.f32 %v2919_v34, %v2751_v17  ;;  %10299 = vst [vmem:[#allocation145_spill] sm:$0xff] %v8222_v11  ;;  %v8226_v17 = vor.u32 %v7206_v61, %v6157_v15  ;;  %v2251_v61 = vadd.f32 %v7870_v62, %v8014_v50  ;;  %v7213_v62 = vld [vmem:[#allocation2 + $0x450] sm:$0xf0] }
 0x1d3   :  { %10300 = vst [vmem:[#allocation146_spill] sm:$0xff] %v8224_v31 }
 0x1d4   :  { %10301 = vst [vmem:[#allocation147_spill] sm:$0xff] %v8226_v17 }
 0x1d5   :  { %v2583_v8 = vpop.f32.mrf.mxu2 }
 0x1d6   :  { %v2584_v40 = vadd.f32 %v2583_v8, %v2415_v7  ;;  %v2752_v13 = vpop.f32.mrf.mxu3  ;;  %v7384_v7 = vld [vmem:[#allocation5 + $0x2a4] sm:$0xf0] }
 0x1d7   :  { %v2417_v34 = vpop.f32.mrf.mxu1  ;;  %v6870_v9 = vor.u32 %v7384_v7, %v6869_v12  ;;  %v7212_v12 = vld [vmem:[#allocation2 + $0x448] sm:$0xf0] }
 0x1d8   :  { %v2418_v63 = vadd.f32 %v2417_v34, %v2249_v27  ;;  %v2753_v4 = vadd.f32 %v2752_v13, %v2584_v40  ;;  %v7208_v27 = vld [vmem:[#allocation2 + $0x42c] sm:$0xf]  ;;  %v6949_v40 = vld [vmem:[#allocation5 + $0x340] sm:$0xf]  ;;  %v7404_v13 = vld [vmem:[#allocation5 + $0x344] sm:$0xf0] }
 0x1d9   :  { %v2924_v47 = vpop.f32.mrf.mxu0  ;;  %3039 = vmatpush.bf16.msra.mxu1 %v6870_v9  ;;  %v6171_v34 = vld [vmem:[#allocation2 + $0x444] sm:$0xf0]  ;;  %v6950_v7 = vor.u32 %v7404_v13, %v6949_v40  ;;  %v6179_v9 = vld [vmem:[#allocation2 + $0x44c] sm:$0xf0] }
 0x1da   :  { %v8228_v43 = vadd.f32 %v2921_v20, %v2753_v4  ;;  %2456 = vmatmul.bf16.gmra.mxu1 %v8220_v30  ;;  %2625 = vmatmul.bf16.gmra.mxu2 %v8222_v11  ;;  %v6177_v4 = vld [vmem:[#allocation2 + $0x430] sm:$0xf]  ;;  %v6185_v11 = vld [vmem:[#allocation2 + $0x438] sm:$0xf] }
 0x1db   :  { %2794 = vmatmul.bf16.gmra.mxu3 %v8224_v31  ;;  %3206 = vmatpush.bf16.msra.mxu2 %v6950_v7 }
 0x1dc   :  { %10302 = vst [vmem:[#allocation148_spill] sm:$0xff] %v8228_v43  ;;  %2963 = vmatmul.bf16.gmra.mxu0 %v8226_v17  ;;  %v7209_v17 = vld [vmem:[#allocation2 + $0x434] sm:$0xf] }
 0x1dd   :  { %v2586_v46 = vpop.f32.mrf.mxu2  ;;  %v8244_v18 = vor.u32 %v7209_v17, %v6179_v9  ;;  %v6205_v9 = vld [vmem:[#allocation2 + $0x468] sm:$0xf] }
 0x1de   :  { %v2587_v22 = vadd.f32 %v2586_v46, %v2418_v63  ;;  %v2755_v59 = vpop.f32.mrf.mxu3  ;;  %v2254_v63 = vadd.f32 %v7882_v6, %v8014_v50 }
 0x1df   :  { %v2419_v20 = vpop.f32.mrf.mxu1  ;;  %10306 = vst [vmem:[#allocation152_spill] sm:$0xff] %v8244_v18 }
 0x1e0   :  { %v2420_v48 = vadd.f32 %v2419_v20, %v2251_v61  ;;  %v2756_v52 = vadd.f32 %v2755_v59, %v2587_v22  ;;  %v8242_v22 = vor.u32 %v7212_v12, %v6177_v4  ;;  %v7307_v59 = vld [vmem:[#allocation5 + $0x44] sm:$0xf]  ;;  %v6567_v20 = vld [vmem:[#allocation5 + $0x48] sm:$0xf0]  ;;  %v6199_v12 = vld [vmem:[#allocation2 + $0x47c] sm:$0xf0] }
 0x1e1   :  { %v2926_v8 = vpop.f32.mrf.mxu0  ;;  %v6570_v40 = vor.u32 %v7307_v59, %v6567_v20  ;;  %v6213_v59 = vld [vmem:[#allocation2 + $0x470] sm:$0xf]  ;;  %v7220_v20 = vld [vmem:[#allocation2 + $0x488] sm:$0xf0] }
 0x1e2   :  { %v8236_v15 = vadd.f32 %v2924_v47, %v2756_v52  ;;  %v8240_v47 = vor.u32 %v7208_v27, %v6171_v34  ;;  %10305 = vst [vmem:[#allocation151_spill] sm:$0xff] %v8242_v22 }
 0x1e3   :  { %3375 = vmatpush.bf16.msra.mxu3 %v6570_v40 }
 0x1e4   :  { %10303 = vst [vmem:[#allocation149_spill] sm:$0xff] %v8236_v15  ;;  %v8246_v15 = vor.u32 %v7213_v62, %v6185_v11  ;;  %v7219_v62 = vld [vmem:[#allocation2 + $0x480] sm:$0xf0] }
 0x1e5   :  { %v2588_v31 = vpop.f32.mrf.mxu2  ;;  %10304 = vst [vmem:[#allocation150_spill] sm:$0xff] %v8240_v47 }
 0x1e6   :  { %v2589_v46 = vadd.f32 %v2588_v31, %v2420_v48  ;;  %v2757_v61 = vpop.f32.mrf.mxu3  ;;  %10307 = vst [vmem:[#allocation153_spill] sm:$0xff] %v8246_v15  ;;  %v2256_v31 = vadd.f32 %v7898_v2, %v8014_v50  ;;  %v2259_v2 = vadd.f32 %v7910_v54, %v8014_v50 }
 0x1e7   :  { %v2422_v52 = vpop.f32.mrf.mxu1 }
 0x1e8   :  { %v2423_v13 = vadd.f32 %v2422_v52, %v2254_v63  ;;  %v2758_v30 = vadd.f32 %v2757_v61, %v2589_v46  ;;  %v7216_v63 = vld [vmem:[#allocation2 + $0x46c] sm:$0xf]  ;;  %v6207_v46 = vld [vmem:[#allocation2 + $0x484] sm:$0xf0] }
 0x1e9   :  { %v2929_v7 = vpop.f32.mrf.mxu0 }
 0x1ea   :  { %v8248_v43 = vadd.f32 %v2926_v8, %v2758_v30  ;;  %2461 = vmatmul.bf16.gmra.mxu1 %v8240_v47  ;;  %2630 = vmatmul.bf16.gmra.mxu2 %v8242_v22  ;;  %v7215_v8 = vld [vmem:[#allocation2 + $0x464] sm:$0xf] }
 0x1eb   :  { %2799 = vmatmul.bf16.gmra.mxu3 %v8244_v18 }
 0x1ec   :  { %2968 = vmatmul.bf16.gmra.mxu0 %v8246_v15  ;;  %v6647_v15 = vld [vmem:[#allocation5 + $0xe8] sm:$0xf0] }
 0x1ed   :  { %v2591_v6 = vpop.f32.mrf.mxu2 }
 0x1ee   :  { %v2592_v17 = vadd.f32 %v2591_v6, %v2423_v13  ;;  %v2760_v48 = vpop.f32.mrf.mxu3  ;;  %v8260_v13 = vor.u32 %v7215_v8, %v6199_v12  ;;  %v8262_v6 = vor.u32 %v7219_v62, %v6205_v9 }
 0x1ef   :  { %v2424_v11 = vpop.f32.mrf.mxu1 }
 0x1f0   :  { %v2425_v27 = vadd.f32 %v2424_v11, %v2256_v31  ;;  %v2761_v34 = vadd.f32 %v2760_v48, %v2592_v17  ;;  %10308 = vst [vmem:[#allocation154_spill] sm:$0xff] %v8262_v6  ;;  %v8264_v31 = vor.u32 %v7216_v63, %v6207_v46  ;;  %v8266_v11 = vor.u32 %v7220_v20, %v6213_v59  ;;  %v7222_v46 = vld [vmem:[#allocation2 + $0x49c] sm:$0xf]  ;;  %v6233_v59 = vld [vmem:[#allocation2 + $0x4a0] sm:$0xf] }
 0x1f1   :  { %v2931_v4 = vpop.f32.mrf.mxu0  ;;  %v7226_v20 = vld [vmem:[#allocation2 + $0x4b8] sm:$0xf0] }
 0x1f2   :  { %v8256_v30 = vadd.f32 %v2929_v7, %v2761_v34  ;;  %10309 = vst [vmem:[#allocation155_spill] sm:$0xff] %v8264_v31  ;;  %v7327_v34 = vld [vmem:[#allocation5 + $0xe4] sm:$0xf] }
 0x1f3   :  { %10310 = vst [vmem:[#allocation156_spill] sm:$0xff] %v8266_v11  ;;  %v6650_v22 = vor.u32 %v7327_v34, %v6647_v15 }
 0x1f5   :  { %v2593_v61 = vpop.f32.mrf.mxu2  ;;  %3542 = vmatpush.bf16.msra.mxu0 %v6650_v22  ;;  %v6235_v22 = vld [vmem:[#allocation2 + $0x4bc] sm:$0xf0] }
 0x1f6   :  { %v2594_v52 = vadd.f32 %v2593_v61, %v2425_v27  ;;  %v2762_v40 = vpop.f32.mrf.mxu3  ;;  %v2261_v27 = vadd.f32 %v7926_v49, %v8014_v50  ;;  %v6227_v61 = vld [vmem:[#allocation2 + $0x4b4] sm:$0xf0]  ;;  %v2264_v49 = vadd.f32 %v7938_v37, %v8014_v50 }
 0x1f7   :  { %v2427_v7 = vpop.f32.mrf.mxu1  ;;  %v8280_v34 = vor.u32 %v7222_v46, %v6227_v61 }
 0x1f8   :  { %v2428_v17 = vadd.f32 %v2427_v7, %v2259_v2  ;;  %v2763_v48 = vadd.f32 %v2762_v40, %v2594_v52  ;;  %v7223_v2 = vld [vmem:[#allocation2 + $0x4a4] sm:$0xf]  ;;  %v6241_v40 = vld [vmem:[#allocation2 + $0x4a8] sm:$0xf] }
 0x1f9   :  { %v2934_v18 = vpop.f32.mrf.mxu0  ;;  %v7227_v7 = vld [vmem:[#allocation2 + $0x4c0] sm:$0xf0] }
 0x1fa   :  { %v8268_v47 = vadd.f32 %v2931_v4, %v2763_v48  ;;  %2466 = vmatmul.bf16.gmra.mxu1 %v8260_v13  ;;  %2635 = vmatmul.bf16.gmra.mxu2 %v8262_v6 }
 0x1fb   :  { %2804 = vmatmul.bf16.gmra.mxu3 %v8264_v31 }
 0x1fc   :  { %2973 = vmatmul.bf16.gmra.mxu0 %v8266_v11 }
 0x1fd   :  { %v2596_v54 = vpop.f32.mrf.mxu2 }
 0x1fe   :  { %v2597_v8 = vadd.f32 %v2596_v54, %v2428_v17  ;;  %v2765_v12 = vpop.f32.mrf.mxu3  ;;  %v8282_v54 = vor.u32 %v7226_v20, %v6233_v59 }
 0x1ff   :  { %v2429_v9 = vpop.f32.mrf.mxu1 }
 0x200   :  { %v2430_v62 = vadd.f32 %v2429_v9, %v2261_v27  ;;  %v2766_v15 = vadd.f32 %v2765_v12, %v2597_v8  ;;  %10311 = vst [vmem:[#allocation157_spill] sm:$0xff] %v8282_v54  ;;  %v8284_v27 = vor.u32 %v7223_v2, %v6235_v22  ;;  %v8286_v9 = vor.u32 %v7227_v7, %v6241_v40  ;;  %v6255_v40 = vld [vmem:[#allocation2 + $0x4ec] sm:$0xf0]  ;;  %v6261_v7 = vld [vmem:[#allocation2 + $0x4d8] sm:$0xf] }
 0x201   :  { %v2936_v4 = vpop.f32.mrf.mxu0 }
 0x202   :  { %v8276_v63 = vadd.f32 %v2934_v18, %v2766_v15  ;;  %10312 = vst [vmem:[#allocation158_spill] sm:$0xff] %v8284_v27 }
 0x203   :  { %10313 = vst [vmem:[#allocation159_spill] sm:$0xff] %v8286_v9 }
 0x205   :  { %v2598_v52 = vpop.f32.mrf.mxu2 }
 0x206   :  { %v2599_v17 = vadd.f32 %v2598_v52, %v2430_v62  ;;  %v2767_v48 = vpop.f32.mrf.mxu3  ;;  %v2266_v62 = vadd.f32 %v7954_v29, %v8014_v50  ;;  %v7229_v52 = vld [vmem:[#allocation2 + $0x4d4] sm:$0xf]  ;;  %v2269_v29 = vadd.f32 %v7966_v45, %v8014_v50  ;;  %v6861_v45 = vld [vmem:[#allocation5 + $0x290] sm:$0xf] }
 0x207   :  { %v2432_v18 = vpop.f32.mrf.mxu1 }
 0x208   :  { %v2433_v8 = vadd.f32 %v2432_v18, %v2264_v49  ;;  %v2768_v12 = vadd.f32 %v2767_v48, %v2599_v17  ;;  %v7233_v49 = vld [vmem:[#allocation2 + $0x4f0] sm:$0xf0]  ;;  %v7230_v17 = vld [vmem:[#allocation2 + $0x4dc] sm:$0xf]  ;;  %v6263_v48 = vld [vmem:[#allocation2 + $0x4f4] sm:$0xf0] }
 0x209   :  { %v2939_v15 = vpop.f32.mrf.mxu0 }
 0x20a   :  { %v8288_v11 = vadd.f32 %v2936_v4, %v2768_v12  ;;  %2471 = vmatmul.bf16.gmra.mxu1 %v8280_v34  ;;  %2640 = vmatmul.bf16.gmra.mxu2 %v8282_v54  ;;  %v6269_v12 = vld [vmem:[#allocation2 + $0x4e0] sm:$0xf] }
 0x20b   :  { %2809 = vmatmul.bf16.gmra.mxu3 %v8284_v27  ;;  %v8300_v27 = vor.u32 %v7229_v52, %v6255_v40 }
 0x20c   :  { %2978 = vmatmul.bf16.gmra.mxu0 %v8286_v9  ;;  %v7234_v9 = vld [vmem:[#allocation2 + $0x4f8] sm:$0xf0] }
 0x20d   :  { %v2601_v37 = vpop.f32.mrf.mxu2  ;;  %10314 = vst [vmem:[#allocation160_spill] sm:$0xff] %v8300_v27 }
 0x20e   :  { %v2602_v46 = vadd.f32 %v2601_v37, %v2433_v8  ;;  %v2770_v61 = vpop.f32.mrf.mxu3 }
 0x20f   :  { %v2434_v59 = vpop.f32.mrf.mxu1 }
 0x210   :  { %v2435_v20 = vadd.f32 %v2434_v59, %v2266_v62  ;;  %v2771_v2 = vadd.f32 %v2770_v61, %v2602_v46  ;;  %v8302_v62 = vor.u32 %v7233_v49, %v6261_v7  ;;  %v8304_v46 = vor.u32 %v7230_v17, %v6263_v48 }
 0x211   :  { %v2941_v22 = vpop.f32.mrf.mxu0 }
 0x212   :  { %v8296_v4 = vadd.f32 %v2939_v15, %v2771_v2  ;;  %10315 = vst [vmem:[#allocation161_spill] sm:$0xff] %v8302_v62  ;;  %v8306_v2 = vor.u32 %v7234_v9, %v6269_v12  ;;  %v2271_v9 = vadd.f32 %v7982_v53, %v8014_v50  ;;  %v7241_v53 = vld [vmem:[#allocation2 + $0x530] sm:$0xf0] }
 0x213   :  { %10316 = vst [vmem:[#allocation162_spill] sm:$0xff] %v8304_v46 }
 0x214   :  { %10317 = vst [vmem:[#allocation163_spill] sm:$0xff] %v8306_v2 }
 0x215   :  { %v2603_v18 = vpop.f32.mrf.mxu2 }
 0x216   :  { %v2604_v8 = vadd.f32 %v2603_v18, %v2435_v20  ;;  %v2772_v37 = vpop.f32.mrf.mxu3  ;;  %v7382_v20 = vld [vmem:[#allocation5 + $0x294] sm:$0xf0] }
 0x217   :  { %v2437_v15 = vpop.f32.mrf.mxu1  ;;  %v6862_v52 = vor.u32 %v7382_v20, %v6861_v45  ;;  %v7240_v45 = vld [vmem:[#allocation2 + $0x528] sm:$0xf0] }
 0x218   :  { %v2438_v61 = vadd.f32 %v2437_v15, %v2269_v29  ;;  %v2773_v59 = vadd.f32 %v2772_v37, %v2604_v8  ;;  %v7236_v29 = vld [vmem:[#allocation2 + $0x50c] sm:$0xf]  ;;  %v6941_v8 = vld [vmem:[#allocation5 + $0x330] sm:$0xf]  ;;  %v7402_v37 = vld [vmem:[#allocation5 + $0x334] sm:$0xf0] }
 0x219   :  { %v2944_v54 = vpop.f32.mrf.mxu0  ;;  %3040 = vmatpush.bf16.msra.mxu1 %v6862_v52  ;;  %v6283_v15 = vld [vmem:[#allocation2 + $0x524] sm:$0xf0]  ;;  %v6942_v20 = vor.u32 %v7402_v37, %v6941_v8  ;;  %v6291_v52 = vld [vmem:[#allocation2 + $0x52c] sm:$0xf0] }
 0x21a   :  { %v8308_v31 = vadd.f32 %v2941_v22, %v2773_v59  ;;  %2476 = vmatmul.bf16.gmra.mxu1 %v8300_v27  ;;  %2645 = vmatmul.bf16.gmra.mxu2 %v8302_v62  ;;  %v6289_v59 = vld [vmem:[#allocation2 + $0x510] sm:$0xf]  ;;  %v6297_v62 = vld [vmem:[#allocation2 + $0x518] sm:$0xf] }
 0x21b   :  { %2814 = vmatmul.bf16.gmra.mxu3 %v8304_v46  ;;  %3207 = vmatpush.bf16.msra.mxu2 %v6942_v20 }
 0x21c   :  { %10318 = vst [vmem:[#allocation164_spill] sm:$0xff] %v8308_v31  ;;  %2983 = vmatmul.bf16.gmra.mxu0 %v8306_v2  ;;  %v7237_v2 = vld [vmem:[#allocation2 + $0x514] sm:$0xf] }
 0x21d   :  { %v2606_v40 = vpop.f32.mrf.mxu2  ;;  %v8324_v6 = vor.u32 %v7237_v2, %v6291_v52  ;;  %v6317_v52 = vld [vmem:[#allocation2 + $0x548] sm:$0xf] }
 0x21e   :  { %v2607_v7 = vadd.f32 %v2606_v40, %v2438_v61  ;;  %v2775_v49 = vpop.f32.mrf.mxu3  ;;  %v2274_v61 = vadd.f32 %v7994_v56, %v8014_v50 }
 0x21f   :  { %v2439_v22 = vpop.f32.mrf.mxu1  ;;  %10322 = vst [vmem:[#allocation168_spill] sm:$0xff] %v8324_v6 }
 0x220   :  { %v2440_v17 = vadd.f32 %v2439_v22, %v2271_v9  ;;  %v2776_v48 = vadd.f32 %v2775_v49, %v2607_v7  ;;  %v8322_v7 = vor.u32 %v7240_v45, %v6289_v59  ;;  %v7305_v49 = vld [vmem:[#allocation5 + $0x34] sm:$0xf]  ;;  %v6559_v22 = vld [vmem:[#allocation5 + $0x38] sm:$0xf0]  ;;  %v6311_v45 = vld [vmem:[#allocation2 + $0x55c] sm:$0xf0] }
 0x221   :  { %v2946_v18 = vpop.f32.mrf.mxu0  ;;  %v6562_v8 = vor.u32 %v7305_v49, %v6559_v22  ;;  %v6325_v49 = vld [vmem:[#allocation2 + $0x550] sm:$0xf]  ;;  %v7248_v22 = vld [vmem:[#allocation2 + $0x568] sm:$0xf0] }
 0x222   :  { %v8316_v12 = vadd.f32 %v2944_v54, %v2776_v48  ;;  %v8320_v54 = vor.u32 %v7236_v29, %v6283_v15  ;;  %10321 = vst [vmem:[#allocation167_spill] sm:$0xff] %v8322_v7 }
 0x223   :  { %3376 = vmatpush.bf16.msra.mxu3 %v6562_v8 }
 0x224   :  { %10319 = vst [vmem:[#allocation165_spill] sm:$0xff] %v8316_v12  ;;  %v8326_v12 = vor.u32 %v7241_v53, %v6297_v62  ;;  %v7247_v53 = vld [vmem:[#allocation2 + $0x560] sm:$0xf0] }
 0x225   :  { %v2608_v46 = vpop.f32.mrf.mxu2  ;;  %10320 = vst [vmem:[#allocation166_spill] sm:$0xff] %v8320_v54 }
 0x226   :  { %v2609_v40 = vadd.f32 %v2608_v46, %v2440_v17  ;;  %v2777_v9 = vpop.f32.mrf.mxu3  ;;  %10323 = vst [vmem:[#allocation169_spill] sm:$0xff] %v8326_v12  ;;  %v2276_v46 = vadd.f32 %v8010_v23, %v8014_v50  ;;  %v2279_v23 = vadd.f32 %v7810_v57, %v8014_v50 }
 0x227   :  { %v2442_v48 = vpop.f32.mrf.mxu1 }
 0x228   :  { %v2443_v37 = vadd.f32 %v2442_v48, %v2274_v61  ;;  %v2778_v27 = vadd.f32 %v2777_v9, %v2609_v40  ;;  %v7244_v61 = vld [vmem:[#allocation2 + $0x54c] sm:$0xf]  ;;  %v6319_v40 = vld [vmem:[#allocation2 + $0x564] sm:$0xf0] }
 0x229   :  { %v2949_v20 = vpop.f32.mrf.mxu0 }
 0x22a   :  { %v8328_v31 = vadd.f32 %v2946_v18, %v2778_v27  ;;  %2481 = vmatmul.bf16.gmra.mxu1 %v8320_v54  ;;  %2650 = vmatmul.bf16.gmra.mxu2 %v8322_v7  ;;  %v7243_v18 = vld [vmem:[#allocation2 + $0x544] sm:$0xf] }
 0x22b   :  { %2819 = vmatmul.bf16.gmra.mxu3 %v8324_v6 }
 0x22c   :  { %2988 = vmatmul.bf16.gmra.mxu0 %v8326_v12  ;;  %v6639_v12 = vld [vmem:[#allocation5 + $0xd8] sm:$0xf0] }
 0x22d   :  { %v2611_v56 = vpop.f32.mrf.mxu2 }
 0x22e   :  { %v2612_v2 = vadd.f32 %v2611_v56, %v2443_v37  ;;  %v2780_v17 = vpop.f32.mrf.mxu3  ;;  %v8340_v37 = vor.u32 %v7243_v18, %v6311_v45  ;;  %v8342_v56 = vor.u32 %v7247_v53, %v6317_v52 }
 0x22f   :  { %v2444_v62 = vpop.f32.mrf.mxu1 }
 0x230   :  { %v2445_v29 = vadd.f32 %v2444_v62, %v2276_v46  ;;  %v2781_v15 = vadd.f32 %v2780_v17, %v2612_v2  ;;  %10324 = vst [vmem:[#allocation170_spill] sm:$0xff] %v8342_v56  ;;  %v8344_v46 = vor.u32 %v7244_v61, %v6319_v40  ;;  %v8346_v62 = vor.u32 %v7248_v22, %v6325_v49  ;;  %v7250_v40 = vld [vmem:[#allocation2 + $0x57c] sm:$0xf]  ;;  %v6345_v49 = vld [vmem:[#allocation2 + $0x580] sm:$0xf] }
 0x231   :  { %v2951_v59 = vpop.f32.mrf.mxu0  ;;  %v7254_v22 = vld [vmem:[#allocation2 + $0x598] sm:$0xf0] }
 0x232   :  { %v8336_v27 = vadd.f32 %v2949_v20, %v2781_v15  ;;  %10325 = vst [vmem:[#allocation171_spill] sm:$0xff] %v8344_v46  ;;  %v7325_v15 = vld [vmem:[#allocation5 + $0xd4] sm:$0xf] }
 0x233   :  { %10326 = vst [vmem:[#allocation172_spill] sm:$0xff] %v8346_v62  ;;  %v6642_v7 = vor.u32 %v7325_v15, %v6639_v12 }
 0x235   :  { %v2613_v9 = vpop.f32.mrf.mxu2  ;;  %3543 = vmatpush.bf16.msra.mxu0 %v6642_v7  ;;  %v6347_v7 = vld [vmem:[#allocation2 + $0x59c] sm:$0xf0] }
 0x236   :  { %v2614_v48 = vadd.f32 %v2613_v9, %v2445_v29  ;;  %v2782_v8 = vpop.f32.mrf.mxu3  ;;  %v2281_v29 = vadd.f32 %v7818_v3, %v8014_v50  ;;  %v6339_v9 = vld [vmem:[#allocation2 + $0x594] sm:$0xf0]  ;;  %v2284_v3 = vadd.f32 %v7838_v25, %v8014_v50 }
 0x237   :  { %v2447_v20 = vpop.f32.mrf.mxu1  ;;  %v8360_v15 = vor.u32 %v7250_v40, %v6339_v9 }
 0x238   :  { %v2448_v2 = vadd.f32 %v2447_v20, %v2279_v23  ;;  %v2783_v17 = vadd.f32 %v2782_v8, %v2614_v48  ;;  %v7251_v23 = vld [vmem:[#allocation2 + $0x584] sm:$0xf]  ;;  %v6353_v8 = vld [vmem:[#allocation2 + $0x588] sm:$0xf] }
 0x239   :  { %v2954_v6 = vpop.f32.mrf.mxu0  ;;  %v7255_v20 = vld [vmem:[#allocation2 + $0x5a0] sm:$0xf0] }
 0x23a   :  { %v8348_v54 = vadd.f32 %v2951_v59, %v2783_v17  ;;  %2486 = vmatmul.bf16.gmra.mxu1 %v8340_v37  ;;  %2655 = vmatmul.bf16.gmra.mxu2 %v8342_v56 }
 0x23b   :  { %2824 = vmatmul.bf16.gmra.mxu3 %v8344_v46 }
 0x23c   :  { %2993 = vmatmul.bf16.gmra.mxu0 %v8346_v62 }
 0x23d   :  { %v2616_v57 = vpop.f32.mrf.mxu2 }
 0x23e   :  { %v2617_v18 = vadd.f32 %v2616_v57, %v2448_v2  ;;  %v2785_v45 = vpop.f32.mrf.mxu3  ;;  %v8362_v57 = vor.u32 %v7254_v22, %v6345_v49 }
 0x23f   :  { %v2449_v52 = vpop.f32.mrf.mxu1 }
 0x240   :  { %v2450_v53 = vadd.f32 %v2449_v52, %v2281_v29  ;;  %v2786_v12 = vadd.f32 %v2785_v45, %v2617_v18  ;;  %10327 = vst [vmem:[#allocation173_spill] sm:$0xff] %v8362_v57  ;;  %v8364_v29 = vor.u32 %v7251_v23, %v6347_v7  ;;  %v8366_v52 = vor.u32 %v7255_v20, %v6353_v8  ;;  %v6367_v8 = vld [vmem:[#allocation2 + $0x5cc] sm:$0xf0]  ;;  %v6373_v20 = vld [vmem:[#allocation2 + $0x5b8] sm:$0xf] }
 0x241   :  { %v2956_v59 = vpop.f32.mrf.mxu0 }
 0x242   :  { %v8356_v61 = vadd.f32 %v2954_v6, %v2786_v12  ;;  %10328 = vst [vmem:[#allocation174_spill] sm:$0xff] %v8364_v29 }
 0x243   :  { %10329 = vst [vmem:[#allocation175_spill] sm:$0xff] %v8366_v52 }
 0x245   :  { %v2618_v48 = vpop.f32.mrf.mxu2 }
 0x246   :  { %v2619_v2 = vadd.f32 %v2618_v48, %v2450_v53  ;;  %v2787_v17 = vpop.f32.mrf.mxu3  ;;  %v2286_v53 = vadd.f32 %v7846_v1, %v8014_v50  ;;  %v7257_v48 = vld [vmem:[#allocation2 + $0x5b4] sm:$0xf]  ;;  %v2289_v1 = vadd.f32 %v7866_v42, %v8014_v50  ;;  %v6853_v42 = vld [vmem:[#allocation5 + $0x280] sm:$0xf] }
 0x247   :  { %v2452_v6 = vpop.f32.mrf.mxu1 }
 0x248   :  { %v2453_v18 = vadd.f32 %v2452_v6, %v2284_v3  ;;  %v2788_v45 = vadd.f32 %v2787_v17, %v2619_v2  ;;  %v7261_v3 = vld [vmem:[#allocation2 + $0x5d0] sm:$0xf0]  ;;  %v7258_v2 = vld [vmem:[#allocation2 + $0x5bc] sm:$0xf]  ;;  %v6375_v17 = vld [vmem:[#allocation2 + $0x5d4] sm:$0xf0] }
 0x249   :  { %v2959_v12 = vpop.f32.mrf.mxu0 }
 0x24a   :  { %v8368_v62 = vadd.f32 %v2956_v59, %v2788_v45  ;;  %2491 = vmatmul.bf16.gmra.mxu1 %v8360_v15  ;;  %2660 = vmatmul.bf16.gmra.mxu2 %v8362_v57  ;;  %v6381_v45 = vld [vmem:[#allocation2 + $0x5c0] sm:$0xf] }
 0x24b   :  { %2829 = vmatmul.bf16.gmra.mxu3 %v8364_v29  ;;  %v8380_v29 = vor.u32 %v7257_v48, %v6367_v8 }
 0x24c   :  { %2998 = vmatmul.bf16.gmra.mxu0 %v8366_v52  ;;  %v7262_v52 = vld [vmem:[#allocation2 + $0x5d8] sm:$0xf0] }
 0x24d   :  { %v2621_v25 = vpop.f32.mrf.mxu2  ;;  %10330 = vst [vmem:[#allocation176_spill] sm:$0xff] %v8380_v29 }
 0x24e   :  { %v2622_v40 = vadd.f32 %v2621_v25, %v2453_v18  ;;  %v2790_v9 = vpop.f32.mrf.mxu3 }
 0x24f   :  { %v2454_v49 = vpop.f32.mrf.mxu1 }
 0x250   :  { %v2455_v22 = vadd.f32 %v2454_v49, %v2286_v53  ;;  %v2791_v23 = vadd.f32 %v2790_v9, %v2622_v40  ;;  %v8382_v53 = vor.u32 %v7261_v3, %v6373_v20  ;;  %v8384_v40 = vor.u32 %v7258_v2, %v6375_v17 }
 0x251   :  { %v2961_v7 = vpop.f32.mrf.mxu0 }
 0x252   :  { %v8376_v59 = vadd.f32 %v2959_v12, %v2791_v23  ;;  %10331 = vst [vmem:[#allocation177_spill] sm:$0xff] %v8382_v53  ;;  %v8386_v23 = vor.u32 %v7262_v52, %v6381_v45  ;;  %v2291_v52 = vadd.f32 %v7874_v21, %v8014_v50  ;;  %v7269_v21 = vld [vmem:[#allocation2 + $0x610] sm:$0xf0] }
 0x253   :  { %10332 = vst [vmem:[#allocation178_spill] sm:$0xff] %v8384_v40 }
 0x254   :  { %10333 = vst [vmem:[#allocation179_spill] sm:$0xff] %v8386_v23 }
 0x255   :  { %v2623_v6 = vpop.f32.mrf.mxu2 }
 0x256   :  { %v2624_v18 = vadd.f32 %v2623_v6, %v2455_v22  ;;  %v2792_v25 = vpop.f32.mrf.mxu3  ;;  %v7380_v22 = vld [vmem:[#allocation5 + $0x284] sm:$0xf0] }
 0x257   :  { %v2457_v12 = vpop.f32.mrf.mxu1  ;;  %v6854_v48 = vor.u32 %v7380_v22, %v6853_v42  ;;  %v7268_v42 = vld [vmem:[#allocation2 + $0x608] sm:$0xf0] }
 0x258   :  { %v2458_v9 = vadd.f32 %v2457_v12, %v2289_v1  ;;  %v2793_v49 = vadd.f32 %v2792_v25, %v2624_v18  ;;  %v7264_v1 = vld [vmem:[#allocation2 + $0x5ec] sm:$0xf]  ;;  %v6933_v18 = vld [vmem:[#allocation5 + $0x320] sm:$0xf]  ;;  %v7400_v25 = vld [vmem:[#allocation5 + $0x324] sm:$0xf0] }
 0x259   :  { %v2964_v57 = vpop.f32.mrf.mxu0  ;;  %3041 = vmatpush.bf16.msra.mxu1 %v6854_v48  ;;  %v6395_v12 = vld [vmem:[#allocation2 + $0x604] sm:$0xf0]  ;;  %v6934_v22 = vor.u32 %v7400_v25, %v6933_v18  ;;  %v6403_v48 = vld [vmem:[#allocation2 + $0x60c] sm:$0xf0] }
 0x25a   :  { %v8388_v46 = vadd.f32 %v2961_v7, %v2793_v49  ;;  %2496 = vmatmul.bf16.gmra.mxu1 %v8380_v29  ;;  %2665 = vmatmul.bf16.gmra.mxu2 %v8382_v53  ;;  %v6401_v49 = vld [vmem:[#allocation2 + $0x5f0] sm:$0xf]  ;;  %v6409_v53 = vld [vmem:[#allocation2 + $0x5f8] sm:$0xf] }
 0x25b   :  { %2834 = vmatmul.bf16.gmra.mxu3 %v8384_v40  ;;  %3208 = vmatpush.bf16.msra.mxu2 %v6934_v22 }
 0x25c   :  { %10334 = vst [vmem:[#allocation180_spill] sm:$0xff] %v8388_v46  ;;  %3003 = vmatmul.bf16.gmra.mxu0 %v8386_v23  ;;  %v7265_v23 = vld [vmem:[#allocation2 + $0x5f4] sm:$0xf] }
 0x25d   :  { %v2626_v8 = vpop.f32.mrf.mxu2  ;;  %v8404_v56 = vor.u32 %v7265_v23, %v6403_v48  ;;  %v6429_v48 = vld [vmem:[#allocation2 + $0x628] sm:$0xf] }
 0x25e   :  { %v2627_v20 = vadd.f32 %v2626_v8, %v2458_v9  ;;  %v2795_v3 = vpop.f32.mrf.mxu3  ;;  %v2294_v9 = vadd.f32 %v7894_v0, %v8014_v50 }
 0x25f   :  { %v2459_v7 = vpop.f32.mrf.mxu1  ;;  %10338 = vst [vmem:[#allocation184_spill] sm:$0xff] %v8404_v56 }
 0x260   :  { %v2460_v2 = vadd.f32 %v2459_v7, %v2291_v52  ;;  %v2796_v17 = vadd.f32 %v2795_v3, %v2627_v20  ;;  %v8402_v20 = vor.u32 %v7268_v42, %v6401_v49  ;;  %v7303_v3 = vld [vmem:[#allocation5 + $0x24] sm:$0xf]  ;;  %v6551_v7 = vld [vmem:[#allocation5 + $0x28] sm:$0xf0]  ;;  %v6423_v42 = vld [vmem:[#allocation2 + $0x63c] sm:$0xf0] }
 0x261   :  { %v2966_v6 = vpop.f32.mrf.mxu0  ;;  %v6554_v18 = vor.u32 %v7303_v3, %v6551_v7  ;;  %v6437_v3 = vld [vmem:[#allocation2 + $0x630] sm:$0xf]  ;;  %v7276_v7 = vld [vmem:[#allocation2 + $0x648] sm:$0xf0] }
 0x262   :  { %v8396_v45 = vadd.f32 %v2964_v57, %v2796_v17  ;;  %v8400_v57 = vor.u32 %v7264_v1, %v6395_v12  ;;  %10337 = vst [vmem:[#allocation183_spill] sm:$0xff] %v8402_v20 }
 0x263   :  { %3377 = vmatpush.bf16.msra.mxu3 %v6554_v18 }
 0x264   :  { %10335 = vst [vmem:[#allocation181_spill] sm:$0xff] %v8396_v45  ;;  %v8406_v45 = vor.u32 %v7269_v21, %v6409_v53  ;;  %v7275_v21 = vld [vmem:[#allocation2 + $0x640] sm:$0xf0] }
 0x265   :  { %v2628_v40 = vpop.f32.mrf.mxu2  ;;  %10336 = vst [vmem:[#allocation182_spill] sm:$0xff] %v8400_v57 }
 0x266   :  { %v2629_v8 = vadd.f32 %v2628_v40, %v2460_v2  ;;  %v2797_v52 = vpop.f32.mrf.mxu3  ;;  %10339 = vst [vmem:[#allocation185_spill] sm:$0xff] %v8406_v45  ;;  %v2296_v40 = vadd.f32 %v7902_v35, %v8014_v50  ;;  %v2299_v35 = vadd.f32 %v7922_v32, %v8014_v50 }
 0x267   :  { %v2462_v17 = vpop.f32.mrf.mxu1 }
 0x268   :  { %v2463_v25 = vadd.f32 %v2462_v17, %v2294_v9  ;;  %v2798_v29 = vadd.f32 %v2797_v52, %v2629_v8  ;;  %v7272_v9 = vld [vmem:[#allocation2 + $0x62c] sm:$0xf]  ;;  %v6431_v8 = vld [vmem:[#allocation2 + $0x644] sm:$0xf0] }
 0x269   :  { %v2969_v22 = vpop.f32.mrf.mxu0 }
 0x26a   :  { %v8408_v46 = vadd.f32 %v2966_v6, %v2798_v29  ;;  %2501 = vmatmul.bf16.gmra.mxu1 %v8400_v57  ;;  %2670 = vmatmul.bf16.gmra.mxu2 %v8402_v20  ;;  %v7271_v6 = vld [vmem:[#allocation2 + $0x624] sm:$0xf] }
 0x26b   :  { %2839 = vmatmul.bf16.gmra.mxu3 %v8404_v56 }
 0x26c   :  { %3008 = vmatmul.bf16.gmra.mxu0 %v8406_v45  ;;  %v6631_v45 = vld [vmem:[#allocation5 + $0xc8] sm:$0xf0] }
 0x26d   :  { %v2631_v0 = vpop.f32.mrf.mxu2 }
 0x26e   :  { %v2632_v23 = vadd.f32 %v2631_v0, %v2463_v25  ;;  %v2800_v2 = vpop.f32.mrf.mxu3  ;;  %v8420_v25 = vor.u32 %v7271_v6, %v6423_v42  ;;  %v8422_v0 = vor.u32 %v7275_v21, %v6429_v48 }
 0x26f   :  { %v2464_v53 = vpop.f32.mrf.mxu1 }
 0x270   :  { %v2465_v1 = vadd.f32 %v2464_v53, %v2296_v40  ;;  %v2801_v12 = vadd.f32 %v2800_v2, %v2632_v23  ;;  %10340 = vst [vmem:[#allocation186_spill] sm:$0xff] %v8420_v25  ;;  %v8424_v40 = vor.u32 %v7272_v9, %v6431_v8  ;;  %v8426_v53 = vor.u32 %v7276_v7, %v6437_v3  ;;  %v7278_v8 = vld [vmem:[#allocation2 + $0x65c] sm:$0xf]  ;;  %v6457_v3 = vld [vmem:[#allocation2 + $0x660] sm:$0xf] }
 0x271   :  { %v2971_v49 = vpop.f32.mrf.mxu0  ;;  %10341 = vst [vmem:[#allocation187_spill] sm:$0xff] %v8422_v0  ;;  %v7282_v7 = vld [vmem:[#allocation2 + $0x678] sm:$0xf0] }
 0x272   :  { %v8416_v29 = vadd.f32 %v2969_v22, %v2801_v12  ;;  %10342 = vst [vmem:[#allocation188_spill] sm:$0xff] %v8424_v40  ;;  %v7323_v12 = vld [vmem:[#allocation5 + $0xc4] sm:$0xf] }
 0x273   :  { %10343 = vst [vmem:[#allocation189_spill] sm:$0xff] %v8426_v53  ;;  %v6634_v20 = vor.u32 %v7323_v12, %v6631_v45 }
 0x275   :  { %v2633_v52 = vpop.f32.mrf.mxu2  ;;  %3544 = vmatpush.bf16.msra.mxu0 %v6634_v20  ;;  %v6459_v20 = vld [vmem:[#allocation2 + $0x67c] sm:$0xf0] }
 0x276   :  { %v2634_v17 = vadd.f32 %v2633_v52, %v2465_v1  ;;  %v2802_v18 = vpop.f32.mrf.mxu3  ;;  %v2301_v1 = vadd.f32 %v7930_v19, %v8014_v50  ;;  %v6451_v52 = vld [vmem:[#allocation2 + $0x674] sm:$0xf0]  ;;  %v2304_v19 = vadd.f32 %v7950_v55, %v8014_v50 }
 0x277   :  { %v2467_v22 = vpop.f32.mrf.mxu1  ;;  %v8440_v12 = vor.u32 %v7278_v8, %v6451_v52 }
 0x278   :  { %v2468_v23 = vadd.f32 %v2467_v22, %v2299_v35  ;;  %v2803_v2 = vadd.f32 %v2802_v18, %v2634_v17  ;;  %v7279_v35 = vld [vmem:[#allocation2 + $0x664] sm:$0xf]  ;;  %v6465_v18 = vld [vmem:[#allocation2 + $0x668] sm:$0xf] }
 0x279   :  { %v2974_v56 = vpop.f32.mrf.mxu0  ;;  %v7283_v22 = vld [vmem:[#allocation2 + $0x680] sm:$0xf0]  ;;  %10346 = vst [vmem:[#allocation192_spill] sm:$0xff] %v8440_v12 }
 0x27a   :  { %v8428_v57 = vadd.f32 %v2971_v49, %v2803_v2  ;;  %2506 = vmatmul.bf16.gmra.mxu1 %v8420_v25  ;;  %2675 = vmatmul.bf16.gmra.mxu2 %v8422_v0  ;;  %v6493_v0 = vld [vmem:[#allocation2 + $0x6a0] sm:$0xf] }
 0x27b   :  { %2844 = vmatmul.bf16.gmra.mxu3 %v8424_v40  ;;  %v7286_v40 = vld [vmem:[#allocation2 + $0x69c] sm:$0xf] }
 0x27c   :  { %10344 = vst [vmem:[#allocation190_spill] sm:$0xff] %v8428_v57  ;;  %3013 = vmatmul.bf16.gmra.mxu0 %v8426_v53 }
 0x27d   :  { %v2636_v32 = vpop.f32.mrf.mxu2 }
 0x27e   :  { %v2637_v6 = vadd.f32 %v2636_v32, %v2468_v23  ;;  %v2805_v42 = vpop.f32.mrf.mxu3  ;;  %v8442_v32 = vor.u32 %v7282_v7, %v6457_v3 }
 0x27f   :  { %v2469_v48 = vpop.f32.mrf.mxu1 }
 0x280   :  { %v2470_v21 = vadd.f32 %v2469_v48, %v2301_v1  ;;  %v2806_v45 = vadd.f32 %v2805_v42, %v2637_v6  ;;  %10347 = vst [vmem:[#allocation193_spill] sm:$0xff] %v8442_v32  ;;  %v8444_v1 = vor.u32 %v7279_v35, %v6459_v20  ;;  %v8446_v48 = vor.u32 %v7283_v22, %v6465_v18  ;;  %v7285_v22 = vld [vmem:[#allocation2 + $0x694] sm:$0xf] }
 0x281   :  { %v2976_v49 = vpop.f32.mrf.mxu0 }
 0x282   :  { %v8436_v9 = vadd.f32 %v2974_v56, %v2806_v45  ;;  %10348 = vst [vmem:[#allocation194_spill] sm:$0xff] %v8444_v1 }
 0x283   :  { %10349 = vst [vmem:[#allocation195_spill] sm:$0xff] %v8446_v48 }
 0x284   :  { %10345 = vst [vmem:[#allocation191_spill] sm:$0xff] %v8436_v9 }
 0x285   :  { %v2638_v17 = vpop.f32.mrf.mxu2 }
 0x286   :  { %v2639_v23 = vadd.f32 %v2638_v17, %v2470_v21  ;;  %v2807_v2 = vpop.f32.mrf.mxu3  ;;  %v10351_v21 = vld [vmem:[#allocation83_spill] sm:$0xff]  ;;  %v6925_v17 = vld [vmem:[#allocation5 + $0x310] sm:$0xf] }
 0x287   :  { %v2472_v56 = vpop.f32.mrf.mxu1  ;;  %v2306_v8 = vadd.f32 %v10351_v21, %v8014_v50  ;;  %v6487_v21 = vld [vmem:[#allocation2 + $0x6b4] sm:$0xf0] }
 0x288   :  { %v2473_v6 = vadd.f32 %v2472_v56, %v2304_v19  ;;  %v2808_v42 = vadd.f32 %v2807_v2, %v2639_v23  ;;  %v6479_v19 = vld [vmem:[#allocation2 + $0x6ac] sm:$0xf0]  ;;  %v6485_v23 = vld [vmem:[#allocation2 + $0x698] sm:$0xf] }
 0x289   :  { %v2979_v45 = vpop.f32.mrf.mxu0 }
 0x28a   :  { %v8448_v53 = vadd.f32 %v2976_v49, %v2808_v42  ;;  %2511 = vmatmul.bf16.gmra.mxu1 %v8440_v12  ;;  %2680 = vmatmul.bf16.gmra.mxu2 %v8442_v32  ;;  %v7398_v49 = vld [vmem:[#allocation5 + $0x314] sm:$0xf0]  ;;  %v7301_v42 = vld [vmem:[#allocation5 + $0x14] sm:$0xf]  ;;  %v7290_v12 = vld [vmem:[#allocation2 + $0x6b8] sm:$0xf0] }
 0x28b   :  { %2849 = vmatmul.bf16.gmra.mxu3 %v8444_v1  ;;  %v6926_v2 = vor.u32 %v7398_v49, %v6925_v17  ;;  %v7321_v1 = vld [vmem:[#allocation5 + $0xb4] sm:$0xf]  ;;  %v8466_v57 = vor.u32 %v7290_v12, %v6493_v0 }
 0x28c   :  { %10350 = vst [vmem:[#allocation196_spill] sm:$0xff] %v8448_v53  ;;  %3018 = vmatmul.bf16.gmra.mxu0 %v8446_v48  ;;  %v6543_v48 = vld [vmem:[#allocation5 + $0x18] sm:$0xf0]  ;;  %v7289_v32 = vld [vmem:[#allocation2 + $0x6b0] sm:$0xf0] }
 0x28d   :  { %v2641_v55 = vpop.f32.mrf.mxu2  ;;  %3209 = vmatpush.bf16.msra.mxu2 %v6926_v2  ;;  %v8462_v25 = vor.u32 %v7289_v32, %v6485_v23  ;;  %v6535_v2 = vld [vmem:[#allocation5 + $0x8] sm:$0xf0]  ;;  %10356 = vst [vmem:[#allocation198_spill] sm:$0xff] %v8466_v57  ;;  %v7345_v32 = vld [vmem:[#allocation5 + $0x174] sm:$0xf] }
 0x28e   :  { %v2642_v52 = vadd.f32 %v2641_v55, %v2473_v6  ;;  %v2810_v3 = vpop.f32.mrf.mxu3  ;;  %v6546_v6 = vor.u32 %v7301_v42, %v6543_v48  ;;  %v6623_v55 = vld [vmem:[#allocation5 + $0xb8] sm:$0xf0]  ;;  %v7299_v48 = vld [vmem:[#allocation5 + $0x4] sm:$0xf] }
 0x28f   :  { %v2474_v7 = vpop.f32.mrf.mxu1  ;;  %v6538_v9 = vor.u32 %v7299_v48, %v6535_v2  ;;  %v6607_v23 = vld [vmem:[#allocation5 + $0x98] sm:$0xf0] }
 0x290   :  { %v2475_v35 = vadd.f32 %v2474_v7, %v2306_v8  ;;  %v2811_v20 = vadd.f32 %v2810_v3, %v2642_v52  ;;  %v6626_v8 = vor.u32 %v7321_v1, %v6623_v55  ;;  %v6917_v52 = vld [vmem:[#allocation5 + $0x300] sm:$0xf]  ;;  %v7396_v3 = vld [vmem:[#allocation5 + $0x304] sm:$0xf0]  ;;  %3378 = vmatpush.bf16.msra.mxu3 %v6546_v6  ;;  %v7319_v1 = vld [vmem:[#allocation5 + $0xa4] sm:$0xf]  ;;  %v8464_v55 = vor.u32 %v7286_v40, %v6487_v21 }
 0x291   :  { %v2981_v18 = vpop.f32.mrf.mxu0  ;;  %v6918_v53 = vor.u32 %v7396_v3, %v6917_v52  ;;  %v6615_v6 = vld [vmem:[#allocation5 + $0xa8] sm:$0xf0]  ;;  %v7317_v40 = vld [vmem:[#allocation5 + $0x94] sm:$0xf] }
 0x292   :  { %v8456_v56 = vadd.f32 %v2979_v45, %v2811_v20  ;;  %v10353_v45 = vld [vmem:[#allocation89_spill] sm:$0xff]  ;;  %3545 = vmatpush.bf16.msra.mxu0 %v6626_v8  ;;  %10355 = vst [vmem:[#allocation197_spill] sm:$0xff] %v8464_v55  ;;  %v6610_v0 = vor.u32 %v7317_v40, %v6607_v23  ;;  %v7297_v23 = vld [vmem:[#allocation2 + $0x6f0] sm:$0xf0] }
 0x293   :  { %v2309_v20 = vadd.f32 %v10353_v45, %v8014_v50  ;;  %10354 = vst [vmem:[#allocation89_spill] sm:$0xff] %v8462_v25  ;;  %3210 = vmatpush.bf16.msra.mxu2 %v6918_v53  ;;  %v7315_v45 = vld [vmem:[#allocation5 + $0x84] sm:$0xf]  ;;  %v6515_v40 = vld [vmem:[#allocation2 + $0x6ec] sm:$0xf0] }
 0x294   :  { %10352 = vst [vmem:[#allocation83_spill] sm:$0xff] %v8456_v56  ;;  %v8460_v56 = vor.u32 %v7285_v22, %v6479_v19  ;;  %3379 = vmatpush.bf16.msra.mxu3 %v6538_v9  ;;  %v6719_v19 = vld [vmem:[#allocation5 + $0x178] sm:$0xf0] }
 0x295   :  { %v2643_v7 = vpop.f32.mrf.mxu2  ;;  %v6722_v53 = vor.u32 %v7345_v32, %v6719_v19  ;;  %v10357_v9 = vld [vmem:[#allocation91_spill] sm:$0xff]  ;;  %v7296_v32 = vld [vmem:[#allocation2 + $0x6e8] sm:$0xf0]  ;;  %v7293_v19 = vld [vmem:[#allocation2 + $0x6d4] sm:$0xf] }
 0x296   :  { %v2644_v17 = vadd.f32 %v2643_v7, %v2475_v35  ;;  %v2812_v49 = vpop.f32.mrf.mxu3  ;;  %v6618_v35 = vor.u32 %v7319_v1, %v6615_v6  ;;  %v7292_v6 = vld [vmem:[#allocation2 + $0x6cc] sm:$0xf] }
 0x297   :  { %v2477_v42 = vpop.f32.mrf.mxu1  ;;  %3710 = vmatpush.bf16.msrb.mxu1 %v6722_v53 }
 0x298   :  { %v2478_v52 = vadd.f32 %v2477_v42, %v2309_v20  ;;  %v2813_v3 = vadd.f32 %v2812_v49, %v2644_v17  ;;  %3546 = vmatpush.bf16.msra.mxu0 %v6618_v35  ;;  %v6599_v20 = vld [vmem:[#allocation5 + $0x88] sm:$0xf0]  ;;  %v6513_v35 = vld [vmem:[#allocation2 + $0x6d0] sm:$0xf] }
 0x299   :  { %v2984_v7 = vpop.f32.mrf.mxu0  ;;  %v6602_v49 = vor.u32 %v7315_v45, %v6599_v20 }
 0x29a   :  { %v8468_v22 = vadd.f32 %v2981_v18, %v2813_v3  ;;  %2516 = vmatmul.bf16.gmra.mxu1 %v8460_v56  ;;  %2685 = vmatmul.bf16.gmra.mxu2 %v8462_v25  ;;  %v2311_v18 = vadd.f32 %v10357_v9, %v8014_v50  ;;  %v6507_v3 = vld [vmem:[#allocation2 + $0x6e4] sm:$0xf0] }
 0x29b   :  { %2854 = vmatmul.bf16.gmra.mxu3 %v8464_v55 }
 0x29c   :  { %3023 = vmatmul.bf16.gmra.mxu0 %v8466_v57 }
 0x29d   :  { %v2646_v12 = vpop.f32.mrf.mxu2  ;;  %3547 = vmatpush.bf16.msra.mxu0 %v6610_v0 }
 0x29e   :  { %v2647_v21 = vadd.f32 %v2646_v12, %v2478_v52  ;;  %v2815_v8 = vpop.f32.mrf.mxu3  ;;  %v6521_v52 = vld [vmem:[#allocation2 + $0x6d8] sm:$0xf]  ;;  %v10358_v12 = vld [vmem:[#allocation97_spill] sm:$0xff] }
 0x29f   :  { %v2479_v17 = vpop.f32.mrf.mxu1  ;;  %v2314_v9 = vadd.f32 %v10358_v12, %v8014_v50  ;;  %v5655_v12 = vld [vmem:[#allocation2 + $0x2c] sm:$0xf0] }
 0x2a0   :  { %v2480_v48 = vadd.f32 %v2479_v17, %v2311_v18  ;;  %v2816_v2 = vadd.f32 %v2815_v8, %v2647_v21  ;;  %v8480_v18 = vor.u32 %v7292_v6, %v6507_v3  ;;  %v8482_v21 = vor.u32 %v7296_v32, %v6513_v35  ;;  %v10362_v6 = vld [vmem:[#allocation99_spill] sm:$0xff] }
 0x2a1   :  { %v2986_v1 = vpop.f32.mrf.mxu0  ;;  %3548 = vmatpush.bf16.msra.mxu0 %v6602_v49  ;;  %v8484_v8 = vor.u32 %v7293_v19, %v6515_v40  ;;  %v8486_v49 = vor.u32 %v7297_v23, %v6521_v52  ;;  %v2316_v3 = vadd.f32 %v10362_v6, %v8014_v50  ;;  %v7077_v23 = vld [vmem:[#allocation2 + $0x14] sm:$0xf] }
 0x2a2   :  { %v8476_v42 = vadd.f32 %v2984_v7, %v2816_v2  ;;  %10359 = vst [vmem:[#allocation91_spill] sm:$0xff] %v8482_v21 }
 0x2a3   :  { %10360 = vst [vmem:[#allocation97_spill] sm:$0xff] %v8484_v8 }
 0x2a4   :  { %10361 = vst [vmem:[#allocation199_spill] sm:$0xff] %v8486_v49 }
 0x2a5   :  { %v2648_v53 = vpop.f32.mrf.mxu2 }
 0x2a6   :  { %v2649_v0 = vadd.f32 %v2648_v53, %v2480_v48  ;;  %v2817_v45 = vpop.f32.mrf.mxu3 }
 0x2a7   :  { %v2482_v7 = vpop.f32.mrf.mxu1 }
 0x2a8   :  { %v2483_v20 = vadd.f32 %v2482_v7, %v2314_v9  ;;  %v2818_v17 = vadd.f32 %v2817_v45, %v2649_v0  ;;  %v5661_v9 = vld [vmem:[#allocation2 + $0x18] sm:$0xf]  ;;  %v7081_v0 = vld [vmem:[#allocation2 + $0x30] sm:$0xf0]  ;;  %v10363_v7 = vld [vmem:[#allocation52_spill] sm:$0xff] }
 0x2a9   :  { %v2989_v2 = vpop.f32.mrf.mxu0 }
 0x2aa   :  { %v8488_v57 = vadd.f32 %v2986_v1, %v2818_v17  ;;  %2521 = vmatmul.bf16.gmra.mxu1 %v8480_v18  ;;  %2690 = vmatmul.bf16.gmra.mxu2 %v8482_v21  ;;  %v2319_v17 = vadd.f32 %v10363_v7, %v8014_v50  ;;  %v8500_v21 = vor.u32 %v7077_v23, %v5655_v12  ;;  %v7084_v7 = vld [vmem:[#allocation2 + $0x4c] sm:$0xf] }
 0x2ab   :  { %2859 = vmatmul.bf16.gmra.mxu3 %v8484_v8 }
 0x2ac   :  { %3028 = vmatmul.bf16.gmra.mxu0 %v8486_v49  ;;  %10364 = vst [vmem:[#allocation99_spill] sm:$0xff] %v8500_v21 }
 0x2ad   :  { %v2651_v48 = vpop.f32.mrf.mxu2 }
 0x2ae   :  { %v2652_v35 = vadd.f32 %v2651_v48, %v2483_v20  ;;  %v2820_v32 = vpop.f32.mrf.mxu3  ;;  %v8502_v20 = vor.u32 %v7081_v0, %v5661_v9 }
 0x2af   :  { %v2484_v19 = vpop.f32.mrf.mxu1 }
 0x2b0   :  { %v2485_v40 = vadd.f32 %v2484_v19, %v2316_v3  ;;  %v2821_v53 = vadd.f32 %v2820_v32, %v2652_v35  ;;  %10365 = vst [vmem:[#allocation52_spill] sm:$0xff] %v8502_v20  ;;  %v10366_v32 = vld [vmem:[#allocation19_spill] sm:$0xff]  ;;  %v10367_v19 = vld [vmem:[#allocation48_spill] sm:$0xff] }
 0x2b1   :  { %v2991_v52 = vpop.f32.mrf.mxu0 }
 0x2b2   :  { %v8496_v1 = vadd.f32 %v2989_v2, %v2821_v53  ;;  %v10368_v53 = vld [vmem:[#allocation53_spill] sm:$0xff] }
 0x2b3   :  { %v2321_v23 = vadd.f32 %v10368_v53, %v8014_v50 }
 0x2b5   :  { %v2653_v45 = vpop.f32.mrf.mxu2 }
 0x2b6   :  { %v2654_v49 = vadd.f32 %v2653_v45, %v2485_v40  ;;  %v2822_v8 = vpop.f32.mrf.mxu3 }
 0x2b7   :  { %v2487_v48 = vpop.f32.mrf.mxu1 }
 0x2b8   :  { %v2488_v6 = vadd.f32 %v2487_v48, %v2319_v17  ;;  %v2823_v3 = vadd.f32 %v2822_v8, %v2654_v49  ;;  %v5683_v17 = vld [vmem:[#allocation2 + $0x64] sm:$0xf0]  ;;  %v5689_v48 = vld [vmem:[#allocation2 + $0x50] sm:$0xf] }
 0x2b9   :  { %v2994_v35 = vpop.f32.mrf.mxu0 }
 0x2ba   :  { %v8504_v2 = vadd.f32 %v2991_v52, %v2823_v3  ;;  %3042 = vmatmul.bf16.vlgmr.msra.gmra.mxu1 %v8500_v21  ;;  %3211 = vmatmul.bf16.vlgmr.msra.gmra.mxu2 %v8502_v20  ;;  %v7088_v3 = vld [vmem:[#allocation2 + $0x68] sm:$0xf0]  ;;  %v8516_v21 = vor.u32 %v7084_v7, %v5683_v17 }
 0x2bb   :  { %3380 = vmatmul.bf16.vlgmr.msra.gmra.mxu3 %v10366_v32  ;;  %v10370_v32 = vld [vmem:[#allocation58_spill] sm:$0xff] }
 0x2bc   :  { %3549 = vmatmul.bf16.vlgmr.msra.gmra.mxu0 %v10367_v19  ;;  %v2324_v19 = vadd.f32 %v10370_v32, %v8014_v50  ;;  %10371 = vst [vmem:[#allocation48_spill] sm:$0xff] %v8516_v21  ;;  %v7091_v32 = vld [vmem:[#allocation2 + $0x84] sm:$0xf] }
 0x2bd   :  { %v2656_v40 = vpop.f32.mrf.mxu2 }
 0x2be   :  { %v2657_v12 = vadd.f32 %v2656_v40, %v2488_v6  ;;  %v2825_v9 = vpop.f32.mrf.mxu3  ;;  %v8518_v6 = vor.u32 %v7088_v3, %v5689_v48 }
 0x2bf   :  { %v2489_v0 = vpop.f32.mrf.mxu1 }
 0x2c0   :  { %v2490_v45 = vadd.f32 %v2489_v0, %v2321_v23  ;;  %v2826_v8 = vadd.f32 %v2825_v9, %v2657_v12  ;;  %10372 = vst [vmem:[#allocation53_spill] sm:$0xff] %v8518_v6  ;;  %v10374_v9 = vld [vmem:[#allocation23_spill] sm:$0xff]  ;;  %v10375_v0 = vld [vmem:[#allocation54_spill] sm:$0xff] }
 0x2c1   :  { %v2996_v49 = vpop.f32.mrf.mxu0 }
 0x2c2   :  { %v8512_v52 = vadd.f32 %v2994_v35, %v2826_v8 }
 0x2c4   :  { %10369 = vst [vmem:[#allocation19_spill] sm:$0xff] %v8512_v52 }
 0x2c5   :  { %v2658_v20 = vpop.f32.mrf.mxu2 }
 0x2c6   :  { %v2659_v55 = vadd.f32 %v2658_v20, %v2490_v45  ;;  %v2827_v25 = vpop.f32.mrf.mxu3  ;;  %v10376_v45 = vld [vmem:[#allocation59_spill] sm:$0xff] }
 0x2c7   :  { %v2492_v40 = vpop.f32.mrf.mxu1  ;;  %v2326_v8 = vadd.f32 %v10376_v45, %v8014_v50 }
 0x2c8   :  { %v2493_v53 = vadd.f32 %v2492_v40, %v2324_v19  ;;  %v2828_v23 = vadd.f32 %v2827_v25, %v2659_v55  ;;  %v5711_v19 = vld [vmem:[#allocation2 + $0x9c] sm:$0xf0]  ;;  %v5717_v40 = vld [vmem:[#allocation2 + $0x88] sm:$0xf] }
 0x2c9   :  { %v2999_v12 = vpop.f32.mrf.mxu0  ;;  %v8532_v52 = vor.u32 %v7091_v32, %v5711_v19  ;;  %v10384_v19 = vld [vmem:[#allocation65_spill] sm:$0xff] }
 0x2ca   :  { %v8520_v35 = vadd.f32 %v2996_v49, %v2828_v23  ;;  %3047 = vmatmul.bf16.gmra.mxu1 %v8516_v21  ;;  %3216 = vmatmul.bf16.gmra.mxu2 %v8518_v6  ;;  %v7095_v23 = vld [vmem:[#allocation2 + $0xa0] sm:$0xf0] }
 0x2cb   :  { %3385 = vmatmul.bf16.gmra.mxu3 %v10374_v9  ;;  %v10378_v9 = vld [vmem:[#allocation64_spill] sm:$0xff]  ;;  %10379 = vst [vmem:[#allocation54_spill] sm:$0xff] %v8532_v52 }
 0x2cc   :  { %10373 = vst [vmem:[#allocation58_spill] sm:$0xff] %v8520_v35  ;;  %3554 = vmatmul.bf16.gmra.mxu0 %v10375_v0  ;;  %v2329_v0 = vadd.f32 %v10378_v9, %v8014_v50 }
 0x2cd   :  { %v2661_v20 = vpop.f32.mrf.mxu2 }
 0x2ce   :  { %v2662_v7 = vadd.f32 %v2661_v20, %v2493_v53  ;;  %v2830_v17 = vpop.f32.mrf.mxu3  ;;  %v8534_v53 = vor.u32 %v7095_v23, %v5717_v40  ;;  %v2331_v40 = vadd.f32 %v10384_v19, %v8014_v50 }
 0x2cf   :  { %v2494_v48 = vpop.f32.mrf.mxu1 }
 0x2d0   :  { %v2495_v3 = vadd.f32 %v2494_v48, %v2326_v8  ;;  %v2831_v25 = vadd.f32 %v2830_v17, %v2662_v7  ;;  %10380 = vst [vmem:[#allocation59_spill] sm:$0xff] %v8534_v53  ;;  %v7343_v17 = vld [vmem:[#allocation5 + $0x164] sm:$0xf]  ;;  %v6711_v48 = vld [vmem:[#allocation5 + $0x168] sm:$0xf0] }
 0x2d1   :  { %v3001_v55 = vpop.f32.mrf.mxu0 }
 0x2d2   :  { %v8528_v49 = vadd.f32 %v2999_v12, %v2831_v25  ;;  %v10382_v25 = vld [vmem:[#allocation27_spill] sm:$0xff] }
 0x2d4   :  { %10377 = vst [vmem:[#allocation23_spill] sm:$0xff] %v8528_v49 }
 0x2d5   :  { %v2663_v6 = vpop.f32.mrf.mxu2 }
 0x2d6   :  { %v2664_v21 = vadd.f32 %v2663_v6, %v2495_v3  ;;  %v2832_v35 = vpop.f32.mrf.mxu3  ;;  %v6714_v6 = vor.u32 %v7343_v17, %v6711_v48  ;;  %v10383_v3 = vld [vmem:[#allocation60_spill] sm:$0xff]  ;;  %v10386_v48 = vld [vmem:[#allocation70_spill] sm:$0xff] }
 0x2d7   :  { %v2497_v20 = vpop.f32.mrf.mxu1 }
 0x2d8   :  { %v2498_v45 = vadd.f32 %v2497_v20, %v2329_v0  ;;  %v2833_v8 = vadd.f32 %v2832_v35, %v2664_v21  ;;  %3711 = vmatpush.bf16.msrb.mxu1 %v6714_v6 }
 0x2d9   :  { %v3004_v7 = vpop.f32.mrf.mxu0 }
 0x2da   :  { %v8536_v12 = vadd.f32 %v3001_v55, %v2833_v8  ;;  %3052 = vmatmul.bf16.gmra.mxu1 %v8532_v52  ;;  %3221 = vmatmul.bf16.gmra.mxu2 %v8534_v53  ;;  %v7098_v8 = vld [vmem:[#allocation2 + $0xbc] sm:$0xf]  ;;  %v5739_v53 = vld [vmem:[#allocation2 + $0xd4] sm:$0xf0]  ;;  %v5745_v52 = vld [vmem:[#allocation2 + $0xc0] sm:$0xf] }
 0x2db   :  { %3390 = vmatmul.bf16.gmra.mxu3 %v10382_v25  ;;  %v7102_v25 = vld [vmem:[#allocation2 + $0xd8] sm:$0xf0]  ;;  %v8548_v49 = vor.u32 %v7098_v8, %v5739_v53 }
 0x2dc   :  { %10381 = vst [vmem:[#allocation64_spill] sm:$0xff] %v8536_v12  ;;  %3559 = vmatmul.bf16.gmra.mxu0 %v10383_v3  ;;  %v2334_v3 = vadd.f32 %v10386_v48, %v8014_v50  ;;  %v10392_v53 = vld [vmem:[#allocation71_spill] sm:$0xff] }
 0x2dd   :  { %v2666_v32 = vpop.f32.mrf.mxu2  ;;  %10387 = vst [vmem:[#allocation60_spill] sm:$0xff] %v8548_v49 }
 0x2de   :  { %v2667_v21 = vadd.f32 %v2666_v32, %v2498_v45  ;;  %v2835_v35 = vpop.f32.mrf.mxu3  ;;  %v8550_v45 = vor.u32 %v7102_v25, %v5745_v52 }
 0x2df   :  { %v2499_v55 = vpop.f32.mrf.mxu1 }
 0x2e0   :  { %v2500_v23 = vadd.f32 %v2499_v55, %v2331_v40  ;;  %v2836_v9 = vadd.f32 %v2835_v35, %v2667_v21  ;;  %10388 = vst [vmem:[#allocation65_spill] sm:$0xff] %v8550_v45  ;;  %v10390_v35 = vld [vmem:[#allocation31_spill] sm:$0xff]  ;;  %v10391_v55 = vld [vmem:[#allocation66_spill] sm:$0xff] }
 0x2e1   :  { %v3006_v0 = vpop.f32.mrf.mxu0 }
 0x2e2   :  { %v8544_v20 = vadd.f32 %v3004_v7, %v2836_v9  ;;  %v2336_v9 = vadd.f32 %v10392_v53, %v8014_v50 }
 0x2e4   :  { %10385 = vst [vmem:[#allocation27_spill] sm:$0xff] %v8544_v20 }
 0x2e5   :  { %v2668_v17 = vpop.f32.mrf.mxu2 }
 0x2e6   :  { %v2669_v6 = vadd.f32 %v2668_v17, %v2500_v23  ;;  %v2837_v12 = vpop.f32.mrf.mxu3 }
 0x2e7   :  { %v2502_v32 = vpop.f32.mrf.mxu1 }
 0x2e8   :  { %v2503_v19 = vadd.f32 %v2502_v32, %v2334_v3  ;;  %v2838_v40 = vadd.f32 %v2837_v12, %v2669_v6  ;;  %v7105_v3 = vld [vmem:[#allocation2 + $0xf4] sm:$0xf]  ;;  %v5767_v6 = vld [vmem:[#allocation2 + $0x10c] sm:$0xf0]  ;;  %v5773_v32 = vld [vmem:[#allocation2 + $0xf8] sm:$0xf] }
 0x2e9   :  { %v3009_v21 = vpop.f32.mrf.mxu0  ;;  %v8564_v20 = vor.u32 %v7105_v3, %v5767_v6 }
 0x2ea   :  { %v8552_v7 = vadd.f32 %v3006_v0, %v2838_v40  ;;  %3057 = vmatmul.bf16.gmra.mxu1 %v8548_v49  ;;  %3226 = vmatmul.bf16.gmra.mxu2 %v8550_v45  ;;  %v7109_v40 = vld [vmem:[#allocation2 + $0x110] sm:$0xf0] }
 0x2eb   :  { %3395 = vmatmul.bf16.gmra.mxu3 %v10390_v35  ;;  %v10394_v35 = vld [vmem:[#allocation76_spill] sm:$0xff]  ;;  %10395 = vst [vmem:[#allocation66_spill] sm:$0xff] %v8564_v20 }
 0x2ec   :  { %10389 = vst [vmem:[#allocation70_spill] sm:$0xff] %v8552_v7  ;;  %3564 = vmatmul.bf16.gmra.mxu0 %v10391_v55  ;;  %v2339_v55 = vadd.f32 %v10394_v35, %v8014_v50  ;;  %v7112_v35 = vld [vmem:[#allocation2 + $0x12c] sm:$0xf] }
 0x2ed   :  { %v2671_v23 = vpop.f32.mrf.mxu2 }
 0x2ee   :  { %v2672_v52 = vadd.f32 %v2671_v23, %v2503_v19  ;;  %v2840_v8 = vpop.f32.mrf.mxu3  ;;  %v8566_v19 = vor.u32 %v7109_v40, %v5773_v32 }
 0x2ef   :  { %v2504_v25 = vpop.f32.mrf.mxu1 }
 0x2f0   :  { %v2505_v17 = vadd.f32 %v2504_v25, %v2336_v9  ;;  %v2841_v12 = vadd.f32 %v2840_v8, %v2672_v52  ;;  %10396 = vst [vmem:[#allocation71_spill] sm:$0xff] %v8566_v19  ;;  %v10398_v8 = vld [vmem:[#allocation35_spill] sm:$0xff]  ;;  %v10399_v25 = vld [vmem:[#allocation72_spill] sm:$0xff] }
 0x2f1   :  { %v3011_v48 = vpop.f32.mrf.mxu0 }
 0x2f2   :  { %v8560_v0 = vadd.f32 %v3009_v21, %v2841_v12 }
 0x2f4   :  { %10393 = vst [vmem:[#allocation31_spill] sm:$0xff] %v8560_v0 }
 0x2f5   :  { %v2673_v45 = vpop.f32.mrf.mxu2 }
 0x2f6   :  { %v2674_v49 = vadd.f32 %v2673_v45, %v2505_v17  ;;  %v2842_v7 = vpop.f32.mrf.mxu3  ;;  %v10400_v17 = vld [vmem:[#allocation77_spill] sm:$0xff] }
 0x2f7   :  { %v2507_v23 = vpop.f32.mrf.mxu1  ;;  %v2341_v12 = vadd.f32 %v10400_v17, %v8014_v50 }
 0x2f8   :  { %v2508_v53 = vadd.f32 %v2507_v23, %v2339_v55  ;;  %v2843_v9 = vadd.f32 %v2842_v7, %v2674_v49  ;;  %v5795_v55 = vld [vmem:[#allocation2 + $0x144] sm:$0xf0]  ;;  %v5801_v23 = vld [vmem:[#allocation2 + $0x130] sm:$0xf] }
 0x2f9   :  { %v3014_v52 = vpop.f32.mrf.mxu0  ;;  %v8580_v0 = vor.u32 %v7112_v35, %v5795_v55 }
 0x2fa   :  { %v8568_v21 = vadd.f32 %v3011_v48, %v2843_v9  ;;  %3062 = vmatmul.bf16.gmra.mxu1 %v8564_v20  ;;  %3231 = vmatmul.bf16.gmra.mxu2 %v8566_v19  ;;  %v7116_v9 = vld [vmem:[#allocation2 + $0x148] sm:$0xf0] }
 0x2fb   :  { %3400 = vmatmul.bf16.gmra.mxu3 %v10398_v8  ;;  %v10402_v8 = vld [vmem:[#allocation82_spill] sm:$0xff]  ;;  %10403 = vst [vmem:[#allocation72_spill] sm:$0xff] %v8580_v0 }
 0x2fc   :  { %10397 = vst [vmem:[#allocation76_spill] sm:$0xff] %v8568_v21  ;;  %3569 = vmatmul.bf16.gmra.mxu0 %v10399_v25  ;;  %v2344_v25 = vadd.f32 %v10402_v8, %v8014_v50  ;;  %v7119_v8 = vld [vmem:[#allocation2 + $0x164] sm:$0xf] }
 0x2fd   :  { %v2676_v45 = vpop.f32.mrf.mxu2 }
 0x2fe   :  { %v2677_v3 = vadd.f32 %v2676_v45, %v2508_v53  ;;  %v2845_v6 = vpop.f32.mrf.mxu3  ;;  %v8582_v53 = vor.u32 %v7116_v9, %v5801_v23 }
 0x2ff   :  { %v2509_v32 = vpop.f32.mrf.mxu1 }
 0x300   :  { %v2510_v40 = vadd.f32 %v2509_v32, %v2341_v12  ;;  %v2846_v49 = vadd.f32 %v2845_v6, %v2677_v3  ;;  %10404 = vst [vmem:[#allocation77_spill] sm:$0xff] %v8582_v53  ;;  %v10406_v6 = vld [vmem:[#allocation39_spill] sm:$0xff]  ;;  %v10407_v32 = vld [vmem:[#allocation78_spill] sm:$0xff] }
 0x301   :  { %v3016_v7 = vpop.f32.mrf.mxu0 }
 0x302   :  { %v8576_v48 = vadd.f32 %v3014_v52, %v2846_v49 }
 0x304   :  { %10401 = vst [vmem:[#allocation35_spill] sm:$0xff] %v8576_v48 }
 0x305   :  { %v2678_v19 = vpop.f32.mrf.mxu2 }
 0x306   :  { %v2679_v20 = vadd.f32 %v2678_v19, %v2510_v40  ;;  %v2847_v21 = vpop.f32.mrf.mxu3  ;;  %v10408_v40 = vld [vmem:[#allocation84_spill] sm:$0xff] }
 0x307   :  { %v2512_v45 = vpop.f32.mrf.mxu1  ;;  %v2346_v49 = vadd.f32 %v10408_v40, %v8014_v50 }
 0x308   :  { %v2513_v17 = vadd.f32 %v2512_v45, %v2344_v25  ;;  %v2848_v12 = vadd.f32 %v2847_v21, %v2679_v20  ;;  %v5823_v25 = vld [vmem:[#allocation2 + $0x17c] sm:$0xf0]  ;;  %v5829_v45 = vld [vmem:[#allocation2 + $0x168] sm:$0xf] }
 0x309   :  { %v3019_v3 = vpop.f32.mrf.mxu0  ;;  %v8596_v48 = vor.u32 %v7119_v8, %v5823_v25  ;;  %v10416_v25 = vld [vmem:[#allocation92_spill] sm:$0xff] }
 0x30a   :  { %v8584_v52 = vadd.f32 %v3016_v7, %v2848_v12  ;;  %3067 = vmatmul.bf16.gmra.mxu1 %v8580_v0  ;;  %3236 = vmatmul.bf16.gmra.mxu2 %v8582_v53  ;;  %v7123_v12 = vld [vmem:[#allocation2 + $0x180] sm:$0xf0] }
 0x30b   :  { %3405 = vmatmul.bf16.gmra.mxu3 %v10406_v6  ;;  %v10410_v6 = vld [vmem:[#allocation90_spill] sm:$0xff]  ;;  %10411 = vst [vmem:[#allocation78_spill] sm:$0xff] %v8596_v48 }
 0x30c   :  { %10405 = vst [vmem:[#allocation82_spill] sm:$0xff] %v8584_v52  ;;  %3574 = vmatmul.bf16.gmra.mxu0 %v10407_v32  ;;  %v2349_v32 = vadd.f32 %v10410_v6, %v8014_v50 }
 0x30d   :  { %v2681_v19 = vpop.f32.mrf.mxu2 }
 0x30e   :  { %v2682_v35 = vadd.f32 %v2681_v19, %v2513_v17  ;;  %v2850_v55 = vpop.f32.mrf.mxu3  ;;  %v8598_v17 = vor.u32 %v7123_v12, %v5829_v45  ;;  %v2351_v45 = vadd.f32 %v10416_v25, %v8014_v50 }
 0x30f   :  { %v2514_v23 = vpop.f32.mrf.mxu1 }
 0x310   :  { %v2515_v9 = vadd.f32 %v2514_v23, %v2346_v49  ;;  %v2851_v20 = vadd.f32 %v2850_v55, %v2682_v35  ;;  %10412 = vst [vmem:[#allocation84_spill] sm:$0xff] %v8598_v17  ;;  %v7341_v55 = vld [vmem:[#allocation5 + $0x154] sm:$0xf]  ;;  %v6703_v23 = vld [vmem:[#allocation5 + $0x158] sm:$0xf0] }
 0x311   :  { %v3021_v21 = vpop.f32.mrf.mxu0 }
 0x312   :  { %v8592_v7 = vadd.f32 %v3019_v3, %v2851_v20  ;;  %v10414_v20 = vld [vmem:[#allocation43_spill] sm:$0xff] }
 0x314   :  { %10409 = vst [vmem:[#allocation39_spill] sm:$0xff] %v8592_v7 }
 0x315   :  { %v2683_v53 = vpop.f32.mrf.mxu2 }
 0x316   :  { %v2684_v0 = vadd.f32 %v2683_v53, %v2515_v9  ;;  %v2852_v52 = vpop.f32.mrf.mxu3  ;;  %v6706_v53 = vor.u32 %v7341_v55, %v6703_v23  ;;  %v10415_v9 = vld [vmem:[#allocation85_spill] sm:$0xff]  ;;  %v5851_v55 = vld [vmem:[#allocation2 + $0x1b4] sm:$0xf0]  ;;  %v5857_v23 = vld [vmem:[#allocation2 + $0x1a0] sm:$0xf] }
 0x317   :  { %v2517_v19 = vpop.f32.mrf.mxu1 }
 0x318   :  { %v2518_v40 = vadd.f32 %v2517_v19, %v2349_v32  ;;  %v2853_v49 = vadd.f32 %v2852_v52, %v2684_v0  ;;  %3712 = vmatpush.bf16.msrb.mxu1 %v6706_v53  ;;  %v7361_v19 = vld [vmem:[#allocation5 + $0x1f4] sm:$0xf] }
 0x319   :  { %v3024_v35 = vpop.f32.mrf.mxu0 }
 0x31a   :  { %v8600_v3 = vadd.f32 %v3021_v21, %v2853_v49  ;;  %3072 = vmatmul.bf16.gmra.mxu1 %v8596_v48  ;;  %3241 = vmatmul.bf16.gmra.mxu2 %v8598_v17  ;;  %v6783_v49 = vld [vmem:[#allocation5 + $0x1f8] sm:$0xf0] }
 0x31b   :  { %3410 = vmatmul.bf16.gmra.mxu3 %v10414_v20  ;;  %v7126_v48 = vld [vmem:[#allocation2 + $0x19c] sm:$0xf]  ;;  %v6786_v20 = vor.u32 %v7361_v19, %v6783_v49  ;;  %v7377_v19 = vld [vmem:[#allocation5 + $0x274] sm:$0xf] }
 0x31c   :  { %10413 = vst [vmem:[#allocation90_spill] sm:$0xff] %v8600_v3  ;;  %3579 = vmatmul.bf16.gmra.mxu0 %v10415_v9  ;;  %v7130_v9 = vld [vmem:[#allocation2 + $0x1b8] sm:$0xf0]  ;;  %v10417_v3 = vld [vmem:[#allocation98_spill] sm:$0xff]  ;;  %v8612_v7 = vor.u32 %v7126_v48, %v5851_v55  ;;  %v10423_v55 = vld [vmem:[#allocation100_spill] sm:$0xff] }
 0x31d   :  { %v2686_v8 = vpop.f32.mrf.mxu2  ;;  %3879 = vmatpush.bf16.msrb.mxu2 %v6786_v20  ;;  %v2354_v25 = vadd.f32 %v10417_v3, %v8014_v50  ;;  %v6847_v49 = vld [vmem:[#allocation5 + $0x278] sm:$0xf0] }
 0x31e   :  { %v2687_v0 = vadd.f32 %v2686_v8, %v2518_v40  ;;  %v2855_v52 = vpop.f32.mrf.mxu3  ;;  %10418 = vst [vmem:[#allocation43_spill] sm:$0xff] %v8612_v7  ;;  %v10421_v20 = vld [vmem:[#allocation47_spill] sm:$0xff]  ;;  %v6850_v3 = vor.u32 %v7377_v19, %v6847_v49 }
 0x31f   :  { %v2519_v21 = vpop.f32.mrf.mxu1 }
 0x320   :  { %v2520_v12 = vadd.f32 %v2519_v21, %v2351_v45  ;;  %v2856_v6 = vadd.f32 %v2855_v52, %v2687_v0  ;;  %v8614_v45 = vor.u32 %v7130_v9, %v5857_v23  ;;  %4048 = vmatpush.bf16.msrb.mxu3 %v6850_v3  ;;  %v2356_v23 = vadd.f32 %v10423_v55, %v8014_v50 }
 0x321   :  { %v3026_v32 = vpop.f32.mrf.mxu0 }
 0x322   :  { %v8608_v17 = vadd.f32 %v3024_v35, %v2856_v6  ;;  %10419 = vst [vmem:[#allocation85_spill] sm:$0xff] %v8614_v45 }
 0x325   :  { %v2688_v53 = vpop.f32.mrf.mxu2 }
 0x326   :  { %v2689_v40 = vadd.f32 %v2688_v53, %v2520_v12  ;;  %v2857_v8 = vpop.f32.mrf.mxu3  ;;  %v10422_v12 = vld [vmem:[#allocation93_spill] sm:$0xff] }
 0x327   :  { %v2522_v0 = vpop.f32.mrf.mxu1 }
 0x328   :  { %v2523_v52 = vadd.f32 %v2522_v0, %v2354_v25  ;;  %v2858_v35 = vadd.f32 %v2857_v8, %v2689_v40 }
 0x329   :  { %v3029_v21 = vpop.f32.mrf.mxu0 }
 0x32a   :  { %v8616_v6 = vadd.f32 %v3026_v32, %v2858_v35  ;;  %3077 = vmatmul.bf16.gmra.mxu1 %v8612_v7  ;;  %3246 = vmatmul.bf16.gmra.mxu2 %v8614_v45  ;;  %v7133_v35 = vld [vmem:[#allocation2 + $0x1d4] sm:$0xf]  ;;  %v5879_v45 = vld [vmem:[#allocation2 + $0x1ec] sm:$0xf0]  ;;  %v5885_v7 = vld [vmem:[#allocation2 + $0x1d8] sm:$0xf] }
 0x32b   :  { %3415 = vmatmul.bf16.gmra.mxu3 %v10421_v20  ;;  %v7137_v20 = vld [vmem:[#allocation2 + $0x1f0] sm:$0xf0] }
 0x32c   :  { %10420 = vst [vmem:[#allocation92_spill] sm:$0xff] %v8616_v6  ;;  %3584 = vmatmul.bf16.gmra.mxu0 %v10422_v12  ;;  %v8626_v6 = vor.u32 %v7133_v35, %v5879_v45  ;;  %v8628_v3 = vor.u32 %v7137_v20, %v5885_v7  ;;  %v10430_v45 = vld [vmem:[#allocation101_spill] sm:$0xff] }
 0x32d   :  { %v2691_v48 = vpop.f32.mrf.mxu2 }
 0x32e   :  { %v2692_v9 = vadd.f32 %v2691_v48, %v2523_v52  ;;  %v2860_v53 = vpop.f32.mrf.mxu3  ;;  %10425 = vst [vmem:[#allocation47_spill] sm:$0xff] %v8626_v6  ;;  %v10427_v48 = vld [vmem:[#allocation105_spill] sm:$0xff] }
 0x32f   :  { %v2524_v32 = vpop.f32.mrf.mxu1  ;;  %10426 = vst [vmem:[#allocation93_spill] sm:$0xff] %v8628_v3 }
 0x330   :  { %v2525_v25 = vadd.f32 %v2524_v32, %v2356_v23  ;;  %v2861_v40 = vadd.f32 %v2860_v53, %v2692_v9  ;;  %v7473_v53 = vld [vmem:[#allocation7] sm:$0x3] }
 0x331   :  { %v3031_v8 = vpop.f32.mrf.mxu0  ;;  %v8636_v32 = vperm.slane %v7473_v53, 1 }
 0x332   :  { %v8624_v0 = vadd.f32 %v3029_v21, %v2861_v40  ;;  %v10429_v21 = vld [vmem:[#allocation16_spill] sm:$0xff] }
 0x334   :  { %10424 = vst [vmem:[#allocation98_spill] sm:$0xff] %v8624_v0 }
 0x335   :  { %v2693_v19 = vpop.f32.mrf.mxu2 }
 0x336   :  { %v2694_v49 = vadd.f32 %v2693_v19, %v2525_v25  ;;  %v2862_v12 = vpop.f32.mrf.mxu3  ;;  %v10431_v19 = vld [vmem:[#allocation110_spill] sm:$0xff] }
 0x337   :  { %v3043_v50 = vpop.f32.mrf.mxu1 }
 0x338   :  { %v2863_v52 = vadd.f32 %v2862_v12, %v2694_v49  ;;  %v3044_v55 = vadd.f32 %v3043_v50, %v10427_v48  ;;  %v7140_v50 = vld [vmem:[#allocation2 + $0x20c] sm:$0xf]  ;;  %v5913_v48 = vld [vmem:[#allocation2 + $0x210] sm:$0xf] }
 0x339   :  { %v3550_v23 = vpop.f32.mrf.mxu0 }
 0x33a   :  { %v8631_v9 = vadd.f32 %v3031_v8, %v2863_v52  ;;  %3082 = vmatmul.bf16.gmra.mxu1 %v8626_v6  ;;  %3251 = vmatmul.bf16.gmra.mxu2 %v8628_v3  ;;  %v5907_v52 = vld [vmem:[#allocation2 + $0x224] sm:$0xf0] }
 0x33b   :  { %3420 = vmatmul.bf16.gmra.mxu3 %v10429_v21  ;;  %v7144_v21 = vld [vmem:[#allocation2 + $0x228] sm:$0xf0] }
 0x33c   :  { %10428 = vst [vmem:[#allocation100_spill] sm:$0xff] %v8631_v9  ;;  %3589 = vmatmul.bf16.gmra.mxu0 %v10430_v45  ;;  %v8643_v9 = vor.u32 %v7140_v50, %v5907_v52  ;;  %v8645_v45 = vor.u32 %v7144_v21, %v5913_v48  ;;  %v10440_v21 = vld [vmem:[#allocation116_spill] sm:$0xff] }
 0x33d   :  { %v3212_v7 = vpop.f32.mrf.mxu2 }
 0x33e   :  { %v3213_v25 = vadd.f32 %v3212_v7, %v3044_v55  ;;  %v3381_v40 = vpop.f32.mrf.mxu3  ;;  %10433 = vst [vmem:[#allocation16_spill] sm:$0xff] %v8643_v9 }
 0x33f   :  { %v3045_v35 = vpop.f32.mrf.mxu1  ;;  %v3382_v20 = vadd.f32 %v3381_v40, %v8636_v32  ;;  %10434 = vst [vmem:[#allocation101_spill] sm:$0xff] %v8645_v45 }
 0x340   :  { %v3046_v8 = vadd.f32 %v3045_v35, %v10431_v19  ;;  %v4555_v40 = vmax.f32 %v3213_v25, 0.0  ;;  %v10435_v35 = vld [vmem:[#allocation111_spill] sm:$0xff] }
 0x341   :  { %v8641_v49 = vadd.f32 %v3550_v23, %v3382_v20  ;;  %v3552_v12 = vpop.f32.mrf.mxu0 }
 0x343   :  { %10432 = vst [vmem:[#allocation105_spill] sm:$0xff] %v8641_v49 }
 0x345   :  { %v3214_v3 = vpop.f32.mrf.mxu2 }
 0x346   :  { %v3215_v53 = vadd.f32 %v3214_v3, %v3046_v8  ;;  %v3383_v6 = vpop.f32.mrf.mxu3  ;;  %v10438_v3 = vld [vmem:[#allocation20_spill] sm:$0xff]  ;;  %v10439_v8 = vld [vmem:[#allocation106_spill] sm:$0xff] }
 0x347   :  { %v3048_v55 = vpop.f32.mrf.mxu1  ;;  %v3384_v7 = vadd.f32 %v3383_v6, %v8636_v32 }
 0x348   :  { %v4557_v0 = vmax.f32 %v3215_v53, 0.0  ;;  %v3049_v23 = vadd.f32 %v3048_v55, %v10435_v35  ;;  %v7147_v55 = vld [vmem:[#allocation2 + $0x244] sm:$0xf] }
 0x349   :  { %v8649_v20 = vadd.f32 %v3552_v12, %v3384_v7  ;;  %v3555_v19 = vpop.f32.mrf.mxu0  ;;  %v5935_v7 = vld [vmem:[#allocation2 + $0x25c] sm:$0xf0]  ;;  %v7151_v35 = vld [vmem:[#allocation2 + $0x260] sm:$0xf0] }
 0x34a   :  { %v8651_v49 = vpack.c.bf16 %v4557_v0, %v4555_v40  ;;  %3087 = vmatmul.bf16.gmra.mxu1 %v8643_v9  ;;  %3256 = vmatmul.bf16.gmra.mxu2 %v8645_v45  ;;  %v5941_v40 = vld [vmem:[#allocation2 + $0x248] sm:$0xf]  ;;  %v8661_v9 = vor.u32 %v7147_v55, %v5935_v7 }
 0x34b   :  { %10436 = vst [vmem:[#allocation110_spill] sm:$0xff] %v8649_v20  ;;  %3425 = vmatmul.bf16.gmra.mxu3 %v10438_v3  ;;  %v10447_v7 = vld [vmem:[#allocation24_spill] sm:$0xff] }
 0x34c   :  { %10437 = vst [vmem:[#allocation111_spill] sm:$0xff] %v8651_v49  ;;  %3594 = vmatmul.bf16.gmra.mxu0 %v10439_v8  ;;  %v8663_v8 = vor.u32 %v7151_v35, %v5941_v40  ;;  %v10448_v35 = vld [vmem:[#allocation112_spill] sm:$0xff] }
 0x34d   :  { %v3217_v50 = vpop.f32.mrf.mxu2  ;;  %10442 = vst [vmem:[#allocation106_spill] sm:$0xff] %v8661_v9 }
 0x34e   :  { %v3218_v52 = vadd.f32 %v3217_v50, %v3049_v23  ;;  %v3386_v6 = vpop.f32.mrf.mxu3  ;;  %10443 = vst [vmem:[#allocation116_spill] sm:$0xff] %v8663_v8 }
 0x34f   :  { %v3050_v25 = vpop.f32.mrf.mxu1  ;;  %v3387_v48 = vadd.f32 %v3386_v6, %v8636_v32 }
 0x350   :  { %v3051_v12 = vadd.f32 %v3050_v25, %v10440_v21  ;;  %v4559_v6 = vmax.f32 %v3218_v52, 0.0  ;;  %v10444_v25 = vld [vmem:[#allocation117_spill] sm:$0xff] }
 0x351   :  { %v8659_v53 = vadd.f32 %v3555_v19, %v3387_v48  ;;  %v3557_v0 = vpop.f32.mrf.mxu0 }
 0x353   :  { %10441 = vst [vmem:[#allocation20_spill] sm:$0xff] %v8659_v53 }
 0x355   :  { %v3219_v45 = vpop.f32.mrf.mxu2 }
 0x356   :  { %v3220_v49 = vadd.f32 %v3219_v45, %v3051_v12  ;;  %v3388_v3 = vpop.f32.mrf.mxu3  ;;  %v7339_v45 = vld [vmem:[#allocation5 + $0x144] sm:$0xf]  ;;  %v6695_v12 = vld [vmem:[#allocation5 + $0x148] sm:$0xf0] }
 0x357   :  { %v3053_v23 = vpop.f32.mrf.mxu1  ;;  %v3389_v50 = vadd.f32 %v3388_v3, %v8636_v32  ;;  %v6698_v40 = vor.u32 %v7339_v45, %v6695_v12  ;;  %v5969_v45 = vld [vmem:[#allocation2 + $0x280] sm:$0xf]  ;;  %v7158_v12 = vld [vmem:[#allocation2 + $0x298] sm:$0xf0] }
 0x358   :  { %v4561_v20 = vmax.f32 %v3220_v49, 0.0  ;;  %v3054_v19 = vadd.f32 %v3053_v23, %v10444_v25 }
 0x359   :  { %v8667_v48 = vadd.f32 %v3557_v0, %v3389_v50  ;;  %v3560_v21 = vpop.f32.mrf.mxu0  ;;  %3713 = vmatpush.bf16.msrb.mxu1 %v6698_v40 }
 0x35a   :  { %3092 = vmatmul.bf16.gmra.mxu1 %v8661_v9  ;;  %3261 = vmatmul.bf16.gmra.mxu2 %v8663_v8  ;;  %v8671_v55 = vpack.c.bf16 %v4561_v20, %v4559_v6  ;;  %v7359_v9 = vld [vmem:[#allocation5 + $0x1e4] sm:$0xf]  ;;  %v6775_v20 = vld [vmem:[#allocation5 + $0x1e8] sm:$0xf0]  ;;  %v7154_v6 = vld [vmem:[#allocation2 + $0x27c] sm:$0xf] }
 0x35b   :  { %10445 = vst [vmem:[#allocation117_spill] sm:$0xff] %v8667_v48  ;;  %3430 = vmatmul.bf16.gmra.mxu3 %v10447_v7  ;;  %v5963_v7 = vld [vmem:[#allocation2 + $0x294] sm:$0xf0]  ;;  %v8681_v48 = vor.u32 %v7158_v12, %v5969_v45 }
 0x35c   :  { %10446 = vst [vmem:[#allocation200_spill] sm:$0xff] %v8671_v55  ;;  %3599 = vmatmul.bf16.gmra.mxu0 %v10448_v35  ;;  %v6778_v55 = vor.u32 %v7359_v9, %v6775_v20  ;;  %v6839_v9 = vld [vmem:[#allocation5 + $0x268] sm:$0xf0] }
 0x35d   :  { %v3222_v52 = vpop.f32.mrf.mxu2  ;;  %10450 = vst [vmem:[#allocation112_spill] sm:$0xff] %v8681_v48 }
 0x35e   :  { %v3223_v49 = vadd.f32 %v3222_v52, %v3054_v19  ;;  %v3391_v3 = vpop.f32.mrf.mxu3  ;;  %3880 = vmatpush.bf16.msrb.mxu2 %v6778_v55  ;;  %v8679_v52 = vor.u32 %v7154_v6, %v5963_v7  ;;  %v10452_v6 = vld [vmem:[#allocation28_spill] sm:$0xff] }
 0x35f   :  { %v3055_v0 = vpop.f32.mrf.mxu1  ;;  %v3392_v23 = vadd.f32 %v3391_v3, %v8636_v32 }
 0x360   :  { %v3056_v50 = vadd.f32 %v3055_v0, %v8088_v24 }
 0x361   :  { %v8677_v25 = vadd.f32 %v3560_v21, %v3392_v23  ;;  %v3562_v8 = vpop.f32.mrf.mxu0  ;;  %v4563_v21 = vmax.f32 %v3223_v49, 0.0 }
 0x363   :  { %10449 = vst [vmem:[#allocation24_spill] sm:$0xff] %v8677_v25  ;;  %v7375_v25 = vld [vmem:[#allocation5 + $0x264] sm:$0xf] }
 0x364   :  { %v6842_v55 = vor.u32 %v7375_v25, %v6839_v9 }
 0x365   :  { %v3224_v35 = vpop.f32.mrf.mxu2 }
 0x366   :  { %v3225_v40 = vadd.f32 %v3224_v35, %v3056_v50  ;;  %v3393_v19 = vpop.f32.mrf.mxu3  ;;  %4049 = vmatpush.bf16.msrb.mxu3 %v6842_v55 }
 0x367   :  { %v3058_v3 = vpop.f32.mrf.mxu1  ;;  %v3394_v24 = vadd.f32 %v3393_v19, %v8636_v32  ;;  %v5991_v19 = vld [vmem:[#allocation2 + $0x2cc] sm:$0xf0] }
 0x368   :  { %v4565_v0 = vmax.f32 %v3225_v40, 0.0  ;;  %v3059_v23 = vadd.f32 %v3058_v3, %v8096_v14  ;;  %v7161_v40 = vld [vmem:[#allocation2 + $0x2b4] sm:$0xf]  ;;  %v5997_v3 = vld [vmem:[#allocation2 + $0x2b8] sm:$0xf] }
 0x369   :  { %v8685_v20 = vadd.f32 %v3562_v8, %v3394_v24  ;;  %v3565_v53 = vpop.f32.mrf.mxu0  ;;  %v7165_v24 = vld [vmem:[#allocation2 + $0x2d0] sm:$0xf0] }
 0x36a   :  { %3097 = vmatmul.bf16.gmra.mxu1 %v8679_v52  ;;  %3266 = vmatmul.bf16.gmra.mxu2 %v8681_v48  ;;  %v8689_v50 = vpack.c.bf16 %v4565_v0, %v4563_v21  ;;  %v8699_v55 = vor.u32 %v7165_v24, %v5997_v3 }
 0x36b   :  { %3435 = vmatmul.bf16.gmra.mxu3 %v10452_v6 }
 0x36c   :  { %10451 = vst [vmem:[#allocation201_spill] sm:$0xff] %v8689_v50  ;;  %3604 = vmatmul.bf16.gmra.mxu0 %v8080_v39  ;;  %v8697_v39 = vor.u32 %v7161_v40, %v5991_v19 }
 0x36d   :  { %v3227_v49 = vpop.f32.mrf.mxu2  ;;  %10453 = vst [vmem:[#allocation28_spill] sm:$0xff] %v8699_v55 }
 0x36e   :  { %v3228_v7 = vadd.f32 %v3227_v49, %v3059_v23  ;;  %v3396_v14 = vpop.f32.mrf.mxu3 }
 0x36f   :  { %v3060_v45 = vpop.f32.mrf.mxu1  ;;  %v3397_v8 = vadd.f32 %v3396_v14, %v8636_v32 }
 0x370   :  { %v3061_v12 = vadd.f32 %v3060_v45, %v8108_v44  ;;  %v4567_v49 = vmax.f32 %v3228_v7, 0.0 }
 0x371   :  { %v8695_v25 = vadd.f32 %v3565_v53, %v3397_v8  ;;  %v3567_v35 = vpop.f32.mrf.mxu0 }
 0x375   :  { %v3229_v21 = vpop.f32.mrf.mxu2 }
 0x376   :  { %v3230_v0 = vadd.f32 %v3229_v21, %v3061_v12  ;;  %v3398_v9 = vpop.f32.mrf.mxu3  ;;  %v10455_v12 = vld [vmem:[#allocation32_spill] sm:$0xff] }
 0x377   :  { %v3063_v23 = vpop.f32.mrf.mxu1  ;;  %v3399_v6 = vadd.f32 %v3398_v9, %v8636_v32  ;;  %v6019_v9 = vld [vmem:[#allocation2 + $0x304] sm:$0xf0] }
 0x378   :  { %v4569_v14 = vmax.f32 %v3230_v0, 0.0  ;;  %v3064_v44 = vadd.f32 %v3063_v23, %v8116_v5  ;;  %v7168_v0 = vld [vmem:[#allocation2 + $0x2ec] sm:$0xf]  ;;  %v6025_v23 = vld [vmem:[#allocation2 + $0x2f0] sm:$0xf] }
 0x379   :  { %v8703_v53 = vadd.f32 %v3567_v35, %v3399_v6  ;;  %v3570_v45 = vpop.f32.mrf.mxu0  ;;  %v7172_v6 = vld [vmem:[#allocation2 + $0x308] sm:$0xf0] }
 0x37a   :  { %3102 = vmatmul.bf16.gmra.mxu1 %v8697_v39  ;;  %3271 = vmatmul.bf16.gmra.mxu2 %v8699_v55  ;;  %v8707_v8 = vpack.c.bf16 %v4569_v14, %v4567_v49  ;;  %v8715_v55 = vor.u32 %v7168_v0, %v6019_v9  ;;  %v10460_v0 = vld [vmem:[#allocation124_spill] sm:$0xff] }
 0x37b   :  { %3440 = vmatmul.bf16.gmra.mxu3 %v10455_v12 }
 0x37c   :  { %10454 = vst [vmem:[#allocation202_spill] sm:$0xff] %v8707_v8  ;;  %3609 = vmatmul.bf16.gmra.mxu0 %v8100_v16  ;;  %v8717_v16 = vor.u32 %v7172_v6, %v6025_v23 }
 0x37d   :  { %v3232_v40 = vpop.f32.mrf.mxu2  ;;  %10456 = vst [vmem:[#allocation32_spill] sm:$0xff] %v8715_v55 }
 0x37e   :  { %v3233_v19 = vadd.f32 %v3232_v40, %v3064_v44  ;;  %v3401_v3 = vpop.f32.mrf.mxu3  ;;  %10457 = vst [vmem:[#allocation203_spill] sm:$0xff] %v8717_v16 }
 0x37f   :  { %v3065_v7 = vpop.f32.mrf.mxu1  ;;  %v3402_v24 = vadd.f32 %v3401_v3, %v8636_v32 }
 0x380   :  { %v3066_v5 = vadd.f32 %v3065_v7, %v8128_v33  ;;  %v4571_v3 = vmax.f32 %v3233_v19, 0.0 }
 0x381   :  { %v8713_v35 = vadd.f32 %v3570_v45, %v3402_v24  ;;  %v3572_v21 = vpop.f32.mrf.mxu0 }
 0x385   :  { %v3234_v49 = vpop.f32.mrf.mxu2 }
 0x386   :  { %v3235_v14 = vadd.f32 %v3234_v49, %v3066_v5  ;;  %v3403_v12 = vpop.f32.mrf.mxu3  ;;  %v10459_v5 = vld [vmem:[#allocation36_spill] sm:$0xff] }
 0x387   :  { %v3068_v44 = vpop.f32.mrf.mxu1  ;;  %v3404_v40 = vadd.f32 %v3403_v12, %v8636_v32 }
 0x388   :  { %v4573_v48 = vmax.f32 %v3235_v14, 0.0  ;;  %v3069_v33 = vadd.f32 %v3068_v44, %v8136_v36  ;;  %v10461_v36 = vld [vmem:[#allocation132_spill] sm:$0xff] }
 0x389   :  { %v8721_v45 = vadd.f32 %v3572_v21, %v3404_v40  ;;  %v3575_v7 = vpop.f32.mrf.mxu0  ;;  %v7175_v44 = vld [vmem:[#allocation2 + $0x324] sm:$0xf]  ;;  %v6047_v40 = vld [vmem:[#allocation2 + $0x33c] sm:$0xf0] }
 0x38a   :  { %3107 = vmatmul.bf16.gmra.mxu1 %v8715_v55  ;;  %3276 = vmatmul.bf16.gmra.mxu2 %v8717_v16  ;;  %v8725_v24 = vpack.c.bf16 %v4573_v48, %v4571_v3  ;;  %v6053_v16 = vld [vmem:[#allocation2 + $0x328] sm:$0xf]  ;;  %v7179_v48 = vld [vmem:[#allocation2 + $0x340] sm:$0xf0]  ;;  %v8733_v8 = vor.u32 %v7175_v44, %v6047_v40 }
 0x38b   :  { %3445 = vmatmul.bf16.gmra.mxu3 %v10459_v5 }
 0x38c   :  { %10458 = vst [vmem:[#allocation204_spill] sm:$0xff] %v8725_v24  ;;  %3614 = vmatmul.bf16.gmra.mxu0 %v10460_v0  ;;  %v8735_v0 = vor.u32 %v7179_v48, %v6053_v16  ;;  %v10467_v16 = vld [vmem:[#allocation40_spill] sm:$0xff] }
 0x38d   :  { %v3237_v9 = vpop.f32.mrf.mxu2  ;;  %10462 = vst [vmem:[#allocation36_spill] sm:$0xff] %v8733_v8  ;;  %v10468_v48 = vld [vmem:[#allocation128_spill] sm:$0xff] }
 0x38e   :  { %v3238_v23 = vadd.f32 %v3237_v9, %v3069_v33  ;;  %v3406_v6 = vpop.f32.mrf.mxu3  ;;  %10463 = vst [vmem:[#allocation124_spill] sm:$0xff] %v8735_v0 }
 0x38f   :  { %v3070_v19 = vpop.f32.mrf.mxu1  ;;  %v3407_v49 = vadd.f32 %v3406_v6, %v8636_v32 }
 0x390   :  { %v3071_v21 = vadd.f32 %v3070_v19, %v10461_v36  ;;  %v4575_v6 = vmax.f32 %v3238_v23, 0.0  ;;  %v10464_v19 = vld [vmem:[#allocation133_spill] sm:$0xff] }
 0x391   :  { %v8731_v14 = vadd.f32 %v3575_v7, %v3407_v49  ;;  %v3577_v12 = vpop.f32.mrf.mxu0 }
 0x395   :  { %v3239_v3 = vpop.f32.mrf.mxu2 }
 0x396   :  { %v3240_v24 = vadd.f32 %v3239_v3, %v3071_v21  ;;  %v3408_v5 = vpop.f32.mrf.mxu3  ;;  %v7337_v21 = vld [vmem:[#allocation5 + $0x134] sm:$0xf]  ;;  %v6687_v3 = vld [vmem:[#allocation5 + $0x138] sm:$0xf0] }
 0x397   :  { %v3073_v33 = vpop.f32.mrf.mxu1  ;;  %v3409_v9 = vadd.f32 %v3408_v5, %v8636_v32  ;;  %v6690_v40 = vor.u32 %v7337_v21, %v6687_v3  ;;  %v6081_v21 = vld [vmem:[#allocation2 + $0x360] sm:$0xf]  ;;  %v7186_v3 = vld [vmem:[#allocation2 + $0x378] sm:$0xf0] }
 0x398   :  { %v4577_v50 = vmax.f32 %v3240_v24, 0.0  ;;  %v3074_v7 = vadd.f32 %v3073_v33, %v10464_v19 }
 0x399   :  { %v8739_v49 = vadd.f32 %v3577_v12, %v3409_v9  ;;  %v3580_v36 = vpop.f32.mrf.mxu0  ;;  %3714 = vmatpush.bf16.msrb.mxu1 %v6690_v40 }
 0x39a   :  { %3112 = vmatmul.bf16.gmra.mxu1 %v8733_v8  ;;  %3281 = vmatmul.bf16.gmra.mxu2 %v8735_v0  ;;  %v8743_v44 = vpack.c.bf16 %v4577_v50, %v4575_v6  ;;  %v7357_v8 = vld [vmem:[#allocation5 + $0x1d4] sm:$0xf]  ;;  %v6767_v50 = vld [vmem:[#allocation5 + $0x1d8] sm:$0xf0] }
 0x39b   :  { %10465 = vst [vmem:[#allocation132_spill] sm:$0xff] %v8739_v49  ;;  %3450 = vmatmul.bf16.gmra.mxu3 %v10467_v16  ;;  %v7182_v6 = vld [vmem:[#allocation2 + $0x35c] sm:$0xf]  ;;  %v6075_v16 = vld [vmem:[#allocation2 + $0x374] sm:$0xf0]  ;;  %v8753_v49 = vor.u32 %v7186_v3, %v6081_v21 }
 0x39c   :  { %10466 = vst [vmem:[#allocation133_spill] sm:$0xff] %v8743_v44  ;;  %3619 = vmatmul.bf16.gmra.mxu0 %v10468_v48  ;;  %v6770_v44 = vor.u32 %v7357_v8, %v6767_v50  ;;  %v6831_v8 = vld [vmem:[#allocation5 + $0x258] sm:$0xf0] }
 0x39d   :  { %v3242_v23 = vpop.f32.mrf.mxu2  ;;  %10471 = vst [vmem:[#allocation205_spill] sm:$0xff] %v8753_v49 }
 0x39e   :  { %v3243_v24 = vadd.f32 %v3242_v23, %v3074_v7  ;;  %v3411_v5 = vpop.f32.mrf.mxu3  ;;  %3881 = vmatpush.bf16.msrb.mxu2 %v6770_v44  ;;  %v8751_v23 = vor.u32 %v7182_v6, %v6075_v16  ;;  %v10473_v6 = vld [vmem:[#allocation44_spill] sm:$0xff]  ;;  %v10474_v16 = vld [vmem:[#allocation134_spill] sm:$0xff] }
 0x39f   :  { %v3075_v12 = vpop.f32.mrf.mxu1  ;;  %v3412_v33 = vadd.f32 %v3411_v5, %v8636_v32 }
 0x3a0   :  { %v3076_v9 = vadd.f32 %v3075_v12, %v8168_v38  ;;  %10470 = vst [vmem:[#allocation128_spill] sm:$0xff] %v8751_v23 }
 0x3a1   :  { %v8749_v19 = vadd.f32 %v3580_v36, %v3412_v33  ;;  %v3582_v0 = vpop.f32.mrf.mxu0  ;;  %v4579_v36 = vmax.f32 %v3243_v24, 0.0 }
 0x3a3   :  { %10469 = vst [vmem:[#allocation40_spill] sm:$0xff] %v8749_v19  ;;  %v7373_v19 = vld [vmem:[#allocation5 + $0x254] sm:$0xf] }
 0x3a4   :  { %v6834_v44 = vor.u32 %v7373_v19, %v6831_v8 }
 0x3a5   :  { %v3244_v48 = vpop.f32.mrf.mxu2 }
 0x3a6   :  { %v3245_v40 = vadd.f32 %v3244_v48, %v3076_v9  ;;  %v3413_v7 = vpop.f32.mrf.mxu3  ;;  %4050 = vmatpush.bf16.msrb.mxu3 %v6834_v44 }
 0x3a7   :  { %v3078_v5 = vpop.f32.mrf.mxu1  ;;  %v3414_v38 = vadd.f32 %v3413_v7, %v8636_v32  ;;  %v7189_v7 = vld [vmem:[#allocation2 + $0x394] sm:$0xf] }
 0x3a8   :  { %v4581_v12 = vmax.f32 %v3245_v40, 0.0  ;;  %v3079_v33 = vadd.f32 %v3078_v5, %v8176_v51  ;;  %v6103_v5 = vld [vmem:[#allocation2 + $0x3ac] sm:$0xf0] }
 0x3a9   :  { %v8757_v50 = vadd.f32 %v3582_v0, %v3414_v38  ;;  %v3585_v55 = vpop.f32.mrf.mxu0  ;;  %v6109_v38 = vld [vmem:[#allocation2 + $0x398] sm:$0xf] }
 0x3aa   :  { %3117 = vmatmul.bf16.gmra.mxu1 %v8751_v23  ;;  %3286 = vmatmul.bf16.gmra.mxu2 %v8753_v49  ;;  %v8761_v9 = vpack.c.bf16 %v4581_v12, %v4579_v36  ;;  %v7193_v36 = vld [vmem:[#allocation2 + $0x3b0] sm:$0xf0] }
 0x3ab   :  { %3455 = vmatmul.bf16.gmra.mxu3 %v10473_v6  ;;  %v8771_v44 = vor.u32 %v7193_v36, %v6109_v38 }
 0x3ac   :  { %10472 = vst [vmem:[#allocation206_spill] sm:$0xff] %v8761_v9  ;;  %3624 = vmatmul.bf16.gmra.mxu0 %v10474_v16  ;;  %v8769_v16 = vor.u32 %v7189_v7, %v6103_v5  ;;  %v10477_v7 = vld [vmem:[#allocation17_spill] sm:$0xff] }
 0x3ad   :  { %v3247_v24 = vpop.f32.mrf.mxu2  ;;  %10475 = vst [vmem:[#allocation44_spill] sm:$0xff] %v8771_v44 }
 0x3ae   :  { %v3248_v21 = vadd.f32 %v3247_v24, %v3079_v33  ;;  %v3416_v51 = vpop.f32.mrf.mxu3 }
 0x3af   :  { %v3080_v3 = vpop.f32.mrf.mxu1  ;;  %v3417_v0 = vadd.f32 %v3416_v51, %v8636_v32 }
 0x3b0   :  { %v3081_v48 = vadd.f32 %v3080_v3, %v8188_v28  ;;  %v4583_v51 = vmax.f32 %v3248_v21, 0.0  ;;  %v6911_v3 = vld [vmem:[#allocation5 + $0x2f8] sm:$0xf0] }
 0x3b1   :  { %v8767_v19 = vadd.f32 %v3585_v55, %v3417_v0  ;;  %v3587_v40 = vpop.f32.mrf.mxu0  ;;  %v7393_v55 = vld [vmem:[#allocation5 + $0x2f4] sm:$0xf] }
 0x3b2   :  { %v6914_v23 = vor.u32 %v7393_v55, %v6911_v3 }
 0x3b4   :  { %4217 = vmatpush.bf16.msrb.mxu0 %v6914_v23 }
 0x3b5   :  { %v3249_v12 = vpop.f32.mrf.mxu2 }
 0x3b6   :  { %v3250_v8 = vadd.f32 %v3249_v12, %v3081_v48  ;;  %v3418_v6 = vpop.f32.mrf.mxu3 }
 0x3b7   :  { %v3083_v33 = vpop.f32.mrf.mxu1  ;;  %v3419_v24 = vadd.f32 %v3418_v6, %v8636_v32  ;;  %v7196_v6 = vld [vmem:[#allocation2 + $0x3cc] sm:$0xf] }
 0x3b8   :  { %v4585_v49 = vmax.f32 %v3250_v8, 0.0  ;;  %v3084_v28 = vadd.f32 %v3083_v33, %v8196_v58  ;;  %v6131_v33 = vld [vmem:[#allocation2 + $0x3e4] sm:$0xf0] }
 0x3b9   :  { %v8775_v0 = vadd.f32 %v3587_v40, %v3419_v24  ;;  %v3590_v9 = vpop.f32.mrf.mxu0  ;;  %v7200_v24 = vld [vmem:[#allocation2 + $0x3e8] sm:$0xf0]  ;;  %v8787_v3 = vor.u32 %v7196_v6, %v6131_v33 }
 0x3ba   :  { %3122 = vmatmul.bf16.gmra.mxu1 %v8769_v16  ;;  %3291 = vmatmul.bf16.gmra.mxu2 %v8771_v44  ;;  %v8779_v48 = vpack.c.bf16 %v4585_v49, %v4583_v51  ;;  %v6137_v49 = vld [vmem:[#allocation2 + $0x3d0] sm:$0xf] }
 0x3bb   :  { %3460 = vmatmul.bf16.gmra.mxu3 %v10477_v7 }
 0x3bc   :  { %10476 = vst [vmem:[#allocation134_spill] sm:$0xff] %v8779_v48  ;;  %3629 = vmatmul.bf16.gmra.mxu0 %v8180_v10  ;;  %v8789_v10 = vor.u32 %v7200_v24, %v6137_v49  ;;  %v7355_v48 = vld [vmem:[#allocation5 + $0x1c4] sm:$0xf] }
 0x3bd   :  { %v3252_v21 = vpop.f32.mrf.mxu2 }
 0x3be   :  { %v3253_v5 = vadd.f32 %v3252_v21, %v3084_v28  ;;  %v3421_v58 = vpop.f32.mrf.mxu3  ;;  %10478 = vst [vmem:[#allocation17_spill] sm:$0xff] %v8789_v10 }
 0x3bf   :  { %v3085_v38 = vpop.f32.mrf.mxu1  ;;  %v3422_v40 = vadd.f32 %v3421_v58, %v8636_v32 }
 0x3c0   :  { %v3086_v36 = vadd.f32 %v3085_v38, %v8208_v60  ;;  %v4587_v21 = vmax.f32 %v3253_v5, 0.0 }
 0x3c1   :  { %v8785_v12 = vadd.f32 %v3590_v9, %v3422_v40  ;;  %v3592_v8 = vpop.f32.mrf.mxu0 }
 0x3c5   :  { %v3254_v51 = vpop.f32.mrf.mxu2 }
 0x3c6   :  { %v3255_v55 = vadd.f32 %v3254_v51, %v3086_v36  ;;  %v3423_v23 = vpop.f32.mrf.mxu3  ;;  %v10480_v36 = vld [vmem:[#allocation21_spill] sm:$0xff] }
 0x3c7   :  { %v3088_v28 = vpop.f32.mrf.mxu1  ;;  %v3424_v7 = vadd.f32 %v3423_v23, %v8636_v32  ;;  %v7203_v23 = vld [vmem:[#allocation2 + $0x404] sm:$0xf] }
 0x3c8   :  { %v4589_v58 = vmax.f32 %v3255_v55, 0.0  ;;  %v3089_v60 = vadd.f32 %v3088_v28, %v8216_v41  ;;  %v10481_v41 = vld [vmem:[#allocation148_spill] sm:$0xff] }
 0x3c9   :  { %v8793_v9 = vadd.f32 %v3592_v8, %v3424_v7  ;;  %v3595_v38 = vpop.f32.mrf.mxu0  ;;  %v6159_v28 = vld [vmem:[#allocation2 + $0x41c] sm:$0xf0]  ;;  %v6165_v7 = vld [vmem:[#allocation2 + $0x408] sm:$0xf] }
 0x3ca   :  { %3127 = vmatmul.bf16.gmra.mxu1 %v8787_v3  ;;  %3296 = vmatmul.bf16.gmra.mxu2 %v8789_v10  ;;  %v8797_v40 = vpack.c.bf16 %v4589_v58, %v4587_v21  ;;  %v7207_v21 = vld [vmem:[#allocation2 + $0x420] sm:$0xf0]  ;;  %v8805_v44 = vor.u32 %v7203_v23, %v6159_v28  ;;  %v10487_v28 = vld [vmem:[#allocation25_spill] sm:$0xff] }
 0x3cb   :  { %3465 = vmatmul.bf16.gmra.mxu3 %v10480_v36 }
 0x3cc   :  { %10479 = vst [vmem:[#allocation207_spill] sm:$0xff] %v8797_v40  ;;  %3634 = vmatmul.bf16.gmra.mxu0 %v8200_v26  ;;  %v8807_v26 = vor.u32 %v7207_v21, %v6165_v7  ;;  %v10488_v21 = vld [vmem:[#allocation144_spill] sm:$0xff] }
 0x3cd   :  { %v3257_v6 = vpop.f32.mrf.mxu2  ;;  %10482 = vst [vmem:[#allocation21_spill] sm:$0xff] %v8805_v44 }
 0x3ce   :  { %v3258_v33 = vadd.f32 %v3257_v6, %v3089_v60  ;;  %v3426_v49 = vpop.f32.mrf.mxu3  ;;  %10483 = vst [vmem:[#allocation148_spill] sm:$0xff] %v8807_v26 }
 0x3cf   :  { %v3090_v5 = vpop.f32.mrf.mxu1  ;;  %v3427_v24 = vadd.f32 %v3426_v49, %v8636_v32 }
 0x3d0   :  { %v3091_v8 = vadd.f32 %v3090_v5, %v10481_v41  ;;  %v4591_v49 = vmax.f32 %v3258_v33, 0.0  ;;  %v10484_v5 = vld [vmem:[#allocation149_spill] sm:$0xff] }
 0x3d1   :  { %v8803_v51 = vadd.f32 %v3595_v38, %v3427_v24  ;;  %v3597_v55 = vpop.f32.mrf.mxu0 }
 0x3d5   :  { %v3259_v58 = vpop.f32.mrf.mxu2 }
 0x3d6   :  { %v3260_v10 = vadd.f32 %v3259_v58, %v3091_v8  ;;  %v3428_v36 = vpop.f32.mrf.mxu3  ;;  %v7335_v8 = vld [vmem:[#allocation5 + $0x124] sm:$0xf]  ;;  %v6679_v58 = vld [vmem:[#allocation5 + $0x128] sm:$0xf0] }
 0x3d7   :  { %v3093_v60 = vpop.f32.mrf.mxu1  ;;  %v3429_v6 = vadd.f32 %v3428_v36, %v8636_v32  ;;  %v6682_v7 = vor.u32 %v7335_v8, %v6679_v58  ;;  %v6193_v8 = vld [vmem:[#allocation2 + $0x440] sm:$0xf]  ;;  %v7214_v58 = vld [vmem:[#allocation2 + $0x458] sm:$0xf0] }
 0x3d8   :  { %v4593_v40 = vmax.f32 %v3260_v10, 0.0  ;;  %v3094_v38 = vadd.f32 %v3093_v60, %v10484_v5 }
 0x3d9   :  { %v8811_v24 = vadd.f32 %v3597_v55, %v3429_v6  ;;  %v3600_v41 = vpop.f32.mrf.mxu0  ;;  %3715 = vmatpush.bf16.msrb.mxu1 %v6682_v7 }
 0x3da   :  { %3132 = vmatmul.bf16.gmra.mxu1 %v8805_v44  ;;  %3301 = vmatmul.bf16.gmra.mxu2 %v8807_v26  ;;  %v8815_v23 = vpack.c.bf16 %v4593_v40, %v4591_v49  ;;  %v6759_v40 = vld [vmem:[#allocation5 + $0x1c8] sm:$0xf0]  ;;  %v7210_v49 = vld [vmem:[#allocation2 + $0x43c] sm:$0xf]  ;;  %v8825_v44 = vor.u32 %v7214_v58, %v6193_v8 }
 0x3db   :  { %10485 = vst [vmem:[#allocation149_spill] sm:$0xff] %v8811_v24  ;;  %3470 = vmatmul.bf16.gmra.mxu3 %v10487_v28  ;;  %v6187_v28 = vld [vmem:[#allocation2 + $0x454] sm:$0xf0] }
 0x3dc   :  { %10486 = vst [vmem:[#allocation208_spill] sm:$0xff] %v8815_v23  ;;  %3639 = vmatmul.bf16.gmra.mxu0 %v10488_v21  ;;  %v6762_v23 = vor.u32 %v7355_v48, %v6759_v40  ;;  %v6823_v48 = vld [vmem:[#allocation5 + $0x248] sm:$0xf0] }
 0x3dd   :  { %v3262_v33 = vpop.f32.mrf.mxu2  ;;  %10491 = vst [vmem:[#allocation209_spill] sm:$0xff] %v8825_v44 }
 0x3de   :  { %v3263_v10 = vadd.f32 %v3262_v33, %v3094_v38  ;;  %v3431_v36 = vpop.f32.mrf.mxu3  ;;  %3882 = vmatpush.bf16.msrb.mxu2 %v6762_v23  ;;  %v8823_v33 = vor.u32 %v7210_v49, %v6187_v28  ;;  %v10493_v49 = vld [vmem:[#allocation29_spill] sm:$0xff]  ;;  %v10494_v28 = vld [vmem:[#allocation150_spill] sm:$0xff] }
 0x3df   :  { %v3095_v55 = vpop.f32.mrf.mxu1  ;;  %v3432_v60 = vadd.f32 %v3431_v36, %v8636_v32 }
 0x3e0   :  { %v3096_v6 = vadd.f32 %v3095_v55, %v8248_v43  ;;  %10490 = vst [vmem:[#allocation144_spill] sm:$0xff] %v8823_v33 }
 0x3e1   :  { %v8821_v5 = vadd.f32 %v3600_v41, %v3432_v60  ;;  %v3602_v26 = vpop.f32.mrf.mxu0  ;;  %v4595_v41 = vmax.f32 %v3263_v10, 0.0 }
 0x3e3   :  { %10489 = vst [vmem:[#allocation25_spill] sm:$0xff] %v8821_v5  ;;  %v7371_v5 = vld [vmem:[#allocation5 + $0x244] sm:$0xf] }
 0x3e4   :  { %v6826_v23 = vor.u32 %v7371_v5, %v6823_v48 }
 0x3e5   :  { %v3264_v21 = vpop.f32.mrf.mxu2 }
 0x3e6   :  { %v3265_v7 = vadd.f32 %v3264_v21, %v3096_v6  ;;  %v3433_v38 = vpop.f32.mrf.mxu3  ;;  %4051 = vmatpush.bf16.msrb.mxu3 %v6826_v23 }
 0x3e7   :  { %v3098_v36 = vpop.f32.mrf.mxu1  ;;  %v3434_v43 = vadd.f32 %v3433_v38, %v8636_v32  ;;  %v7217_v38 = vld [vmem:[#allocation2 + $0x474] sm:$0xf] }
 0x3e8   :  { %v4597_v55 = vmax.f32 %v3265_v7, 0.0  ;;  %v3099_v60 = vadd.f32 %v3098_v36, %v8256_v30  ;;  %v6215_v36 = vld [vmem:[#allocation2 + $0x48c] sm:$0xf0] }
 0x3e9   :  { %v8829_v40 = vadd.f32 %v3602_v26, %v3434_v43  ;;  %v3605_v24 = vpop.f32.mrf.mxu0  ;;  %v6221_v43 = vld [vmem:[#allocation2 + $0x478] sm:$0xf] }
 0x3ea   :  { %3137 = vmatmul.bf16.gmra.mxu1 %v8823_v33  ;;  %3306 = vmatmul.bf16.gmra.mxu2 %v8825_v44  ;;  %v8833_v6 = vpack.c.bf16 %v4597_v55, %v4595_v41  ;;  %v7221_v41 = vld [vmem:[#allocation2 + $0x490] sm:$0xf0] }
 0x3eb   :  { %3475 = vmatmul.bf16.gmra.mxu3 %v10493_v49  ;;  %v8843_v23 = vor.u32 %v7221_v41, %v6221_v43 }
 0x3ec   :  { %10492 = vst [vmem:[#allocation210_spill] sm:$0xff] %v8833_v6  ;;  %3644 = vmatmul.bf16.gmra.mxu0 %v10494_v28  ;;  %v8841_v28 = vor.u32 %v7217_v38, %v6215_v36  ;;  %v10497_v38 = vld [vmem:[#allocation33_spill] sm:$0xff] }
 0x3ed   :  { %v3267_v10 = vpop.f32.mrf.mxu2  ;;  %10495 = vst [vmem:[#allocation29_spill] sm:$0xff] %v8843_v23 }
 0x3ee   :  { %v3268_v8 = vadd.f32 %v3267_v10, %v3099_v60  ;;  %v3436_v30 = vpop.f32.mrf.mxu3 }
 0x3ef   :  { %v3100_v58 = vpop.f32.mrf.mxu1  ;;  %v3437_v26 = vadd.f32 %v3436_v30, %v8636_v32 }
 0x3f0   :  { %v3101_v21 = vadd.f32 %v3100_v58, %v8268_v47  ;;  %v4599_v30 = vmax.f32 %v3268_v8, 0.0  ;;  %v6903_v58 = vld [vmem:[#allocation5 + $0x2e8] sm:$0xf0] }
 0x3f1   :  { %v8839_v5 = vadd.f32 %v3605_v24, %v3437_v26  ;;  %v3607_v7 = vpop.f32.mrf.mxu0  ;;  %v7391_v24 = vld [vmem:[#allocation5 + $0x2e4] sm:$0xf] }
 0x3f2   :  { %v6906_v33 = vor.u32 %v7391_v24, %v6903_v58 }
 0x3f4   :  { %4218 = vmatpush.bf16.msrb.mxu0 %v6906_v33 }
 0x3f5   :  { %v3269_v55 = vpop.f32.mrf.mxu2 }
 0x3f6   :  { %v3270_v48 = vadd.f32 %v3269_v55, %v3101_v21  ;;  %v3438_v49 = vpop.f32.mrf.mxu3 }
 0x3f7   :  { %v3103_v60 = vpop.f32.mrf.mxu1  ;;  %v3439_v10 = vadd.f32 %v3438_v49, %v8636_v32  ;;  %v7224_v49 = vld [vmem:[#allocation2 + $0x4ac] sm:$0xf] }
 0x3f8   :  { %v4601_v44 = vmax.f32 %v3270_v48, 0.0  ;;  %v3104_v47 = vadd.f32 %v3103_v60, %v8276_v63  ;;  %v6243_v60 = vld [vmem:[#allocation2 + $0x4c4] sm:$0xf0] }
 0x3f9   :  { %v8847_v26 = vadd.f32 %v3607_v7, %v3439_v10  ;;  %v3610_v6 = vpop.f32.mrf.mxu0  ;;  %v7228_v10 = vld [vmem:[#allocation2 + $0x4c8] sm:$0xf0]  ;;  %v8859_v58 = vor.u32 %v7224_v49, %v6243_v60 }
 0x3fa   :  { %3142 = vmatmul.bf16.gmra.mxu1 %v8841_v28  ;;  %3311 = vmatmul.bf16.gmra.mxu2 %v8843_v23  ;;  %v8851_v21 = vpack.c.bf16 %v4601_v44, %v4599_v30  ;;  %v6249_v44 = vld [vmem:[#allocation2 + $0x4b0] sm:$0xf] }
 0x3fb   :  { %3480 = vmatmul.bf16.gmra.mxu3 %v10497_v38 }
 0x3fc   :  { %10496 = vst [vmem:[#allocation150_spill] sm:$0xff] %v8851_v21  ;;  %3649 = vmatmul.bf16.gmra.mxu0 %v8260_v13  ;;  %v8861_v13 = vor.u32 %v7228_v10, %v6249_v44  ;;  %v7353_v21 = vld [vmem:[#allocation5 + $0x1b4] sm:$0xf] }
 0x3fd   :  { %v3272_v8 = vpop.f32.mrf.mxu2 }
 0x3fe   :  { %v3273_v36 = vadd.f32 %v3272_v8, %v3104_v47  ;;  %v3441_v63 = vpop.f32.mrf.mxu3  ;;  %10498 = vst [vmem:[#allocation33_spill] sm:$0xff] %v8861_v13 }
 0x3ff   :  { %v3105_v43 = vpop.f32.mrf.mxu1  ;;  %v3442_v7 = vadd.f32 %v3441_v63, %v8636_v32 }
 0x400   :  { %v3106_v41 = vadd.f32 %v3105_v43, %v8288_v11  ;;  %v4603_v8 = vmax.f32 %v3273_v36, 0.0 }
 0x401   :  { %v8857_v55 = vadd.f32 %v3610_v6, %v3442_v7  ;;  %v3612_v48 = vpop.f32.mrf.mxu0 }
 0x405   :  { %v3274_v30 = vpop.f32.mrf.mxu2 }
 0x406   :  { %v3275_v24 = vadd.f32 %v3274_v30, %v3106_v41  ;;  %v3443_v33 = vpop.f32.mrf.mxu3  ;;  %v10500_v41 = vld [vmem:[#allocation37_spill] sm:$0xff] }
 0x407   :  { %v3108_v47 = vpop.f32.mrf.mxu1  ;;  %v3444_v38 = vadd.f32 %v3443_v33, %v8636_v32  ;;  %v7231_v33 = vld [vmem:[#allocation2 + $0x4e4] sm:$0xf] }
 0x408   :  { %v4605_v63 = vmax.f32 %v3275_v24, 0.0  ;;  %v3109_v11 = vadd.f32 %v3108_v47, %v8296_v4  ;;  %v10501_v4 = vld [vmem:[#allocation164_spill] sm:$0xff] }
 0x409   :  { %v8865_v6 = vadd.f32 %v3612_v48, %v3444_v38  ;;  %v3615_v43 = vpop.f32.mrf.mxu0  ;;  %v6271_v47 = vld [vmem:[#allocation2 + $0x4fc] sm:$0xf0]  ;;  %v6277_v38 = vld [vmem:[#allocation2 + $0x4e8] sm:$0xf] }
 0x40a   :  { %3147 = vmatmul.bf16.gmra.mxu1 %v8859_v58  ;;  %3316 = vmatmul.bf16.gmra.mxu2 %v8861_v13  ;;  %v8869_v7 = vpack.c.bf16 %v4605_v63, %v4603_v8  ;;  %v7235_v8 = vld [vmem:[#allocation2 + $0x500] sm:$0xf0]  ;;  %v8877_v23 = vor.u32 %v7231_v33, %v6271_v47  ;;  %v10507_v47 = vld [vmem:[#allocation41_spill] sm:$0xff] }
 0x40b   :  { %3485 = vmatmul.bf16.gmra.mxu3 %v10500_v41 }
 0x40c   :  { %10499 = vst [vmem:[#allocation211_spill] sm:$0xff] %v8869_v7  ;;  %3654 = vmatmul.bf16.gmra.mxu0 %v8280_v34  ;;  %v8879_v34 = vor.u32 %v7235_v8, %v6277_v38  ;;  %v10508_v8 = vld [vmem:[#allocation160_spill] sm:$0xff] }
 0x40d   :  { %v3277_v49 = vpop.f32.mrf.mxu2  ;;  %10502 = vst [vmem:[#allocation37_spill] sm:$0xff] %v8877_v23 }
 0x40e   :  { %v3278_v60 = vadd.f32 %v3277_v49, %v3109_v11  ;;  %v3446_v44 = vpop.f32.mrf.mxu3  ;;  %10503 = vst [vmem:[#allocation164_spill] sm:$0xff] %v8879_v34 }
 0x40f   :  { %v3110_v36 = vpop.f32.mrf.mxu1  ;;  %v3447_v10 = vadd.f32 %v3446_v44, %v8636_v32 }
 0x410   :  { %v3111_v48 = vadd.f32 %v3110_v36, %v10501_v4  ;;  %v4607_v44 = vmax.f32 %v3278_v60, 0.0  ;;  %v10504_v36 = vld [vmem:[#allocation165_spill] sm:$0xff] }
 0x411   :  { %v8875_v30 = vadd.f32 %v3615_v43, %v3447_v10  ;;  %v3617_v24 = vpop.f32.mrf.mxu0 }
 0x415   :  { %v3279_v63 = vpop.f32.mrf.mxu2 }
 0x416   :  { %v3280_v13 = vadd.f32 %v3279_v63, %v3111_v48  ;;  %v3448_v41 = vpop.f32.mrf.mxu3  ;;  %v7333_v48 = vld [vmem:[#allocation5 + $0x114] sm:$0xf]  ;;  %v6671_v63 = vld [vmem:[#allocation5 + $0x118] sm:$0xf0] }
 0x417   :  { %v3113_v11 = vpop.f32.mrf.mxu1  ;;  %v3449_v49 = vadd.f32 %v3448_v41, %v8636_v32  ;;  %v6674_v38 = vor.u32 %v7333_v48, %v6671_v63  ;;  %v6305_v48 = vld [vmem:[#allocation2 + $0x520] sm:$0xf]  ;;  %v7242_v63 = vld [vmem:[#allocation2 + $0x538] sm:$0xf0] }
 0x418   :  { %v4609_v7 = vmax.f32 %v3280_v13, 0.0  ;;  %v3114_v43 = vadd.f32 %v3113_v11, %v10504_v36 }
 0x419   :  { %v8883_v10 = vadd.f32 %v3617_v24, %v3449_v49  ;;  %v3620_v4 = vpop.f32.mrf.mxu0  ;;  %3716 = vmatpush.bf16.msrb.mxu1 %v6674_v38 }
 0x41a   :  { %3152 = vmatmul.bf16.gmra.mxu1 %v8877_v23  ;;  %3321 = vmatmul.bf16.gmra.mxu2 %v8879_v34  ;;  %v8887_v33 = vpack.c.bf16 %v4609_v7, %v4607_v44  ;;  %v6751_v7 = vld [vmem:[#allocation5 + $0x1b8] sm:$0xf0]  ;;  %v8897_v23 = vor.u32 %v7242_v63, %v6305_v48 }
 0x41b   :  { %10505 = vst [vmem:[#allocation165_spill] sm:$0xff] %v8883_v10  ;;  %3490 = vmatmul.bf16.gmra.mxu3 %v10507_v47  ;;  %v7238_v44 = vld [vmem:[#allocation2 + $0x51c] sm:$0xf]  ;;  %v6299_v47 = vld [vmem:[#allocation2 + $0x534] sm:$0xf0] }
 0x41c   :  { %10506 = vst [vmem:[#allocation212_spill] sm:$0xff] %v8887_v33  ;;  %3659 = vmatmul.bf16.gmra.mxu0 %v10508_v8  ;;  %v6754_v33 = vor.u32 %v7353_v21, %v6751_v7  ;;  %v6815_v21 = vld [vmem:[#allocation5 + $0x238] sm:$0xf0] }
 0x41d   :  { %v3282_v60 = vpop.f32.mrf.mxu2  ;;  %10511 = vst [vmem:[#allocation213_spill] sm:$0xff] %v8897_v23 }
 0x41e   :  { %v3283_v13 = vadd.f32 %v3282_v60, %v3114_v43  ;;  %v3451_v41 = vpop.f32.mrf.mxu3  ;;  %3883 = vmatpush.bf16.msrb.mxu2 %v6754_v33  ;;  %v8895_v60 = vor.u32 %v7238_v44, %v6299_v47  ;;  %v10513_v44 = vld [vmem:[#allocation45_spill] sm:$0xff]  ;;  %v10514_v47 = vld [vmem:[#allocation166_spill] sm:$0xff] }
 0x41f   :  { %v3115_v24 = vpop.f32.mrf.mxu1  ;;  %v3452_v11 = vadd.f32 %v3451_v41, %v8636_v32 }
 0x420   :  { %v3116_v49 = vadd.f32 %v3115_v24, %v8328_v31  ;;  %10510 = vst [vmem:[#allocation160_spill] sm:$0xff] %v8895_v60 }
 0x421   :  { %v8893_v36 = vadd.f32 %v3620_v4, %v3452_v11  ;;  %v3622_v34 = vpop.f32.mrf.mxu0  ;;  %v4611_v4 = vmax.f32 %v3283_v13, 0.0 }
 0x423   :  { %10509 = vst [vmem:[#allocation41_spill] sm:$0xff] %v8893_v36  ;;  %v7369_v36 = vld [vmem:[#allocation5 + $0x234] sm:$0xf] }
 0x424   :  { %v6818_v33 = vor.u32 %v7369_v36, %v6815_v21 }
 0x425   :  { %v3284_v8 = vpop.f32.mrf.mxu2 }
 0x426   :  { %v3285_v38 = vadd.f32 %v3284_v8, %v3116_v49  ;;  %v3453_v43 = vpop.f32.mrf.mxu3  ;;  %4052 = vmatpush.bf16.msrb.mxu3 %v6818_v33 }
 0x427   :  { %v3118_v41 = vpop.f32.mrf.mxu1  ;;  %v3454_v31 = vadd.f32 %v3453_v43, %v8636_v32  ;;  %v7245_v43 = vld [vmem:[#allocation2 + $0x554] sm:$0xf] }
 0x428   :  { %v4613_v24 = vmax.f32 %v3285_v38, 0.0  ;;  %v3119_v11 = vadd.f32 %v3118_v41, %v8336_v27  ;;  %v6327_v41 = vld [vmem:[#allocation2 + $0x56c] sm:$0xf0] }
 0x429   :  { %v8901_v7 = vadd.f32 %v3622_v34, %v3454_v31  ;;  %v3625_v10 = vpop.f32.mrf.mxu0  ;;  %v6333_v31 = vld [vmem:[#allocation2 + $0x558] sm:$0xf] }
 0x42a   :  { %3157 = vmatmul.bf16.gmra.mxu1 %v8895_v60  ;;  %3326 = vmatmul.bf16.gmra.mxu2 %v8897_v23  ;;  %v8905_v49 = vpack.c.bf16 %v4613_v24, %v4611_v4  ;;  %v7249_v4 = vld [vmem:[#allocation2 + $0x570] sm:$0xf0] }
 0x42b   :  { %3495 = vmatmul.bf16.gmra.mxu3 %v10513_v44  ;;  %v8915_v33 = vor.u32 %v7249_v4, %v6333_v31 }
 0x42c   :  { %10512 = vst [vmem:[#allocation214_spill] sm:$0xff] %v8905_v49  ;;  %3664 = vmatmul.bf16.gmra.mxu0 %v10514_v47  ;;  %v8913_v47 = vor.u32 %v7245_v43, %v6327_v41  ;;  %v10517_v43 = vld [vmem:[#allocation18_spill] sm:$0xff] }
 0x42d   :  { %v3287_v13 = vpop.f32.mrf.mxu2  ;;  %10515 = vst [vmem:[#allocation45_spill] sm:$0xff] %v8915_v33 }
 0x42e   :  { %v3288_v48 = vadd.f32 %v3287_v13, %v3119_v11  ;;  %v3456_v27 = vpop.f32.mrf.mxu3 }
 0x42f   :  { %v3120_v63 = vpop.f32.mrf.mxu1  ;;  %v3457_v34 = vadd.f32 %v3456_v27, %v8636_v32 }
 0x430   :  { %v3121_v8 = vadd.f32 %v3120_v63, %v8348_v54  ;;  %v4615_v27 = vmax.f32 %v3288_v48, 0.0  ;;  %v6895_v63 = vld [vmem:[#allocation5 + $0x2d8] sm:$0xf0] }
 0x431   :  { %v8911_v36 = vadd.f32 %v3625_v10, %v3457_v34  ;;  %v3627_v38 = vpop.f32.mrf.mxu0  ;;  %v7389_v10 = vld [vmem:[#allocation5 + $0x2d4] sm:$0xf] }
 0x432   :  { %v6898_v60 = vor.u32 %v7389_v10, %v6895_v63 }
 0x434   :  { %4219 = vmatpush.bf16.msrb.mxu0 %v6898_v60 }
 0x435   :  { %v3289_v24 = vpop.f32.mrf.mxu2 }
 0x436   :  { %v3290_v21 = vadd.f32 %v3289_v24, %v3121_v8  ;;  %v3458_v44 = vpop.f32.mrf.mxu3 }
 0x437   :  { %v3123_v11 = vpop.f32.mrf.mxu1  ;;  %v3459_v13 = vadd.f32 %v3458_v44, %v8636_v32  ;;  %v7252_v44 = vld [vmem:[#allocation2 + $0x58c] sm:$0xf] }
 0x438   :  { %v4617_v23 = vmax.f32 %v3290_v21, 0.0  ;;  %v3124_v54 = vadd.f32 %v3123_v11, %v8356_v61  ;;  %v6355_v11 = vld [vmem:[#allocation2 + $0x5a4] sm:$0xf0] }
 0x439   :  { %v8919_v34 = vadd.f32 %v3627_v38, %v3459_v13  ;;  %v3630_v49 = vpop.f32.mrf.mxu0  ;;  %v7256_v13 = vld [vmem:[#allocation2 + $0x5a8] sm:$0xf0]  ;;  %v8931_v63 = vor.u32 %v7252_v44, %v6355_v11 }
 0x43a   :  { %3162 = vmatmul.bf16.gmra.mxu1 %v8913_v47  ;;  %3331 = vmatmul.bf16.gmra.mxu2 %v8915_v33  ;;  %v8923_v8 = vpack.c.bf16 %v4617_v23, %v4615_v27  ;;  %v6361_v23 = vld [vmem:[#allocation2 + $0x590] sm:$0xf] }
 0x43b   :  { %3500 = vmatmul.bf16.gmra.mxu3 %v10517_v43  ;;  %10518 = vst [vmem:[#allocation18_spill] sm:$0xff] %v8931_v63 }
 0x43c   :  { %10516 = vst [vmem:[#allocation166_spill] sm:$0xff] %v8923_v8  ;;  %3669 = vmatmul.bf16.gmra.mxu0 %v8340_v37  ;;  %v8933_v37 = vor.u32 %v7256_v13, %v6361_v23  ;;  %v7351_v8 = vld [vmem:[#allocation5 + $0x1a4] sm:$0xf] }
 0x43d   :  { %v3292_v48 = vpop.f32.mrf.mxu2 }
 0x43e   :  { %v3293_v41 = vadd.f32 %v3292_v48, %v3124_v54  ;;  %v3461_v61 = vpop.f32.mrf.mxu3  ;;  %10519 = vst [vmem:[#allocation215_spill] sm:$0xff] %v8933_v37 }
 0x43f   :  { %v3125_v31 = vpop.f32.mrf.mxu1  ;;  %v3462_v38 = vadd.f32 %v3461_v61, %v8636_v32 }
 0x440   :  { %v3126_v4 = vadd.f32 %v3125_v31, %v8368_v62  ;;  %v4619_v48 = vmax.f32 %v3293_v41, 0.0 }
 0x441   :  { %v8929_v24 = vadd.f32 %v3630_v49, %v3462_v38  ;;  %v3632_v21 = vpop.f32.mrf.mxu0 }
 0x445   :  { %v3294_v27 = vpop.f32.mrf.mxu2 }
 0x446   :  { %v3295_v10 = vadd.f32 %v3294_v27, %v3126_v4  ;;  %v3463_v60 = vpop.f32.mrf.mxu3  ;;  %v10521_v4 = vld [vmem:[#allocation22_spill] sm:$0xff] }
 0x447   :  { %v3128_v54 = vpop.f32.mrf.mxu1  ;;  %v3464_v43 = vadd.f32 %v3463_v60, %v8636_v32  ;;  %v7259_v60 = vld [vmem:[#allocation2 + $0x5c4] sm:$0xf] }
 0x448   :  { %v4621_v61 = vmax.f32 %v3295_v10, 0.0  ;;  %v3129_v62 = vadd.f32 %v3128_v54, %v8376_v59  ;;  %v10522_v59 = vld [vmem:[#allocation180_spill] sm:$0xff] }
 0x449   :  { %v8937_v49 = vadd.f32 %v3632_v21, %v3464_v43  ;;  %v3635_v31 = vpop.f32.mrf.mxu0  ;;  %v6383_v54 = vld [vmem:[#allocation2 + $0x5dc] sm:$0xf0]  ;;  %v6389_v43 = vld [vmem:[#allocation2 + $0x5c8] sm:$0xf] }
 0x44a   :  { %3167 = vmatmul.bf16.gmra.mxu1 %v8931_v63  ;;  %3336 = vmatmul.bf16.gmra.mxu2 %v8933_v37  ;;  %v8941_v38 = vpack.c.bf16 %v4621_v61, %v4619_v48  ;;  %v7263_v48 = vld [vmem:[#allocation2 + $0x5e0] sm:$0xf0]  ;;  %v8949_v33 = vor.u32 %v7259_v60, %v6383_v54  ;;  %v10529_v54 = vld [vmem:[#allocation26_spill] sm:$0xff] }
 0x44b   :  { %3505 = vmatmul.bf16.gmra.mxu3 %v10521_v4  ;;  %v7383_v63 = vld [vmem:[#allocation5 + $0x2a4] sm:$0xf] }
 0x44c   :  { %10520 = vst [vmem:[#allocation216_spill] sm:$0xff] %v8941_v38  ;;  %3674 = vmatmul.bf16.gmra.mxu0 %v8360_v15  ;;  %v8951_v15 = vor.u32 %v7263_v48, %v6389_v43  ;;  %v10530_v48 = vld [vmem:[#allocation176_spill] sm:$0xff] }
 0x44d   :  { %v3297_v44 = vpop.f32.mrf.mxu2  ;;  %10524 = vst [vmem:[#allocation180_spill] sm:$0xff] %v8949_v33 }
 0x44e   :  { %v3298_v11 = vadd.f32 %v3297_v44, %v3129_v62  ;;  %v3466_v23 = vpop.f32.mrf.mxu3  ;;  %10525 = vst [vmem:[#allocation217_spill] sm:$0xff] %v8951_v15 }
 0x44f   :  { %v3130_v41 = vpop.f32.mrf.mxu1  ;;  %v3467_v13 = vadd.f32 %v3466_v23, %v8636_v32 }
 0x450   :  { %v3131_v21 = vadd.f32 %v3130_v41, %v10522_v59  ;;  %v4623_v23 = vmax.f32 %v3298_v11, 0.0  ;;  %v10526_v41 = vld [vmem:[#allocation181_spill] sm:$0xff] }
 0x451   :  { %v8947_v27 = vadd.f32 %v3635_v31, %v3467_v13  ;;  %v3637_v10 = vpop.f32.mrf.mxu0 }
 0x453   :  { %10523 = vst [vmem:[#allocation22_spill] sm:$0xff] %v8947_v27 }
 0x455   :  { %v3299_v61 = vpop.f32.mrf.mxu2 }
 0x456   :  { %v3300_v37 = vadd.f32 %v3299_v61, %v3131_v21  ;;  %v3468_v4 = vpop.f32.mrf.mxu3  ;;  %v7331_v21 = vld [vmem:[#allocation5 + $0x104] sm:$0xf]  ;;  %v6663_v61 = vld [vmem:[#allocation5 + $0x108] sm:$0xf0] }
 0x457   :  { %v3133_v62 = vpop.f32.mrf.mxu1  ;;  %v3469_v44 = vadd.f32 %v3468_v4, %v8636_v32  ;;  %v6666_v43 = vor.u32 %v7331_v21, %v6663_v61  ;;  %v6417_v21 = vld [vmem:[#allocation2 + $0x600] sm:$0xf]  ;;  %v7270_v61 = vld [vmem:[#allocation2 + $0x618] sm:$0xf0] }
 0x458   :  { %v4625_v38 = vmax.f32 %v3300_v37, 0.0  ;;  %v3134_v31 = vadd.f32 %v3133_v62, %v10526_v41 }
 0x459   :  { %v8955_v13 = vadd.f32 %v3637_v10, %v3469_v44  ;;  %v3640_v59 = vpop.f32.mrf.mxu0  ;;  %3717 = vmatpush.bf16.msrb.mxu1 %v6666_v43 }
 0x45a   :  { %3172 = vmatmul.bf16.gmra.mxu1 %v8949_v33  ;;  %3341 = vmatmul.bf16.gmra.mxu2 %v8951_v15  ;;  %v8959_v60 = vpack.c.bf16 %v4625_v38, %v4623_v23  ;;  %v6743_v38 = vld [vmem:[#allocation5 + $0x1a8] sm:$0xf0]  ;;  %v7266_v23 = vld [vmem:[#allocation2 + $0x5fc] sm:$0xf]  ;;  %v8969_v33 = vor.u32 %v7270_v61, %v6417_v21 }
 0x45b   :  { %10527 = vst [vmem:[#allocation181_spill] sm:$0xff] %v8955_v13  ;;  %3510 = vmatmul.bf16.gmra.mxu3 %v10529_v54  ;;  %v6411_v54 = vld [vmem:[#allocation2 + $0x614] sm:$0xf0] }
 0x45c   :  { %10528 = vst [vmem:[#allocation218_spill] sm:$0xff] %v8959_v60  ;;  %3679 = vmatmul.bf16.gmra.mxu0 %v10530_v48  ;;  %v6746_v60 = vor.u32 %v7351_v8, %v6743_v38  ;;  %v6807_v8 = vld [vmem:[#allocation5 + $0x228] sm:$0xf0] }
 0x45d   :  { %v3302_v11 = vpop.f32.mrf.mxu2  ;;  %10533 = vst [vmem:[#allocation219_spill] sm:$0xff] %v8969_v33 }
 0x45e   :  { %v3303_v37 = vadd.f32 %v3302_v11, %v3134_v31  ;;  %v3471_v4 = vpop.f32.mrf.mxu3  ;;  %3884 = vmatpush.bf16.msrb.mxu2 %v6746_v60  ;;  %v8967_v11 = vor.u32 %v7266_v23, %v6411_v54  ;;  %v10536_v23 = vld [vmem:[#allocation30_spill] sm:$0xff] }
 0x45f   :  { %v3135_v10 = vpop.f32.mrf.mxu1  ;;  %v3472_v62 = vadd.f32 %v3471_v4, %v8636_v32  ;;  %v10537_v54 = vld [vmem:[#allocation182_spill] sm:$0xff] }
 0x460   :  { %v3136_v44 = vadd.f32 %v3135_v10, %v8408_v46  ;;  %10532 = vst [vmem:[#allocation176_spill] sm:$0xff] %v8967_v11 }
 0x461   :  { %v8965_v41 = vadd.f32 %v3640_v59, %v3472_v62  ;;  %v3642_v15 = vpop.f32.mrf.mxu0  ;;  %v4627_v59 = vmax.f32 %v3303_v37, 0.0 }
 0x463   :  { %10531 = vst [vmem:[#allocation26_spill] sm:$0xff] %v8965_v41  ;;  %v7367_v41 = vld [vmem:[#allocation5 + $0x224] sm:$0xf] }
 0x464   :  { %v6810_v60 = vor.u32 %v7367_v41, %v6807_v8 }
 0x465   :  { %v3304_v48 = vpop.f32.mrf.mxu2 }
 0x466   :  { %v3305_v43 = vadd.f32 %v3304_v48, %v3136_v44  ;;  %v3473_v31 = vpop.f32.mrf.mxu3  ;;  %4053 = vmatpush.bf16.msrb.mxu3 %v6810_v60  ;;  %v10538_v48 = vld [vmem:[#allocation190_spill] sm:$0xff] }
 0x467   :  { %v3138_v4 = vpop.f32.mrf.mxu1  ;;  %v3474_v46 = vadd.f32 %v3473_v31, %v8636_v32 }
 0x468   :  { %v4629_v10 = vmax.f32 %v3305_v43, 0.0  ;;  %v3139_v62 = vadd.f32 %v3138_v4, %v8416_v29  ;;  %v7273_v4 = vld [vmem:[#allocation2 + $0x634] sm:$0xf] }
 0x469   :  { %v8973_v38 = vadd.f32 %v3642_v15, %v3474_v46  ;;  %v3645_v13 = vpop.f32.mrf.mxu0  ;;  %v6439_v46 = vld [vmem:[#allocation2 + $0x64c] sm:$0xf0] }
 0x46a   :  { %3177 = vmatmul.bf16.gmra.mxu1 %v8967_v11  ;;  %3346 = vmatmul.bf16.gmra.mxu2 %v8969_v33  ;;  %v8977_v44 = vpack.c.bf16 %v4629_v10, %v4627_v59  ;;  %v6445_v59 = vld [vmem:[#allocation2 + $0x638] sm:$0xf]  ;;  %v7277_v10 = vld [vmem:[#allocation2 + $0x650] sm:$0xf0] }
 0x46b   :  { %10534 = vst [vmem:[#allocation220_spill] sm:$0xff] %v8973_v38  ;;  %3515 = vmatmul.bf16.gmra.mxu3 %v10536_v23  ;;  %v8987_v60 = vor.u32 %v7277_v10, %v6445_v59 }
 0x46c   :  { %10535 = vst [vmem:[#allocation221_spill] sm:$0xff] %v8977_v44  ;;  %3684 = vmatmul.bf16.gmra.mxu0 %v10537_v54  ;;  %v8985_v54 = vor.u32 %v7273_v4, %v6439_v46  ;;  %v10545_v4 = vld [vmem:[#allocation34_spill] sm:$0xff] }
 0x46d   :  { %v3307_v37 = vpop.f32.mrf.mxu2  ;;  %10541 = vst [vmem:[#allocation190_spill] sm:$0xff] %v8987_v60 }
 0x46e   :  { %v3308_v21 = vadd.f32 %v3307_v37, %v3139_v62  ;;  %v3476_v29 = vpop.f32.mrf.mxu3  ;;  %10540 = vst [vmem:[#allocation182_spill] sm:$0xff] %v8985_v54 }
 0x46f   :  { %v3140_v61 = vpop.f32.mrf.mxu1  ;;  %v3477_v15 = vadd.f32 %v3476_v29, %v8636_v32 }
 0x470   :  { %v3141_v43 = vadd.f32 %v3140_v61, %v10538_v48  ;;  %v4631_v29 = vmax.f32 %v3308_v21, 0.0  ;;  %v10542_v61 = vld [vmem:[#allocation191_spill] sm:$0xff]  ;;  %v6887_v48 = vld [vmem:[#allocation5 + $0x2c8] sm:$0xf0] }
 0x471   :  { %v8983_v41 = vadd.f32 %v3645_v13, %v3477_v15  ;;  %v3647_v31 = vpop.f32.mrf.mxu0  ;;  %v7387_v15 = vld [vmem:[#allocation5 + $0x2c4] sm:$0xf] }
 0x472   :  { %v6890_v38 = vor.u32 %v7387_v15, %v6887_v48  ;;  %v6467_v15 = vld [vmem:[#allocation2 + $0x684] sm:$0xf0] }
 0x473   :  { %10539 = vst [vmem:[#allocation30_spill] sm:$0xff] %v8983_v41 }
 0x474   :  { %4220 = vmatpush.bf16.msrb.mxu0 %v6890_v38 }
 0x475   :  { %v3309_v8 = vpop.f32.mrf.mxu2 }
 0x476   :  { %v3310_v23 = vadd.f32 %v3309_v8, %v3141_v43  ;;  %v3478_v33 = vpop.f32.mrf.mxu3  ;;  %v10547_v8 = vld [vmem:[#allocation196_spill] sm:$0xff] }
 0x477   :  { %v3143_v62 = vpop.f32.mrf.mxu1  ;;  %v3479_v37 = vadd.f32 %v3478_v33, %v8636_v32  ;;  %v10546_v33 = vld [vmem:[#allocation186_spill] sm:$0xff] }
 0x478   :  { %v4633_v44 = vmax.f32 %v3310_v23, 0.0  ;;  %v3144_v13 = vadd.f32 %v3143_v62, %v10542_v61  ;;  %v7280_v61 = vld [vmem:[#allocation2 + $0x66c] sm:$0xf] }
 0x479   :  { %v8991_v11 = vadd.f32 %v3647_v31, %v3479_v37  ;;  %v3650_v41 = vpop.f32.mrf.mxu0 }
 0x47a   :  { %3182 = vmatmul.bf16.gmra.mxu1 %v8985_v54  ;;  %3351 = vmatmul.bf16.gmra.mxu2 %v8987_v60  ;;  %v8995_v43 = vpack.c.bf16 %v4633_v44, %v4631_v29  ;;  %v6473_v44 = vld [vmem:[#allocation2 + $0x670] sm:$0xf]  ;;  %v7284_v29 = vld [vmem:[#allocation2 + $0x688] sm:$0xf0]  ;;  %v9003_v60 = vor.u32 %v7280_v61, %v6467_v15  ;;  %v10555_v15 = vld [vmem:[#allocation192_spill] sm:$0xff] }
 0x47b   :  { %10543 = vst [vmem:[#allocation191_spill] sm:$0xff] %v8991_v11  ;;  %3520 = vmatmul.bf16.gmra.mxu3 %v10545_v4  ;;  %v10554_v61 = vld [vmem:[#allocation38_spill] sm:$0xff] }
 0x47c   :  { %10544 = vst [vmem:[#allocation222_spill] sm:$0xff] %v8995_v43  ;;  %3689 = vmatmul.bf16.gmra.mxu0 %v10546_v33  ;;  %v9005_v33 = vor.u32 %v7284_v29, %v6473_v44 }
 0x47d   :  { %v3312_v21 = vpop.f32.mrf.mxu2  ;;  %10549 = vst [vmem:[#allocation186_spill] sm:$0xff] %v9003_v60 }
 0x47e   :  { %v3313_v46 = vadd.f32 %v3312_v21, %v3144_v13  ;;  %v3481_v59 = vpop.f32.mrf.mxu3  ;;  %10550 = vst [vmem:[#allocation196_spill] sm:$0xff] %v9005_v33 }
 0x47f   :  { %v3145_v10 = vpop.f32.mrf.mxu1  ;;  %v3482_v31 = vadd.f32 %v3481_v59, %v8636_v32 }
 0x480   :  { %v3146_v23 = vadd.f32 %v3145_v10, %v10547_v8  ;;  %v4635_v59 = vmax.f32 %v3313_v46, 0.0  ;;  %v10551_v10 = vld [vmem:[#allocation83_spill] sm:$0xff] }
 0x481   :  { %v9001_v62 = vadd.f32 %v3650_v41, %v3482_v31  ;;  %v3652_v37 = vpop.f32.mrf.mxu0 }
 0x483   :  { %10548 = vst [vmem:[#allocation34_spill] sm:$0xff] %v9001_v62  ;;  %v6727_v62 = vld [vmem:[#allocation5 + $0x188] sm:$0xf0] }
 0x485   :  { %v3314_v48 = vpop.f32.mrf.mxu2 }
 0x486   :  { %v3315_v4 = vadd.f32 %v3314_v48, %v3146_v23  ;;  %v3483_v38 = vpop.f32.mrf.mxu3 }
 0x487   :  { %v3148_v13 = vpop.f32.mrf.mxu1  ;;  %v3484_v21 = vadd.f32 %v3483_v38, %v8636_v32  ;;  %v7349_v38 = vld [vmem:[#allocation5 + $0x194] sm:$0xf] }
 0x488   :  { %v4637_v43 = vmax.f32 %v3315_v4, 0.0  ;;  %v3149_v41 = vadd.f32 %v3148_v13, %v10551_v10  ;;  %v6735_v13 = vld [vmem:[#allocation5 + $0x198] sm:$0xf0] }
 0x489   :  { %v9009_v31 = vadd.f32 %v3652_v37, %v3484_v21  ;;  %v3655_v8 = vpop.f32.mrf.mxu0 }
 0x48a   :  { %3187 = vmatmul.bf16.gmra.mxu1 %v9003_v60  ;;  %3356 = vmatmul.bf16.gmra.mxu2 %v9005_v33  ;;  %v9013_v23 = vpack.c.bf16 %v4637_v43, %v4635_v59  ;;  %v7287_v33 = vld [vmem:[#allocation2 + $0x6a4] sm:$0xf]  ;;  %v6495_v43 = vld [vmem:[#allocation2 + $0x6bc] sm:$0xf0]  ;;  %v6738_v59 = vor.u32 %v7349_v38, %v6735_v13  ;;  %v7385_v60 = vld [vmem:[#allocation5 + $0x2b4] sm:$0xf] }
 0x48b   :  { %10552 = vst [vmem:[#allocation83_spill] sm:$0xff] %v9009_v31  ;;  %3525 = vmatmul.bf16.gmra.mxu3 %v10554_v61  ;;  %v6799_v61 = vld [vmem:[#allocation5 + $0x218] sm:$0xf0]  ;;  %v7291_v31 = vld [vmem:[#allocation2 + $0x6c0] sm:$0xf0] }
 0x48c   :  { %10553 = vst [vmem:[#allocation223_spill] sm:$0xff] %v9013_v23  ;;  %3694 = vmatmul.bf16.gmra.mxu0 %v10555_v15  ;;  %v7365_v23 = vld [vmem:[#allocation5 + $0x214] sm:$0xf]  ;;  %v6501_v15 = vld [vmem:[#allocation2 + $0x6a8] sm:$0xf]  ;;  %3885 = vmatpush.bf16.msrb.mxu2 %v6738_v59 }
 0x48d   :  { %v3317_v44 = vpop.f32.mrf.mxu2  ;;  %v9023_v11 = vor.u32 %v7291_v31, %v6501_v15  ;;  %v7363_v38 = vld [vmem:[#allocation5 + $0x204] sm:$0xf]  ;;  %v6791_v13 = vld [vmem:[#allocation5 + $0x208] sm:$0xf0]  ;;  %v6975_v31 = vld [vmem:[#allocation5 + $0x378] sm:$0xf0] }
 0x48e   :  { %v3318_v29 = vadd.f32 %v3317_v44, %v3149_v41  ;;  %v3486_v48 = vpop.f32.mrf.mxu3  ;;  %v6802_v41 = vor.u32 %v7365_v23, %v6799_v61  ;;  %v6879_v44 = vld [vmem:[#allocation5 + $0x2b8] sm:$0xf0]  ;;  %v6871_v59 = vld [vmem:[#allocation5 + $0x2a8] sm:$0xf0] }
 0x48f   :  { %v3150_v46 = vpop.f32.mrf.mxu1  ;;  %v3487_v4 = vadd.f32 %v3486_v48, %v8636_v32  ;;  %v6882_v54 = vor.u32 %v7385_v60, %v6879_v44  ;;  %v7347_v48 = vld [vmem:[#allocation5 + $0x184] sm:$0xf]  ;;  %10557 = vst [vmem:[#allocation192_spill] sm:$0xff] %v9023_v11  ;;  %v6794_v60 = vor.u32 %v7363_v38, %v6791_v13 }
 0x490   :  { %v3151_v37 = vadd.f32 %v3150_v46, %v8468_v22  ;;  %4054 = vmatpush.bf16.msrb.mxu3 %v6802_v41  ;;  %v6730_v46 = vor.u32 %v7347_v48, %v6727_v62  ;;  %v4639_v61 = vmax.f32 %v3318_v29, 0.0  ;;  %v10559_v48 = vld [vmem:[#allocation42_spill] sm:$0xff] }
 0x491   :  { %v9019_v21 = vadd.f32 %v3655_v8, %v3487_v4  ;;  %v3657_v10 = vpop.f32.mrf.mxu0  ;;  %4221 = vmatpush.bf16.msrb.mxu0 %v6882_v54  ;;  %v7409_v54 = vld [vmem:[#allocation5 + $0x374] sm:$0xf] }
 0x492   :  { %3886 = vmatpush.bf16.msrb.mxu2 %v6730_v46  ;;  %v6978_v29 = vor.u32 %v7409_v54, %v6975_v31  ;;  %v7379_v46 = vld [vmem:[#allocation5 + $0x284] sm:$0xf] }
 0x493   :  { %10556 = vst [vmem:[#allocation38_spill] sm:$0xff] %v9019_v21  ;;  %v9021_v21 = vor.u32 %v7287_v33, %v6495_v43  ;;  %v7381_v43 = vld [vmem:[#allocation5 + $0x294] sm:$0xf] }
 0x494   :  { %4055 = vmatpush.bf16.msrb.mxu3 %v6794_v60  ;;  %4386 = vmatpush.bf16.msra.mxu1 %v6978_v29 }
 0x495   :  { %v3319_v22 = vpop.f32.mrf.mxu2 }
 0x496   :  { %v3320_v8 = vadd.f32 %v3319_v22, %v3151_v37  ;;  %v3488_v4 = vpop.f32.mrf.mxu3  ;;  %v6874_v37 = vor.u32 %v7383_v63, %v6871_v59  ;;  %v6863_v22 = vld [vmem:[#allocation5 + $0x298] sm:$0xf0] }
 0x497   :  { %v3153_v27 = vpop.f32.mrf.mxu1  ;;  %v3489_v23 = vadd.f32 %v3488_v4, %v8636_v32 }
 0x498   :  { %v4641_v44 = vmax.f32 %v3320_v8, 0.0  ;;  %v3154_v62 = vadd.f32 %v3153_v27, %v8476_v42  ;;  %4222 = vmatpush.bf16.msrb.mxu0 %v6874_v37  ;;  %v6866_v42 = vor.u32 %v7381_v43, %v6863_v22  ;;  %v6855_v8 = vld [vmem:[#allocation5 + $0x288] sm:$0xf0]  ;;  %v7298_v37 = vld [vmem:[#allocation2 + $0x6f8] sm:$0xf0] }
 0x499   :  { %v9027_v41 = vadd.f32 %v3657_v10, %v3489_v23  ;;  %v3660_v33 = vpop.f32.mrf.mxu0  ;;  %v6858_v13 = vor.u32 %v7379_v46, %v6855_v8  ;;  %v10562_v8 = vld [vmem:[#allocation46_spill] sm:$0xff] }
 0x49a   :  { %3192 = vmatmul.bf16.gmra.mxu1 %v9021_v21  ;;  %3361 = vmatmul.bf16.gmra.mxu2 %v9023_v11  ;;  %v9031_v15 = vpack.c.bf16 %v4641_v44, %v4639_v61  ;;  %v7294_v61 = vld [vmem:[#allocation2 + $0x6dc] sm:$0xf]  ;;  %v6523_v44 = vld [vmem:[#allocation2 + $0x6f4] sm:$0xf0] }
 0x49b   :  { %3530 = vmatmul.bf16.gmra.mxu3 %v10559_v48  ;;  %v9039_v43 = vor.u32 %v7294_v61, %v6523_v44 }
 0x49c   :  { %10558 = vst [vmem:[#allocation224_spill] sm:$0xff] %v9031_v15  ;;  %3699 = vmatmul.bf16.gmra.mxu0 %v8460_v56  ;;  %v6529_v56 = vld [vmem:[#allocation2 + $0x6e0] sm:$0xf] }
 0x49d   :  { %v3322_v63 = vpop.f32.mrf.mxu2  ;;  %4223 = vmatpush.bf16.msrb.mxu0 %v6866_v42  ;;  %v9041_v48 = vor.u32 %v7298_v37, %v6529_v56  ;;  %v10587_v15 = vld [vmem:[#allocation67_spill] sm:$0xff] }
 0x49e   :  { %v3323_v27 = vadd.f32 %v3322_v63, %v3154_v62  ;;  %v3491_v10 = vpop.f32.mrf.mxu3 }
 0x49f   :  { %v3155_v4 = vpop.f32.mrf.mxu1  ;;  %v3492_v38 = vadd.f32 %v3491_v10, %v8636_v32  ;;  %10560 = vst [vmem:[#allocation42_spill] sm:$0xff] %v9041_v48 }
 0x4a0   :  { %v3156_v23 = vadd.f32 %v3155_v4, %v8488_v57  ;;  %v4643_v42 = vmax.f32 %v3323_v27, 0.0 }
 0x4a1   :  { %v9037_v60 = vadd.f32 %v3660_v33, %v3492_v38  ;;  %v3662_v59 = vpop.f32.mrf.mxu0  ;;  %4224 = vmatpush.bf16.msrb.mxu0 %v6858_v13 }
 0x4a5   :  { %v3324_v54 = vpop.f32.mrf.mxu2 }
 0x4a6   :  { %v3325_v62 = vadd.f32 %v3324_v54, %v3156_v23  ;;  %v3493_v31 = vpop.f32.mrf.mxu3 }
 0x4a7   :  { %v3158_v29 = vpop.f32.mrf.mxu1  ;;  %v3494_v22 = vadd.f32 %v3493_v31, %v8636_v32 }
 0x4a8   :  { %v4645_v57 = vmax.f32 %v3325_v62, 0.0  ;;  %v3159_v33 = vadd.f32 %v3158_v29, %v8496_v1 }
 0x4a9   :  { %v9045_v63 = vadd.f32 %v3662_v59, %v3494_v22  ;;  %v3665_v10 = vpop.f32.mrf.mxu0 }
 0x4aa   :  { %3197 = vmatmul.bf16.gmra.mxu1 %v9039_v43  ;;  %3366 = vmatmul.bf16.gmra.mxu2 %v9041_v48  ;;  %v9049_v46 = vpack.c.bf16 %v4645_v57, %v4643_v42  ;;  %v10571_v48 = vld [vmem:[#allocation55_spill] sm:$0xff] }
 0x4ab   :  { %3535 = vmatmul.bf16.gmra.mxu3 %v10562_v8  ;;  %v10565_v8 = vld [vmem:[#allocation50_spill] sm:$0xff] }
 0x4ac   :  { %10561 = vst [vmem:[#allocation225_spill] sm:$0xff] %v9049_v46  ;;  %3704 = vmatmul.bf16.gmra.mxu0 %v8480_v18  ;;  %v10563_v18 = vld [vmem:[#allocation19_spill] sm:$0xff] }
 0x4ad   :  { %v3327_v4 = vpop.f32.mrf.mxu2 }
 0x4ae   :  { %v3328_v38 = vadd.f32 %v3327_v4, %v3159_v33  ;;  %v3496_v13 = vpop.f32.mrf.mxu3  ;;  %v10564_v33 = vld [vmem:[#allocation49_spill] sm:$0xff]  ;;  %v10568_v4 = vld [vmem:[#allocation99_spill] sm:$0xff] }
 0x4af   :  { %v3160_v27 = vpop.f32.mrf.mxu1  ;;  %v3497_v23 = vadd.f32 %v3496_v13, %v8636_v32 }
 0x4b0   :  { %v3161_v1 = vadd.f32 %v3160_v27, %v8504_v2  ;;  %v4647_v31 = vmax.f32 %v3328_v38, 0.0 }
 0x4b1   :  { %v9055_v59 = vadd.f32 %v3665_v10, %v3497_v23  ;;  %v3667_v61 = vpop.f32.mrf.mxu0  ;;  %v10567_v10 = vld [vmem:[#allocation51_spill] sm:$0xff] }
 0x4b5   :  { %v3329_v44 = vpop.f32.mrf.mxu2 }
 0x4b6   :  { %v3330_v56 = vadd.f32 %v3329_v44, %v3161_v1  ;;  %v3498_v37 = vpop.f32.mrf.mxu3  ;;  %v10569_v44 = vld [vmem:[#allocation58_spill] sm:$0xff] }
 0x4b7   :  { %v3163_v54 = vpop.f32.mrf.mxu1  ;;  %v3499_v62 = vadd.f32 %v3498_v37, %v8636_v32 }
 0x4b8   :  { %v4649_v29 = vmax.f32 %v3330_v56, 0.0  ;;  %v3164_v22 = vadd.f32 %v3163_v54, %v10563_v18 }
 0x4b9   :  { %v9059_v42 = vadd.f32 %v3667_v61, %v3499_v62  ;;  %v3670_v57 = vpop.f32.mrf.mxu0 }
 0x4ba   :  { %3718 = vmatmul.bf16.vlgmr.msrb.gmra.mxu1 %v10564_v33  ;;  %3887 = vmatmul.bf16.vlgmr.msrb.gmra.mxu2 %v10565_v8  ;;  %v9063_v2 = vpack.c.bf16 %v4649_v29, %v4647_v31 }
 0x4bb   :  { %4056 = vmatmul.bf16.vlgmr.msrb.gmra.mxu3 %v10567_v10  ;;  %v10570_v10 = vld [vmem:[#allocation23_spill] sm:$0xff] }
 0x4bc   :  { %10566 = vst [vmem:[#allocation46_spill] sm:$0xff] %v9063_v2  ;;  %4225 = vmatmul.bf16.vlgmr.msrb.gmra.mxu0 %v10568_v4  ;;  %v10578_v2 = vld [vmem:[#allocation61_spill] sm:$0xff] }
 0x4bd   :  { %v3332_v13 = vpop.f32.mrf.mxu2 }
 0x4be   :  { %v3333_v27 = vadd.f32 %v3332_v13, %v3164_v22  ;;  %v3501_v23 = vpop.f32.mrf.mxu3 }
 0x4bf   :  { %v3165_v38 = vpop.f32.mrf.mxu1  ;;  %v3502_v1 = vadd.f32 %v3501_v23, %v8636_v32  ;;  %v10572_v23 = vld [vmem:[#allocation56_spill] sm:$0xff] }
 0x4c0   :  { %v3166_v61 = vadd.f32 %v3165_v38, %v10569_v44  ;;  %v4651_v33 = vmax.f32 %v3333_v27, 0.0  ;;  %v10574_v38 = vld [vmem:[#allocation57_spill] sm:$0xff] }
 0x4c1   :  { %v9069_v56 = vadd.f32 %v3670_v57, %v3502_v1  ;;  %v3672_v37 = vpop.f32.mrf.mxu0  ;;  %v10575_v1 = vld [vmem:[#allocation48_spill] sm:$0xff] }
 0x4c5   :  { %v3334_v54 = vpop.f32.mrf.mxu2 }
 0x4c6   :  { %v3335_v62 = vadd.f32 %v3334_v54, %v3166_v61  ;;  %v3503_v18 = vpop.f32.mrf.mxu3 }
 0x4c7   :  { %v3168_v31 = vpop.f32.mrf.mxu1  ;;  %v3504_v29 = vadd.f32 %v3503_v18, %v8636_v32  ;;  %v10576_v18 = vld [vmem:[#allocation64_spill] sm:$0xff] }
 0x4c8   :  { %v4653_v8 = vmax.f32 %v3335_v62, 0.0  ;;  %v3169_v4 = vadd.f32 %v3168_v31, %v10570_v10 }
 0x4c9   :  { %v9073_v22 = vadd.f32 %v3672_v37, %v3504_v29  ;;  %v3675_v13 = vpop.f32.mrf.mxu0 }
 0x4ca   :  { %3723 = vmatmul.bf16.gmra.mxu1 %v10571_v48  ;;  %3892 = vmatmul.bf16.gmra.mxu2 %v10572_v23  ;;  %v9077_v57 = vpack.c.bf16 %v4653_v8, %v4651_v33 }
 0x4cb   :  { %4061 = vmatmul.bf16.gmra.mxu3 %v10574_v38 }
 0x4cc   :  { %10573 = vst [vmem:[#allocation19_spill] sm:$0xff] %v9077_v57  ;;  %4230 = vmatmul.bf16.gmra.mxu0 %v10575_v1  ;;  %v10577_v1 = vld [vmem:[#allocation27_spill] sm:$0xff] }
 0x4cd   :  { %v3337_v44 = vpop.f32.mrf.mxu2 }
 0x4ce   :  { %v3338_v61 = vadd.f32 %v3337_v44, %v3169_v4  ;;  %v3506_v54 = vpop.f32.mrf.mxu3 }
 0x4cf   :  { %v3170_v27 = vpop.f32.mrf.mxu1  ;;  %v3507_v62 = vadd.f32 %v3506_v54, %v8636_v32  ;;  %v10579_v54 = vld [vmem:[#allocation62_spill] sm:$0xff] }
 0x4d0   :  { %v3171_v37 = vadd.f32 %v3170_v27, %v10576_v18  ;;  %v4655_v38 = vmax.f32 %v3338_v61, 0.0  ;;  %v6967_v27 = vld [vmem:[#allocation5 + $0x368] sm:$0xf0]  ;;  %v10581_v18 = vld [vmem:[#allocation63_spill] sm:$0xff] }
 0x4d1   :  { %v9083_v31 = vadd.f32 %v3675_v13, %v3507_v62  ;;  %v3677_v29 = vpop.f32.mrf.mxu0  ;;  %v7407_v13 = vld [vmem:[#allocation5 + $0x364] sm:$0xf] }
 0x4d5   :  { %v3339_v48 = vpop.f32.mrf.mxu2 }
 0x4d6   :  { %v3340_v10 = vadd.f32 %v3339_v48, %v3171_v37  ;;  %v3508_v23 = vpop.f32.mrf.mxu3  ;;  %v6970_v37 = vor.u32 %v7407_v13, %v6967_v27  ;;  %v10582_v48 = vld [vmem:[#allocation54_spill] sm:$0xff] }
 0x4d7   :  { %v3173_v33 = vpop.f32.mrf.mxu1  ;;  %v3509_v8 = vadd.f32 %v3508_v23, %v8636_v32 }
 0x4d8   :  { %v4657_v11 = vmax.f32 %v3340_v10, 0.0  ;;  %v3174_v57 = vadd.f32 %v3173_v33, %v10577_v1  ;;  %4387 = vmatpush.bf16.msra.mxu1 %v6970_v37 }
 0x4d9   :  { %v9087_v4 = vadd.f32 %v3677_v29, %v3509_v8  ;;  %v3680_v44 = vpop.f32.mrf.mxu0  ;;  %v10583_v8 = vld [vmem:[#allocation70_spill] sm:$0xff] }
 0x4da   :  { %3728 = vmatmul.bf16.gmra.mxu1 %v10578_v2  ;;  %3897 = vmatmul.bf16.gmra.mxu2 %v10579_v54  ;;  %v9091_v62 = vpack.c.bf16 %v4657_v11, %v4655_v38 }
 0x4db   :  { %4066 = vmatmul.bf16.gmra.mxu3 %v10581_v18 }
 0x4dc   :  { %10580 = vst [vmem:[#allocation49_spill] sm:$0xff] %v9091_v62  ;;  %4235 = vmatmul.bf16.gmra.mxu0 %v10582_v48  ;;  %v10585_v48 = vld [vmem:[#allocation31_spill] sm:$0xff] }
 0x4dd   :  { %v3342_v61 = vpop.f32.mrf.mxu2 }
 0x4de   :  { %v3343_v10 = vadd.f32 %v3342_v61, %v3174_v57  ;;  %v3511_v23 = vpop.f32.mrf.mxu3 }
 0x4df   :  { %v3175_v29 = vpop.f32.mrf.mxu1  ;;  %v3512_v33 = vadd.f32 %v3511_v23, %v8636_v32  ;;  %v10588_v23 = vld [vmem:[#allocation68_spill] sm:$0xff] }
 0x4e0   :  { %v3176_v2 = vadd.f32 %v3175_v29, %v10583_v8  ;;  %v4659_v27 = vmax.f32 %v3343_v10, 0.0  ;;  %v10590_v29 = vld [vmem:[#allocation69_spill] sm:$0xff] }
 0x4e1   :  { %v9097_v1 = vadd.f32 %v3680_v44, %v3512_v33  ;;  %v3682_v54 = vpop.f32.mrf.mxu0 }
 0x4e3   :  { %10584 = vst [vmem:[#allocation50_spill] sm:$0xff] %v9097_v1  ;;  %v10596_v1 = vld [vmem:[#allocation73_spill] sm:$0xff] }
 0x4e5   :  { %v3344_v46 = vpop.f32.mrf.mxu2 }
 0x4e6   :  { %v3345_v11 = vadd.f32 %v3344_v46, %v3176_v2  ;;  %v3513_v38 = vpop.f32.mrf.mxu3  ;;  %v10591_v46 = vld [vmem:[#allocation60_spill] sm:$0xff] }
 0x4e7   :  { %v3178_v62 = vpop.f32.mrf.mxu1  ;;  %v3514_v13 = vadd.f32 %v3513_v38, %v8636_v32 }
 0x4e8   :  { %v4661_v18 = vmax.f32 %v3345_v11, 0.0  ;;  %v3179_v37 = vadd.f32 %v3178_v62, %v10585_v48  ;;  %v10592_v62 = vld [vmem:[#allocation76_spill] sm:$0xff] }
 0x4e9   :  { %v9101_v57 = vadd.f32 %v3682_v54, %v3514_v13  ;;  %v3685_v61 = vpop.f32.mrf.mxu0 }
 0x4ea   :  { %3733 = vmatmul.bf16.gmra.mxu1 %v10587_v15  ;;  %3902 = vmatmul.bf16.gmra.mxu2 %v10588_v23  ;;  %v9105_v44 = vpack.c.bf16 %v4661_v18, %v4659_v27 }
 0x4eb   :  { %10586 = vst [vmem:[#allocation51_spill] sm:$0xff] %v9101_v57  ;;  %4071 = vmatmul.bf16.gmra.mxu3 %v10590_v29 }
 0x4ec   :  { %10589 = vst [vmem:[#allocation99_spill] sm:$0xff] %v9105_v44  ;;  %4240 = vmatmul.bf16.gmra.mxu0 %v10591_v46  ;;  %v10594_v46 = vld [vmem:[#allocation35_spill] sm:$0xff] }
 0x4ed   :  { %v3347_v33 = vpop.f32.mrf.mxu2 }
 0x4ee   :  { %v3348_v8 = vadd.f32 %v3347_v33, %v3179_v37  ;;  %v3516_v2 = vpop.f32.mrf.mxu3 }
 0x4ef   :  { %v3180_v10 = vpop.f32.mrf.mxu1  ;;  %v3517_v11 = vadd.f32 %v3516_v2, %v8636_v32  ;;  %v10597_v2 = vld [vmem:[#allocation74_spill] sm:$0xff] }
 0x4f0   :  { %v3181_v54 = vadd.f32 %v3180_v10, %v10592_v62  ;;  %v4663_v29 = vmax.f32 %v3348_v8, 0.0  ;;  %v10599_v10 = vld [vmem:[#allocation75_spill] sm:$0xff] }
 0x4f1   :  { %v9111_v38 = vadd.f32 %v3685_v61, %v3517_v11  ;;  %v3687_v13 = vpop.f32.mrf.mxu0  ;;  %v10600_v11 = vld [vmem:[#allocation66_spill] sm:$0xff] }
 0x4f3   :  { %10593 = vst [vmem:[#allocation58_spill] sm:$0xff] %v9111_v38  ;;  %v10604_v38 = vld [vmem:[#allocation79_spill] sm:$0xff] }
 0x4f5   :  { %v3349_v15 = vpop.f32.mrf.mxu2 }
 0x4f6   :  { %v3350_v48 = vadd.f32 %v3349_v15, %v3181_v54  ;;  %v3518_v23 = vpop.f32.mrf.mxu3 }
 0x4f7   :  { %v3183_v27 = vpop.f32.mrf.mxu1  ;;  %v3519_v18 = vadd.f32 %v3518_v23, %v8636_v32  ;;  %v10601_v23 = vld [vmem:[#allocation82_spill] sm:$0xff] }
 0x4f8   :  { %v4665_v44 = vmax.f32 %v3350_v48, 0.0  ;;  %v3184_v57 = vadd.f32 %v3183_v27, %v10594_v46 }
 0x4f9   :  { %v9115_v37 = vadd.f32 %v3687_v13, %v3519_v18  ;;  %v3690_v33 = vpop.f32.mrf.mxu0 }
 0x4fa   :  { %3738 = vmatmul.bf16.gmra.mxu1 %v10596_v1  ;;  %3907 = vmatmul.bf16.gmra.mxu2 %v10597_v2  ;;  %v9119_v61 = vpack.c.bf16 %v4665_v44, %v4663_v29 }
 0x4fb   :  { %10595 = vst [vmem:[#allocation23_spill] sm:$0xff] %v9115_v37  ;;  %4076 = vmatmul.bf16.gmra.mxu3 %v10599_v10 }
 0x4fc   :  { %10598 = vst [vmem:[#allocation55_spill] sm:$0xff] %v9119_v61  ;;  %4245 = vmatmul.bf16.gmra.mxu0 %v10600_v11  ;;  %v10602_v11 = vld [vmem:[#allocation39_spill] sm:$0xff] }
 0x4fd   :  { %v3352_v62 = vpop.f32.mrf.mxu2 }
 0x4fe   :  { %v3353_v54 = vadd.f32 %v3352_v62, %v3184_v57  ;;  %v3521_v15 = vpop.f32.mrf.mxu3 }
 0x4ff   :  { %v3185_v8 = vpop.f32.mrf.mxu1  ;;  %v3522_v48 = vadd.f32 %v3521_v15, %v8636_v32  ;;  %v10605_v15 = vld [vmem:[#allocation80_spill] sm:$0xff] }
 0x500   :  { %v3186_v13 = vadd.f32 %v3185_v8, %v10601_v23  ;;  %v4667_v10 = vmax.f32 %v3353_v54, 0.0  ;;  %v10607_v8 = vld [vmem:[#allocation81_spill] sm:$0xff] }
 0x501   :  { %v9125_v27 = vadd.f32 %v3690_v33, %v3522_v48  ;;  %v3692_v18 = vpop.f32.mrf.mxu0  ;;  %v10608_v48 = vld [vmem:[#allocation72_spill] sm:$0xff] }
 0x505   :  { %v3354_v1 = vpop.f32.mrf.mxu2 }
 0x506   :  { %v3355_v46 = vadd.f32 %v3354_v1, %v3186_v13  ;;  %v3523_v2 = vpop.f32.mrf.mxu3 }
 0x507   :  { %v3188_v44 = vpop.f32.mrf.mxu1  ;;  %v3524_v29 = vadd.f32 %v3523_v2, %v8636_v32  ;;  %v10609_v2 = vld [vmem:[#allocation90_spill] sm:$0xff] }
 0x508   :  { %v4669_v61 = vmax.f32 %v3355_v46, 0.0  ;;  %v3189_v37 = vadd.f32 %v3188_v44, %v10602_v11 }
 0x509   :  { %v9129_v57 = vadd.f32 %v3692_v18, %v3524_v29  ;;  %v3695_v62 = vpop.f32.mrf.mxu0 }
 0x50a   :  { %3743 = vmatmul.bf16.gmra.mxu1 %v10604_v38  ;;  %3912 = vmatmul.bf16.gmra.mxu2 %v10605_v15  ;;  %v9133_v33 = vpack.c.bf16 %v4669_v61, %v4667_v10 }
 0x50b   :  { %10603 = vst [vmem:[#allocation56_spill] sm:$0xff] %v9129_v57  ;;  %4081 = vmatmul.bf16.gmra.mxu3 %v10607_v8  ;;  %v10612_v57 = vld [vmem:[#allocation86_spill] sm:$0xff] }
 0x50c   :  { %10606 = vst [vmem:[#allocation57_spill] sm:$0xff] %v9133_v33  ;;  %4250 = vmatmul.bf16.gmra.mxu0 %v10608_v48 }
 0x50d   :  { %v3357_v23 = vpop.f32.mrf.mxu2 }
 0x50e   :  { %v3358_v13 = vadd.f32 %v3357_v23, %v3189_v37  ;;  %v3526_v1 = vpop.f32.mrf.mxu3 }
 0x50f   :  { %v3190_v54 = vpop.f32.mrf.mxu1  ;;  %v3527_v46 = vadd.f32 %v3526_v1, %v8636_v32  ;;  %v10613_v1 = vld [vmem:[#allocation87_spill] sm:$0xff] }
 0x510   :  { %v3191_v18 = vadd.f32 %v3190_v54, %v10609_v2  ;;  %v4671_v8 = vmax.f32 %v3358_v13, 0.0  ;;  %v6959_v54 = vld [vmem:[#allocation5 + $0x358] sm:$0xf0]  ;;  %v10615_v2 = vld [vmem:[#allocation88_spill] sm:$0xff] }
 0x511   :  { %v9139_v44 = vadd.f32 %v3695_v62, %v3527_v46  ;;  %v3697_v29 = vpop.f32.mrf.mxu0  ;;  %v7405_v62 = vld [vmem:[#allocation5 + $0x354] sm:$0xf] }
 0x513   :  { %10610 = vst [vmem:[#allocation48_spill] sm:$0xff] %v9139_v44  ;;  %v10629_v44 = vld [vmem:[#allocation102_spill] sm:$0xff] }
 0x515   :  { %v3359_v38 = vpop.f32.mrf.mxu2 }
 0x516   :  { %v3360_v11 = vadd.f32 %v3359_v38, %v3191_v18  ;;  %v3528_v15 = vpop.f32.mrf.mxu3  ;;  %v6962_v18 = vor.u32 %v7405_v62, %v6959_v54  ;;  %v10616_v38 = vld [vmem:[#allocation78_spill] sm:$0xff]  ;;  %v7426_v62 = vld [vmem:[#allocation8 + $0x78] sm:$0xff] }
 0x517   :  { %v3193_v61 = vpop.f32.mrf.mxu1  ;;  %v3529_v10 = vadd.f32 %v3528_v15, %v8636_v32  ;;  %5048 = vmatpush.bf16.msra.mxu3 %v7426_v62  ;;  %v10626_v62 = vld [vmem:[#allocation100_spill] sm:$0xff] }
 0x518   :  { %v4673_v33 = vmax.f32 %v3360_v11, 0.0  ;;  %v3194_v48 = vadd.f32 %v3193_v61, %v8608_v17  ;;  %4388 = vmatpush.bf16.msra.mxu1 %v6962_v18  ;;  %v10617_v61 = vld [vmem:[#allocation92_spill] sm:$0xff] }
 0x519   :  { %v9143_v37 = vadd.f32 %v3697_v29, %v3529_v10  ;;  %v3700_v23 = vpop.f32.mrf.mxu0 }
 0x51a   :  { %3748 = vmatmul.bf16.gmra.mxu1 %v10612_v57  ;;  %3917 = vmatmul.bf16.gmra.mxu2 %v10613_v1  ;;  %v9147_v46 = vpack.c.bf16 %v4673_v33, %v4671_v8 }
 0x51b   :  { %10611 = vst [vmem:[#allocation64_spill] sm:$0xff] %v9143_v37  ;;  %4086 = vmatmul.bf16.gmra.mxu3 %v10615_v2  ;;  %v7418_v37 = vld [vmem:[#allocation8 + $0x38] sm:$0xff] }
 0x51c   :  { %10614 = vst [vmem:[#allocation27_spill] sm:$0xff] %v9147_v46  ;;  %4255 = vmatmul.bf16.gmra.mxu0 %v10616_v38  ;;  %4879 = vmatpush.bf16.msra.mxu2 %v7418_v37 }
 0x51d   :  { %v3362_v13 = vpop.f32.mrf.mxu2 }
 0x51e   :  { %v3363_v11 = vadd.f32 %v3362_v13, %v3194_v48  ;;  %v3531_v17 = vpop.f32.mrf.mxu3  ;;  %v10619_v13 = vld [vmem:[#allocation98_spill] sm:$0xff] }
 0x51f   :  { %v3195_v29 = vpop.f32.mrf.mxu1  ;;  %v3532_v15 = vadd.f32 %v3531_v17, %v8636_v32 }
 0x520   :  { %v3196_v57 = vadd.f32 %v3195_v29, %v10617_v61  ;;  %v4675_v18 = vmax.f32 %v3363_v11, 0.0  ;;  %v10624_v61 = vld [vmem:[#allocation96_spill] sm:$0xff] }
 0x521   :  { %v9153_v10 = vadd.f32 %v3700_v23, %v3532_v15  ;;  %v3702_v1 = vpop.f32.mrf.mxu0  ;;  %v10621_v23 = vld [vmem:[#allocation94_spill] sm:$0xff]  ;;  %v10622_v15 = vld [vmem:[#allocation95_spill] sm:$0xff] }
 0x523   :  { %10618 = vst [vmem:[#allocation61_spill] sm:$0xff] %v9153_v10 }
 0x525   :  { %v3364_v33 = vpop.f32.mrf.mxu2 }
 0x526   :  { %v3365_v8 = vadd.f32 %v3364_v33, %v3196_v57  ;;  %v3533_v2 = vpop.f32.mrf.mxu3  ;;  %v10625_v57 = vld [vmem:[#allocation43_spill] sm:$0xff] }
 0x527   :  { %v3198_v54 = vpop.f32.mrf.mxu1  ;;  %v3534_v38 = vadd.f32 %v3533_v2, %v8636_v32 }
 0x528   :  { %v4677_v48 = vmax.f32 %v3365_v8, 0.0  ;;  %v3199_v46 = vadd.f32 %v3198_v54, %v10619_v13 }
 0x529   :  { %v9157_v17 = vadd.f32 %v3702_v1, %v3534_v38  ;;  %v3705_v29 = vpop.f32.mrf.mxu0 }
 0x52a   :  { %3753 = vmatmul.bf16.gmra.mxu1 %v10621_v23  ;;  %3922 = vmatmul.bf16.gmra.mxu2 %v10622_v15  ;;  %v9161_v37 = vpack.c.bf16 %v4677_v48, %v4675_v18 }
 0x52b   :  { %10620 = vst [vmem:[#allocation62_spill] sm:$0xff] %v9157_v17  ;;  %4091 = vmatmul.bf16.gmra.mxu3 %v10624_v61 }
 0x52c   :  { %10623 = vst [vmem:[#allocation63_spill] sm:$0xff] %v9161_v37  ;;  %4260 = vmatmul.bf16.gmra.mxu0 %v10625_v57  ;;  %v10627_v57 = vld [vmem:[#allocation105_spill] sm:$0xff] }
 0x52d   :  { %v3367_v33 = vpop.f32.mrf.mxu2 }
 0x52e   :  { %v3368_v2 = vadd.f32 %v3367_v33, %v3199_v46  ;;  %v3536_v11 = vpop.f32.mrf.mxu3 }
 0x52f   :  { %v3200_v8 = vpop.f32.mrf.mxu1  ;;  %v3537_v54 = vadd.f32 %v3536_v11, %v8636_v32  ;;  %v10630_v11 = vld [vmem:[#allocation103_spill] sm:$0xff] }
 0x530   :  { %v3201_v1 = vadd.f32 %v3200_v8, %v10626_v62  ;;  %v4679_v61 = vmax.f32 %v3368_v2, 0.0  ;;  %v10632_v8 = vld [vmem:[#allocation104_spill] sm:$0xff] }
 0x531   :  { %v9167_v38 = vadd.f32 %v3705_v29, %v3537_v54  ;;  %v3707_v13 = vpop.f32.mrf.mxu0  ;;  %v10633_v54 = vld [vmem:[#allocation47_spill] sm:$0xff] }
 0x535   :  { %v3369_v23 = vpop.f32.mrf.mxu2 }
 0x536   :  { %v3370_v17 = vadd.f32 %v3369_v23, %v3201_v1  ;;  %v3538_v15 = vpop.f32.mrf.mxu3 }
 0x537   :  { %v3539_v18 = vadd.f32 %v3538_v15, %v8636_v32  ;;  %v3719_v48 = vpop.f32.mrf.mxu1 }
 0x538   :  { %v4681_v37 = vmax.f32 %v3370_v17, 0.0  ;;  %v3720_v10 = vadd.f32 %v3719_v48, %v10627_v57  ;;  %v10634_v17 = vld [vmem:[#allocation110_spill] sm:$0xff] }
 0x539   :  { %v9171_v46 = vadd.f32 %v3707_v13, %v3539_v18  ;;  %v4226_v33 = vpop.f32.mrf.mxu0 }
 0x53a   :  { %3758 = vmatmul.bf16.gmra.mxu1 %v10629_v44  ;;  %3927 = vmatmul.bf16.gmra.mxu2 %v10630_v11  ;;  %v9175_v29 = vpack.c.bf16 %v4681_v37, %v4679_v61  ;;  %v10636_v37 = vld [vmem:[#allocation20_spill] sm:$0xff] }
 0x53b   :  { %10628 = vst [vmem:[#allocation54_spill] sm:$0xff] %v9171_v46  ;;  %4096 = vmatmul.bf16.gmra.mxu3 %v10632_v8 }
 0x53c   :  { %10631 = vst [vmem:[#allocation70_spill] sm:$0xff] %v9175_v29  ;;  %4265 = vmatmul.bf16.gmra.mxu0 %v10633_v54  ;;  %v10638_v54 = vld [vmem:[#allocation107_spill] sm:$0xff] }
 0x53d   :  { %v3888_v62 = vpop.f32.mrf.mxu2 }
 0x53e   :  { %v3889_v32 = vadd.f32 %v3888_v62, %v3720_v10  ;;  %v4057_v1 = vpop.f32.mrf.mxu3  ;;  %v10639_v10 = vld [vmem:[#allocation108_spill] sm:$0xff]  ;;  %v10640_v62 = vld [vmem:[#allocation109_spill] sm:$0xff] }
 0x53f   :  { %v3721_v2 = vpop.f32.mrf.mxu1 }
 0x540   :  { %v3722_v23 = vadd.f32 %v3721_v2, %v10634_v17  ;;  %v4058_v15 = vadd.f32 %v4057_v1, %v3889_v32  ;;  %v10641_v32 = vld [vmem:[#allocation16_spill] sm:$0xff] }
 0x541   :  { %v4228_v13 = vpop.f32.mrf.mxu0 }
 0x542   :  { %v9180_v18 = vadd.f32 %v4226_v33, %v4058_v15 }
 0x544   :  { %10635 = vst [vmem:[#allocation31_spill] sm:$0xff] %v9180_v18 }
 0x545   :  { %v3890_v48 = vpop.f32.mrf.mxu2 }
 0x546   :  { %v3891_v44 = vadd.f32 %v3890_v48, %v3722_v23  ;;  %v4059_v57 = vpop.f32.mrf.mxu3  ;;  %v10642_v23 = vld [vmem:[#allocation117_spill] sm:$0xff] }
 0x547   :  { %v3724_v11 = vpop.f32.mrf.mxu1 }
 0x548   :  { %v3725_v61 = vadd.f32 %v3724_v11, %v10636_v37  ;;  %v4060_v29 = vadd.f32 %v4059_v57, %v3891_v44 }
 0x549   :  { %v4231_v8 = vpop.f32.mrf.mxu0 }
 0x54a   :  { %v9183_v46 = vadd.f32 %v4228_v13, %v4060_v29  ;;  %3763 = vmatmul.bf16.gmra.mxu1 %v10638_v54  ;;  %3932 = vmatmul.bf16.gmra.mxu2 %v10639_v10  ;;  %v10643_v54 = vld [vmem:[#allocation24_spill] sm:$0xff] }
 0x54b   :  { %4101 = vmatmul.bf16.gmra.mxu3 %v10640_v62 }
 0x54c   :  { %10637 = vst [vmem:[#allocation67_spill] sm:$0xff] %v9183_v46  ;;  %4270 = vmatmul.bf16.gmra.mxu0 %v10641_v32  ;;  %v10644_v32 = vld [vmem:[#allocation113_spill] sm:$0xff] }
 0x54d   :  { %v3893_v33 = vpop.f32.mrf.mxu2 }
 0x54e   :  { %v3894_v1 = vadd.f32 %v3893_v33, %v3725_v61  ;;  %v4062_v2 = vpop.f32.mrf.mxu3  ;;  %v10645_v61 = vld [vmem:[#allocation114_spill] sm:$0xff]  ;;  %v7403_v33 = vld [vmem:[#allocation5 + $0x344] sm:$0xf] }
 0x54f   :  { %v3726_v17 = vpop.f32.mrf.mxu1 }
 0x550   :  { %v3727_v15 = vadd.f32 %v3726_v17, %v10642_v23  ;;  %v4063_v48 = vadd.f32 %v4062_v2, %v3894_v1  ;;  %v6951_v17 = vld [vmem:[#allocation5 + $0x348] sm:$0xf0]  ;;  %v10646_v1 = vld [vmem:[#allocation115_spill] sm:$0xff]  ;;  %v10647_v2 = vld [vmem:[#allocation106_spill] sm:$0xff] }
 0x551   :  { %v4233_v11 = vpop.f32.mrf.mxu0 }
 0x552   :  { %v9190_v44 = vadd.f32 %v4231_v8, %v4063_v48  ;;  %v6954_v8 = vor.u32 %v7403_v33, %v6951_v17 }
 0x554   :  { %4389 = vmatpush.bf16.msra.mxu1 %v6954_v8 }
 0x555   :  { %v3895_v29 = vpop.f32.mrf.mxu2 }
 0x556   :  { %v3896_v13 = vadd.f32 %v3895_v29, %v3727_v15  ;;  %v4064_v57 = vpop.f32.mrf.mxu3 }
 0x557   :  { %v3729_v37 = vpop.f32.mrf.mxu1 }
 0x558   :  { %v3730_v10 = vadd.f32 %v3729_v37, %v10643_v54  ;;  %v4065_v46 = vadd.f32 %v4064_v57, %v3896_v13  ;;  %v7417_v37 = vld [vmem:[#allocation8 + $0x30] sm:$0xff] }
 0x559   :  { %v4236_v62 = vpop.f32.mrf.mxu0  ;;  %4880 = vmatpush.bf16.msra.mxu2 %v7417_v37 }
 0x55a   :  { %v9193_v18 = vadd.f32 %v4233_v11, %v4065_v46  ;;  %3768 = vmatmul.bf16.gmra.mxu1 %v10644_v32  ;;  %3937 = vmatmul.bf16.gmra.mxu2 %v10645_v61 }
 0x55b   :  { %4106 = vmatmul.bf16.gmra.mxu3 %v10646_v1  ;;  %v7425_v1 = vld [vmem:[#allocation8 + $0x70] sm:$0xff] }
 0x55c   :  { %4275 = vmatmul.bf16.gmra.mxu0 %v10647_v2  ;;  %5049 = vmatpush.bf16.msra.mxu3 %v7425_v1 }
 0x55d   :  { %v3898_v23 = vpop.f32.mrf.mxu2 }
 0x55e   :  { %v3899_v15 = vadd.f32 %v3898_v23, %v3730_v10  ;;  %v4067_v48 = vpop.f32.mrf.mxu3  ;;  %v10648_v23 = vld [vmem:[#allocation118_spill] sm:$0xff] }
 0x55f   :  { %v3731_v29 = vpop.f32.mrf.mxu1 }
 0x560   :  { %v3732_v13 = vadd.f32 %v3731_v29, %v8685_v20  ;;  %v4068_v46 = vadd.f32 %v4067_v48, %v3899_v15  ;;  %v10649_v20 = vld [vmem:[#allocation119_spill] sm:$0xff] }
 0x561   :  { %v4238_v11 = vpop.f32.mrf.mxu0 }
 0x562   :  { %v9200_v57 = vadd.f32 %v4236_v62, %v4068_v46  ;;  %v10650_v62 = vld [vmem:[#allocation120_spill] sm:$0xff] }
 0x565   :  { %v3900_v54 = vpop.f32.mrf.mxu2 }
 0x566   :  { %v3901_v32 = vadd.f32 %v3900_v54, %v3732_v13  ;;  %v4069_v61 = vpop.f32.mrf.mxu3 }
 0x567   :  { %v3734_v33 = vpop.f32.mrf.mxu1 }
 0x568   :  { %v3735_v17 = vadd.f32 %v3734_v33, %v8695_v25  ;;  %v4070_v2 = vadd.f32 %v4069_v61, %v3901_v32 }
 0x569   :  { %v4241_v10 = vpop.f32.mrf.mxu0 }
 0x56a   :  { %v9203_v8 = vadd.f32 %v4238_v11, %v4070_v2  ;;  %3773 = vmatmul.bf16.gmra.mxu1 %v10648_v23  ;;  %3942 = vmatmul.bf16.gmra.mxu2 %v10649_v20 }
 0x56b   :  { %4111 = vmatmul.bf16.gmra.mxu3 %v10650_v62  ;;  %v10653_v62 = vld [vmem:[#allocation123_spill] sm:$0xff] }
 0x56c   :  { %4280 = vmatmul.bf16.gmra.mxu0 %v8679_v52  ;;  %v10651_v52 = vld [vmem:[#allocation121_spill] sm:$0xff] }
 0x56d   :  { %v3903_v15 = vpop.f32.mrf.mxu2 }
 0x56e   :  { %v3904_v48 = vadd.f32 %v3903_v15, %v3735_v17  ;;  %v4072_v29 = vpop.f32.mrf.mxu3  ;;  %v10652_v17 = vld [vmem:[#allocation122_spill] sm:$0xff] }
 0x56f   :  { %v3736_v13 = vpop.f32.mrf.mxu1 }
 0x570   :  { %v3737_v46 = vadd.f32 %v3736_v13, %v8703_v53  ;;  %v4073_v25 = vadd.f32 %v4072_v29, %v3904_v48 }
 0x571   :  { %v4243_v37 = vpop.f32.mrf.mxu0 }
 0x572   :  { %v9210_v54 = vadd.f32 %v4241_v10, %v4073_v25 }
 0x575   :  { %v3905_v11 = vpop.f32.mrf.mxu2 }
 0x576   :  { %v3906_v32 = vadd.f32 %v3905_v11, %v3737_v46  ;;  %v4074_v61 = vpop.f32.mrf.mxu3 }
 0x577   :  { %v3739_v1 = vpop.f32.mrf.mxu1 }
 0x578   :  { %v3740_v33 = vadd.f32 %v3739_v1, %v8713_v35  ;;  %v4075_v2 = vadd.f32 %v4074_v61, %v3906_v32 }
 0x579   :  { %v4246_v23 = vpop.f32.mrf.mxu0 }
 0x57a   :  { %v9213_v20 = vadd.f32 %v4243_v37, %v4075_v2  ;;  %3778 = vmatmul.bf16.gmra.mxu1 %v10651_v52  ;;  %3947 = vmatmul.bf16.gmra.mxu2 %v10652_v17  ;;  %v10656_v17 = vld [vmem:[#allocation127_spill] sm:$0xff] }
 0x57b   :  { %4116 = vmatmul.bf16.gmra.mxu3 %v10653_v62 }
 0x57c   :  { %4285 = vmatmul.bf16.gmra.mxu0 %v8697_v39  ;;  %v10654_v39 = vld [vmem:[#allocation125_spill] sm:$0xff] }
 0x57d   :  { %v3908_v53 = vpop.f32.mrf.mxu2 }
 0x57e   :  { %v3909_v10 = vadd.f32 %v3908_v53, %v3740_v33  ;;  %v4077_v15 = vpop.f32.mrf.mxu3  ;;  %v10655_v33 = vld [vmem:[#allocation126_spill] sm:$0xff] }
 0x57f   :  { %v3741_v48 = vpop.f32.mrf.mxu1 }
 0x580   :  { %v3742_v29 = vadd.f32 %v3741_v48, %v8721_v45  ;;  %v4078_v13 = vadd.f32 %v4077_v15, %v3909_v10  ;;  %v10657_v45 = vld [vmem:[#allocation32_spill] sm:$0xff] }
 0x581   :  { %v4248_v35 = vpop.f32.mrf.mxu0  ;;  %v10658_v15 = vld [vmem:[#allocation132_spill] sm:$0xff] }
 0x582   :  { %v9220_v46 = vadd.f32 %v4246_v23, %v4078_v13 }
 0x585   :  { %v3910_v25 = vpop.f32.mrf.mxu2 }
 0x586   :  { %v3911_v37 = vadd.f32 %v3910_v25, %v3742_v29  ;;  %v4079_v11 = vpop.f32.mrf.mxu3 }
 0x587   :  { %v3744_v32 = vpop.f32.mrf.mxu1 }
 0x588   :  { %v3745_v61 = vadd.f32 %v3744_v32, %v8731_v14  ;;  %v4080_v1 = vadd.f32 %v4079_v11, %v3911_v37  ;;  %v10659_v32 = vld [vmem:[#allocation40_spill] sm:$0xff] }
 0x589   :  { %v4251_v2 = vpop.f32.mrf.mxu0 }
 0x58a   :  { %v9223_v52 = vadd.f32 %v4248_v35, %v4080_v1  ;;  %3783 = vmatmul.bf16.gmra.mxu1 %v10654_v39  ;;  %3952 = vmatmul.bf16.gmra.mxu2 %v10655_v33 }
 0x58b   :  { %4121 = vmatmul.bf16.gmra.mxu3 %v10656_v17 }
 0x58c   :  { %4290 = vmatmul.bf16.gmra.mxu0 %v10657_v45  ;;  %v10660_v45 = vld [vmem:[#allocation129_spill] sm:$0xff] }
 0x58d   :  { %v3913_v23 = vpop.f32.mrf.mxu2 }
 0x58e   :  { %v3914_v62 = vadd.f32 %v3913_v23, %v3745_v61  ;;  %v4082_v53 = vpop.f32.mrf.mxu3  ;;  %v10661_v61 = vld [vmem:[#allocation130_spill] sm:$0xff] }
 0x58f   :  { %v3746_v10 = vpop.f32.mrf.mxu1  ;;  %v7401_v23 = vld [vmem:[#allocation5 + $0x334] sm:$0xf] }
 0x590   :  { %v3747_v48 = vadd.f32 %v3746_v10, %v10658_v15  ;;  %v4083_v29 = vadd.f32 %v4082_v53, %v3914_v62  ;;  %v6943_v10 = vld [vmem:[#allocation5 + $0x338] sm:$0xf0]  ;;  %v10663_v53 = vld [vmem:[#allocation36_spill] sm:$0xff] }
 0x591   :  { %v4253_v14 = vpop.f32.mrf.mxu0  ;;  %v10662_v62 = vld [vmem:[#allocation131_spill] sm:$0xff] }
 0x592   :  { %v9230_v13 = vadd.f32 %v4251_v2, %v4083_v29  ;;  %v6946_v2 = vor.u32 %v7401_v23, %v6943_v10 }
 0x594   :  { %4390 = vmatpush.bf16.msra.mxu1 %v6946_v2 }
 0x595   :  { %v3915_v35 = vpop.f32.mrf.mxu2 }
 0x596   :  { %v3916_v25 = vadd.f32 %v3915_v35, %v3747_v48  ;;  %v4084_v37 = vpop.f32.mrf.mxu3 }
 0x597   :  { %v3749_v11 = vpop.f32.mrf.mxu1 }
 0x598   :  { %v3750_v1 = vadd.f32 %v3749_v11, %v10659_v32  ;;  %v4085_v39 = vadd.f32 %v4084_v37, %v3916_v25  ;;  %v7416_v32 = vld [vmem:[#allocation8 + $0x28] sm:$0xff] }
 0x599   :  { %v4256_v33 = vpop.f32.mrf.mxu0  ;;  %4881 = vmatpush.bf16.msra.mxu2 %v7416_v32 }
 0x59a   :  { %v9233_v17 = vadd.f32 %v4253_v14, %v4085_v39  ;;  %3788 = vmatmul.bf16.gmra.mxu1 %v10660_v45  ;;  %3957 = vmatmul.bf16.gmra.mxu2 %v10661_v61 }
 0x59b   :  { %4126 = vmatmul.bf16.gmra.mxu3 %v10662_v62  ;;  %v7424_v62 = vld [vmem:[#allocation8 + $0x68] sm:$0xff] }
 0x59c   :  { %4295 = vmatmul.bf16.gmra.mxu0 %v10663_v53  ;;  %5050 = vmatpush.bf16.msra.mxu3 %v7424_v62 }
 0x59d   :  { %v3918_v15 = vpop.f32.mrf.mxu2 }
 0x59e   :  { %v3919_v48 = vadd.f32 %v3918_v15, %v3750_v1  ;;  %v4087_v29 = vpop.f32.mrf.mxu3  ;;  %v10664_v15 = vld [vmem:[#allocation135_spill] sm:$0xff] }
 0x59f   :  { %v3751_v35 = vpop.f32.mrf.mxu1 }
 0x5a0   :  { %v3752_v25 = vadd.f32 %v3751_v35, %v8757_v50  ;;  %v4088_v14 = vadd.f32 %v4087_v29, %v3919_v48  ;;  %v10665_v50 = vld [vmem:[#allocation136_spill] sm:$0xff] }
 0x5a1   :  { %v4258_v37 = vpop.f32.mrf.mxu0  ;;  %v10667_v48 = vld [vmem:[#allocation128_spill] sm:$0xff] }
 0x5a2   :  { %v9240_v11 = vadd.f32 %v4256_v33, %v4088_v14  ;;  %v10666_v33 = vld [vmem:[#allocation137_spill] sm:$0xff] }
 0x5a5   :  { %v3920_v39 = vpop.f32.mrf.mxu2 }
 0x5a6   :  { %v3921_v45 = vadd.f32 %v3920_v39, %v3752_v25  ;;  %v4089_v61 = vpop.f32.mrf.mxu3 }
 0x5a7   :  { %v3754_v23 = vpop.f32.mrf.mxu1 }
 0x5a8   :  { %v3755_v10 = vadd.f32 %v3754_v23, %v8767_v19  ;;  %v4090_v53 = vadd.f32 %v4089_v61, %v3921_v45 }
 0x5a9   :  { %v4261_v1 = vpop.f32.mrf.mxu0 }
 0x5aa   :  { %v9243_v2 = vadd.f32 %v4258_v37, %v4090_v53  ;;  %3793 = vmatmul.bf16.gmra.mxu1 %v10664_v15  ;;  %3962 = vmatmul.bf16.gmra.mxu2 %v10665_v50  ;;  %v7434_v50 = vld [vmem:[#allocation10 + $0x38] sm:$0xff] }
 0x5ab   :  { %4131 = vmatmul.bf16.gmra.mxu3 %v10666_v33  ;;  %5381 = vmatpush.bf16.msra.mxu0 %v7434_v50 }
 0x5ac   :  { %4300 = vmatmul.bf16.gmra.mxu0 %v10667_v48 }
 0x5ad   :  { %v3923_v29 = vpop.f32.mrf.mxu2 }
 0x5ae   :  { %v3924_v35 = vadd.f32 %v3923_v29, %v3755_v10  ;;  %v4092_v25 = vpop.f32.mrf.mxu3  ;;  %v10668_v10 = vld [vmem:[#allocation138_spill] sm:$0xff]  ;;  %v10669_v29 = vld [vmem:[#allocation139_spill] sm:$0xff] }
 0x5af   :  { %v3756_v14 = vpop.f32.mrf.mxu1 }
 0x5b0   :  { %v3757_v32 = vadd.f32 %v3756_v14, %v8775_v0  ;;  %v4093_v19 = vadd.f32 %v4092_v25, %v3924_v35  ;;  %v10670_v0 = vld [vmem:[#allocation140_spill] sm:$0xff] }
 0x5b1   :  { %v4263_v39 = vpop.f32.mrf.mxu0 }
 0x5b2   :  { %v9250_v45 = vadd.f32 %v4261_v1, %v4093_v19 }
 0x5b5   :  { %v3925_v37 = vpop.f32.mrf.mxu2 }
 0x5b6   :  { %v3926_v61 = vadd.f32 %v3925_v37, %v3757_v32  ;;  %v4094_v62 = vpop.f32.mrf.mxu3 }
 0x5b7   :  { %v3759_v23 = vpop.f32.mrf.mxu1 }
 0x5b8   :  { %v3760_v53 = vadd.f32 %v3759_v23, %v8785_v12  ;;  %v4095_v15 = vadd.f32 %v4094_v62, %v3926_v61 }
 0x5b9   :  { %v4266_v33 = vpop.f32.mrf.mxu0 }
 0x5ba   :  { %v9253_v48 = vadd.f32 %v4263_v39, %v4095_v15  ;;  %3798 = vmatmul.bf16.gmra.mxu1 %v10668_v10  ;;  %3967 = vmatmul.bf16.gmra.mxu2 %v10669_v29 }
 0x5bb   :  { %4136 = vmatmul.bf16.gmra.mxu3 %v10670_v0  ;;  %v10673_v0 = vld [vmem:[#allocation143_spill] sm:$0xff] }
 0x5bc   :  { %4305 = vmatmul.bf16.gmra.mxu0 %v8769_v16  ;;  %v10671_v16 = vld [vmem:[#allocation141_spill] sm:$0xff] }
 0x5bd   :  { %v3928_v1 = vpop.f32.mrf.mxu2 }
 0x5be   :  { %v3929_v35 = vadd.f32 %v3928_v1, %v3760_v53  ;;  %v4097_v25 = vpop.f32.mrf.mxu3  ;;  %v10672_v53 = vld [vmem:[#allocation142_spill] sm:$0xff] }
 0x5bf   :  { %v3761_v14 = vpop.f32.mrf.mxu1 }
 0x5c0   :  { %v3762_v12 = vadd.f32 %v3761_v14, %v8793_v9  ;;  %v4098_v32 = vadd.f32 %v4097_v25, %v3929_v35  ;;  %v10674_v25 = vld [vmem:[#allocation149_spill] sm:$0xff] }
 0x5c1   :  { %v4268_v19 = vpop.f32.mrf.mxu0 }
 0x5c2   :  { %v9260_v37 = vadd.f32 %v4266_v33, %v4098_v32 }
 0x5c5   :  { %v3930_v39 = vpop.f32.mrf.mxu2 }
 0x5c6   :  { %v3931_v61 = vadd.f32 %v3930_v39, %v3762_v12  ;;  %v4099_v62 = vpop.f32.mrf.mxu3 }
 0x5c7   :  { %v3764_v23 = vpop.f32.mrf.mxu1 }
 0x5c8   :  { %v3765_v15 = vadd.f32 %v3764_v23, %v8803_v51  ;;  %v4100_v10 = vadd.f32 %v4099_v62, %v3931_v61  ;;  %v10675_v23 = vld [vmem:[#allocation25_spill] sm:$0xff] }
 0x5c9   :  { %v4271_v50 = vpop.f32.mrf.mxu0 }
 0x5ca   :  { %v9263_v29 = vadd.f32 %v4268_v19, %v4100_v10  ;;  %3803 = vmatmul.bf16.gmra.mxu1 %v10671_v16  ;;  %3972 = vmatmul.bf16.gmra.mxu2 %v10672_v53 }
 0x5cb   :  { %4141 = vmatmul.bf16.gmra.mxu3 %v10673_v0 }
 0x5cc   :  { %4310 = vmatmul.bf16.gmra.mxu0 %v8787_v3  ;;  %v10676_v3 = vld [vmem:[#allocation145_spill] sm:$0xff] }
 0x5cd   :  { %v3933_v9 = vpop.f32.mrf.mxu2 }
 0x5ce   :  { %v3934_v33 = vadd.f32 %v3933_v9, %v3765_v15  ;;  %v4102_v1 = vpop.f32.mrf.mxu3  ;;  %v10677_v15 = vld [vmem:[#allocation146_spill] sm:$0xff]  ;;  %v7399_v9 = vld [vmem:[#allocation5 + $0x324] sm:$0xf] }
 0x5cf   :  { %v3766_v35 = vpop.f32.mrf.mxu1 }
 0x5d0   :  { %v3767_v14 = vadd.f32 %v3766_v35, %v10674_v25  ;;  %v4103_v12 = vadd.f32 %v4102_v1, %v3934_v33  ;;  %v6935_v35 = vld [vmem:[#allocation5 + $0x328] sm:$0xf0]  ;;  %v10678_v33 = vld [vmem:[#allocation147_spill] sm:$0xff] }
 0x5d1   :  { %v4273_v51 = vpop.f32.mrf.mxu0  ;;  %v10679_v1 = vld [vmem:[#allocation21_spill] sm:$0xff] }
 0x5d2   :  { %v9270_v32 = vadd.f32 %v4271_v50, %v4103_v12  ;;  %v6938_v50 = vor.u32 %v7399_v9, %v6935_v35 }
 0x5d4   :  { %4391 = vmatpush.bf16.msra.mxu1 %v6938_v50 }
 0x5d5   :  { %v3935_v19 = vpop.f32.mrf.mxu2 }
 0x5d6   :  { %v3936_v39 = vadd.f32 %v3935_v19, %v3767_v14  ;;  %v4104_v61 = vpop.f32.mrf.mxu3 }
 0x5d7   :  { %v3769_v62 = vpop.f32.mrf.mxu1 }
 0x5d8   :  { %v3770_v10 = vadd.f32 %v3769_v62, %v10675_v23  ;;  %v4105_v16 = vadd.f32 %v4104_v61, %v3936_v39  ;;  %v7415_v23 = vld [vmem:[#allocation8 + $0x20] sm:$0xff] }
 0x5d9   :  { %v4276_v53 = vpop.f32.mrf.mxu0  ;;  %4882 = vmatpush.bf16.msra.mxu2 %v7415_v23 }
 0x5da   :  { %v9273_v0 = vadd.f32 %v4273_v51, %v4105_v16  ;;  %3808 = vmatmul.bf16.gmra.mxu1 %v10676_v3  ;;  %3977 = vmatmul.bf16.gmra.mxu2 %v10677_v15 }
 0x5db   :  { %4146 = vmatmul.bf16.gmra.mxu3 %v10678_v33  ;;  %v7423_v33 = vld [vmem:[#allocation8 + $0x60] sm:$0xff] }
 0x5dc   :  { %4315 = vmatmul.bf16.gmra.mxu0 %v10679_v1  ;;  %5051 = vmatpush.bf16.msra.mxu3 %v7423_v33 }
 0x5dd   :  { %v3938_v25 = vpop.f32.mrf.mxu2 }
 0x5de   :  { %v3939_v14 = vadd.f32 %v3938_v25, %v3770_v10  ;;  %v4107_v12 = vpop.f32.mrf.mxu3  ;;  %v10680_v25 = vld [vmem:[#allocation151_spill] sm:$0xff] }
 0x5df   :  { %v3771_v19 = vpop.f32.mrf.mxu1 }
 0x5e0   :  { %v3772_v39 = vadd.f32 %v3771_v19, %v8829_v40  ;;  %v4108_v51 = vadd.f32 %v4107_v12, %v3939_v14  ;;  %v10681_v40 = vld [vmem:[#allocation152_spill] sm:$0xff] }
 0x5e1   :  { %v4278_v61 = vpop.f32.mrf.mxu0  ;;  %v10683_v14 = vld [vmem:[#allocation144_spill] sm:$0xff] }
 0x5e2   :  { %v9280_v62 = vadd.f32 %v4276_v53, %v4108_v51  ;;  %v10682_v53 = vld [vmem:[#allocation153_spill] sm:$0xff] }
 0x5e5   :  { %v3940_v16 = vpop.f32.mrf.mxu2 }
 0x5e6   :  { %v3941_v3 = vadd.f32 %v3940_v16, %v3772_v39  ;;  %v4109_v15 = vpop.f32.mrf.mxu3 }
 0x5e7   :  { %v3774_v9 = vpop.f32.mrf.mxu1 }
 0x5e8   :  { %v3775_v35 = vadd.f32 %v3774_v9, %v8839_v5  ;;  %v4110_v1 = vadd.f32 %v4109_v15, %v3941_v3 }
 0x5e9   :  { %v4281_v10 = vpop.f32.mrf.mxu0 }
 0x5ea   :  { %v9283_v50 = vadd.f32 %v4278_v61, %v4110_v1  ;;  %3813 = vmatmul.bf16.gmra.mxu1 %v10680_v25  ;;  %3982 = vmatmul.bf16.gmra.mxu2 %v10681_v40  ;;  %v7433_v40 = vld [vmem:[#allocation10 + $0x30] sm:$0xff] }
 0x5eb   :  { %4151 = vmatmul.bf16.gmra.mxu3 %v10682_v53  ;;  %5382 = vmatpush.bf16.msra.mxu0 %v7433_v40 }
 0x5ec   :  { %4320 = vmatmul.bf16.gmra.mxu0 %v10683_v14 }
 0x5ed   :  { %v3943_v12 = vpop.f32.mrf.mxu2 }
 0x5ee   :  { %v3944_v19 = vadd.f32 %v3943_v12, %v3775_v35  ;;  %v4112_v39 = vpop.f32.mrf.mxu3  ;;  %v10684_v35 = vld [vmem:[#allocation154_spill] sm:$0xff]  ;;  %v10685_v12 = vld [vmem:[#allocation155_spill] sm:$0xff] }
 0x5ef   :  { %v3776_v51 = vpop.f32.mrf.mxu1 }
 0x5f0   :  { %v3777_v23 = vadd.f32 %v3776_v51, %v8847_v26  ;;  %v4113_v5 = vadd.f32 %v4112_v39, %v3944_v19  ;;  %v10686_v26 = vld [vmem:[#allocation156_spill] sm:$0xff] }
 0x5f1   :  { %v4283_v16 = vpop.f32.mrf.mxu0 }
 0x5f2   :  { %v9290_v3 = vadd.f32 %v4281_v10, %v4113_v5 }
 0x5f5   :  { %v3945_v61 = vpop.f32.mrf.mxu2 }
 0x5f6   :  { %v3946_v15 = vadd.f32 %v3945_v61, %v3777_v23  ;;  %v4114_v33 = vpop.f32.mrf.mxu3 }
 0x5f7   :  { %v3779_v9 = vpop.f32.mrf.mxu1 }
 0x5f8   :  { %v3780_v1 = vadd.f32 %v3779_v9, %v8857_v55  ;;  %v4115_v25 = vadd.f32 %v4114_v33, %v3946_v15 }
 0x5f9   :  { %v4286_v53 = vpop.f32.mrf.mxu0 }
 0x5fa   :  { %v9293_v14 = vadd.f32 %v4283_v16, %v4115_v25  ;;  %3818 = vmatmul.bf16.gmra.mxu1 %v10684_v35  ;;  %3987 = vmatmul.bf16.gmra.mxu2 %v10685_v12 }
 0x5fb   :  { %4156 = vmatmul.bf16.gmra.mxu3 %v10686_v26  ;;  %v10689_v26 = vld [vmem:[#allocation159_spill] sm:$0xff] }
 0x5fc   :  { %4325 = vmatmul.bf16.gmra.mxu0 %v8841_v28  ;;  %v10687_v28 = vld [vmem:[#allocation157_spill] sm:$0xff] }
 0x5fd   :  { %v3948_v10 = vpop.f32.mrf.mxu2 }
 0x5fe   :  { %v3949_v19 = vadd.f32 %v3948_v10, %v3780_v1  ;;  %v4117_v39 = vpop.f32.mrf.mxu3  ;;  %v10688_v1 = vld [vmem:[#allocation158_spill] sm:$0xff] }
 0x5ff   :  { %v3781_v51 = vpop.f32.mrf.mxu1 }
 0x600   :  { %v3782_v55 = vadd.f32 %v3781_v51, %v8865_v6  ;;  %v4118_v23 = vadd.f32 %v4117_v39, %v3949_v19  ;;  %v10690_v39 = vld [vmem:[#allocation165_spill] sm:$0xff] }
 0x601   :  { %v4288_v5 = vpop.f32.mrf.mxu0 }
 0x602   :  { %v9300_v61 = vadd.f32 %v4286_v53, %v4118_v23 }
 0x605   :  { %v3950_v16 = vpop.f32.mrf.mxu2 }
 0x606   :  { %v3951_v15 = vadd.f32 %v3950_v16, %v3782_v55  ;;  %v4119_v33 = vpop.f32.mrf.mxu3 }
 0x607   :  { %v3784_v9 = vpop.f32.mrf.mxu1 }
 0x608   :  { %v3785_v25 = vadd.f32 %v3784_v9, %v8875_v30  ;;  %v4120_v35 = vadd.f32 %v4119_v33, %v3951_v15  ;;  %v10691_v9 = vld [vmem:[#allocation41_spill] sm:$0xff] }
 0x609   :  { %v4291_v40 = vpop.f32.mrf.mxu0 }
 0x60a   :  { %v9303_v12 = vadd.f32 %v4288_v5, %v4120_v35  ;;  %3823 = vmatmul.bf16.gmra.mxu1 %v10687_v28  ;;  %3992 = vmatmul.bf16.gmra.mxu2 %v10688_v1 }
 0x60b   :  { %4161 = vmatmul.bf16.gmra.mxu3 %v10689_v26 }
 0x60c   :  { %4330 = vmatmul.bf16.gmra.mxu0 %v8859_v58  ;;  %v10692_v58 = vld [vmem:[#allocation161_spill] sm:$0xff] }
 0x60d   :  { %v3953_v6 = vpop.f32.mrf.mxu2 }
 0x60e   :  { %v3954_v53 = vadd.f32 %v3953_v6, %v3785_v25  ;;  %v4122_v10 = vpop.f32.mrf.mxu3  ;;  %v10693_v25 = vld [vmem:[#allocation162_spill] sm:$0xff] }
 0x60f   :  { %v3786_v19 = vpop.f32.mrf.mxu1  ;;  %v7397_v6 = vld [vmem:[#allocation5 + $0x314] sm:$0xf] }
 0x610   :  { %v3787_v51 = vadd.f32 %v3786_v19, %v10690_v39  ;;  %v4123_v55 = vadd.f32 %v4122_v10, %v3954_v53  ;;  %v6927_v19 = vld [vmem:[#allocation5 + $0x318] sm:$0xf0]  ;;  %v10695_v10 = vld [vmem:[#allocation37_spill] sm:$0xff] }
 0x611   :  { %v4293_v30 = vpop.f32.mrf.mxu0  ;;  %v10694_v53 = vld [vmem:[#allocation163_spill] sm:$0xff] }
 0x612   :  { %v9310_v23 = vadd.f32 %v4291_v40, %v4123_v55  ;;  %v6930_v40 = vor.u32 %v7397_v6, %v6927_v19 }
 0x614   :  { %4392 = vmatpush.bf16.msra.mxu1 %v6930_v40 }
 0x615   :  { %v3955_v5 = vpop.f32.mrf.mxu2 }
 0x616   :  { %v3956_v16 = vadd.f32 %v3955_v5, %v3787_v51  ;;  %v4124_v15 = vpop.f32.mrf.mxu3 }
 0x617   :  { %v3789_v33 = vpop.f32.mrf.mxu1 }
 0x618   :  { %v3790_v35 = vadd.f32 %v3789_v33, %v10691_v9  ;;  %v4125_v28 = vadd.f32 %v4124_v15, %v3956_v16  ;;  %v7414_v9 = vld [vmem:[#allocation8 + $0x18] sm:$0xff] }
 0x619   :  { %v4296_v1 = vpop.f32.mrf.mxu0  ;;  %4883 = vmatpush.bf16.msra.mxu2 %v7414_v9 }
 0x61a   :  { %v9313_v26 = vadd.f32 %v4293_v30, %v4125_v28  ;;  %3828 = vmatmul.bf16.gmra.mxu1 %v10692_v58  ;;  %3997 = vmatmul.bf16.gmra.mxu2 %v10693_v25 }
 0x61b   :  { %4166 = vmatmul.bf16.gmra.mxu3 %v10694_v53  ;;  %v7422_v53 = vld [vmem:[#allocation8 + $0x58] sm:$0xff] }
 0x61c   :  { %4335 = vmatmul.bf16.gmra.mxu0 %v10695_v10  ;;  %5052 = vmatpush.bf16.msra.mxu3 %v7422_v53 }
 0x61d   :  { %v3958_v39 = vpop.f32.mrf.mxu2 }
 0x61e   :  { %v3959_v51 = vadd.f32 %v3958_v39, %v3790_v35  ;;  %v4127_v55 = vpop.f32.mrf.mxu3  ;;  %v10696_v39 = vld [vmem:[#allocation167_spill] sm:$0xff] }
 0x61f   :  { %v3791_v5 = vpop.f32.mrf.mxu1 }
 0x620   :  { %v3792_v16 = vadd.f32 %v3791_v5, %v8901_v7  ;;  %v4128_v30 = vadd.f32 %v4127_v55, %v3959_v51  ;;  %v10697_v7 = vld [vmem:[#allocation168_spill] sm:$0xff] }
 0x621   :  { %v4298_v15 = vpop.f32.mrf.mxu0  ;;  %v10699_v51 = vld [vmem:[#allocation160_spill] sm:$0xff] }
 0x622   :  { %v9320_v33 = vadd.f32 %v4296_v1, %v4128_v30  ;;  %v10698_v1 = vld [vmem:[#allocation169_spill] sm:$0xff] }
 0x625   :  { %v3960_v28 = vpop.f32.mrf.mxu2 }
 0x626   :  { %v3961_v58 = vadd.f32 %v3960_v28, %v3792_v16  ;;  %v4129_v25 = vpop.f32.mrf.mxu3 }
 0x627   :  { %v3794_v6 = vpop.f32.mrf.mxu1 }
 0x628   :  { %v3795_v19 = vadd.f32 %v3794_v6, %v8911_v36  ;;  %v4130_v10 = vadd.f32 %v4129_v25, %v3961_v58 }
 0x629   :  { %v4301_v35 = vpop.f32.mrf.mxu0 }
 0x62a   :  { %v9323_v40 = vadd.f32 %v4298_v15, %v4130_v10  ;;  %3833 = vmatmul.bf16.gmra.mxu1 %v10696_v39  ;;  %4002 = vmatmul.bf16.gmra.mxu2 %v10697_v7  ;;  %v7432_v7 = vld [vmem:[#allocation10 + $0x28] sm:$0xff] }
 0x62b   :  { %4171 = vmatmul.bf16.gmra.mxu3 %v10698_v1  ;;  %5383 = vmatpush.bf16.msra.mxu0 %v7432_v7 }
 0x62c   :  { %4340 = vmatmul.bf16.gmra.mxu0 %v10699_v51 }
 0x62d   :  { %v3963_v55 = vpop.f32.mrf.mxu2 }
 0x62e   :  { %v3964_v5 = vadd.f32 %v3963_v55, %v3795_v19  ;;  %v4132_v16 = vpop.f32.mrf.mxu3  ;;  %v10700_v19 = vld [vmem:[#allocation170_spill] sm:$0xff]  ;;  %v10701_v55 = vld [vmem:[#allocation171_spill] sm:$0xff] }
 0x62f   :  { %v3796_v30 = vpop.f32.mrf.mxu1 }
 0x630   :  { %v3797_v9 = vadd.f32 %v3796_v30, %v8919_v34  ;;  %v4133_v36 = vadd.f32 %v4132_v16, %v3964_v5  ;;  %v10702_v34 = vld [vmem:[#allocation172_spill] sm:$0xff] }
 0x631   :  { %v4303_v28 = vpop.f32.mrf.mxu0 }
 0x632   :  { %v9330_v58 = vadd.f32 %v4301_v35, %v4133_v36 }
 0x635   :  { %v3965_v15 = vpop.f32.mrf.mxu2 }
 0x636   :  { %v3966_v25 = vadd.f32 %v3965_v15, %v3797_v9  ;;  %v4134_v53 = vpop.f32.mrf.mxu3 }
 0x637   :  { %v3799_v6 = vpop.f32.mrf.mxu1 }
 0x638   :  { %v3800_v10 = vadd.f32 %v3799_v6, %v8929_v24  ;;  %v4135_v39 = vadd.f32 %v4134_v53, %v3966_v25 }
 0x639   :  { %v4306_v1 = vpop.f32.mrf.mxu0 }
 0x63a   :  { %v9333_v51 = vadd.f32 %v4303_v28, %v4135_v39  ;;  %3838 = vmatmul.bf16.gmra.mxu1 %v10700_v19  ;;  %4007 = vmatmul.bf16.gmra.mxu2 %v10701_v55  ;;  %v10704_v39 = vld [vmem:[#allocation22_spill] sm:$0xff] }
 0x63b   :  { %4176 = vmatmul.bf16.gmra.mxu3 %v10702_v34 }
 0x63c   :  { %4345 = vmatmul.bf16.gmra.mxu0 %v8913_v47  ;;  %v10706_v47 = vld [vmem:[#allocation173_spill] sm:$0xff] }
 0x63d   :  { %v3968_v35 = vpop.f32.mrf.mxu2 }
 0x63e   :  { %v3969_v5 = vadd.f32 %v3968_v35, %v3800_v10  ;;  %v4137_v16 = vpop.f32.mrf.mxu3  ;;  %v10707_v10 = vld [vmem:[#allocation174_spill] sm:$0xff]  ;;  %v10708_v35 = vld [vmem:[#allocation175_spill] sm:$0xff] }
 0x63f   :  { %v3801_v30 = vpop.f32.mrf.mxu1 }
 0x640   :  { %v3802_v24 = vadd.f32 %v3801_v30, %v8937_v49  ;;  %v4138_v9 = vadd.f32 %v4137_v16, %v3969_v5  ;;  %v10709_v49 = vld [vmem:[#allocation18_spill] sm:$0xff] }
 0x641   :  { %v4308_v36 = vpop.f32.mrf.mxu0 }
 0x642   :  { %v9340_v15 = vadd.f32 %v4306_v1, %v4138_v9 }
 0x644   :  { %10703 = vst [vmem:[#allocation68_spill] sm:$0xff] %v9340_v15 }
 0x645   :  { %v3970_v28 = vpop.f32.mrf.mxu2 }
 0x646   :  { %v3971_v25 = vadd.f32 %v3970_v28, %v3802_v24  ;;  %v4139_v53 = vpop.f32.mrf.mxu3  ;;  %v10710_v24 = vld [vmem:[#allocation181_spill] sm:$0xff] }
 0x647   :  { %v3804_v6 = vpop.f32.mrf.mxu1 }
 0x648   :  { %v3805_v19 = vadd.f32 %v3804_v6, %v10704_v39  ;;  %v4140_v55 = vadd.f32 %v4139_v53, %v3971_v25 }
 0x649   :  { %v4311_v7 = vpop.f32.mrf.mxu0 }
 0x64a   :  { %v9343_v34 = vadd.f32 %v4308_v36, %v4140_v55  ;;  %3843 = vmatmul.bf16.gmra.mxu1 %v10706_v47  ;;  %4012 = vmatmul.bf16.gmra.mxu2 %v10707_v10  ;;  %v10712_v47 = vld [vmem:[#allocation26_spill] sm:$0xff] }
 0x64b   :  { %4181 = vmatmul.bf16.gmra.mxu3 %v10708_v35 }
 0x64c   :  { %10705 = vst [vmem:[#allocation69_spill] sm:$0xff] %v9343_v34  ;;  %4350 = vmatmul.bf16.gmra.mxu0 %v10709_v49  ;;  %v10714_v49 = vld [vmem:[#allocation177_spill] sm:$0xff] }
 0x64d   :  { %v3973_v1 = vpop.f32.mrf.mxu2 }
 0x64e   :  { %v3974_v5 = vadd.f32 %v3973_v1, %v3805_v19  ;;  %v4142_v16 = vpop.f32.mrf.mxu3  ;;  %v10715_v19 = vld [vmem:[#allocation178_spill] sm:$0xff]  ;;  %v7395_v1 = vld [vmem:[#allocation5 + $0x304] sm:$0xf] }
 0x64f   :  { %v3806_v30 = vpop.f32.mrf.mxu1 }
 0x650   :  { %v3807_v9 = vadd.f32 %v3806_v30, %v10710_v24  ;;  %v4143_v28 = vadd.f32 %v4142_v16, %v3974_v5  ;;  %v6919_v30 = vld [vmem:[#allocation5 + $0x308] sm:$0xf0]  ;;  %v10716_v5 = vld [vmem:[#allocation179_spill] sm:$0xff]  ;;  %v10717_v16 = vld [vmem:[#allocation180_spill] sm:$0xff] }
 0x651   :  { %v4313_v6 = vpop.f32.mrf.mxu0 }
 0x652   :  { %v9350_v25 = vadd.f32 %v4311_v7, %v4143_v28  ;;  %v6922_v7 = vor.u32 %v7395_v1, %v6919_v30  ;;  %v10720_v30 = vld [vmem:[#allocation30_spill] sm:$0xff] }
 0x654   :  { %10711 = vst [vmem:[#allocation60_spill] sm:$0xff] %v9350_v25  ;;  %4393 = vmatpush.bf16.msra.mxu1 %v6922_v7 }
 0x655   :  { %v3975_v36 = vpop.f32.mrf.mxu2 }
 0x656   :  { %v3976_v53 = vadd.f32 %v3975_v36, %v3807_v9  ;;  %v4144_v39 = vpop.f32.mrf.mxu3 }
 0x657   :  { %v3809_v55 = vpop.f32.mrf.mxu1 }
 0x658   :  { %v3810_v10 = vadd.f32 %v3809_v55, %v10712_v47  ;;  %v4145_v34 = vadd.f32 %v4144_v39, %v3976_v53  ;;  %v10718_v53 = vld [vmem:[#allocation220_spill] sm:$0xff]  ;;  %v7413_v47 = vld [vmem:[#allocation8 + $0x10] sm:$0xff] }
 0x659   :  { %v4316_v35 = vpop.f32.mrf.mxu0  ;;  %4884 = vmatpush.bf16.msra.mxu2 %v7413_v47  ;;  %v10726_v47 = vld [vmem:[#allocation191_spill] sm:$0xff] }
 0x65a   :  { %v9353_v15 = vadd.f32 %v4313_v6, %v4145_v34  ;;  %3848 = vmatmul.bf16.gmra.mxu1 %v10714_v49  ;;  %4017 = vmatmul.bf16.gmra.mxu2 %v10715_v19 }
 0x65b   :  { %4186 = vmatmul.bf16.gmra.mxu3 %v10716_v5  ;;  %v7421_v5 = vld [vmem:[#allocation8 + $0x50] sm:$0xff] }
 0x65c   :  { %10713 = vst [vmem:[#allocation76_spill] sm:$0xff] %v9353_v15  ;;  %4355 = vmatmul.bf16.gmra.mxu0 %v10717_v16  ;;  %5053 = vmatpush.bf16.msra.mxu3 %v7421_v5 }
 0x65d   :  { %v3978_v24 = vpop.f32.mrf.mxu2 }
 0x65e   :  { %v3979_v9 = vadd.f32 %v3978_v24, %v3810_v10  ;;  %v4147_v28 = vpop.f32.mrf.mxu3  ;;  %v10722_v24 = vld [vmem:[#allocation183_spill] sm:$0xff] }
 0x65f   :  { %v3811_v36 = vpop.f32.mrf.mxu1 }
 0x660   :  { %v3812_v39 = vadd.f32 %v3811_v36, %v10718_v53  ;;  %v4148_v34 = vadd.f32 %v4147_v28, %v3979_v9  ;;  %v10723_v9 = vld [vmem:[#allocation184_spill] sm:$0xff] }
 0x661   :  { %v4318_v6 = vpop.f32.mrf.mxu0  ;;  %v10725_v28 = vld [vmem:[#allocation176_spill] sm:$0xff] }
 0x662   :  { %v9360_v55 = vadd.f32 %v4316_v35, %v4148_v34  ;;  %v10724_v35 = vld [vmem:[#allocation185_spill] sm:$0xff] }
 0x664   :  { %10719 = vst [vmem:[#allocation35_spill] sm:$0xff] %v9360_v55 }
 0x665   :  { %v3980_v49 = vpop.f32.mrf.mxu2 }
 0x666   :  { %v3981_v19 = vadd.f32 %v3980_v49, %v3812_v39  ;;  %v4149_v15 = vpop.f32.mrf.mxu3 }
 0x667   :  { %v3814_v1 = vpop.f32.mrf.mxu1 }
 0x668   :  { %v3815_v16 = vadd.f32 %v3814_v1, %v10720_v30  ;;  %v4150_v25 = vadd.f32 %v4149_v15, %v3981_v19 }
 0x669   :  { %v4321_v10 = vpop.f32.mrf.mxu0 }
 0x66a   :  { %v9363_v7 = vadd.f32 %v4318_v6, %v4150_v25  ;;  %3853 = vmatmul.bf16.gmra.mxu1 %v10722_v24  ;;  %4022 = vmatmul.bf16.gmra.mxu2 %v10723_v9  ;;  %v10727_v24 = vld [vmem:[#allocation34_spill] sm:$0xff] }
 0x66b   :  { %4191 = vmatmul.bf16.gmra.mxu3 %v10724_v35  ;;  %v7431_v35 = vld [vmem:[#allocation10 + $0x20] sm:$0xff] }
 0x66c   :  { %10721 = vst [vmem:[#allocation73_spill] sm:$0xff] %v9363_v7  ;;  %4360 = vmatmul.bf16.gmra.mxu0 %v10725_v28 }
 0x66d   :  { %v3983_v36 = vpop.f32.mrf.mxu2  ;;  %5384 = vmatpush.bf16.msra.mxu0 %v7431_v35  ;;  %v10735_v35 = vld [vmem:[#allocation38_spill] sm:$0xff] }
 0x66e   :  { %v3984_v53 = vadd.f32 %v3983_v36, %v3815_v16  ;;  %v4152_v39 = vpop.f32.mrf.mxu3  ;;  %v10728_v16 = vld [vmem:[#allocation187_spill] sm:$0xff]  ;;  %v10729_v36 = vld [vmem:[#allocation188_spill] sm:$0xff] }
 0x66f   :  { %v3816_v34 = vpop.f32.mrf.mxu1 }
 0x670   :  { %v3817_v49 = vadd.f32 %v3816_v34, %v10726_v47  ;;  %v4153_v1 = vadd.f32 %v4152_v39, %v3984_v53  ;;  %v10730_v34 = vld [vmem:[#allocation189_spill] sm:$0xff] }
 0x671   :  { %v4323_v15 = vpop.f32.mrf.mxu0 }
 0x672   :  { %v9370_v19 = vadd.f32 %v4321_v10, %v4153_v1  ;;  %v10731_v10 = vld [vmem:[#allocation182_spill] sm:$0xff]  ;;  %v10732_v1 = vld [vmem:[#allocation83_spill] sm:$0xff] }
 0x675   :  { %v3985_v25 = vpop.f32.mrf.mxu2 }
 0x676   :  { %v3986_v6 = vadd.f32 %v3985_v25, %v3817_v49  ;;  %v4154_v5 = vpop.f32.mrf.mxu3 }
 0x677   :  { %v3819_v30 = vpop.f32.mrf.mxu1 }
 0x678   :  { %v3820_v9 = vadd.f32 %v3819_v30, %v10727_v24  ;;  %v4155_v7 = vadd.f32 %v4154_v5, %v3986_v6 }
 0x679   :  { %v4326_v55 = vpop.f32.mrf.mxu0 }
 0x67a   :  { %v9373_v28 = vadd.f32 %v4323_v15, %v4155_v7  ;;  %3858 = vmatmul.bf16.gmra.mxu1 %v10728_v16  ;;  %4027 = vmatmul.bf16.gmra.mxu2 %v10729_v36 }
 0x67b   :  { %4196 = vmatmul.bf16.gmra.mxu3 %v10730_v34 }
 0x67c   :  { %4365 = vmatmul.bf16.gmra.mxu0 %v10731_v10  ;;  %v10736_v10 = vld [vmem:[#allocation193_spill] sm:$0xff] }
 0x67d   :  { %v3988_v53 = vpop.f32.mrf.mxu2 }
 0x67e   :  { %v3989_v39 = vadd.f32 %v3988_v53, %v3820_v9  ;;  %v4157_v47 = vpop.f32.mrf.mxu3  ;;  %v10737_v9 = vld [vmem:[#allocation194_spill] sm:$0xff]  ;;  %v10738_v53 = vld [vmem:[#allocation195_spill] sm:$0xff] }
 0x67f   :  { %v3821_v49 = vpop.f32.mrf.mxu1 }
 0x680   :  { %v3822_v25 = vadd.f32 %v3821_v49, %v10732_v1  ;;  %v4158_v6 = vadd.f32 %v4157_v47, %v3989_v39  ;;  %v10739_v39 = vld [vmem:[#allocation186_spill] sm:$0xff] }
 0x681   :  { %v9380_v5 = vpop.f32.mrf.mxu0 }
 0x682   :  { %10733 = vst [vmem:[#allocation74_spill] sm:$0xff] %v9380_v5  ;;  %v9382_v7 = vadd.f32 %v4326_v55, %v4158_v6  ;;  %v10741_v5 = vld [vmem:[#allocation89_spill] sm:$0xff] }
 0x684   :  { %10734 = vst [vmem:[#allocation75_spill] sm:$0xff] %v9382_v7  ;;  %v7412_v7 = vld [vmem:[#allocation8 + $0x8] sm:$0xff] }
 0x685   :  { %v3990_v15 = vpop.f32.mrf.mxu2  ;;  %4885 = vmatpush.bf16.msra.mxu2 %v7412_v7 }
 0x686   :  { %v9384_v30 = vadd.f32 %v3990_v15, %v3822_v25  ;;  %v9386_v24 = vpop.f32.mrf.mxu3 }
 0x687   :  { %v3824_v16 = vpop.f32.mrf.mxu1 }
 0x688   :  { %v3825_v36 = vadd.f32 %v3824_v16, %v10735_v35 }
 0x689   :  { %v4331_v34 = vpop.f32.mrf.mxu0 }
 0x68a   :  { %3863 = vmatmul.bf16.gmra.mxu1 %v10736_v10  ;;  %4032 = vmatmul.bf16.gmra.mxu2 %v10737_v9  ;;  %v7411_v10 = vld [vmem:[#allocation8] sm:$0xff] }
 0x68b   :  { %4201 = vmatmul.bf16.gmra.mxu3 %v10738_v53  ;;  %4886 = vmatpush.bf16.msra.mxu2 %v7411_v10 }
 0x68c   :  { %4370 = vmatmul.bf16.gmra.mxu0 %v10739_v39 }
 0x68d   :  { %v3993_v47 = vpop.f32.mrf.mxu2 }
 0x68e   :  { %v3994_v55 = vadd.f32 %v3993_v47, %v3825_v36  ;;  %v4162_v49 = vpop.f32.mrf.mxu3 }
 0x68f   :  { %v3826_v1 = vpop.f32.mrf.mxu1 }
 0x690   :  { %v3827_v25 = vadd.f32 %v3826_v1, %v9027_v41  ;;  %v4163_v6 = vadd.f32 %v4162_v49, %v3994_v55  ;;  %v10742_v41 = vld [vmem:[#allocation197_spill] sm:$0xff]  ;;  %v10743_v55 = vld [vmem:[#allocation198_spill] sm:$0xff] }
 0x691   :  { %v9394_v15 = vpop.f32.mrf.mxu0 }
 0x692   :  { %v9396_v16 = vadd.f32 %v4331_v34, %v4163_v6 }
 0x694   :  { %10740 = vst [vmem:[#allocation66_spill] sm:$0xff] %v9396_v16  ;;  %v10746_v16 = vld [vmem:[#allocation97_spill] sm:$0xff] }
 0x695   :  { %v3995_v35 = vpop.f32.mrf.mxu2 }
 0x696   :  { %v9398_v9 = vadd.f32 %v3995_v35, %v3827_v25  ;;  %v9400_v53 = vpop.f32.mrf.mxu3 }
 0x697   :  { %v3829_v39 = vpop.f32.mrf.mxu1 }
 0x698   :  { %v3830_v36 = vadd.f32 %v3829_v39, %v9037_v60 }
 0x699   :  { %v4336_v47 = vpop.f32.mrf.mxu0 }
 0x69a   :  { %3868 = vmatmul.bf16.gmra.mxu1 %v10741_v5  ;;  %4037 = vmatmul.bf16.gmra.mxu2 %v10742_v41  ;;  %v7420_v41 = vld [vmem:[#allocation8 + $0x48] sm:$0xff] }
 0x69b   :  { %4206 = vmatmul.bf16.gmra.mxu3 %v10743_v55 }
 0x69c   :  { %4375 = vmatmul.bf16.gmra.mxu0 %v9021_v21  ;;  %5054 = vmatpush.bf16.msra.mxu3 %v7420_v41 }
 0x69d   :  { %v3998_v7 = vpop.f32.mrf.mxu2 }
 0x69e   :  { %v3999_v34 = vadd.f32 %v3998_v7, %v3830_v36  ;;  %v4167_v49 = vpop.f32.mrf.mxu3  ;;  %v10745_v7 = vld [vmem:[#allocation91_spill] sm:$0xff] }
 0x69f   :  { %v3831_v1 = vpop.f32.mrf.mxu1 }
 0x6a0   :  { %v3832_v25 = vadd.f32 %v3831_v1, %v9045_v63  ;;  %v4168_v6 = vadd.f32 %v4167_v49, %v3999_v34  ;;  %v10747_v63 = vld [vmem:[#allocation199_spill] sm:$0xff] }
 0x6a1   :  { %v9408_v35 = vpop.f32.mrf.mxu0 }
 0x6a2   :  { %v9410_v10 = vadd.f32 %v4336_v47, %v4168_v6 }
 0x6a4   :  { %10744 = vst [vmem:[#allocation82_spill] sm:$0xff] %v9410_v10 }
 0x6a5   :  { %v4000_v60 = vpop.f32.mrf.mxu2 }
 0x6a6   :  { %v9412_v39 = vadd.f32 %v4000_v60, %v3832_v25  ;;  %v9414_v5 = vpop.f32.mrf.mxu3 }
 0x6a7   :  { %v3834_v55 = vpop.f32.mrf.mxu1 }
 0x6a8   :  { %v3835_v21 = vadd.f32 %v3834_v55, %v9055_v59 }
 0x6a9   :  { %v4341_v36 = vpop.f32.mrf.mxu0 }
 0x6aa   :  { %3873 = vmatmul.bf16.gmra.mxu1 %v10745_v7  ;;  %4042 = vmatmul.bf16.gmra.mxu2 %v10746_v16 }
 0x6ab   :  { %4211 = vmatmul.bf16.gmra.mxu3 %v10747_v63 }
 0x6ac   :  { %4380 = vmatmul.bf16.gmra.mxu0 %v9039_v43  ;;  %v7430_v43 = vld [vmem:[#allocation10 + $0x18] sm:$0xff] }
 0x6ad   :  { %v4003_v47 = vpop.f32.mrf.mxu2  ;;  %5385 = vmatpush.bf16.msra.mxu0 %v7430_v43 }
 0x6ae   :  { %v4004_v34 = vadd.f32 %v4003_v47, %v3835_v21  ;;  %v4172_v49 = vpop.f32.mrf.mxu3  ;;  %v10750_v21 = vld [vmem:[#allocation52_spill] sm:$0xff]  ;;  %v10751_v47 = vld [vmem:[#allocation111_spill] sm:$0xff] }
 0x6af   :  { %v3836_v1 = vpop.f32.mrf.mxu1 }
 0x6b0   :  { %v3837_v25 = vadd.f32 %v3836_v1, %v9059_v42  ;;  %v4173_v6 = vadd.f32 %v4172_v49, %v4004_v34 }
 0x6b1   :  { %v9422_v60 = vpop.f32.mrf.mxu0 }
 0x6b2   :  { %10748 = vst [vmem:[#allocation39_spill] sm:$0xff] %v9422_v60  ;;  %v9424_v59 = vadd.f32 %v4341_v36, %v4173_v6  ;;  %v10755_v60 = vld [vmem:[#allocation53_spill] sm:$0xff] }
 0x6b4   :  { %10749 = vst [vmem:[#allocation79_spill] sm:$0xff] %v9424_v59 }
 0x6b5   :  { %v4005_v41 = vpop.f32.mrf.mxu2 }
 0x6b6   :  { %v9426_v55 = vadd.f32 %v4005_v41, %v3837_v25  ;;  %v9428_v7 = vpop.f32.mrf.mxu3 }
 0x6b7   :  { %v3839_v16 = vpop.f32.mrf.mxu1 }
 0x6b8   :  { %v3840_v63 = vadd.f32 %v3839_v16, %v9069_v56 }
 0x6b9   :  { %v4346_v10 = vpop.f32.mrf.mxu0 }
 0x6ba   :  { %4394 = vmatmul.bf16.vlgmr.msra.gmra.mxu1 %v10750_v21  ;;  %4887 = vmatmul.bf16.vlgmr.msra.gmra.mxu2 %v10751_v47 }
 0x6bd   :  { %v4008_v42 = vpop.f32.mrf.mxu2 }
 0x6be   :  { %v4009_v34 = vadd.f32 %v4008_v42, %v3840_v63  ;;  %v4177_v49 = vpop.f32.mrf.mxu3  ;;  %v10756_v63 = vld [vmem:[#allocation200_spill] sm:$0xff] }
 0x6bf   :  { %v3841_v36 = vpop.f32.mrf.mxu1 }
 0x6c0   :  { %v3842_v1 = vadd.f32 %v3841_v36, %v9073_v22  ;;  %v4178_v25 = vadd.f32 %v4177_v49, %v4009_v34 }
 0x6c1   :  { %v9434_v6 = vpop.f32.mrf.mxu0 }
 0x6c2   :  { %10752 = vst [vmem:[#allocation80_spill] sm:$0xff] %v9434_v6  ;;  %v9436_v41 = vadd.f32 %v4346_v10, %v4178_v25 }
 0x6c4   :  { %10753 = vst [vmem:[#allocation81_spill] sm:$0xff] %v9436_v41 }
 0x6c5   :  { %v4010_v59 = vpop.f32.mrf.mxu2 }
 0x6c6   :  { %v9438_v56 = vadd.f32 %v4010_v59, %v3842_v1  ;;  %v9440_v16 = vpop.f32.mrf.mxu3 }
 0x6c7   :  { %10754 = vst [vmem:[#allocation72_spill] sm:$0xff] %v9440_v16  ;;  %v3844_v21 = vpop.f32.mrf.mxu1  ;;  %v10762_v16 = vld [vmem:[#allocation59_spill] sm:$0xff] }
 0x6c8   :  { %v3845_v47 = vadd.f32 %v3844_v21, %v9083_v31 }
 0x6c9   :  { %v4351_v43 = vpop.f32.mrf.mxu0 }
 0x6ca   :  { %4399 = vmatmul.bf16.gmra.mxu1 %v10755_v60  ;;  %4892 = vmatmul.bf16.gmra.mxu2 %v10756_v63  ;;  %v10761_v60 = vld [vmem:[#allocation50_spill] sm:$0xff] }
 0x6cd   :  { %v4013_v42 = vpop.f32.mrf.mxu2 }
 0x6ce   :  { %v4014_v22 = vadd.f32 %v4013_v42, %v3845_v47  ;;  %v4182_v34 = vpop.f32.mrf.mxu3  ;;  %v10763_v47 = vld [vmem:[#allocation201_spill] sm:$0xff] }
 0x6cf   :  { %v3846_v49 = vpop.f32.mrf.mxu1 }
 0x6d0   :  { %v3847_v10 = vadd.f32 %v3846_v49, %v9087_v4  ;;  %v4183_v36 = vadd.f32 %v4182_v34, %v4014_v22  ;;  %v10764_v49 = vld [vmem:[#allocation51_spill] sm:$0xff] }
 0x6d1   :  { %v9446_v25 = vpop.f32.mrf.mxu0 }
 0x6d2   :  { %10757 = vst [vmem:[#allocation90_spill] sm:$0xff] %v9446_v25  ;;  %v9448_v59 = vadd.f32 %v4351_v43, %v4183_v36 }
 0x6d4   :  { %10758 = vst [vmem:[#allocation86_spill] sm:$0xff] %v9448_v59 }
 0x6d5   :  { %v4015_v1 = vpop.f32.mrf.mxu2 }
 0x6d6   :  { %v9450_v41 = vadd.f32 %v4015_v1, %v3847_v10  ;;  %v9452_v31 = vpop.f32.mrf.mxu3 }
 0x6d7   :  { %10760 = vst [vmem:[#allocation88_spill] sm:$0xff] %v9452_v31  ;;  %v3849_v21 = vpop.f32.mrf.mxu1  ;;  %v10768_v31 = vld [vmem:[#allocation58_spill] sm:$0xff] }
 0x6d8   :  { %10759 = vst [vmem:[#allocation87_spill] sm:$0xff] %v9450_v41  ;;  %v3850_v6 = vadd.f32 %v3849_v21, %v10761_v60  ;;  %v7419_v60 = vld [vmem:[#allocation8 + $0x40] sm:$0xff]  ;;  %v10770_v41 = vld [vmem:[#allocation202_spill] sm:$0xff] }
 0x6d9   :  { %v4356_v63 = vpop.f32.mrf.mxu0  ;;  %5055 = vmatpush.bf16.msra.mxu3 %v7419_v60 }
 0x6da   :  { %4404 = vmatmul.bf16.gmra.mxu1 %v10762_v16  ;;  %4897 = vmatmul.bf16.gmra.mxu2 %v10763_v47 }
 0x6dd   :  { %v4018_v42 = vpop.f32.mrf.mxu2 }
 0x6de   :  { %v4019_v4 = vadd.f32 %v4018_v42, %v3850_v6  ;;  %v4187_v22 = vpop.f32.mrf.mxu3  ;;  %v10769_v42 = vld [vmem:[#allocation65_spill] sm:$0xff] }
 0x6df   :  { %v3851_v34 = vpop.f32.mrf.mxu1 }
 0x6e0   :  { %v3852_v43 = vadd.f32 %v3851_v34, %v10764_v49  ;;  %v4188_v36 = vadd.f32 %v4187_v22, %v4019_v4  ;;  %v10771_v49 = vld [vmem:[#allocation23_spill] sm:$0xff] }
 0x6e1   :  { %v9458_v59 = vpop.f32.mrf.mxu0 }
 0x6e2   :  { %10765 = vst [vmem:[#allocation78_spill] sm:$0xff] %v9458_v59  ;;  %v9460_v10 = vadd.f32 %v4356_v63, %v4188_v36 }
 0x6e4   :  { %10766 = vst [vmem:[#allocation92_spill] sm:$0xff] %v9460_v10 }
 0x6e5   :  { %v4020_v1 = vpop.f32.mrf.mxu2 }
 0x6e6   :  { %v9462_v25 = vadd.f32 %v4020_v1, %v3852_v43  ;;  %v9464_v21 = vpop.f32.mrf.mxu3 }
 0x6e7   :  { %10767 = vst [vmem:[#allocation98_spill] sm:$0xff] %v9464_v21  ;;  %v3854_v16 = vpop.f32.mrf.mxu1 }
 0x6e8   :  { %v3855_v47 = vadd.f32 %v3854_v16, %v10768_v31 }
 0x6e9   :  { %v4361_v6 = vpop.f32.mrf.mxu0 }
 0x6ea   :  { %4409 = vmatmul.bf16.gmra.mxu1 %v10769_v42  ;;  %4902 = vmatmul.bf16.gmra.mxu2 %v10770_v41  ;;  %v7429_v41 = vld [vmem:[#allocation10 + $0x10] sm:$0xff] }
 0x6eb   :  { %5386 = vmatpush.bf16.msra.mxu0 %v7429_v41 }
 0x6ed   :  { %v4023_v4 = vpop.f32.mrf.mxu2 }
 0x6ee   :  { %v4024_v22 = vadd.f32 %v4023_v4, %v3855_v47  ;;  %v4192_v34 = vpop.f32.mrf.mxu3  ;;  %v10776_v47 = vld [vmem:[#allocation71_spill] sm:$0xff]  ;;  %v10777_v4 = vld [vmem:[#allocation204_spill] sm:$0xff] }
 0x6ef   :  { %v3856_v63 = vpop.f32.mrf.mxu1 }
 0x6f0   :  { %v3857_v36 = vadd.f32 %v3856_v63, %v10771_v49  ;;  %v4193_v43 = vadd.f32 %v4192_v34, %v4024_v22  ;;  %v10778_v49 = vld [vmem:[#allocation56_spill] sm:$0xff] }
 0x6f1   :  { %v9470_v1 = vpop.f32.mrf.mxu0 }
 0x6f2   :  { %10772 = vst [vmem:[#allocation94_spill] sm:$0xff] %v9470_v1  ;;  %v9472_v10 = vadd.f32 %v4361_v6, %v4193_v43 }
 0x6f4   :  { %10773 = vst [vmem:[#allocation95_spill] sm:$0xff] %v9472_v10 }
 0x6f5   :  { %v4025_v59 = vpop.f32.mrf.mxu2 }
 0x6f6   :  { %v9474_v21 = vadd.f32 %v4025_v59, %v3857_v36  ;;  %v9476_v31 = vpop.f32.mrf.mxu3 }
 0x6f7   :  { %10775 = vst [vmem:[#allocation43_spill] sm:$0xff] %v9476_v31  ;;  %v3859_v60 = vpop.f32.mrf.mxu1  ;;  %v10783_v31 = vld [vmem:[#allocation48_spill] sm:$0xff] }
 0x6f8   :  { %10774 = vst [vmem:[#allocation96_spill] sm:$0xff] %v9474_v21  ;;  %v3860_v16 = vadd.f32 %v3859_v60, %v9125_v27  ;;  %v10784_v21 = vld [vmem:[#allocation77_spill] sm:$0xff] }
 0x6f9   :  { %v4366_v42 = vpop.f32.mrf.mxu0 }
 0x6fa   :  { %4414 = vmatmul.bf16.gmra.mxu1 %v10776_v47  ;;  %4907 = vmatmul.bf16.gmra.mxu2 %v10777_v4 }
 0x6fd   :  { %v4028_v22 = vpop.f32.mrf.mxu2 }
 0x6fe   :  { %v4029_v34 = vadd.f32 %v4028_v22, %v3860_v16  ;;  %v4197_v63 = vpop.f32.mrf.mxu3  ;;  %v10785_v16 = vld [vmem:[#allocation133_spill] sm:$0xff] }
 0x6ff   :  { %v3861_v6 = vpop.f32.mrf.mxu1 }
 0x700   :  { %v3862_v43 = vadd.f32 %v3861_v6, %v10778_v49  ;;  %v4198_v59 = vadd.f32 %v4197_v63, %v4029_v34  ;;  %v10786_v49 = vld [vmem:[#allocation64_spill] sm:$0xff] }
 0x701   :  { %v9482_v36 = vpop.f32.mrf.mxu0 }
 0x702   :  { %10779 = vst [vmem:[#allocation100_spill] sm:$0xff] %v9482_v36  ;;  %v9484_v10 = vadd.f32 %v4366_v42, %v4198_v59 }
 0x704   :  { %10780 = vst [vmem:[#allocation105_spill] sm:$0xff] %v9484_v10 }
 0x705   :  { %v4030_v1 = vpop.f32.mrf.mxu2 }
 0x706   :  { %v9486_v27 = vadd.f32 %v4030_v1, %v3862_v43  ;;  %v9488_v60 = vpop.f32.mrf.mxu3 }
 0x707   :  { %10782 = vst [vmem:[#allocation103_spill] sm:$0xff] %v9488_v60  ;;  %v3864_v47 = vpop.f32.mrf.mxu1 }
 0x708   :  { %10781 = vst [vmem:[#allocation102_spill] sm:$0xff] %v9486_v27  ;;  %v3865_v4 = vadd.f32 %v3864_v47, %v10783_v31 }
 0x709   :  { %v4371_v41 = vpop.f32.mrf.mxu0 }
 0x70a   :  { %4419 = vmatmul.bf16.gmra.mxu1 %v10784_v21  ;;  %4912 = vmatmul.bf16.gmra.mxu2 %v10785_v16  ;;  %v10791_v21 = vld [vmem:[#allocation61_spill] sm:$0xff]  ;;  %v10792_v16 = vld [vmem:[#allocation84_spill] sm:$0xff] }
 0x70d   :  { %v4033_v22 = vpop.f32.mrf.mxu2 }
 0x70e   :  { %v4034_v6 = vadd.f32 %v4033_v22, %v3865_v4  ;;  %v4202_v34 = vpop.f32.mrf.mxu3  ;;  %v10793_v4 = vld [vmem:[#allocation206_spill] sm:$0xff] }
 0x70f   :  { %v3866_v63 = vpop.f32.mrf.mxu1 }
 0x710   :  { %v3867_v42 = vadd.f32 %v3866_v63, %v10786_v49  ;;  %v4203_v59 = vadd.f32 %v4202_v34, %v4034_v6  ;;  %v10794_v49 = vld [vmem:[#allocation62_spill] sm:$0xff] }
 0x711   :  { %v9494_v10 = vpop.f32.mrf.mxu0 }
 0x712   :  { %10787 = vst [vmem:[#allocation104_spill] sm:$0xff] %v9494_v10  ;;  %v9496_v1 = vadd.f32 %v4371_v41, %v4203_v59 }
 0x714   :  { %10788 = vst [vmem:[#allocation47_spill] sm:$0xff] %v9496_v1 }
 0x715   :  { %v4035_v43 = vpop.f32.mrf.mxu2 }
 0x716   :  { %v9498_v36 = vadd.f32 %v4035_v43, %v3867_v42  ;;  %v9500_v31 = vpop.f32.mrf.mxu3 }
 0x717   :  { %10790 = vst [vmem:[#allocation20_spill] sm:$0xff] %v9500_v31  ;;  %v3869_v47 = vpop.f32.mrf.mxu1 }
 0x718   :  { %10789 = vst [vmem:[#allocation110_spill] sm:$0xff] %v9498_v36  ;;  %v3870_v60 = vadd.f32 %v3869_v47, %v10791_v21 }
 0x719   :  { %v4376_v22 = vpop.f32.mrf.mxu0 }
 0x71a   :  { %4424 = vmatmul.bf16.gmra.mxu1 %v10792_v16  ;;  %4917 = vmatmul.bf16.gmra.mxu2 %v10793_v4  ;;  %v10799_v4 = vld [vmem:[#allocation85_spill] sm:$0xff] }
 0x71d   :  { %v4038_v27 = vpop.f32.mrf.mxu2 }
 0x71e   :  { %v4039_v63 = vadd.f32 %v4038_v27, %v3870_v60  ;;  %v4207_v6 = vpop.f32.mrf.mxu3  ;;  %v10800_v27 = vld [vmem:[#allocation134_spill] sm:$0xff] }
 0x71f   :  { %v3871_v34 = vpop.f32.mrf.mxu1 }
 0x720   :  { %v3872_v41 = vadd.f32 %v3871_v34, %v10794_v49  ;;  %v4208_v59 = vadd.f32 %v4207_v6, %v4039_v63  ;;  %v10801_v6 = vld [vmem:[#allocation54_spill] sm:$0xff] }
 0x721   :  { %v9508_v43 = vpop.f32.mrf.mxu0 }
 0x722   :  { %v9506_v1 = vadd.f32 %v4376_v22, %v4208_v59  ;;  %10796 = vst [vmem:[#allocation108_spill] sm:$0xff] %v9508_v43 }
 0x724   :  { %10795 = vst [vmem:[#allocation107_spill] sm:$0xff] %v9506_v1 }
 0x725   :  { %v4040_v42 = vpop.f32.mrf.mxu2 }
 0x726   :  { %v9510_v10 = vadd.f32 %v4040_v42, %v3872_v41  ;;  %v9512_v47 = vpop.f32.mrf.mxu3 }
 0x727   :  { %10798 = vst [vmem:[#allocation16_spill] sm:$0xff] %v9512_v47  ;;  %v3874_v21 = vpop.f32.mrf.mxu1  ;;  %v10804_v47 = vld [vmem:[#allocation93_spill] sm:$0xff] }
 0x728   :  { %10797 = vst [vmem:[#allocation109_spill] sm:$0xff] %v9510_v10  ;;  %v3875_v16 = vadd.f32 %v3874_v21, %v9167_v38  ;;  %v10805_v38 = vld [vmem:[#allocation207_spill] sm:$0xff]  ;;  %v7428_v21 = vld [vmem:[#allocation10 + $0x8] sm:$0xff] }
 0x729   :  { %v4381_v22 = vpop.f32.mrf.mxu0  ;;  %5387 = vmatpush.bf16.msra.mxu0 %v7428_v21  ;;  %v10807_v10 = vld [vmem:[#allocation67_spill] sm:$0xff] }
 0x72a   :  { %4429 = vmatmul.bf16.gmra.mxu1 %v10799_v4  ;;  %4922 = vmatmul.bf16.gmra.mxu2 %v10800_v27 }
 0x72d   :  { %v4043_v60 = vpop.f32.mrf.mxu2 }
 0x72e   :  { %v4044_v31 = vadd.f32 %v4043_v60, %v3875_v16  ;;  %v4212_v34 = vpop.f32.mrf.mxu3  ;;  %v10806_v16 = vld [vmem:[#allocation31_spill] sm:$0xff] }
 0x72f   :  { %v3876_v63 = vpop.f32.mrf.mxu1 }
 0x730   :  { %v3877_v49 = vadd.f32 %v3876_v63, %v10801_v6  ;;  %v4213_v59 = vadd.f32 %v4212_v34, %v4044_v31 }
 0x732   :  { %v9518_v1 = vadd.f32 %v4381_v22, %v4213_v59  ;;  %v10808_v59 = vld [vmem:[#allocation101_spill] sm:$0xff] }
 0x734   :  { %10802 = vst [vmem:[#allocation117_spill] sm:$0xff] %v9518_v1 }
 0x735   :  { %v4045_v41 = vpop.f32.mrf.mxu2 }
 0x736   :  { %v9520_v42 = vadd.f32 %v4045_v41, %v3877_v49 }
 0x737   :  { %v4395_v43 = vpop.f32.mrf.mxu1 }
 0x738   :  { %10803 = vst [vmem:[#allocation24_spill] sm:$0xff] %v9520_v42  ;;  %v4396_v27 = vadd.f32 %v4395_v43, %v10806_v16 }
 0x73a   :  { %4434 = vmatmul.bf16.gmra.mxu1 %v10804_v47  ;;  %4927 = vmatmul.bf16.gmra.mxu2 %v10805_v38  ;;  %v4556_v31 = vmax.f32 %v4396_v27, 0.0  ;;  %v10809_v47 = vld [vmem:[#allocation208_spill] sm:$0xff] }
 0x73d   :  { %v9524_v4 = vpop.f32.mrf.mxu2 }
 0x73f   :  { %v4397_v60 = vpop.f32.mrf.mxu1 }
 0x740   :  { %v4398_v63 = vadd.f32 %v4397_v60, %v10807_v10 }
 0x742   :  { %v4558_v34 = vmax.f32 %v4398_v63, 0.0 }
 0x744   :  { %v4684_v22 = vpack.c.bf16 %v4558_v34, %v4556_v31  ;;  %v10810_v31 = vld [vmem:[#allocation116_spill] sm:$0xff]  ;;  %v10811_v34 = vld [vmem:[#allocation210_spill] sm:$0xff] }
 0x745   :  { %v9528_v6 = vpop.f32.mrf.mxu2 }
 0x746   :  { %5056 = vmatmul.bf16.vlgmr.msra.gmra.mxu3 %v4684_v22 }
 0x747   :  { %v4400_v49 = vpop.f32.mrf.mxu1 }
 0x748   :  { %v4401_v38 = vadd.f32 %v4400_v49, %v9190_v44 }
 0x74a   :  { %4439 = vmatmul.bf16.gmra.mxu1 %v10808_v59  ;;  %4932 = vmatmul.bf16.gmra.mxu2 %v10809_v47  ;;  %v4560_v16 = vmax.f32 %v4401_v38, 0.0 }
 0x74d   :  { %v9532_v41 = vpop.f32.mrf.mxu2 }
 0x74f   :  { %v4402_v21 = vpop.f32.mrf.mxu1 }
 0x750   :  { %v4403_v43 = vadd.f32 %v4402_v21, %v9193_v18 }
 0x752   :  { %v4562_v10 = vmax.f32 %v4403_v43, 0.0 }
 0x754   :  { %v4686_v27 = vpack.c.bf16 %v4562_v10, %v4560_v16  ;;  %v10812_v16 = vld [vmem:[#allocation112_spill] sm:$0xff]  ;;  %v10813_v10 = vld [vmem:[#allocation150_spill] sm:$0xff] }
 0x755   :  { %v9536_v60 = vpop.f32.mrf.mxu2 }
 0x756   :  { %5061 = vmatmul.bf16.gmra.mxu3 %v4686_v27 }
 0x757   :  { %v4405_v63 = vpop.f32.mrf.mxu1 }
 0x758   :  { %v4406_v59 = vadd.f32 %v4405_v63, %v9200_v57 }
 0x75a   :  { %4444 = vmatmul.bf16.gmra.mxu1 %v10810_v31  ;;  %4937 = vmatmul.bf16.gmra.mxu2 %v10811_v34  ;;  %v4564_v49 = vmax.f32 %v4406_v59, 0.0 }
 0x75d   :  { %v9540_v22 = vpop.f32.mrf.mxu2 }
 0x75f   :  { %v4407_v47 = vpop.f32.mrf.mxu1 }
 0x760   :  { %v4408_v44 = vadd.f32 %v4407_v47, %v9203_v8 }
 0x762   :  { %v4566_v18 = vmax.f32 %v4408_v44, 0.0 }
 0x764   :  { %v4688_v38 = vpack.c.bf16 %v4566_v18, %v4564_v49  ;;  %v10814_v49 = vld [vmem:[#allocation28_spill] sm:$0xff]  ;;  %v10815_v18 = vld [vmem:[#allocation211_spill] sm:$0xff] }
 0x765   :  { %v9544_v21 = vpop.f32.mrf.mxu2 }
 0x766   :  { %5066 = vmatmul.bf16.gmra.mxu3 %v4688_v38  ;;  %v7427_v38 = vld [vmem:[#allocation10] sm:$0xff] }
 0x767   :  { %v4410_v43 = vpop.f32.mrf.mxu1  ;;  %5388 = vmatpush.bf16.msra.mxu0 %v7427_v38 }
 0x768   :  { %v4411_v31 = vadd.f32 %v4410_v43, %v9210_v54 }
 0x76a   :  { %4449 = vmatmul.bf16.gmra.mxu1 %v10812_v16  ;;  %4942 = vmatmul.bf16.gmra.mxu2 %v10813_v10  ;;  %v4568_v63 = vmax.f32 %v4411_v31, 0.0 }
 0x76d   :  { %v9548_v27 = vpop.f32.mrf.mxu2 }
 0x76f   :  { %v4412_v34 = vpop.f32.mrf.mxu1 }
 0x770   :  { %v4413_v57 = vadd.f32 %v4412_v34, %v9213_v20 }
 0x772   :  { %v4570_v8 = vmax.f32 %v4413_v57, 0.0 }
 0x774   :  { %v4690_v59 = vpack.c.bf16 %v4570_v8, %v4568_v63  ;;  %v10816_v8 = vld [vmem:[#allocation203_spill] sm:$0xff] }
 0x775   :  { %v9552_v47 = vpop.f32.mrf.mxu2 }
 0x776   :  { %5071 = vmatmul.bf16.gmra.mxu3 %v4690_v59  ;;  %v10817_v59 = vld [vmem:[#allocation212_spill] sm:$0xff] }
 0x777   :  { %v4415_v44 = vpop.f32.mrf.mxu1 }
 0x778   :  { %v4416_v54 = vadd.f32 %v4415_v44, %v9220_v46 }
 0x77a   :  { %4454 = vmatmul.bf16.gmra.mxu1 %v10814_v49  ;;  %4947 = vmatmul.bf16.gmra.mxu2 %v10815_v18  ;;  %v4572_v10 = vmax.f32 %v4416_v54, 0.0 }
 0x77d   :  { %v9556_v16 = vpop.f32.mrf.mxu2 }
 0x77f   :  { %v4417_v43 = vpop.f32.mrf.mxu1 }
 0x780   :  { %v4418_v20 = vadd.f32 %v4417_v43, %v9223_v52 }
 0x782   :  { %v4574_v31 = vmax.f32 %v4418_v20, 0.0 }
 0x784   :  { %v4692_v34 = vpack.c.bf16 %v4574_v31, %v4572_v10  ;;  %v10818_v10 = vld [vmem:[#allocation124_spill] sm:$0xff]  ;;  %v10819_v31 = vld [vmem:[#allocation214_spill] sm:$0xff] }
 0x785   :  { %v9560_v57 = vpop.f32.mrf.mxu2 }
 0x786   :  { %5076 = vmatmul.bf16.gmra.mxu3 %v4692_v34 }
 0x787   :  { %v4420_v63 = vpop.f32.mrf.mxu1 }
 0x788   :  { %v4421_v18 = vadd.f32 %v4420_v63, %v9230_v13 }
 0x78a   :  { %4459 = vmatmul.bf16.gmra.mxu1 %v10816_v8  ;;  %4952 = vmatmul.bf16.gmra.mxu2 %v10817_v59  ;;  %v4576_v44 = vmax.f32 %v4421_v18, 0.0 }
 0x78d   :  { %v9564_v49 = vpop.f32.mrf.mxu2 }
 0x78f   :  { %v4422_v38 = vpop.f32.mrf.mxu1 }
 0x790   :  { %v4423_v46 = vadd.f32 %v4422_v38, %v9233_v17 }
 0x792   :  { %v4578_v52 = vmax.f32 %v4423_v46, 0.0 }
 0x794   :  { %v4694_v54 = vpack.c.bf16 %v4578_v52, %v4576_v44  ;;  %v10820_v44 = vld [vmem:[#allocation205_spill] sm:$0xff]  ;;  %v10821_v52 = vld [vmem:[#allocation166_spill] sm:$0xff] }
 0x795   :  { %v9568_v43 = vpop.f32.mrf.mxu2 }
 0x796   :  { %5081 = vmatmul.bf16.gmra.mxu3 %v4694_v54 }
 0x797   :  { %v4425_v20 = vpop.f32.mrf.mxu1 }
 0x798   :  { %v4426_v8 = vadd.f32 %v4425_v20, %v9240_v11 }
 0x79a   :  { %4464 = vmatmul.bf16.gmra.mxu1 %v10818_v10  ;;  %4957 = vmatmul.bf16.gmra.mxu2 %v10819_v31  ;;  %v4580_v63 = vmax.f32 %v4426_v8, 0.0 }
 0x79d   :  { %v9572_v34 = vpop.f32.mrf.mxu2 }
 0x79f   :  { %v4427_v59 = vpop.f32.mrf.mxu1 }
 0x7a0   :  { %v4428_v13 = vadd.f32 %v4427_v59, %v9243_v2 }
 0x7a2   :  { %v4582_v17 = vmax.f32 %v4428_v13, 0.0 }
 0x7a4   :  { %v4696_v18 = vpack.c.bf16 %v4582_v17, %v4580_v63  ;;  %v10822_v63 = vld [vmem:[#allocation44_spill] sm:$0xff] }
 0x7a5   :  { %v9576_v38 = vpop.f32.mrf.mxu2  ;;  %v10823_v17 = vld [vmem:[#allocation216_spill] sm:$0xff] }
 0x7a6   :  { %5086 = vmatmul.bf16.gmra.mxu3 %v4696_v18 }
 0x7a7   :  { %v4430_v46 = vpop.f32.mrf.mxu1 }
 0x7a8   :  { %v4431_v54 = vadd.f32 %v4430_v46, %v9250_v45  ;;  %v9590_v46 = vpop.f32.mrf.mxu3 }
 0x7a9   :  { %10824 = vst [vmem:[#allocation113_spill] sm:$0xff] %v9590_v46 }
 0x7aa   :  { %4469 = vmatmul.bf16.gmra.mxu1 %v10820_v44  ;;  %4962 = vmatmul.bf16.gmra.mxu2 %v10821_v52  ;;  %v4584_v20 = vmax.f32 %v4431_v54, 0.0 }
 0x7ad   :  { %v9581_v31 = vpop.f32.mrf.mxu2 }
 0x7af   :  { %v4432_v10 = vpop.f32.mrf.mxu1 }
 0x7b0   :  { %v4433_v11 = vadd.f32 %v4432_v10, %v9253_v48 }
 0x7b2   :  { %v4586_v2 = vmax.f32 %v4433_v11, 0.0 }
 0x7b4   :  { %v4698_v8 = vpack.c.bf16 %v4586_v2, %v4584_v20  ;;  %v9597_v2 = vld [vmem:[%s9961_s4] ss:$0 sm:$0xff] }
 0x7b5   :  { %v9584_v13 = vpop.f32.mrf.mxu2 }
 0x7b6   :  { %5091 = vmatmul.bf16.gmra.mxu3 %v4698_v8  ;;  %v10825_v8 = vld [vmem:[#allocation17_spill] sm:$0xff] }
 0x7b7   :  { %v4435_v59 = vpop.f32.mrf.mxu1 }
 0x7b8   :  { %v4436_v18 = vadd.f32 %v4435_v59, %v9260_v37  ;;  %v10826_v37 = vld [vmem:[#allocation218_spill] sm:$0xff] }
 0x7ba   :  { %4474 = vmatmul.bf16.gmra.mxu1 %v10822_v63  ;;  %4967 = vmatmul.bf16.gmra.mxu2 %v10823_v17  ;;  %v4588_v52 = vmax.f32 %v4436_v18, 0.0  ;;  %v4891_v18 = vadd.f32 %v9597_v2, %v9528_v6  ;;  %v10828_v6 = vld [vmem:[#allocation221_spill] sm:$0xff] }
 0x7bd   :  { %v9592_v54 = vpop.f32.mrf.mxu2 }
 0x7bf   :  { %v4437_v44 = vpop.f32.mrf.mxu1 }
 0x7c0   :  { %v4438_v45 = vadd.f32 %v4437_v44, %v9263_v29  ;;  %v4889_v29 = vadd.f32 %v9597_v2, %v9524_v4 }
 0x7c2   :  { %v4590_v48 = vmax.f32 %v4438_v45, 0.0 }
 0x7c4   :  { %v4700_v10 = vpack.c.bf16 %v4590_v48, %v4588_v52 }
 0x7c5   :  { %v9603_v59 = vpop.f32.mrf.mxu2 }
 0x7c6   :  { %5096 = vmatmul.bf16.gmra.mxu3 %v4700_v10 }
 0x7c7   :  { %v4440_v11 = vpop.f32.mrf.mxu1 }
 0x7c8   :  { %v4441_v63 = vadd.f32 %v4440_v11, %v9270_v32  ;;  %v10827_v11 = vld [vmem:[#allocation148_spill] sm:$0xff] }
 0x7c9   :  { %v5057_v20 = vpop.f32.mrf.mxu3 }
 0x7ca   :  { %4479 = vmatmul.bf16.gmra.mxu1 %v10825_v8  ;;  %4972 = vmatmul.bf16.gmra.mxu2 %v10826_v37  ;;  %v5058_v44 = vadd.f32 %v5057_v20, %v4889_v29  ;;  %v4592_v48 = vmax.f32 %v4441_v63, 0.0  ;;  %v4896_v63 = vadd.f32 %v9597_v2, %v9536_v60  ;;  %v10830_v60 = vld [vmem:[#allocation222_spill] sm:$0xff] }
 0x7cc   :  { %v5217_v1 = vmax.f32 %v5058_v44, 0.0 }
 0x7cd   :  { %v9609_v36 = vpop.f32.mrf.mxu2 }
 0x7cf   :  { %v4442_v17 = vpop.f32.mrf.mxu1 }
 0x7d0   :  { %v4443_v45 = vadd.f32 %v4442_v17, %v9273_v0  ;;  %v4894_v0 = vadd.f32 %v9597_v2, %v9532_v41 }
 0x7d1   :  { %v5059_v52 = vpop.f32.mrf.mxu3 }
 0x7d2   :  { %v4594_v10 = vmax.f32 %v4443_v45, 0.0  ;;  %v5060_v8 = vadd.f32 %v5059_v52, %v4891_v18 }
 0x7d4   :  { %v5218_v37 = vmax.f32 %v5060_v8, 0.0  ;;  %v4702_v46 = vpack.c.bf16 %v4594_v10, %v4592_v48 }
 0x7d5   :  { %v9619_v18 = vpop.f32.mrf.mxu2 }
 0x7d6   :  { %v5281_v42 = vpack.c.bf16 %v5218_v37, %v5217_v1  ;;  %5101 = vmatmul.bf16.gmra.mxu3 %v4702_v46  ;;  %v10829_v37 = vld [vmem:[#allocation209_spill] sm:$0xff] }
 0x7d7   :  { %v4445_v4 = vpop.f32.mrf.mxu1 }
 0x7d8   :  { %5389 = vmatmul.bf16.vlgmr.msra.gmra.mxu0 %v5281_v42  ;;  %v4446_v20 = vadd.f32 %v4445_v4, %v9280_v62 }
 0x7d9   :  { %v5062_v32 = vpop.f32.mrf.mxu3 }
 0x7da   :  { %4484 = vmatmul.bf16.gmra.mxu1 %v10827_v11  ;;  %4977 = vmatmul.bf16.gmra.mxu2 %v10828_v6  ;;  %v5063_v1 = vadd.f32 %v5062_v32, %v4894_v0  ;;  %v4596_v42 = vmax.f32 %v4446_v20, 0.0  ;;  %v4901_v6 = vadd.f32 %v9597_v2, %v9544_v21  ;;  %v10832_v21 = vld [vmem:[#allocation223_spill] sm:$0xff] }
 0x7dc   :  { %v5219_v52 = vmax.f32 %v5063_v1, 0.0 }
 0x7dd   :  { %v9623_v4 = vpop.f32.mrf.mxu2 }
 0x7df   :  { %v4447_v29 = vpop.f32.mrf.mxu1 }
 0x7e0   :  { %v4448_v46 = vadd.f32 %v4447_v29, %v9283_v50  ;;  %v4899_v50 = vadd.f32 %v9597_v2, %v9540_v22 }
 0x7e1   :  { %v5064_v17 = vpop.f32.mrf.mxu3 }
 0x7e2   :  { %v4598_v44 = vmax.f32 %v4448_v46, 0.0  ;;  %v5065_v45 = vadd.f32 %v5064_v17, %v4896_v63 }
 0x7e4   :  { %v5220_v48 = vmax.f32 %v5065_v45, 0.0  ;;  %v4704_v10 = vpack.c.bf16 %v4598_v44, %v4596_v42 }
 0x7e5   :  { %v9631_v45 = vpop.f32.mrf.mxu2 }
 0x7e6   :  { %5106 = vmatmul.bf16.gmra.mxu3 %v4704_v10  ;;  %v5282_v41 = vpack.c.bf16 %v5220_v48, %v5219_v52  ;;  %v10831_v48 = vld [vmem:[#allocation29_spill] sm:$0xff] }
 0x7e7   :  { %v4450_v8 = vpop.f32.mrf.mxu1 }
 0x7e8   :  { %5394 = vmatmul.bf16.gmra.mxu0 %v5282_v41  ;;  %v4451_v32 = vadd.f32 %v4450_v8, %v9290_v3  ;;  %v4906_v8 = vadd.f32 %v9597_v2, %v9552_v47  ;;  %v10833_v47 = vld [vmem:[#allocation33_spill] sm:$0xff] }
 0x7e9   :  { %v5067_v62 = vpop.f32.mrf.mxu3 }
 0x7ea   :  { %4489 = vmatmul.bf16.gmra.mxu1 %v10829_v37  ;;  %4982 = vmatmul.bf16.gmra.mxu2 %v10830_v60  ;;  %v5068_v0 = vadd.f32 %v5067_v62, %v4899_v50  ;;  %v4600_v63 = vmax.f32 %v4451_v32, 0.0 }
 0x7ec   :  { %v5221_v17 = vmax.f32 %v5068_v0, 0.0 }
 0x7ed   :  { %v9640_v62 = vpop.f32.mrf.mxu2 }
 0x7ef   :  { %v4452_v11 = vpop.f32.mrf.mxu1 }
 0x7f0   :  { %v4453_v20 = vadd.f32 %v4452_v11, %v9293_v14  ;;  %v4904_v14 = vadd.f32 %v9597_v2, %v9548_v27 }
 0x7f1   :  { %v5069_v29 = vpop.f32.mrf.mxu3 }
 0x7f2   :  { %v4602_v1 = vmax.f32 %v4453_v20, 0.0  ;;  %v5070_v46 = vadd.f32 %v5069_v29, %v4901_v6 }
 0x7f4   :  { %v5222_v42 = vmax.f32 %v5070_v46, 0.0  ;;  %v4706_v44 = vpack.c.bf16 %v4602_v1, %v4600_v63  ;;  %v10834_v46 = vld [vmem:[#allocation224_spill] sm:$0xff] }
 0x7f5   :  { %v9643_v1 = vpop.f32.mrf.mxu2 }
 0x7f6   :  { %5111 = vmatmul.bf16.gmra.mxu3 %v4706_v44  ;;  %v5283_v22 = vpack.c.bf16 %v5222_v42, %v5221_v17  ;;  %v4911_v44 = vadd.f32 %v9597_v2, %v9560_v57  ;;  %v10836_v57 = vld [vmem:[#allocation225_spill] sm:$0xff] }
 0x7f7   :  { %v4455_v52 = vpop.f32.mrf.mxu1 }
 0x7f8   :  { %5399 = vmatmul.bf16.gmra.mxu0 %v5283_v22  ;;  %v4456_v10 = vadd.f32 %v4455_v52, %v9300_v61 }
 0x7f9   :  { %v5072_v3 = vpop.f32.mrf.mxu3 }
 0x7fa   :  { %4494 = vmatmul.bf16.gmra.mxu1 %v10831_v48  ;;  %4987 = vmatmul.bf16.gmra.mxu2 %v10832_v21  ;;  %v5073_v37 = vadd.f32 %v5072_v3, %v4904_v14  ;;  %v4604_v32 = vmax.f32 %v4456_v10, 0.0 }
 0x7fc   :  { %v5223_v0 = vmax.f32 %v5073_v37, 0.0 }
 0x7fd   :  { %v9653_v10 = vpop.f32.mrf.mxu2 }
 0x7ff   :  { %v4457_v41 = vpop.f32.mrf.mxu1 }
 0x800   :  { %v4458_v60 = vadd.f32 %v4457_v41, %v9303_v12  ;;  %v4909_v12 = vadd.f32 %v9597_v2, %v9556_v16 }
 0x801   :  { %v5074_v50 = vpop.f32.mrf.mxu3 }
 0x802   :  { %v4606_v11 = vmax.f32 %v4458_v60, 0.0  ;;  %v5075_v6 = vadd.f32 %v5074_v50, %v4906_v8  ;;  %v10835_v50 = vld [vmem:[#allocation164_spill] sm:$0xff] }
 0x804   :  { %v5224_v20 = vmax.f32 %v5075_v6, 0.0  ;;  %v4708_v29 = vpack.c.bf16 %v4606_v11, %v4604_v32 }
 0x805   :  { %v9659_v32 = vpop.f32.mrf.mxu2 }
 0x806   :  { %5116 = vmatmul.bf16.gmra.mxu3 %v4708_v29  ;;  %v5284_v27 = vpack.c.bf16 %v5224_v20, %v5223_v0  ;;  %v4916_v0 = vadd.f32 %v9597_v2, %v9568_v43  ;;  %v10838_v43 = vld [vmem:[#allocation46_spill] sm:$0xff] }
 0x807   :  { %v4460_v63 = vpop.f32.mrf.mxu1 }
 0x808   :  { %5404 = vmatmul.bf16.gmra.mxu0 %v5284_v27  ;;  %v4461_v17 = vadd.f32 %v4460_v63, %v9310_v23 }
 0x809   :  { %v5077_v61 = vpop.f32.mrf.mxu3 }
 0x80a   :  { %4499 = vmatmul.bf16.gmra.mxu1 %v10833_v47  ;;  %4992 = vmatmul.bf16.gmra.mxu2 %v10834_v46  ;;  %v5078_v22 = vadd.f32 %v5077_v61, %v4909_v12  ;;  %v4608_v48 = vmax.f32 %v4461_v17, 0.0 }
 0x80c   :  { %v5225_v41 = vmax.f32 %v5078_v22, 0.0  ;;  %v10837_v22 = vld [vmem:[#allocation213_spill] sm:$0xff] }
 0x80f   :  { %v4462_v42 = vpop.f32.mrf.mxu1 }
 0x810   :  { %v4463_v52 = vadd.f32 %v4462_v42, %v9313_v26  ;;  %v4914_v26 = vadd.f32 %v9597_v2, %v9564_v49 }
 0x811   :  { %v5079_v3 = vpop.f32.mrf.mxu3 }
 0x812   :  { %v4610_v21 = vmax.f32 %v4463_v52, 0.0  ;;  %v5080_v14 = vadd.f32 %v5079_v3, %v4911_v44  ;;  %v9665_v44 = vpop.f32.mrf.mxu2 }
 0x814   :  { %v5226_v8 = vmax.f32 %v5080_v14, 0.0  ;;  %v4710_v37 = vpack.c.bf16 %v4610_v21, %v4608_v48  ;;  %v4921_v48 = vadd.f32 %v9597_v2, %v9576_v38  ;;  %v10840_v38 = vld [vmem:[#allocation19_spill] sm:$0xff] }
 0x816   :  { %5121 = vmatmul.bf16.gmra.mxu3 %v4710_v37  ;;  %v5285_v16 = vpack.c.bf16 %v5226_v8, %v5225_v41 }
 0x817   :  { %v4465_v60 = vpop.f32.mrf.mxu1 }
 0x818   :  { %5409 = vmatmul.bf16.gmra.mxu0 %v5285_v16  ;;  %v4466_v11 = vadd.f32 %v4465_v60, %v9320_v33 }
 0x819   :  { %v5082_v23 = vpop.f32.mrf.mxu3 }
 0x81a   :  { %4504 = vmatmul.bf16.gmra.mxu1 %v10835_v50  ;;  %4997 = vmatmul.bf16.gmra.mxu2 %v10836_v57  ;;  %v5083_v20 = vadd.f32 %v5082_v23, %v4914_v26  ;;  %v4612_v63 = vmax.f32 %v4466_v11, 0.0  ;;  %v9675_v8 = vpop.f32.mrf.mxu2  ;;  %v10839_v11 = vld [vmem:[#allocation45_spill] sm:$0xff] }
 0x81c   :  { %v5227_v46 = vmax.f32 %v5083_v20, 0.0 }
 0x81f   :  { %v4467_v6 = vpop.f32.mrf.mxu1 }
 0x820   :  { %v4468_v29 = vadd.f32 %v4467_v6, %v9323_v40  ;;  %v4919_v40 = vadd.f32 %v9597_v2, %v9572_v34 }
 0x821   :  { %v5084_v27 = vpop.f32.mrf.mxu3 }
 0x822   :  { %v4614_v61 = vmax.f32 %v4468_v29, 0.0  ;;  %v5085_v47 = vadd.f32 %v5084_v27, %v4916_v0  ;;  %v9679_v6 = vpop.f32.mrf.mxu2  ;;  %v10841_v0 = vld [vmem:[#allocation68_spill] sm:$0xff]  ;;  %v4926_v27 = vadd.f32 %v9597_v2, %v9584_v13  ;;  %v10844_v13 = vld [vmem:[#allocation49_spill] sm:$0xff] }
 0x824   :  { %v5228_v12 = vmax.f32 %v5085_v47, 0.0  ;;  %v4712_v17 = vpack.c.bf16 %v4614_v61, %v4612_v63  ;;  %v10842_v61 = vld [vmem:[#allocation69_spill] sm:$0xff] }
 0x826   :  { %5126 = vmatmul.bf16.gmra.mxu3 %v4712_v17  ;;  %v5286_v49 = vpack.c.bf16 %v5228_v12, %v5227_v46 }
 0x827   :  { %v4470_v42 = vpop.f32.mrf.mxu1 }
 0x828   :  { %5414 = vmatmul.bf16.gmra.mxu0 %v5286_v49  ;;  %v4471_v52 = vadd.f32 %v4470_v42, %v9330_v58 }
 0x829   :  { %v5087_v33 = vpop.f32.mrf.mxu3 }
 0x82a   :  { %4509 = vmatmul.bf16.gmra.mxu1 %v10837_v22  ;;  %5002 = vmatmul.bf16.gmra.mxu2 %v10838_v43  ;;  %v5088_v21 = vadd.f32 %v5087_v33, %v4919_v40  ;;  %v4616_v37 = vmax.f32 %v4471_v52, 0.0  ;;  %v9687_v43 = vpop.f32.mrf.mxu2 }
 0x82c   :  { %v5229_v23 = vmax.f32 %v5088_v21, 0.0  ;;  %v4929_v21 = vadd.f32 %v9597_v2, %v9592_v54 }
 0x82f   :  { %v4472_v3 = vpop.f32.mrf.mxu1 }
 0x830   :  { %v4473_v14 = vadd.f32 %v4472_v3, %v9333_v51  ;;  %v4924_v51 = vadd.f32 %v9597_v2, %v9581_v31  ;;  %v10843_v3 = vld [vmem:[#allocation215_spill] sm:$0xff] }
 0x831   :  { %v5089_v41 = vpop.f32.mrf.mxu3 }
 0x832   :  { %v4618_v16 = vmax.f32 %v4473_v14, 0.0  ;;  %v5090_v60 = vadd.f32 %v5089_v41, %v4921_v48  ;;  %v9691_v48 = vpop.f32.mrf.mxu0  ;;  %v10845_v14 = vld [vmem:[#allocation60_spill] sm:$0xff] }
 0x834   :  { %v5230_v50 = vmax.f32 %v5090_v60, 0.0  ;;  %v4714_v57 = vpack.c.bf16 %v4618_v16, %v4616_v37  ;;  %v4931_v16 = vadd.f32 %v9597_v2, %v9603_v59  ;;  %v9698_v60 = vpop.f32.mrf.mxu2 }
 0x836   :  { %5131 = vmatmul.bf16.gmra.mxu3 %v4714_v57  ;;  %v5287_v34 = vpack.c.bf16 %v5230_v50, %v5229_v23  ;;  %v10846_v50 = vld [vmem:[#allocation76_spill] sm:$0xff] }
 0x837   :  { %v4475_v26 = vpop.f32.mrf.mxu1 }
 0x838   :  { %5419 = vmatmul.bf16.gmra.mxu0 %v5287_v34  ;;  %v4476_v20 = vadd.f32 %v4475_v26, %v10841_v0 }
 0x839   :  { %v5092_v58 = vpop.f32.mrf.mxu3 }
 0x83a   :  { %4514 = vmatmul.bf16.gmra.mxu1 %v10839_v11  ;;  %5007 = vmatmul.bf16.gmra.mxu2 %v10840_v38  ;;  %v5093_v63 = vadd.f32 %v5092_v58, %v4924_v51  ;;  %v4620_v12 = vmax.f32 %v4476_v20, 0.0  ;;  %v9704_v38 = vld [vmem:[%s9963_s6] ss:$0 sm:$0xff] }
 0x83c   :  { %v5231_v42 = vmax.f32 %v5093_v63, 0.0 }
 0x83f   :  { %v4477_v29 = vpop.f32.mrf.mxu1 }
 0x840   :  { %v4478_v47 = vadd.f32 %v4477_v29, %v10842_v61  ;;  %v9707_v61 = vpop.f32.mrf.mxu2 }
 0x841   :  { %v5094_v46 = vpop.f32.mrf.mxu3 }
 0x842   :  { %v4622_v17 = vmax.f32 %v4478_v47, 0.0  ;;  %v5095_v49 = vadd.f32 %v5094_v46, %v4926_v27  ;;  %v10847_v47 = vld [vmem:[#allocation217_spill] sm:$0xff]  ;;  %v10848_v46 = vld [vmem:[#allocation99_spill] sm:$0xff] }
 0x844   :  { %v5232_v33 = vmax.f32 %v5095_v49, 0.0  ;;  %v4716_v22 = vpack.c.bf16 %v4622_v17, %v4620_v12  ;;  %v4934_v17 = vadd.f32 %v9597_v2, %v9609_v36  ;;  %v10849_v49 = vld [vmem:[#allocation35_spill] sm:$0xff] }
 0x846   :  { %5136 = vmatmul.bf16.gmra.mxu3 %v4716_v22  ;;  %v5288_v31 = vpack.c.bf16 %v5232_v33, %v5231_v42 }
 0x847   :  { %v4480_v40 = vpop.f32.mrf.mxu1 }
 0x848   :  { %5424 = vmatmul.bf16.gmra.mxu0 %v5288_v31  ;;  %v4481_v41 = vadd.f32 %v4480_v40, %v10845_v14  ;;  %v4936_v31 = vadd.f32 %v9597_v2, %v9619_v18 }
 0x849   :  { %v5097_v52 = vpop.f32.mrf.mxu3 }
 0x84a   :  { %4519 = vmatmul.bf16.gmra.mxu1 %v10843_v3  ;;  %5012 = vmatmul.bf16.gmra.mxu2 %v10844_v13  ;;  %v5098_v23 = vadd.f32 %v5097_v52, %v4929_v21  ;;  %v4624_v26 = vmax.f32 %v4481_v41, 0.0  ;;  %v10850_v52 = vld [vmem:[#allocation73_spill] sm:$0xff] }
 0x84c   :  { %v5233_v54 = vmax.f32 %v5098_v23, 0.0 }
 0x84f   :  { %v4482_v37 = vpop.f32.mrf.mxu1 }
 0x850   :  { %v4483_v57 = vadd.f32 %v4482_v37, %v10846_v50  ;;  %v9718_v37 = vpop.f32.mrf.mxu2 }
 0x851   :  { %v5099_v34 = vpop.f32.mrf.mxu3 }
 0x852   :  { %v4626_v58 = vmax.f32 %v4483_v57, 0.0  ;;  %v5100_v11 = vadd.f32 %v5099_v34, %v4931_v16 }
 0x854   :  { %v5234_v51 = vmax.f32 %v5100_v11, 0.0  ;;  %v4718_v0 = vpack.c.bf16 %v4626_v58, %v4624_v26  ;;  %v10851_v58 = vld [vmem:[#allocation219_spill] sm:$0xff] }
 0x855   :  { %v5390_v20 = vpop.f32.mrf.mxu0  ;;  %v10852_v11 = vld [vmem:[#allocation55_spill] sm:$0xff] }
 0x856   :  { %v5391_v59 = vadd.f32 %v9704_v38, %v5390_v20  ;;  %5141 = vmatmul.bf16.gmra.mxu3 %v4718_v0  ;;  %v5289_v29 = vpack.c.bf16 %v5234_v51, %v5233_v54  ;;  %v4939_v51 = vadd.f32 %v9597_v2, %v9623_v4 }
 0x857   :  { %v4485_v27 = vpop.f32.mrf.mxu1 }
 0x858   :  { %5550 = vst [vmem:[#allocation11] sm:$0xff] %v5391_v59  ;;  %5429 = vmatmul.bf16.gmra.mxu0 %v5289_v29  ;;  %v4486_v42 = vadd.f32 %v4485_v27, %v10849_v49  ;;  %v9725_v0 = vpop.f32.mrf.mxu2  ;;  %v4941_v27 = vadd.f32 %v9597_v2, %v9631_v45 }
 0x859   :  { %v5102_v63 = vpop.f32.mrf.mxu3 }
 0x85a   :  { %4524 = vmatmul.bf16.gmra.mxu1 %v10847_v47  ;;  %5017 = vmatmul.bf16.gmra.mxu2 %v10848_v46  ;;  %v5103_v40 = vadd.f32 %v5102_v63, %v4934_v17  ;;  %v4628_v21 = vmax.f32 %v4486_v42, 0.0 }
 0x85c   :  { %v5235_v16 = vmax.f32 %v5103_v40, 0.0 }
 0x85d   :  { %v5392_v12 = vpop.f32.mrf.mxu0 }
 0x85e   :  { %v5393_v33 = vadd.f32 %v9704_v38, %v5392_v12 }
 0x85f   :  { %v4487_v22 = vpop.f32.mrf.mxu1 }
 0x860   :  { %5551 = vst [vmem:[#allocation11 + $0x8] sm:$0xff] %v5393_v33  ;;  %v4488_v3 = vadd.f32 %v4487_v22, %v10850_v52  ;;  %v9733_v52 = vpop.f32.mrf.mxu2 }
 0x861   :  { %v5104_v13 = vpop.f32.mrf.mxu3 }
 0x862   :  { %v4630_v14 = vmax.f32 %v4488_v3, 0.0  ;;  %v5105_v41 = vadd.f32 %v5104_v13, %v4936_v31  ;;  %v10853_v3 = vld [vmem:[#allocation190_spill] sm:$0xff]  ;;  %v10854_v13 = vld [vmem:[#allocation57_spill] sm:$0xff] }
 0x864   :  { %v5236_v36 = vmax.f32 %v5105_v41, 0.0  ;;  %v4720_v23 = vpack.c.bf16 %v4630_v14, %v4628_v21  ;;  %v10855_v14 = vld [vmem:[#allocation74_spill] sm:$0xff] }
 0x865   :  { %v5395_v50 = vpop.f32.mrf.mxu0 }
 0x866   :  { %v5396_v57 = vadd.f32 %v9704_v38, %v5395_v50  ;;  %5146 = vmatmul.bf16.gmra.mxu3 %v4720_v23  ;;  %v5290_v34 = vpack.c.bf16 %v5236_v36, %v5235_v16  ;;  %v4944_v16 = vadd.f32 %v9597_v2, %v9640_v62  ;;  %v10856_v36 = vld [vmem:[#allocation75_spill] sm:$0xff] }
 0x867   :  { %v4490_v26 = vpop.f32.mrf.mxu1 }
 0x868   :  { %5552 = vst [vmem:[#allocation11 + $0x10] sm:$0xff] %v5396_v57  ;;  %5434 = vmatmul.bf16.gmra.mxu0 %v5290_v34  ;;  %v4491_v20 = vadd.f32 %v4490_v26, %v9370_v19  ;;  %v4946_v34 = vadd.f32 %v9597_v2, %v9643_v1 }
 0x869   :  { %v5107_v18 = vpop.f32.mrf.mxu3 }
 0x86a   :  { %4529 = vmatmul.bf16.gmra.mxu1 %v10851_v58  ;;  %5022 = vmatmul.bf16.gmra.mxu2 %v10852_v11  ;;  %v5108_v63 = vadd.f32 %v5107_v18, %v4939_v51  ;;  %v4632_v12 = vmax.f32 %v4491_v20, 0.0  ;;  %v9746_v18 = vpop.f32.mrf.mxu2 }
 0x86c   :  { %v5237_v42 = vmax.f32 %v5108_v63, 0.0 }
 0x86d   :  { %v5397_v54 = vpop.f32.mrf.mxu0 }
 0x86e   :  { %v5398_v59 = vadd.f32 %v9704_v38, %v5397_v54 }
 0x86f   :  { %v4492_v29 = vpop.f32.mrf.mxu1 }
 0x870   :  { %5553 = vst [vmem:[#allocation11 + $0x18] sm:$0xff] %v5398_v59  ;;  %v4493_v47 = vadd.f32 %v4492_v29, %v9373_v28  ;;  %v4160_v28 = vadd.f32 %v9386_v24, %v9384_v30 }
 0x871   :  { %v5109_v46 = vpop.f32.mrf.mxu3 }
 0x872   :  { %v4634_v17 = vmax.f32 %v4493_v47, 0.0  ;;  %v5110_v49 = vadd.f32 %v5109_v46, %v4941_v27  ;;  %v4329_v41 = vadd.f32 %v10855_v14, %v4160_v28  ;;  %v4165_v47 = vadd.f32 %v9400_v53, %v9398_v9  ;;  %v10857_v46 = vld [vmem:[#allocation196_spill] sm:$0xff] }
 0x873   :  { %v4951_v9 = vadd.f32 %v9597_v2, %v9659_v32 }
 0x874   :  { %v5238_v4 = vmax.f32 %v5110_v49, 0.0  ;;  %v4722_v33 = vpack.c.bf16 %v4634_v17, %v4632_v12  ;;  %v10858_v12 = vld [vmem:[#allocation27_spill] sm:$0xff]  ;;  %v9753_v17 = vpop.f32.mrf.mxu2 }
 0x875   :  { %v5400_v22 = vpop.f32.mrf.mxu0 }
 0x876   :  { %v5401_v19 = vadd.f32 %v9704_v38, %v5400_v22  ;;  %5151 = vmatmul.bf16.gmra.mxu3 %v4722_v33  ;;  %v5291_v31 = vpack.c.bf16 %v5238_v4, %v5237_v42  ;;  %v4334_v42 = vadd.f32 %v9394_v15, %v4165_v47  ;;  %v4949_v4 = vadd.f32 %v9597_v2, %v9653_v10  ;;  %v10859_v33 = vld [vmem:[#allocation66_spill] sm:$0xff] }
 0x877   :  { %v4495_v40 = vpop.f32.mrf.mxu1 }
 0x878   :  { %5554 = vst [vmem:[#allocation11 + $0x20] sm:$0xff] %v5401_v19  ;;  %5439 = vmatmul.bf16.gmra.mxu0 %v5291_v31  ;;  %v4496_v23 = vadd.f32 %v4495_v40, %v10856_v36 }
 0x879   :  { %v5112_v45 = vpop.f32.mrf.mxu3 }
 0x87a   :  { %4534 = vmatmul.bf16.gmra.mxu1 %v10853_v3  ;;  %5027 = vmatmul.bf16.gmra.mxu2 %v10854_v13  ;;  %v5113_v26 = vadd.f32 %v5112_v45, %v4944_v16  ;;  %v4636_v58 = vmax.f32 %v4496_v23, 0.0 }
 0x87c   :  { %v5239_v51 = vmax.f32 %v5113_v26, 0.0  ;;  %v9762_v10 = vpop.f32.mrf.mxu2 }
 0x87d   :  { %v5402_v21 = vpop.f32.mrf.mxu0 }
 0x87e   :  { %v5403_v50 = vadd.f32 %v9704_v38, %v5402_v21 }
 0x87f   :  { %v4497_v57 = vpop.f32.mrf.mxu1 }
 0x880   :  { %5555 = vst [vmem:[#allocation11 + $0x28] sm:$0xff] %v5403_v50  ;;  %v4498_v30 = vadd.f32 %v4497_v57, %v4329_v41  ;;  %v4170_v50 = vadd.f32 %v9414_v5, %v9412_v39  ;;  %v10860_v57 = vld [vmem:[#allocation192_spill] sm:$0xff] }
 0x881   :  { %v5114_v24 = vpop.f32.mrf.mxu3 }
 0x882   :  { %v4638_v11 = vmax.f32 %v4498_v30, 0.0  ;;  %v5115_v54 = vadd.f32 %v5114_v24, %v4946_v34  ;;  %v10861_v34 = vld [vmem:[#allocation63_spill] sm:$0xff]  ;;  %v4339_v30 = vadd.f32 %v9408_v35, %v4170_v50  ;;  %v4954_v24 = vadd.f32 %v9597_v2, %v9665_v44 }
 0x884   :  { %v4724_v20 = vpack.c.bf16 %v4638_v11, %v4636_v58  ;;  %v5240_v62 = vmax.f32 %v5115_v54, 0.0  ;;  %v10862_v58 = vld [vmem:[#allocation82_spill] sm:$0xff] }
 0x885   :  { %v5405_v59 = vpop.f32.mrf.mxu0 }
 0x886   :  { %v5406_v29 = vadd.f32 %v9704_v38, %v5405_v59  ;;  %5156 = vmatmul.bf16.gmra.mxu3 %v4724_v20  ;;  %v5292_v27 = vpack.c.bf16 %v5240_v62, %v5239_v51  ;;  %v4956_v20 = vadd.f32 %v9597_v2, %v9675_v8  ;;  %v9776_v62 = vpop.f32.mrf.mxu2 }
 0x887   :  { %v4500_v63 = vpop.f32.mrf.mxu1 }
 0x888   :  { %5556 = vst [vmem:[#allocation11 + $0x30] sm:$0xff] %v5406_v29  ;;  %5444 = vmatmul.bf16.gmra.mxu0 %v5292_v27  ;;  %v4501_v22 = vadd.f32 %v4500_v63, %v10859_v33  ;;  %v10863_v33 = vld [vmem:[#allocation42_spill] sm:$0xff] }
 0x889   :  { %v5117_v1 = vpop.f32.mrf.mxu3 }
 0x88a   :  { %4539 = vmatmul.bf16.gmra.mxu1 %v10857_v46  ;;  %5032 = vmatmul.bf16.gmra.mxu2 %v10858_v12  ;;  %v5118_v53 = vadd.f32 %v5117_v1, %v4949_v4  ;;  %v4640_v28 = vmax.f32 %v4501_v22, 0.0  ;;  %v10864_v22 = vld [vmem:[#allocation70_spill] sm:$0xff] }
 0x88c   :  { %v5241_v21 = vmax.f32 %v5118_v53, 0.0  ;;  %v4959_v53 = vadd.f32 %v9597_v2, %v9679_v6 }
 0x88d   :  { %v5407_v49 = vpop.f32.mrf.mxu0 }
 0x88e   :  { %v5408_v19 = vadd.f32 %v9704_v38, %v5407_v49  ;;  %v9781_v4 = vpop.f32.mrf.mxu2 }
 0x88f   :  { %v4502_v31 = vpop.f32.mrf.mxu1 }
 0x890   :  { %5557 = vst [vmem:[#allocation11 + $0x38] sm:$0xff] %v5408_v19  ;;  %v4503_v40 = vadd.f32 %v4502_v31, %v4334_v42  ;;  %v4175_v42 = vadd.f32 %v9428_v7, %v9426_v55  ;;  %v10865_v31 = vld [vmem:[#allocation39_spill] sm:$0xff]  ;;  %v4961_v55 = vadd.f32 %v9597_v2, %v9687_v43  ;;  %v10867_v43 = vld [vmem:[#allocation72_spill] sm:$0xff] }
 0x891   :  { %v5119_v45 = vpop.f32.mrf.mxu3 }
 0x892   :  { %v4642_v3 = vmax.f32 %v4503_v40, 0.0  ;;  %v5120_v13 = vadd.f32 %v5119_v45, %v4951_v9  ;;  %v4344_v9 = vadd.f32 %v10865_v31, %v4175_v42  ;;  %v10866_v40 = vld [vmem:[#allocation79_spill] sm:$0xff]  ;;  %v10871_v42 = vld [vmem:[#allocation88_spill] sm:$0xff] }
 0x894   :  { %v4726_v15 = vpack.c.bf16 %v4642_v3, %v4640_v28  ;;  %v5242_v14 = vmax.f32 %v5120_v13, 0.0 }
 0x895   :  { %v5410_v41 = vpop.f32.mrf.mxu0 }
 0x896   :  { %v5411_v16 = vadd.f32 %v9704_v38, %v5410_v41  ;;  %5161 = vmatmul.bf16.gmra.mxu3 %v4726_v15  ;;  %v5293_v36 = vpack.c.bf16 %v5242_v14, %v5241_v21 }
 0x897   :  { %v4505_v23 = vpop.f32.mrf.mxu1 }
 0x898   :  { %5558 = vst [vmem:[#allocation11 + $0x40] sm:$0xff] %v5411_v16  ;;  %5449 = vmatmul.bf16.gmra.mxu0 %v5293_v36  ;;  %v4506_v11 = vadd.f32 %v4505_v23, %v10862_v58 }
 0x899   :  { %v5122_v32 = vpop.f32.mrf.mxu3 }
 0x89a   :  { %4544 = vmatmul.bf16.gmra.mxu1 %v10860_v57  ;;  %5037 = vmatmul.bf16.gmra.mxu2 %v10861_v34  ;;  %v5123_v39 = vadd.f32 %v5122_v32, %v4954_v24  ;;  %v4644_v29 = vmax.f32 %v4506_v11, 0.0  ;;  %v10868_v24 = vld [vmem:[#allocation80_spill] sm:$0xff]  ;;  %v4964_v11 = vadd.f32 %v9597_v2, %v9698_v60 }
 0x89c   :  { %v5243_v63 = vmax.f32 %v5123_v39, 0.0 }
 0x89d   :  { %v5412_v26 = vpop.f32.mrf.mxu0 }
 0x89e   :  { %v5413_v54 = vadd.f32 %v9704_v38, %v5412_v26  ;;  %v4180_v26 = vadd.f32 %v10867_v43, %v9438_v56 }
 0x89f   :  { %v4507_v51 = vpop.f32.mrf.mxu1 }
 0x8a0   :  { %5559 = vst [vmem:[#allocation11 + $0x48] sm:$0xff] %v5413_v54  ;;  %v4508_v5 = vadd.f32 %v4507_v51, %v4339_v30  ;;  %v4349_v58 = vadd.f32 %v10868_v24, %v4180_v26  ;;  %v10869_v54 = vld [vmem:[#allocation81_spill] sm:$0xff]  ;;  %v10875_v26 = vld [vmem:[#allocation78_spill] sm:$0xff]  ;;  %v4974_v24 = vadd.f32 %v9597_v2, %v9733_v52 }
 0x8a1   :  { %v5124_v59 = vpop.f32.mrf.mxu3 }
 0x8a2   :  { %v4646_v27 = vmax.f32 %v4508_v5, 0.0  ;;  %v5125_v35 = vadd.f32 %v5124_v59, %v4956_v20  ;;  %v4966_v5 = vadd.f32 %v9597_v2, %v9707_v61  ;;  %v10870_v61 = vld [vmem:[#allocation87_spill] sm:$0xff] }
 0x8a4   :  { %v4728_v1 = vpack.c.bf16 %v4646_v27, %v4644_v29  ;;  %v5244_v44 = vmax.f32 %v5125_v35, 0.0 }
 0x8a5   :  { %v5415_v47 = vpop.f32.mrf.mxu0 }
 0x8a6   :  { %v5416_v46 = vadd.f32 %v9704_v38, %v5415_v47  ;;  %5166 = vmatmul.bf16.gmra.mxu3 %v4728_v1  ;;  %v5294_v12 = vpack.c.bf16 %v5244_v44, %v5243_v63 }
 0x8a7   :  { %v4510_v49 = vpop.f32.mrf.mxu1 }
 0x8a8   :  { %5560 = vst [vmem:[#allocation11 + $0x50] sm:$0xff] %v5416_v46  ;;  %5454 = vmatmul.bf16.gmra.mxu0 %v5294_v12  ;;  %v4511_v45 = vadd.f32 %v4510_v49, %v10866_v40 }
 0x8a9   :  { %v5127_v8 = vpop.f32.mrf.mxu3 }
 0x8aa   :  { %4549 = vmatmul.bf16.gmra.mxu1 %v10863_v33  ;;  %5042 = vmatmul.bf16.gmra.mxu2 %v10864_v22  ;;  %v5128_v7 = vadd.f32 %v5127_v8, %v4959_v53  ;;  %v4648_v15 = vmax.f32 %v4511_v45, 0.0  ;;  %v4185_v33 = vadd.f32 %v10871_v42, %v10870_v61  ;;  %v10873_v53 = vld [vmem:[#allocation86_spill] sm:$0xff] }
 0x8ab   :  { %v10879_v42 = vld [vmem:[#allocation94_spill] sm:$0xff] }
 0x8ac   :  { %v5245_v16 = vmax.f32 %v5128_v7, 0.0 }
 0x8ad   :  { %v5417_v19 = vpop.f32.mrf.mxu0 }
 0x8ae   :  { %v5418_v28 = vadd.f32 %v9704_v38, %v5417_v19  ;;  %v10872_v19 = vld [vmem:[#allocation90_spill] sm:$0xff] }
 0x8af   :  { %v4512_v3 = vpop.f32.mrf.mxu1  ;;  %v4354_v31 = vadd.f32 %v10872_v19, %v4185_v33  ;;  %v10880_v19 = vld [vmem:[#allocation95_spill] sm:$0xff] }
 0x8b0   :  { %5561 = vst [vmem:[#allocation11 + $0x58] sm:$0xff] %v5418_v28  ;;  %v4513_v13 = vadd.f32 %v4512_v3, %v4344_v9  ;;  %v4969_v9 = vadd.f32 %v9597_v2, %v9718_v37  ;;  %v4971_v3 = vadd.f32 %v9597_v2, %v9725_v0 }
 0x8b1   :  { %v5129_v21 = vpop.f32.mrf.mxu3 }
 0x8b2   :  { %v4650_v14 = vmax.f32 %v4513_v13, 0.0  ;;  %v5130_v41 = vadd.f32 %v5129_v21, %v4961_v55 }
 0x8b4   :  { %v4730_v36 = vpack.c.bf16 %v4650_v14, %v4648_v15  ;;  %v5246_v23 = vmax.f32 %v5130_v41, 0.0 }
 0x8b5   :  { %v5420_v32 = vpop.f32.mrf.mxu0 }
 0x8b6   :  { %v5421_v6 = vadd.f32 %v9704_v38, %v5420_v32  ;;  %5171 = vmatmul.bf16.gmra.mxu3 %v4730_v36  ;;  %v5295_v50 = vpack.c.bf16 %v5246_v23, %v5245_v16 }
 0x8b7   :  { %v4515_v57 = vpop.f32.mrf.mxu1 }
 0x8b8   :  { %5562 = vst [vmem:[#allocation11 + $0x60] sm:$0xff] %v5421_v6  ;;  %5459 = vmatmul.bf16.gmra.mxu0 %v5295_v50  ;;  %v4516_v51 = vadd.f32 %v4515_v57, %v10869_v54  ;;  %v9813_v6 = vpop.f32.mrf.mxu2  ;;  %v10874_v57 = vld [vmem:[#allocation98_spill] sm:$0xff] }
 0x8b9   :  { %v5132_v34 = vpop.f32.mrf.mxu3 }
 0x8ba   :  { %v5133_v59 = vadd.f32 %v5132_v34, %v4964_v11  ;;  %v4652_v35 = vmax.f32 %v4516_v51, 0.0  ;;  %v4190_v34 = vadd.f32 %v10874_v57, %v9462_v25  ;;  %v10883_v57 = vld [vmem:[#allocation100_spill] sm:$0xff] }
 0x8bc   :  { %v5247_v1 = vmax.f32 %v5133_v59, 0.0 }
 0x8bd   :  { %v5422_v30 = vpop.f32.mrf.mxu0 }
 0x8be   :  { %v5423_v20 = vadd.f32 %v9704_v38, %v5422_v30  ;;  %v4359_v30 = vadd.f32 %v10875_v26, %v4190_v34  ;;  %v10884_v26 = vld [vmem:[#allocation105_spill] sm:$0xff] }
 0x8bf   :  { %v4517_v39 = vpop.f32.mrf.mxu1 }
 0x8c0   :  { %5563 = vst [vmem:[#allocation11 + $0x68] sm:$0xff] %v5423_v20  ;;  %v4518_v29 = vadd.f32 %v4517_v39, %v4349_v58  ;;  %v10876_v58 = vld [vmem:[#allocation92_spill] sm:$0xff]  ;;  %v4976_v20 = vadd.f32 %v9597_v2, %v9746_v18  ;;  %v9824_v59 = vpop.f32.mrf.mxu2 }
 0x8c1   :  { %v5134_v27 = vpop.f32.mrf.mxu3 }
 0x8c2   :  { %v4654_v56 = vmax.f32 %v4518_v29, 0.0  ;;  %v5135_v63 = vadd.f32 %v5134_v27, %v4966_v5 }
 0x8c4   :  { %v4732_v44 = vpack.c.bf16 %v4654_v56, %v4652_v35  ;;  %v5248_v47 = vmax.f32 %v5135_v63, 0.0 }
 0x8c5   :  { %v5425_v46 = vpop.f32.mrf.mxu0 }
 0x8c6   :  { %v5426_v60 = vadd.f32 %v9704_v38, %v5425_v46  ;;  %5176 = vmatmul.bf16.gmra.mxu3 %v4732_v44  ;;  %v5296_v12 = vpack.c.bf16 %v5248_v47, %v5247_v1 }
 0x8c7   :  { %v4520_v49 = vpop.f32.mrf.mxu1 }
 0x8c8   :  { %5564 = vst [vmem:[#allocation11 + $0x70] sm:$0xff] %v5426_v60  ;;  %5464 = vmatmul.bf16.gmra.mxu0 %v5296_v12  ;;  %v4521_v40 = vadd.f32 %v4520_v49, %v10873_v53  ;;  %v10877_v60 = vld [vmem:[#allocation96_spill] sm:$0xff]  ;;  %v10878_v12 = vld [vmem:[#allocation43_spill] sm:$0xff] }
 0x8c9   :  { %v5137_v8 = vpop.f32.mrf.mxu3  ;;  %v4195_v49 = vadd.f32 %v10878_v12, %v10877_v60  ;;  %v10887_v60 = vld [vmem:[#allocation104_spill] sm:$0xff] }
 0x8ca   :  { %v5138_v55 = vadd.f32 %v5137_v8, %v4969_v9  ;;  %v4656_v21 = vmax.f32 %v4521_v40, 0.0  ;;  %v9829_v8 = vpop.f32.mrf.mxu2  ;;  %v4981_v40 = vadd.f32 %v9597_v2, %v9762_v10 }
 0x8cb   :  { %v4364_v33 = vadd.f32 %v10879_v42, %v4195_v49  ;;  %v9861_v49 = vld [vmem:[%s9961_s4] ss:$0 sm:$0xff] }
 0x8cc   :  { %v5249_v41 = vmax.f32 %v5138_v55, 0.0  ;;  %v10888_v42 = vld [vmem:[#allocation47_spill] sm:$0xff] }
 0x8cd   :  { %v5427_v22 = vpop.f32.mrf.mxu0 }
 0x8ce   :  { %v5428_v45 = vadd.f32 %v9704_v38, %v5427_v22  ;;  %v4979_v22 = vadd.f32 %v9597_v2, %v9753_v17 }
 0x8cf   :  { %v4522_v28 = vpop.f32.mrf.mxu1 }
 0x8d0   :  { %5565 = vst [vmem:[#allocation11 + $0x78] sm:$0xff] %v5428_v45  ;;  %v4523_v7 = vadd.f32 %v4522_v28, %v4354_v31 }
 0x8d1   :  { %v5139_v13 = vpop.f32.mrf.mxu3 }
 0x8d2   :  { %v4658_v15 = vmax.f32 %v4523_v7, 0.0  ;;  %v5140_v14 = vadd.f32 %v5139_v13, %v4971_v3 }
 0x8d4   :  { %v4734_v16 = vpack.c.bf16 %v4658_v15, %v4656_v21  ;;  %v5250_v36 = vmax.f32 %v5140_v14, 0.0 }
 0x8d5   :  { %v5430_v23 = vpop.f32.mrf.mxu0 }
 0x8d6   :  { %v5431_v37 = vadd.f32 %v9704_v38, %v5430_v23  ;;  %5181 = vmatmul.bf16.gmra.mxu3 %v4734_v16  ;;  %v5297_v32 = vpack.c.bf16 %v5250_v36, %v5249_v41  ;;  %v9838_v41 = vpop.f32.mrf.mxu2 }
 0x8d7   :  { %v4525_v50 = vpop.f32.mrf.mxu1 }
 0x8d8   :  { %5566 = vst [vmem:[#allocation11 + $0x80] sm:$0xff] %v5431_v37  ;;  %5469 = vmatmul.bf16.gmra.mxu0 %v5297_v32  ;;  %v4526_v11 = vadd.f32 %v4525_v50, %v10876_v58  ;;  %v10881_v37 = vld [vmem:[#allocation102_spill] sm:$0xff]  ;;  %v10882_v32 = vld [vmem:[#allocation103_spill] sm:$0xff] }
 0x8d9   :  { %v5142_v0 = vpop.f32.mrf.mxu3  ;;  %v4200_v50 = vadd.f32 %v10882_v32, %v10881_v37  ;;  %v10891_v32 = vld [vmem:[#allocation108_spill] sm:$0xff] }
 0x8da   :  { %v5143_v39 = vadd.f32 %v5142_v0, %v4974_v24  ;;  %v4660_v29 = vmax.f32 %v4526_v11, 0.0 }
 0x8db   :  { %v4369_v34 = vadd.f32 %v10883_v57, %v4200_v50  ;;  %v10892_v57 = vld [vmem:[#allocation107_spill] sm:$0xff] }
 0x8dc   :  { %v5251_v56 = vmax.f32 %v5143_v39, 0.0 }
 0x8dd   :  { %v5432_v43 = vpop.f32.mrf.mxu0 }
 0x8de   :  { %v5433_v54 = vadd.f32 %v9704_v38, %v5432_v43  ;;  %v4984_v43 = vadd.f32 %v9597_v2, %v9776_v62  ;;  %v9848_v58 = vpop.f32.mrf.mxu2 }
 0x8df   :  { %v4527_v51 = vpop.f32.mrf.mxu1 }
 0x8e0   :  { %5567 = vst [vmem:[#allocation11 + $0x88] sm:$0xff] %v5433_v54  ;;  %v4528_v5 = vadd.f32 %v4527_v51, %v4359_v30  ;;  %v4986_v54 = vadd.f32 %v9597_v2, %v9781_v4  ;;  %v10885_v4 = vld [vmem:[#allocation110_spill] sm:$0xff] }
 0x8e1   :  { %v5144_v25 = vpop.f32.mrf.mxu3 }
 0x8e2   :  { %v4662_v27 = vmax.f32 %v4528_v5, 0.0  ;;  %v5145_v35 = vadd.f32 %v5144_v25, %v4976_v20 }
 0x8e4   :  { %v4736_v63 = vpack.c.bf16 %v4662_v27, %v4660_v29  ;;  %v5252_v52 = vmax.f32 %v5145_v35, 0.0 }
 0x8e5   :  { %v5435_v1 = vpop.f32.mrf.mxu0 }
 0x8e6   :  { %v5436_v44 = vadd.f32 %v9704_v38, %v5435_v1  ;;  %5186 = vmatmul.bf16.gmra.mxu3 %v4736_v63  ;;  %v5298_v47 = vpack.c.bf16 %v5252_v52, %v5251_v56 }
 0x8e7   :  { %v4530_v46 = vpop.f32.mrf.mxu1 }
 0x8e8   :  { %5568 = vst [vmem:[#allocation11 + $0x90] sm:$0xff] %v5436_v44  ;;  %5474 = vmatmul.bf16.gmra.mxu0 %v5298_v47  ;;  %v4531_v31 = vadd.f32 %v4530_v46, %v10880_v19  ;;  %v9853_v44 = vpop.f32.mrf.mxu2  ;;  %v10886_v47 = vld [vmem:[#allocation20_spill] sm:$0xff] }
 0x8e9   :  { %v5147_v18 = vpop.f32.mrf.mxu3  ;;  %v4205_v46 = vadd.f32 %v10886_v47, %v10885_v4  ;;  %v4999_v47 = vadd.f32 %v9861_v49, %v9848_v58 }
 0x8ea   :  { %v5148_v45 = vadd.f32 %v5147_v18, %v4979_v22  ;;  %v4664_v55 = vmax.f32 %v4531_v31, 0.0  ;;  %v4991_v31 = vadd.f32 %v9861_v49, %v9824_v59 }
 0x8eb   :  { %v4374_v12 = vadd.f32 %v10887_v60, %v4205_v46  ;;  %v10895_v46 = vld [vmem:[#allocation117_spill] sm:$0xff] }
 0x8ec   :  { %v5253_v21 = vmax.f32 %v5148_v45, 0.0 }
 0x8ed   :  { %v5437_v61 = vpop.f32.mrf.mxu0 }
 0x8ee   :  { %v5438_v9 = vadd.f32 %v9704_v38, %v5437_v61  ;;  %v4989_v61 = vadd.f32 %v9861_v49, %v9813_v6 }
 0x8ef   :  { %v4532_v53 = vpop.f32.mrf.mxu1 }
 0x8f0   :  { %5569 = vst [vmem:[#allocation11 + $0x98] sm:$0xff] %v5438_v9  ;;  %v4533_v28 = vadd.f32 %v4532_v53, %v4364_v33 }
 0x8f1   :  { %v5149_v3 = vpop.f32.mrf.mxu3 }
 0x8f2   :  { %v4666_v7 = vmax.f32 %v4533_v28, 0.0  ;;  %v5150_v13 = vadd.f32 %v5149_v3, %v4981_v40 }
 0x8f4   :  { %v4738_v15 = vpack.c.bf16 %v4666_v7, %v4664_v55  ;;  %v5254_v14 = vmax.f32 %v5150_v13, 0.0  ;;  %v9869_v55 = vpop.f32.mrf.mxu2 }
 0x8f5   :  { %v5440_v17 = vpop.f32.mrf.mxu0 }
 0x8f6   :  { %v5441_v16 = vadd.f32 %v9704_v38, %v5440_v17  ;;  %5191 = vmatmul.bf16.gmra.mxu3 %v4738_v15  ;;  %v5299_v36 = vpack.c.bf16 %v5254_v14, %v5253_v21 }
 0x8f7   :  { %v4535_v23 = vpop.f32.mrf.mxu1 }
 0x8f8   :  { %5570 = vst [vmem:[#allocation11 + $0xa0] sm:$0xff] %v5441_v16  ;;  %5479 = vmatmul.bf16.gmra.mxu0 %v5299_v36  ;;  %v4536_v30 = vadd.f32 %v4535_v23, %v10884_v26  ;;  %v10889_v16 = vld [vmem:[#allocation109_spill] sm:$0xff]  ;;  %v10890_v36 = vld [vmem:[#allocation16_spill] sm:$0xff] }
 0x8f9   :  { %v5152_v10 = vpop.f32.mrf.mxu3  ;;  %v4210_v23 = vadd.f32 %v10890_v36, %v10889_v16 }
 0x8fa   :  { %v5153_v51 = vadd.f32 %v5152_v10, %v4984_v43  ;;  %v4668_v5 = vmax.f32 %v4536_v30, 0.0  ;;  %v4996_v30 = vadd.f32 %v9861_v49, %v9838_v41 }
 0x8fb   :  { %v4379_v50 = vadd.f32 %v10891_v32, %v4210_v23 }
 0x8fc   :  { %v5255_v27 = vmax.f32 %v5153_v51, 0.0  ;;  %v5005_v10 = vpop.f32.mrf.mxu2 }
 0x8fd   :  { %v5442_v0 = vpop.f32.mrf.mxu0 }
 0x8fe   :  { %v5443_v24 = vadd.f32 %v9704_v38, %v5442_v0  ;;  %v4994_v0 = vadd.f32 %v9861_v49, %v9829_v8 }
 0x8ff   :  { %v4537_v11 = vpop.f32.mrf.mxu1 }
 0x900   :  { %5571 = vst [vmem:[#allocation11 + $0xa8] sm:$0xff] %v5443_v24  ;;  %v4538_v20 = vadd.f32 %v4537_v11, %v4369_v34 }
 0x901   :  { %v5154_v39 = vpop.f32.mrf.mxu3 }
 0x902   :  { %v4670_v25 = vmax.f32 %v4538_v20, 0.0  ;;  %v5155_v29 = vadd.f32 %v5154_v39, %v4986_v54 }
 0x904   :  { %v4740_v35 = vpack.c.bf16 %v4670_v25, %v4668_v5  ;;  %v5256_v62 = vmax.f32 %v5155_v29, 0.0 }
 0x905   :  { %v5445_v56 = vpop.f32.mrf.mxu0 }
 0x906   :  { %v5446_v63 = vadd.f32 %v9704_v38, %v5445_v56  ;;  %5196 = vmatmul.bf16.gmra.mxu3 %v4740_v35  ;;  %v5300_v52 = vpack.c.bf16 %v5256_v62, %v5255_v27  ;;  %v5008_v62 = vpop.f32.mrf.mxu2 }
 0x907   :  { %v4540_v1 = vpop.f32.mrf.mxu1 }
 0x908   :  { %5572 = vst [vmem:[#allocation11 + $0xb0] sm:$0xff] %v5446_v63  ;;  %5484 = vmatmul.bf16.gmra.mxu0 %v5300_v52  ;;  %v4541_v33 = vadd.f32 %v4540_v1, %v10888_v42  ;;  %v10893_v63 = vld [vmem:[#allocation24_spill] sm:$0xff]  ;;  %v10894_v52 = vld [vmem:[#allocation113_spill] sm:$0xff] }
 0x909   :  { %v5157_v2 = vpop.f32.mrf.mxu3  ;;  %v4215_v1 = vadd.f32 %v10894_v52, %v10893_v63 }
 0x90a   :  { %v5158_v9 = vadd.f32 %v5157_v2, %v4989_v61  ;;  %v4672_v45 = vmax.f32 %v4541_v33, 0.0  ;;  %v5001_v61 = vadd.f32 %v9861_v49, %v9853_v44 }
 0x90b   :  { %v4384_v4 = vadd.f32 %v9691_v48, %v4215_v1 }
 0x90c   :  { %v5257_v7 = vmax.f32 %v5158_v9, 0.0 }
 0x90d   :  { %v5447_v18 = vpop.f32.mrf.mxu0 }
 0x90e   :  { %v5448_v22 = vadd.f32 %v9704_v38, %v5447_v18 }
 0x90f   :  { %v4542_v19 = vpop.f32.mrf.mxu1 }
 0x910   :  { %5573 = vst [vmem:[#allocation11 + $0xb8] sm:$0xff] %v5448_v22  ;;  %v4543_v53 = vadd.f32 %v4542_v19, %v4374_v12  ;;  %v5010_v22 = vpop.f32.mrf.mxu2 }
 0x911   :  { %v5159_v40 = vpop.f32.mrf.mxu3 }
 0x912   :  { %v4674_v28 = vmax.f32 %v4543_v53, 0.0  ;;  %v5160_v3 = vadd.f32 %v5159_v40, %v4991_v31 }
 0x914   :  { %v4742_v13 = vpack.c.bf16 %v4674_v28, %v4672_v45  ;;  %v5258_v6 = vmax.f32 %v5160_v3, 0.0 }
 0x915   :  { %v5450_v21 = vpop.f32.mrf.mxu0 }
 0x916   :  { %v5301_v15 = vpack.c.bf16 %v5258_v6, %v5257_v7  ;;  %v5451_v14 = vadd.f32 %v9704_v38, %v5450_v21  ;;  %5201 = vmatmul.bf16.gmra.mxu3 %v4742_v13  ;;  %v5004_v6 = vadd.f32 %v9861_v49, %v9869_v55  ;;  %v5009_v55 = vadd.f32 %v9861_v49, %v5008_v62 }
 0x917   :  { %v4545_v17 = vpop.f32.mrf.mxu1 }
 0x918   :  { %5574 = vst [vmem:[#allocation11 + $0xc0] sm:$0xff] %v5451_v14  ;;  %5489 = vmatmul.bf16.gmra.mxu0 %v5301_v15  ;;  %v4546_v34 = vadd.f32 %v4545_v17, %v10892_v57  ;;  %v5013_v44 = vpop.f32.mrf.mxu2  ;;  %v5006_v15 = vadd.f32 %v9861_v49, %v5005_v10 }
 0x919   :  { %v5162_v59 = vpop.f32.mrf.mxu3 }
 0x91a   :  { %v5163_v24 = vadd.f32 %v5162_v59, %v4994_v0  ;;  %v4676_v51 = vmax.f32 %v4546_v34, 0.0 }
 0x91c   :  { %v5259_v5 = vmax.f32 %v5163_v24, 0.0 }
 0x91d   :  { %v5452_v37 = vpop.f32.mrf.mxu0 }
 0x91e   :  { %v5453_v43 = vadd.f32 %v9704_v38, %v5452_v37 }
 0x91f   :  { %v4547_v26 = vpop.f32.mrf.mxu1 }
 0x920   :  { %5575 = vst [vmem:[#allocation11 + $0xc8] sm:$0xff] %v5453_v43  ;;  %v4548_v11 = vadd.f32 %v4547_v26, %v4379_v50  ;;  %v5015_v23 = vpop.f32.mrf.mxu2  ;;  %v5011_v43 = vadd.f32 %v9861_v49, %v5010_v22 }
 0x921   :  { %v5164_v54 = vpop.f32.mrf.mxu3 }
 0x922   :  { %v4678_v20 = vmax.f32 %v4548_v11, 0.0  ;;  %v5165_v39 = vadd.f32 %v5164_v54, %v4996_v30 }
 0x924   :  { %v4744_v25 = vpack.c.bf16 %v4678_v20, %v4676_v51  ;;  %v5260_v29 = vmax.f32 %v5165_v39, 0.0 }
 0x925   :  { %v5455_v27 = vpop.f32.mrf.mxu0 }
 0x926   :  { %v5302_v8 = vpack.c.bf16 %v5260_v29, %v5259_v5  ;;  %v5456_v35 = vadd.f32 %v9704_v38, %v5455_v27  ;;  %5206 = vmatmul.bf16.gmra.mxu3 %v4744_v25  ;;  %v5014_v27 = vadd.f32 %v9861_v49, %v5013_v44 }
 0x927   :  { %v4550_v56 = vpop.f32.mrf.mxu1 }
 0x928   :  { %5576 = vst [vmem:[#allocation11 + $0xd0] sm:$0xff] %v5456_v35  ;;  %5494 = vmatmul.bf16.gmra.mxu0 %v5302_v8  ;;  %v4551_v18 = vadd.f32 %v4550_v56, %v10895_v46  ;;  %v5018_v10 = vpop.f32.mrf.mxu2  ;;  %v5016_v35 = vadd.f32 %v9861_v49, %v5015_v23 }
 0x929   :  { %v5167_v41 = vpop.f32.mrf.mxu3 }
 0x92a   :  { %v5168_v42 = vadd.f32 %v5167_v41, %v4999_v47  ;;  %v4680_v31 = vmax.f32 %v4551_v18, 0.0 }
 0x92c   :  { %v5261_v48 = vmax.f32 %v5168_v42, 0.0 }
 0x92d   :  { %v5457_v2 = vpop.f32.mrf.mxu0 }
 0x92e   :  { %v5458_v60 = vadd.f32 %v9704_v38, %v5457_v2 }
 0x92f   :  { %v4552_v12 = vpop.f32.mrf.mxu1 }
 0x930   :  { %5577 = vst [vmem:[#allocation11 + $0xd8] sm:$0xff] %v5458_v60  ;;  %v4553_v33 = vadd.f32 %v4552_v12, %v4384_v4  ;;  %v5020_v5 = vpop.f32.mrf.mxu2  ;;  %v5019_v12 = vadd.f32 %v9861_v49, %v5018_v10 }
 0x931   :  { %v5169_v19 = vpop.f32.mrf.mxu3  ;;  %v5021_v42 = vadd.f32 %v9861_v49, %v5020_v5 }
 0x932   :  { %v4682_v9 = vmax.f32 %v4553_v33, 0.0  ;;  %v5170_v53 = vadd.f32 %v5169_v19, %v5001_v61 }
 0x934   :  { %v4746_v40 = vpack.c.bf16 %v4682_v9, %v4680_v31  ;;  %v5262_v45 = vmax.f32 %v5170_v53, 0.0 }
 0x935   :  { %v5460_v58 = vpop.f32.mrf.mxu0 }
 0x936   :  { %v5303_v28 = vpack.c.bf16 %v5262_v45, %v5261_v48  ;;  %v5461_v3 = vadd.f32 %v9704_v38, %v5460_v58  ;;  %5211 = vmatmul.bf16.gmra.mxu3 %v4746_v40 }
 0x938   :  { %5578 = vst [vmem:[#allocation11 + $0xe0] sm:$0xff] %v5461_v3  ;;  %5499 = vmatmul.bf16.gmra.mxu0 %v5303_v28  ;;  %v5023_v63 = vpop.f32.mrf.mxu2 }
 0x939   :  { %v5172_v7 = vpop.f32.mrf.mxu3  ;;  %v5024_v3 = vadd.f32 %v9861_v49, %v5023_v63 }
 0x93a   :  { %v5173_v14 = vadd.f32 %v5172_v7, %v5004_v6 }
 0x93c   :  { %v5263_v16 = vmax.f32 %v5173_v14, 0.0 }
 0x93d   :  { %v5462_v13 = vpop.f32.mrf.mxu0 }
 0x93e   :  { %v5463_v21 = vadd.f32 %v9704_v38, %v5462_v13 }
 0x940   :  { %5579 = vst [vmem:[#allocation11 + $0xe8] sm:$0xff] %v5463_v21  ;;  %v5025_v18 = vpop.f32.mrf.mxu2 }
 0x941   :  { %v5174_v17 = vpop.f32.mrf.mxu3  ;;  %v5026_v44 = vadd.f32 %v9861_v49, %v5025_v18 }
 0x942   :  { %v5175_v59 = vadd.f32 %v5174_v17, %v5006_v15 }
 0x944   :  { %v5264_v36 = vmax.f32 %v5175_v59, 0.0 }
 0x945   :  { %v5465_v37 = vpop.f32.mrf.mxu0 }
 0x946   :  { %v5304_v32 = vpack.c.bf16 %v5264_v36, %v5263_v16  ;;  %v5466_v50 = vadd.f32 %v9704_v38, %v5465_v37 }
 0x948   :  { %5580 = vst [vmem:[#allocation11 + $0xf0] sm:$0xff] %v5466_v50  ;;  %5504 = vmatmul.bf16.gmra.mxu0 %v5304_v32  ;;  %v5028_v45 = vpop.f32.mrf.mxu2 }
 0x949   :  { %v5177_v0 = vpop.f32.mrf.mxu3  ;;  %v5029_v50 = vadd.f32 %v9861_v49, %v5028_v45 }
 0x94a   :  { %v5178_v26 = vadd.f32 %v5177_v0, %v5009_v55 }
 0x94c   :  { %v5265_v11 = vmax.f32 %v5178_v26, 0.0 }
 0x94d   :  { %v5467_v57 = vpop.f32.mrf.mxu0 }
 0x94e   :  { %v5468_v34 = vadd.f32 %v9704_v38, %v5467_v57 }
 0x950   :  { %5581 = vst [vmem:[#allocation11 + $0xf8] sm:$0xff] %v5468_v34  ;;  %v5030_v6 = vpop.f32.mrf.mxu2 }
 0x951   :  { %v5179_v30 = vpop.f32.mrf.mxu3  ;;  %v5031_v57 = vadd.f32 %v9861_v49, %v5030_v6 }
 0x952   :  { %v5180_v24 = vadd.f32 %v5179_v30, %v5011_v43 }
 0x954   :  { %v5266_v54 = vmax.f32 %v5180_v24, 0.0 }
 0x955   :  { %v5470_v51 = vpop.f32.mrf.mxu0 }
 0x956   :  { %v5305_v20 = vpack.c.bf16 %v5266_v54, %v5265_v11  ;;  %v5471_v39 = vadd.f32 %v9704_v38, %v5470_v51 }
 0x958   :  { %5582 = vst [vmem:[#allocation11 + $0x100] sm:$0xff] %v5471_v39  ;;  %5509 = vmatmul.bf16.gmra.mxu0 %v5305_v20  ;;  %v5033_v37 = vpop.f32.mrf.mxu2 }
 0x959   :  { %v5182_v25 = vpop.f32.mrf.mxu3  ;;  %v5034_v39 = vadd.f32 %v9861_v49, %v5033_v37 }
 0x95a   :  { %v5183_v62 = vadd.f32 %v5182_v25, %v5014_v27 }
 0x95c   :  { %v5267_v52 = vmax.f32 %v5183_v62, 0.0 }
 0x95d   :  { %v5472_v29 = vpop.f32.mrf.mxu0 }
 0x95e   :  { %v5473_v8 = vadd.f32 %v9704_v38, %v5472_v29 }
 0x960   :  { %5583 = vst [vmem:[#allocation11 + $0x108] sm:$0xff] %v5473_v8  ;;  %v5035_v30 = vpop.f32.mrf.mxu2 }
 0x961   :  { %v5184_v56 = vpop.f32.mrf.mxu3  ;;  %v5036_v29 = vadd.f32 %v9861_v49, %v5035_v30 }
 0x962   :  { %v5185_v41 = vadd.f32 %v5184_v56, %v5016_v35 }
 0x964   :  { %v5268_v1 = vmax.f32 %v5185_v41, 0.0 }
 0x965   :  { %v5475_v2 = vpop.f32.mrf.mxu0 }
 0x966   :  { %v5306_v4 = vpack.c.bf16 %v5268_v1, %v5267_v52  ;;  %v5476_v47 = vadd.f32 %v9704_v38, %v5475_v2  ;;  %v9923_v52 = vld [vmem:[%s9963_s6] ss:$0 sm:$0xff]  ;;  %s7639_s6 = smov [#allocation11]  }
 0x967   :  { %s5618_s1 = sshll.u32 %s7639_s6, 4  ;;  %s5619_s1 = int_to_ptr.vmem [resolvable:$true] %s5618_s1 }
 0x968   :  { %5584 = vst [vmem:[#allocation11 + $0x110] sm:$0xff] %v5476_v47  ;;  %5514 = vmatmul.bf16.gmra.mxu0 %v5306_v4  ;;  %v5038_v25 = vpop.f32.mrf.mxu2 }
 0x969   :  { %v5187_v46 = vpop.f32.mrf.mxu3  ;;  %v5039_v47 = vadd.f32 %v9861_v49, %v5038_v25 }
 0x96a   :  { %v5188_v33 = vadd.f32 %v5187_v46, %v5019_v12 }
 0x96c   :  { %v5269_v31 = vmax.f32 %v5188_v33, 0.0 }
 0x96d   :  { %v5477_v60 = vpop.f32.mrf.mxu0 }
 0x96e   :  { %v5478_v61 = vadd.f32 %v9704_v38, %v5477_v60 }
 0x970   :  { %5585 = vst [vmem:[#allocation11 + $0x118] sm:$0xff] %v5478_v61 }
 0x971   :  { %v5189_v22 = vpop.f32.mrf.mxu3 }
 0x972   :  { %v5190_v19 = vadd.f32 %v5189_v22, %v5021_v42 }
 0x974   :  { %v5270_v9 = vmax.f32 %v5190_v19, 0.0 }
 0x975   :  { %v5480_v53 = vpop.f32.mrf.mxu0 }
 0x976   :  { %v5307_v48 = vpack.c.bf16 %v5270_v9, %v5269_v31  ;;  %v5481_v40 = vadd.f32 %v9704_v38, %v5480_v53 }
 0x978   :  { %5586 = vst [vmem:[#allocation11 + $0x120] sm:$0xff] %v5481_v40  ;;  %5519 = vmatmul.bf16.gmra.mxu0 %v5307_v48 }
 0x979   :  { %v5192_v58 = vpop.f32.mrf.mxu3 }
 0x97a   :  { %v5193_v13 = vadd.f32 %v5192_v58, %v5024_v3 }
 0x97c   :  { %v5271_v14 = vmax.f32 %v5193_v13, 0.0 }
 0x97d   :  { %v5482_v28 = vpop.f32.mrf.mxu0 }
 0x97e   :  { %v5483_v7 = vadd.f32 %v9704_v38, %v5482_v28 }
 0x980   :  { %5587 = vst [vmem:[#allocation11 + $0x128] sm:$0xff] %v5483_v7 }
 0x981   :  { %v5194_v21 = vpop.f32.mrf.mxu3 }
 0x982   :  { %v5195_v15 = vadd.f32 %v5194_v21, %v5026_v44 }
 0x984   :  { %v5272_v17 = vmax.f32 %v5195_v15, 0.0 }
 0x985   :  { %v5485_v59 = vpop.f32.mrf.mxu0 }
 0x986   :  { %v5308_v16 = vpack.c.bf16 %v5272_v17, %v5271_v14  ;;  %v5486_v36 = vadd.f32 %v9704_v38, %v5485_v59 }
 0x988   :  { %5588 = vst [vmem:[#allocation11 + $0x130] sm:$0xff] %v5486_v36  ;;  %5524 = vmatmul.bf16.gmra.mxu0 %v5308_v16 }
 0x989   :  { %v5197_v23 = vpop.f32.mrf.mxu3 }
 0x98a   :  { %v5198_v55 = vadd.f32 %v5197_v23, %v5029_v50 }
 0x98c   :  { %v5273_v43 = vmax.f32 %v5198_v55, 0.0 }
 0x98d   :  { %v5487_v32 = vpop.f32.mrf.mxu0 }
 0x98e   :  { %v5488_v0 = vadd.f32 %v9704_v38, %v5487_v32 }
 0x990   :  { %5589 = vst [vmem:[#allocation11 + $0x138] sm:$0xff] %v5488_v0 }
 0x991   :  { %v5199_v34 = vpop.f32.mrf.mxu3 }
 0x992   :  { %v5200_v10 = vadd.f32 %v5199_v34, %v5031_v57 }
 0x994   :  { %v5274_v26 = vmax.f32 %v5200_v10, 0.0 }
 0x995   :  { %v5490_v24 = vpop.f32.mrf.mxu0 }
 0x996   :  { %v5309_v11 = vpack.c.bf16 %v5274_v26, %v5273_v43  ;;  %v5491_v54 = vadd.f32 %v9704_v38, %v5490_v24 }
 0x998   :  { %5590 = vst [vmem:[#allocation11 + $0x140] sm:$0xff] %v5491_v54  ;;  %5529 = vmatmul.bf16.gmra.mxu0 %v5309_v11 }
 0x999   :  { %v5202_v51 = vpop.f32.mrf.mxu3 }
 0x99a   :  { %v5203_v27 = vadd.f32 %v5202_v51, %v5034_v39 }
 0x99c   :  { %v5275_v62 = vmax.f32 %v5203_v27, 0.0 }
 0x99d   :  { %v5492_v20 = vpop.f32.mrf.mxu0 }
 0x99e   :  { %v5493_v5 = vadd.f32 %v9704_v38, %v5492_v20  ;;  %v5040_v38 = vpop.f32.mrf.mxu2 }
 0x99f   :  { %v5041_v18 = vadd.f32 %v9861_v49, %v5040_v38 }
 0x9a0   :  { %5591 = vst [vmem:[#allocation11 + $0x148] sm:$0xff] %v5493_v5 }
 0x9a1   :  { %v5204_v8 = vpop.f32.mrf.mxu3 }
 0x9a2   :  { %v5205_v35 = vadd.f32 %v5204_v8, %v5036_v29 }
 0x9a4   :  { %v5276_v56 = vmax.f32 %v5205_v35, 0.0 }
 0x9a5   :  { %v5495_v41 = vpop.f32.mrf.mxu0 }
 0x9a6   :  { %v5310_v63 = vpack.c.bf16 %v5276_v56, %v5275_v62  ;;  %v5496_v1 = vadd.f32 %v9923_v52, %v5495_v41  ;;  %v5043_v42 = vpop.f32.mrf.mxu2 }
 0x9a7   :  { %v5044_v45 = vadd.f32 %v9861_v49, %v5043_v42 }
 0x9a8   :  { %5592 = vst [vmem:[#allocation11 + $0x150] sm:$0xff] %v5496_v1  ;;  %5534 = vmatmul.bf16.gmra.mxu0 %v5310_v63 }
 0x9a9   :  { %v5207_v2 = vpop.f32.mrf.mxu3 }
 0x9aa   :  { %v5208_v60 = vadd.f32 %v5207_v2, %v5039_v47 }
 0x9ac   :  { %v5277_v33 = vmax.f32 %v5208_v60, 0.0 }
 0x9ad   :  { %v5497_v4 = vpop.f32.mrf.mxu0 }
 0x9ae   :  { %v5498_v46 = vadd.f32 %v9923_v52, %v5497_v4  ;;  %v5045_v48 = vpop.f32.mrf.mxu2 }
 0x9af   :  { %v5046_v28 = vadd.f32 %v9861_v49, %v5045_v48 }
 0x9b0   :  { %5593 = vst [vmem:[#allocation11 + $0x158] sm:$0xff] %v5498_v46 }
 0x9b1   :  { %v5209_v12 = vpop.f32.mrf.mxu3 }
 0x9b2   :  { %v5210_v61 = vadd.f32 %v5209_v12, %v5041_v18 }
 0x9b4   :  { %v5278_v22 = vmax.f32 %v5210_v61, 0.0 }
 0x9b5   :  { %v5500_v19 = vpop.f32.mrf.mxu0 }
 0x9b6   :  { %v5311_v31 = vpack.c.bf16 %v5278_v22, %v5277_v33  ;;  %v5501_v9 = vadd.f32 %v9923_v52, %v5500_v19 }
 0x9b8   :  { %5594 = vst [vmem:[#allocation11 + $0x160] sm:$0xff] %v5501_v9  ;;  %5539 = vmatmul.bf16.gmra.mxu0 %v5311_v31 }
 0x9b9   :  { %v5212_v53 = vpop.f32.mrf.mxu3 }
 0x9ba   :  { %v5213_v3 = vadd.f32 %v5212_v53, %v5044_v45 }
 0x9bc   :  { %v5279_v13 = vmax.f32 %v5213_v3, 0.0 }
 0x9bd   :  { %v5502_v40 = vpop.f32.mrf.mxu0 }
 0x9be   :  { %v5503_v58 = vadd.f32 %v9923_v52, %v5502_v40 }
 0x9c0   :  { %5595 = vst [vmem:[#allocation11 + $0x168] sm:$0xff] %v5503_v58 }
 0x9c1   :  { %v5214_v7 = vpop.f32.mrf.mxu3 }
 0x9c2   :  { %v5215_v44 = vadd.f32 %v5214_v7, %v5046_v28 }
 0x9c4   :  { %v5280_v6 = vmax.f32 %v5215_v44, 0.0 }
 0x9c5   :  { %v5505_v21 = vpop.f32.mrf.mxu0 }
 0x9c6   :  { %v5312_v15 = vpack.c.bf16 %v5280_v6, %v5279_v13  ;;  %v5506_v14 = vadd.f32 %v9923_v52, %v5505_v21 }
 0x9c8   :  { %5596 = vst [vmem:[#allocation11 + $0x170] sm:$0xff] %v5506_v14  ;;  %5544 = vmatmul.bf16.gmra.mxu0 %v5312_v15 }
 0x9cd   :  { %v5507_v17 = vpop.f32.mrf.mxu0 }
 0x9ce   :  { %v5508_v59 = vadd.f32 %v9923_v52, %v5507_v17 }
 0x9d0   :  { %5597 = vst [vmem:[#allocation11 + $0x178] sm:$0xff] %v5508_v59 }
 0x9d5   :  { %v5510_v16 = vpop.f32.mrf.mxu0 }
 0x9d6   :  { %v5511_v36 = vadd.f32 %v9923_v52, %v5510_v16 }
 0x9d8   :  { %5598 = vst [vmem:[#allocation11 + $0x180] sm:$0xff] %v5511_v36 }
 0x9dd   :  { %v5512_v49 = vpop.f32.mrf.mxu0 }
 0x9de   :  { %v5513_v23 = vadd.f32 %v9923_v52, %v5512_v49 }
 0x9e0   :  { %5599 = vst [vmem:[#allocation11 + $0x188] sm:$0xff] %v5513_v23 }
 0x9e5   :  { %v5515_v37 = vpop.f32.mrf.mxu0 }
 0x9e6   :  { %v5516_v32 = vadd.f32 %v9923_v52, %v5515_v37 }
 0x9e8   :  { %5600 = vst [vmem:[#allocation11 + $0x190] sm:$0xff] %v5516_v32 }
 0x9ed   :  { %v5517_v50 = vpop.f32.mrf.mxu0 }
 0x9ee   :  { %v5518_v0 = vadd.f32 %v9923_v52, %v5517_v50 }
 0x9f0   :  { %5601 = vst [vmem:[#allocation11 + $0x198] sm:$0xff] %v5518_v0 }
 0x9f5   :  { %v5520_v57 = vpop.f32.mrf.mxu0 }
 0x9f6   :  { %v5521_v55 = vadd.f32 %v9923_v52, %v5520_v57 }
 0x9f8   :  { %5602 = vst [vmem:[#allocation11 + $0x1a0] sm:$0xff] %v5521_v55 }
 0x9fd   :  { %v5522_v34 = vpop.f32.mrf.mxu0 }
 0x9fe   :  { %v5523_v10 = vadd.f32 %v9923_v52, %v5522_v34 }
 0xa00   :  { %5603 = vst [vmem:[#allocation11 + $0x1a8] sm:$0xff] %v5523_v10 }
 0xa05   :  { %v5525_v43 = vpop.f32.mrf.mxu0 }
 0xa06   :  { %v5526_v26 = vadd.f32 %v9923_v52, %v5525_v43 }
 0xa08   :  { %5604 = vst [vmem:[#allocation11 + $0x1b0] sm:$0xff] %v5526_v26 }
 0xa0d   :  { %v5527_v30 = vpop.f32.mrf.mxu0 }
 0xa0e   :  { %v5528_v24 = vadd.f32 %v9923_v52, %v5527_v30 }
 0xa10   :  { %5605 = vst [vmem:[#allocation11 + $0x1b8] sm:$0xff] %v5528_v24 }
 0xa15   :  { %v5530_v11 = vpop.f32.mrf.mxu0 }
 0xa16   :  { %v5531_v54 = vadd.f32 %v9923_v52, %v5530_v11 }
 0xa18   :  { %5606 = vst [vmem:[#allocation11 + $0x1c0] sm:$0xff] %v5531_v54 }
 0xa1d   :  { %v5532_v51 = vpop.f32.mrf.mxu0 }
 0xa1e   :  { %v5533_v20 = vadd.f32 %v9923_v52, %v5532_v51 }
 0xa20   :  { %5607 = vst [vmem:[#allocation11 + $0x1c8] sm:$0xff] %v5533_v20 }
 0xa25   :  { %v5535_v39 = vpop.f32.mrf.mxu0 }
 0xa26   :  { %v5536_v5 = vadd.f32 %v9923_v52, %v5535_v39 }
 0xa28   :  { %5608 = vst [vmem:[#allocation11 + $0x1d0] sm:$0xff] %v5536_v5 }
 0xa2d   :  { %v5537_v25 = vpop.f32.mrf.mxu0 }
 0xa2e   :  { %v5538_v29 = vadd.f32 %v9923_v52, %v5537_v25 }
 0xa30   :  { %5609 = vst [vmem:[#allocation11 + $0x1d8] sm:$0xff] %v5538_v29 }
 0xa35   :  { %v5540_v27 = vpop.f32.mrf.mxu0 }
 0xa36   :  { %v5541_v8 = vadd.f32 %v9923_v52, %v5540_v27 }
 0xa38   :  { %5610 = vst [vmem:[#allocation11 + $0x1e0] sm:$0xff] %v5541_v8 }
 0xa3d   :  { %v5542_v35 = vpop.f32.mrf.mxu0 }
 0xa3e   :  { %v5543_v62 = vadd.f32 %v9923_v52, %v5542_v35 }
 0xa40   :  { %5611 = vst [vmem:[#allocation11 + $0x1e8] sm:$0xff] %v5543_v62 }
 0xa45   :  { %v5545_v56 = vpop.f32.mrf.mxu0 }
 0xa46   :  { %v5546_v41 = vadd.f32 %v9923_v52, %v5545_v56 }
 0xa48   :  { %5612 = vst [vmem:[#allocation11 + $0x1f0] sm:$0xff] %v5546_v41 }
 0xa4d   :  { %v5547_v63 = vpop.f32.mrf.mxu0 }
 0xa4e   :  { %v5548_v1 = vadd.f32 %v9923_v52, %v5547_v63 }
 0xa50   :  { %5613 = vst [vmem:[#allocation11 + $0x1f8] sm:$0xff] %v5548_v1 }
 0xa51   :  { %5626 = dma.vmem_to_hbm [thread:$0]  %s5619_s1, 8192, %s5621_s15, [#allocation4], %s7629_s9, %s7629_s9, %s7630_s10  }
 0xa52   :  { %7626 = dma.done.wait [#allocation4], 8192  }
 0xa53   :  { %7627 = vsyncadd [#allocation4], 4294959104 }
 0xa54   :  { %5631 = vsyncpa [#allocation3], 1 }
 0xa55   :  { %5632 = vsyncpa [#allocation6], 1 }
 0xa56   :  { %5633 = vsyncpa [#allocation9], 1 }
 0xa57   :  { %5634 = vsyncpa [#allocation4], 1 }

</bundles_post_ra>
